<compile_context>
chip_gen: v7x
topology: tpu7x:2x2x1
jax: 0.10.0
libtpu: 0.0.40
codegen_flags: <defaults>
</compile_context>

<pallas_src>
import functools

import jax
import jax.numpy as jnp
from jax import lax
from jax.experimental import pallas as pl
from jax.experimental.pallas import tpu as pltpu


# ----------------------------------------------------------------------------
# In-kernel GroupNorm on a (M, C) = (nb*hw, C) activation matrix (loop-free).
# Per-channel stats are mixed into per-group stats with a tiny (C, C) matmul.
# ----------------------------------------------------------------------------
def _group_norm(x2d, gmix, gamma, beta, nb, hw, eps=1e-5):
    C = x2d.shape[-1]
    x3 = x2d.reshape(nb, hw, C)
    mu_c = jnp.mean(x3, axis=1)                         # (nb, C)  E[x] per channel
    m2_c = jnp.mean(x3 * x3, axis=1)                    # (nb, C)  E[x^2] per channel
    mu_g = jnp.dot(mu_c, gmix, preferred_element_type=jnp.float32)
    m2_g = jnp.dot(m2_c, gmix, preferred_element_type=jnp.float32)
    var = m2_g - mu_g * mu_g                            # stats kept in f32
    inv = lax.rsqrt(var + eps)
    xn = (x3 - mu_g[:, None, :]) * inv[:, None, :]
    return xn.reshape(nb * hw, C) * gamma + beta


# ----------------------------------------------------------------------------
# Fused kernel: seq_block ConvGRU steps + sub-pixel ConvTranspose2d + LeakyReLU
# per grid point.  grid = (batch_blocks, seq_blocks); hidden-state im2col is
# carried across grid steps in VMEM scratch.
# ----------------------------------------------------------------------------
def _decoder_kernel(h0cols_ref, xcols_ref,
                    wx1_ref, wh1_ref, b1_ref, g1_ref, be1_ref, gm1_ref,
                    wx2_ref, wrh_ref, b2_ref, g2_ref, be2_ref, gm2_ref,
                    wd_ref, bd_ref,
                    out_ref,
                    padscr, hcols_scr,
                    *, K, P, H, W, Cf, Cout, Tc, ss, neg_slope):
    Bblk = padscr.shape[0]
    HW = H * W
    M = Bblk * HW
    taps = [(ky, kx) for ky in range(K) for kx in range(K)]
    ctr = (K * K) // 2                       # centre tap == unshifted h

    # NOTE: correctness of the recurrence relies on grid=(batch, seq) with the seq
    # axis INNERMOST (Pallas iterates the last grid axis fastest), so that
    # pl.program_id(1)==0 re-initialises the carried state for every batch block.
    @pl.when(pl.program_id(1) == 0)
    def _init():
        # The border of padscr is the implicit zero padding of the 3x3 convs and
        # the deconv halo; it is written once here and never touched again.
        padscr[...] = jnp.zeros_like(padscr)
        hcols_scr[...] = h0cols_ref[...].reshape(M, K * K * Cf)

    def slab(ky, kx):
        # Slice straight from the ref per tap (no full padded-buffer load).
        return padscr[:, ky:ky + H, kx:kx + W, :].reshape(M, Cf)

    hcols = hcols_scr[...]                   # (M, K*K*Cf) im2col of h_prev, f32

    for tau in range(Tc):
        xc = xcols_ref[tau].reshape(M, -1).astype(jnp.float32)    # (M, K*K*Cin)

        # ---- gates z|r: two fat MXU dots (x part + carried h im2col) ----
        acc_zr = (jnp.dot(xc, wx1_ref[...], preferred_element_type=jnp.float32)
                  + jnp.dot(hcols, wh1_ref[...], preferred_element_type=jnp.float32)
                  + b1_ref[...])
        gates = _group_norm(acc_zr, gm1_ref[...], g1_ref[...], be1_ref[...],
                            Bblk, HW)
        z = jax.nn.sigmoid(gates[:, :Cf])
        r = jax.nn.sigmoid(gates[:, Cf:])
        h_prev = hcols[:, ctr * Cf:(ctr + 1) * Cf]

        # ---- candidate: x part (fat dot) + tap-accumulated r*h part ----
        cand = (jnp.dot(xc, wx2_ref[...], preferred_element_type=jnp.float32)
                + b2_ref[...])
        padscr[:, P:P + H, P:P + W, :] = (r * h_prev).reshape(Bblk, H, W, Cf)
        for ti, (ky, kx) in enumerate(taps):
            cand = cand + jnp.dot(slab(ky, kx), wrh_ref[ti],
                                  preferred_element_type=jnp.float32)
        ht = jnp.tanh(_group_norm(cand, gm2_ref[...], g2_ref[...], be2_ref[...],
                                  Bblk, HW))
        h_next = (1.0 - z) * h_prev + z * ht

        # ---- build the h_next im2col ONCE: consumed by the deconv now and by
        #      the gate dot of the next step (carried via hcols_scr) ----
        padscr[:, P:P + H, P:P + W, :] = h_next.reshape(Bblk, H, W, Cf)
        hcols = jnp.concatenate([slab(ky, kx) for ky, kx in taps], axis=-1)

        # ---- fused sub-pixel ConvTranspose2d + LeakyReLU: one bf16 MXU dot
        #      producing all sxs output phases (columns ordered [a, b, cout]) ----
        y = jnp.dot(hcols.astype(jnp.bfloat16), wd_ref[...],
                    preferred_element_type=jnp.float32) + bd_ref[...]
        y = jnp.where(y >= 0, y, neg_slope * y)
        out_ref[tau] = y.reshape(Bblk, HW, ss * Cout).astype(out_ref.dtype)

    hcols_scr[...] = hcols


# ----------------------------------------------------------------------------
# Wrapper: layout / weight prep (pure JAX glue) + the single pallas_call.
# ----------------------------------------------------------------------------
def conv_gru_decoder_forward(x, h_state, params, *, filter_size, deconv_k,
                             deconv_s, deconv_p, neg_slope=0.2,
                             seq_block=2, batch_blocks=1):
    w1, b1, g1, be1, w2, b2, g2, be2, wd, bd = params
    S, B, Cin, H, W = x.shape
    Cf = h_state.shape[1]
    Cout = wd.shape[1]
    K = filter_size
    P = (K - 1) // 2
    HW = H * W
    s, Kd, pdc = deconv_s, deconv_k, deconv_p
    f32 = jnp.float32

    assert Cf % 32 == 0, "GroupNorm(C//32, C) requires num_features % 32 == 0"
    assert Kd - 2 * pdc == s, "sub-pixel deconv assumes an exact x-s upsampling ConvTranspose2d"
    for a in range(s):                       # every deconv tap must fit the conv halo
        for ky in range(Kd):
            if (a + pdc - ky) % s == 0:
                assert abs((a + pdc - ky) // s) <= P, "deconv taps exceed the conv halo"
    # TODO(synk): generalise the sub-pixel deconv to halos larger than the GRU padding.

    groups1 = (2 * Cf) // 32
    groups2 = Cf // 32
    taps = [(ky, kx) for ky in range(K) for kx in range(K)]

    # ---- x im2col precomputed outside the kernel (x is not recurrent) ----
    x_nhwc = jnp.transpose(x, (0, 1, 3, 4, 2)).astype(f32)
    xpad = jnp.pad(x_nhwc, ((0, 0), (0, 0), (P, P), (P, P), (0, 0)))
    xcols = jnp.concatenate([xpad[:, :, ky:ky + H, kx:kx + W, :] for ky, kx in taps],
                            axis=-1).reshape(S, B, HW, K * K * Cin)
    xcols = xcols.astype(jnp.bfloat16)       # matmul operand only; halves HBM bytes

    # ---- initial hidden-state im2col (consumed once, at t == 0) ----
    h0 = jnp.transpose(h_state, (0, 2, 3, 1)).astype(f32)
    h0pad = jnp.pad(h0, ((0, 0), (P, P), (P, P), (0, 0)))
    h0cols = jnp.concatenate([h0pad[:, ky:ky + H, kx:kx + W, :] for ky, kx in taps],
                             axis=-1).reshape(B, HW, K * K * Cf)

    # ---- gate / candidate weights, split into x-part and h-part ----
    w1_t = jnp.transpose(w1, (2, 3, 1, 0)).astype(f32)   # (K, K, Cin+Cf, 2Cf)
    w2_t = jnp.transpose(w2, (2, 3, 1, 0)).astype(f32)   # (K, K, Cin+Cf, Cf)
    wx1 = w1_t[:, :, :Cin, :].reshape(K * K * Cin, 2 * Cf)
    wh1 = w1_t[:, :, Cin:, :].reshape(K * K * Cf, 2 * Cf)
    wx2 = w2_t[:, :, :Cin, :].reshape(K * K * Cin, Cf)
    wrh = w2_t[:, :, Cin:, :].reshape(K * K, Cf, Cf)      # per-tap (Cf, Cf)

    # ---- GroupNorm group-mixing matrices (channel-mean -> group-mean) ----
    def gmix(C, groups):
        cpg = C // groups
        gi = jnp.arange(C) // cpg
        return jnp.where(gi[:, None] == gi[None, :], 1.0 / cpg, 0.0).astype(f32)

    gm1 = gmix(2 * Cf, groups1)
    gm2 = gmix(Cf, groups2)

    # ---- fused sub-pixel ConvTranspose2d weight: (K*K*Cf, s*s*Cout) ----
    wd_fused = jnp.zeros((K * K * Cf, s * s * Cout), f32)
    for ti, (ky_, kx_) in enumerate(taps):
        dy, dx = ky_ - P, kx_ - P
        for a in range(s):
            kky = a + pdc - s * dy
            if not (0 <= kky < Kd):
                continue
            for b_ in range(s):
                kkx = b_ + pdc - s * dx
                if not (0 <= kkx < Kd):
                    continue
                ph = a * s + b_
                wd_fused = wd_fused.at[ti * Cf:(ti + 1) * Cf,
                                       ph * Cout:(ph + 1) * Cout].set(wd[:, :, kky, kkx])
    wd_fused = wd_fused.astype(jnp.bfloat16)
    bdec = jnp.tile(bd.astype(f32), s * s).reshape(1, s * s * Cout)

    # ---- grid: (batch blocks ["parallel"], seq blocks ["arbitrary"]) ----
    # batch_blocks=1 on single-TensorCore v5e/v6e; on v7x (2 TCs) use 2 only when
    # (B/2)*H*W >= ~256 so each core still fills the MXU M dimension.
    n_bblk = batch_blocks if (batch_blocks > 0 and B % batch_blocks == 0) else 1
    Bblk = B // n_bblk
    Tc = seq_block if (seq_block and S % seq_block == 0) else 1
    M = Bblk * HW
    Hp, Wp = H + 2 * P, W + 2 * P

    kernel = functools.partial(
        _decoder_kernel, K=K, P=P, H=H, W=W, Cf=Cf, Cout=Cout, Tc=Tc,
        ss=s * s, neg_slope=neg_slope)

    def const_spec(shape):
        zeros = (0,) * len(shape)
        return pl.BlockSpec(shape, lambda b, t, _z=zeros: _z)

    out = pl.pallas_call(
        kernel,
        out_shape=jax.ShapeDtypeStruct((S, B, HW, s * s * Cout), f32),
        grid_spec=pltpu.PrefetchScalarGridSpec(
            num_scalar_prefetch=0,
            grid=(n_bblk, S // Tc),          # seq axis LAST (innermost, sequential)
            in_specs=[
                pl.BlockSpec((Bblk, HW, K * K * Cf), lambda b, t: (b, 0, 0)),
                pl.BlockSpec((Tc, Bblk, HW, K * K * Cin), lambda b, t: (t, b, 0, 0)),
                const_spec(wx1.shape), const_spec(wh1.shape),
                const_spec((1, 2 * Cf)), const_spec((1, 2 * Cf)), const_spec((1, 2 * Cf)),
                const_spec(gm1.shape),
                const_spec(wx2.shape), const_spec(wrh.shape),
                const_spec((1, Cf)), const_spec((1, Cf)), const_spec((1, Cf)),
                const_spec(gm2.shape),
                const_spec(wd_fused.shape), const_spec(bdec.shape),
            ],
            out_specs=pl.BlockSpec((Tc, Bblk, HW, s * s * Cout),
                                   lambda b, t: (t, b, 0, 0)),
            scratch_shapes=[
                pltpu.VMEM((Bblk, Hp, Wp, Cf), f32),   # padded r*h / h_next scratch
                pltpu.VMEM((M, K * K * Cf), f32),      # carried h im2col
            ],
        ),
        compiler_params=pltpu.CompilerParams(
            dimension_semantics=("parallel", "arbitrary"),
            vmem_limit_bytes=32 * 1024 * 1024),
    )(h0cols, xcols, wx1, wh1,
      b1.reshape(1, -1).astype(f32), g1.reshape(1, -1).astype(f32),
      be1.reshape(1, -1).astype(f32), gm1,
      wx2, wrh,
      b2.reshape(1, -1).astype(f32), g2.reshape(1, -1).astype(f32),
      be2.reshape(1, -1).astype(f32), gm2,
      wd_fused, bdec)

    # Un-flatten + interleave the sub-pixel phases outside the kernel (XLA-side).
    y = out.reshape(S, B, H, W, s, s, Cout)
    y = jnp.transpose(y, (0, 1, 6, 2, 4, 3, 5))
    return y.reshape(S, B, Cout, s * H, s * W)


# ----------------------------------------------------------------------------
# Pure-JAX reference (PyTorch semantics, NCHW) for verification.
# ----------------------------------------------------------------------------
def reference_forward(x, h_state, raw):
    Cf = h_state.shape[1]
    K = raw["filter_size"]
    pad = (K - 1) // 2

    def conv(inp, w, b):
        o = lax.conv_general_dilated(inp, w, (1, 1), [(pad, pad), (pad, pad)],
                                     dimension_numbers=("NCHW", "OIHW", "NCHW"),
                                     precision=lax.Precision.HIGHEST)
        return o + b.reshape(1, -1, 1, 1)

    def gn(v, gamma, beta, groups, eps=1e-5):
        N, C, H, W = v.shape
        vg = v.reshape(N, groups, C // groups, H, W)
        m = vg.mean(axis=(2, 3, 4), keepdims=True)
        var = ((vg - m) ** 2).mean(axis=(2, 3, 4), keepdims=True)
        vn = ((vg - m) / jnp.sqrt(var + eps)).reshape(N, C, H, W)
        return vn * gamma.reshape(1, -1, 1, 1) + beta.reshape(1, -1, 1, 1)

    h = h_state
    outs = []
    for t in range(x.shape[0]):
        xt = x[t]
        gates = gn(conv(jnp.concatenate([xt, h], axis=1), raw["w1"], raw["b1"]),
                   raw["g1"], raw["be1"], (2 * Cf) // 32)
        z = jax.nn.sigmoid(gates[:, :Cf])
        r = jax.nn.sigmoid(gates[:, Cf:])
        ht = jnp.tanh(gn(conv(jnp.concatenate([xt, r * h], axis=1),
                              raw["w2"], raw["b2"]),
                         raw["g2"], raw["be2"], Cf // 32))
        h = (1 - z) * h + z * ht
        outs.append(h)
    y = jnp.stack(outs)                               # (S, B, Cf, H, W)
    S, B, C, H, W = y.shape
    yf = y.reshape(S * B, C, H, W)

    Kd, s, p = raw["deconv_k"], raw["deconv_s"], raw["deconv_p"]
    w_eff = jnp.transpose(raw["wd"], (1, 0, 2, 3))[:, :, ::-1, ::-1]
    o = lax.conv_general_dilated(yf, w_eff, (1, 1),
                                 [(Kd - 1 - p, Kd - 1 - p), (Kd - 1 - p, Kd - 1 - p)],
                                 lhs_dilation=(s, s),
                                 dimension_numbers=("NCHW", "OIHW", "NCHW"),
                                 precision=lax.Precision.HIGHEST)
    o = o + raw["bd"].reshape(1, -1, 1, 1)
    o = jnp.where(o >= 0, o, 0.2 * o)
    return o.reshape(S, B, o.shape[1], o.shape[2], o.shape[3])


# ----------------------------------------------------------------------------
if __name__ == "__main__":
    # GRU_config = (shape, input_channels, filter_size, num_features, seq_len)
    shape = (8, 8)
    Cin, K, Cf, S, B = 16, 3, 32, 4, 2          # num_features=32 (GroupNorm needs /32)
    deconv_config = (Cf, 16, 4, 2, 1)           # (in, out, kernel, stride, pad)
    Cout, Kd, sd, pdc = (deconv_config[1], deconv_config[2],
                         deconv_config[3], deconv_config[4])

    ks = jax.random.split(jax.random.PRNGKey(0), 12)
    w1 = 0.1 * jax.random.normal(ks[0], (2 * Cf, Cin + Cf, K, K), jnp.float32)
    b1 = 0.1 * jax.random.normal(ks[1], (2 * Cf,), jnp.float32)
    g1 = 1.0 + 0.1 * jax.random.normal(ks[2], (2 * Cf,), jnp.float32)
    be1 = 0.1 * jax.random.normal(ks[3], (2 * Cf,), jnp.float32)
    w2 = 0.1 * jax.random.normal(ks[4], (Cf, Cin + Cf, K, K), jnp.float32)
    b2 = 0.1 * jax.random.normal(ks[5], (Cf,), jnp.float32)
    g2 = 1.0 + 0.1 * jax.random.normal(ks[6], (Cf,), jnp.float32)
    be2 = 0.1 * jax.random.normal(ks[7], (Cf,), jnp.float32)
    wd = 0.1 * jax.random.normal(ks[8], (Cf, Cout, Kd, Kd), jnp.float32)
    bd = 0.1 * jax.random.normal(ks[9], (Cout,), jnp.float32)

    x = jax.random.normal(ks[10], (S, B, Cin, shape[0], shape[1]), jnp.float32)
    h0 = jax.random.normal(ks[11], (B, Cf, shape[0], shape[1]), jnp.float32)

    params = (w1, b1, g1, be1, w2, b2, g2, be2, wd, bd)
    fwd = jax.jit(functools.partial(conv_gru_decoder_forward,
                                    filter_size=K, deconv_k=Kd,
                                    deconv_s=sd, deconv_p=pdc,
                                    seq_block=2, batch_blocks=1))
    out = jax.block_until_ready(fwd(x, h0, params))

    ref = reference_forward(x, h0, dict(w1=w1, b1=b1, g1=g1, be1=be1,
                                        w2=w2, b2=b2, g2=g2, be2=be2,
                                        wd=wd, bd=bd, filter_size=K,
                                        deconv_k=Kd, deconv_s=sd, deconv_p=pdc))
    assert out.shape == (S, B, Cout, 2 * shape[0], 2 * shape[1]), out.shape
    err = float(jnp.max(jnp.abs(out - ref)))
    assert err < 2e-2, f"max abs error vs reference: {err}"
    print("KERNEL_OK")
</pallas_src>

<mosaic_0001>
module attributes {stable_mosaic.version = 11 : i64} {
  func.func @_decoder_kernel(%arg0: i32, %arg1: i32, %arg2: memref<2x64x288xf32, #tpu.memory_space<vmem>>, %arg3: memref<2x2x64x144xbf16, #tpu.memory_space<vmem>>, %arg4: memref<144x64xf32, #tpu.memory_space<vmem>>, %arg5: memref<288x64xf32, #tpu.memory_space<vmem>>, %arg6: memref<1x64xf32, #tpu.memory_space<vmem>>, %arg7: memref<1x64xf32, #tpu.memory_space<vmem>>, %arg8: memref<1x64xf32, #tpu.memory_space<vmem>>, %arg9: memref<64x64xf32, #tpu.memory_space<vmem>>, %arg10: memref<144x32xf32, #tpu.memory_space<vmem>>, %arg11: memref<9x32x32xf32, #tpu.memory_space<vmem>>, %arg12: memref<1x32xf32, #tpu.memory_space<vmem>>, %arg13: memref<1x32xf32, #tpu.memory_space<vmem>>, %arg14: memref<1x32xf32, #tpu.memory_space<vmem>>, %arg15: memref<32x32xf32, #tpu.memory_space<vmem>>, %arg16: memref<288x64xbf16, #tpu.memory_space<vmem>>, %arg17: memref<1x64xf32, #tpu.memory_space<vmem>>, %arg18: memref<2x2x64x64xf32, #tpu.memory_space<vmem>>, %arg19: memref<2x10x10x32xf32, #tpu.memory_space<vmem>>, %arg20: memref<128x288xf32, #tpu.memory_space<vmem>>) attributes {dimension_semantics = [#tpu.dimension_semantics<parallel>, #tpu.dimension_semantics<arbitrary>], iteration_bounds = array<i64: 1, 2>, scalar_prefetch = 0 : i64, scratch_operands = 2 : i64, tpu.core_type = #tpu.core_type<tc>, window_params = [{transform_indices = @transform_0, window_bounds = array<i64: 2, 64, 288>}, {transform_indices = @transform_1, window_bounds = array<i64: 2, 2, 64, 144>}, {pipeline_mode = #tpu.pipeline_mode<synchronous>, transform_indices = @transform_2, window_bounds = array<i64: 144, 64>}, {pipeline_mode = #tpu.pipeline_mode<synchronous>, transform_indices = @transform_3, window_bounds = array<i64: 288, 64>}, {pipeline_mode = #tpu.pipeline_mode<synchronous>, transform_indices = @transform_4, window_bounds = array<i64: 1, 64>}, {pipeline_mode = #tpu.pipeline_mode<synchronous>, transform_indices = @transform_5, window_bounds = array<i64: 1, 64>}, {pipeline_mode = #tpu.pipeline_mode<synchronous>, transform_indices = @transform_6, window_bounds = array<i64: 1, 64>}, {pipeline_mode = #tpu.pipeline_mode<synchronous>, transform_indices = @transform_7, window_bounds = array<i64: 64, 64>}, {pipeline_mode = #tpu.pipeline_mode<synchronous>, transform_indices = @transform_8, window_bounds = array<i64: 144, 32>}, {pipeline_mode = #tpu.pipeline_mode<synchronous>, transform_indices = @transform_9, window_bounds = array<i64: 9, 32, 32>}, {pipeline_mode = #tpu.pipeline_mode<synchronous>, transform_indices = @transform_10, window_bounds = array<i64: 1, 32>}, {pipeline_mode = #tpu.pipeline_mode<synchronous>, transform_indices = @transform_11, window_bounds = array<i64: 1, 32>}, {pipeline_mode = #tpu.pipeline_mode<synchronous>, transform_indices = @transform_12, window_bounds = array<i64: 1, 32>}, {pipeline_mode = #tpu.pipeline_mode<synchronous>, transform_indices = @transform_13, window_bounds = array<i64: 32, 32>}, {pipeline_mode = #tpu.pipeline_mode<synchronous>, transform_indices = @transform_14, window_bounds = array<i64: 288, 64>}, {pipeline_mode = #tpu.pipeline_mode<synchronous>, transform_indices = @transform_15, window_bounds = array<i64: 1, 64>}, {transform_indices = @transform_16, window_bounds = array<i64: 2, 2, 64, 64>}]} {
    %c0_i32 = arith.constant 0 : i32
    %0 = arith.cmpi eq, %arg1, %c0_i32 : i32
    %1 = arith.extui %0 : i1 to i32
    %c0_i32_0 = arith.constant 0 : i32
    %2 = arith.cmpi ne, %1, %c0_i32_0 : i32
    scf.if %2 {
      %cst_341 = arith.constant 0.000000e+00 : f32
      %379 = vector.broadcast %cst_341 : f32 to vector<2x10x10x32xf32>
      %c0_342 = arith.constant 0 : index
      %c0_343 = arith.constant 0 : index
      %c0_344 = arith.constant 0 : index
      %c0_345 = arith.constant 0 : index
      %380 = vector.load %arg19[%c0_342, %c0_343, %c0_344, %c0_345] : memref<2x10x10x32xf32, #tpu.memory_space<vmem>>, vector<2x10x10x32xf32>
      tpu.vector_store %arg19[%c0_342, %c0_343, %c0_344, %c0_345], %379 {strides = array<i32>} : memref<2x10x10x32xf32, #tpu.memory_space<vmem>>, vector<2x10x10x32xf32>,
      %c0_346 = arith.constant 0 : index
      %c0_347 = arith.constant 0 : index
      %c0_348 = arith.constant 0 : index
      %381 = vector.load %arg2[%c0_346, %c0_347, %c0_348] : memref<2x64x288xf32, #tpu.memory_space<vmem>>, vector<2x64x288xf32>
      %382 = vector.shape_cast %381 : vector<2x64x288xf32> to vector<128x288xf32>
      %c0_349 = arith.constant 0 : index
      %c0_350 = arith.constant 0 : index
      %383 = vector.load %arg20[%c0_349, %c0_350] : memref<128x288xf32, #tpu.memory_space<vmem>>, vector<128x288xf32>
      tpu.vector_store %arg20[%c0_349, %c0_350], %382 {strides = array<i32>} : memref<128x288xf32, #tpu.memory_space<vmem>>, vector<128x288xf32>,
    } else {
    }
    %c0 = arith.constant 0 : index
    %c0_1 = arith.constant 0 : index
    %3 = vector.load %arg20[%c0, %c0_1] : memref<128x288xf32, #tpu.memory_space<vmem>>, vector<128x288xf32>
    %c0_2 = arith.constant 0 : index
    %c0_3 = arith.constant 0 : index
    %c0_4 = arith.constant 0 : index
    %c0_5 = arith.constant 0 : index
    %4 = vector.load %arg3[%c0_2, %c0_3, %c0_4, %c0_5] : memref<2x2x64x144xbf16, #tpu.memory_space<vmem>>, vector<1x2x64x144xbf16>
    %5 = vector.shape_cast %4 : vector<1x2x64x144xbf16> to vector<2x64x144xbf16>
    %6 = vector.shape_cast %5 : vector<2x64x144xbf16> to vector<128x144xbf16>
    %7 = arith.extf %6 : vector<128x144xbf16> to vector<128x144xf32>
    %c0_6 = arith.constant 0 : index
    %c0_7 = arith.constant 0 : index
    %8 = vector.load %arg4[%c0_6, %c0_7] : memref<144x64xf32, #tpu.memory_space<vmem>>, vector<144x64xf32>
    %cst = arith.constant dense<0.000000e+00> : vector<128x64xf32>
    %9 = tpu.matmul %7, %8, %cst {dimension_numbers = #tpu.dot_dimension_numbers<[1], [0], [0], [1], [0, 0, 1, 1], [], []>} : vector<128x144xf32>, vector<144x64xf32>, vector<128x64xf32> -> vector<128x64xf32>
    %c0_8 = arith.constant 0 : index
    %c0_9 = arith.constant 0 : index
    %10 = vector.load %arg5[%c0_8, %c0_9] : memref<288x64xf32, #tpu.memory_space<vmem>>, vector<288x64xf32>
    %cst_10 = arith.constant dense<0.000000e+00> : vector<128x64xf32>
    %11 = tpu.matmul %3, %10, %cst_10 {dimension_numbers = #tpu.dot_dimension_numbers<[1], [0], [0], [1], [0, 0, 1, 1], [], []>} : vector<128x288xf32>, vector<288x64xf32>, vector<128x64xf32> -> vector<128x64xf32>
    %12 = arith.addf %9, %11 : vector<128x64xf32>
    %c0_11 = arith.constant 0 : index
    %c0_12 = arith.constant 0 : index
    %13 = vector.load %arg6[%c0_11, %c0_12] : memref<1x64xf32, #tpu.memory_space<vmem>>, vector<1x64xf32>
    %14 = vector.broadcast %13 : vector<1x64xf32> to vector<128x64xf32>
    %15 = arith.addf %12, %14 : vector<128x64xf32>
    %c0_13 = arith.constant 0 : index
    %c0_14 = arith.constant 0 : index
    %16 = vector.load %arg9[%c0_13, %c0_14] : memref<64x64xf32, #tpu.memory_space<vmem>>, vector<64x64xf32>
    %c0_15 = arith.constant 0 : index
    %c0_16 = arith.constant 0 : index
    %17 = vector.load %arg7[%c0_15, %c0_16] : memref<1x64xf32, #tpu.memory_space<vmem>>, vector<1x64xf32>
    %c0_17 = arith.constant 0 : index
    %c0_18 = arith.constant 0 : index
    %18 = vector.load %arg8[%c0_17, %c0_18] : memref<1x64xf32, #tpu.memory_space<vmem>>, vector<1x64xf32>
    %19 = vector.shape_cast %15 : vector<128x64xf32> to vector<2x64x64xf32>
    %cst_19 = arith.constant dense<0.000000e+00> : vector<2x64xf32>
    %20 = vector.multi_reduction <add>, %19, %cst_19 [1] : vector<2x64x64xf32> to vector<2x64xf32>
    %cst_20 = arith.constant 6.400000e+01 : f32
    %21 = vector.broadcast %cst_20 : f32 to vector<2x64xf32>
    %22 = arith.divf %20, %21 : vector<2x64xf32>
    %23 = arith.mulf %19, %19 : vector<2x64x64xf32>
    %cst_21 = arith.constant dense<0.000000e+00> : vector<2x64xf32>
    %24 = vector.multi_reduction <add>, %23, %cst_21 [1] : vector<2x64x64xf32> to vector<2x64xf32>
    %cst_22 = arith.constant 6.400000e+01 : f32
    %25 = vector.broadcast %cst_22 : f32 to vector<2x64xf32>
    %26 = arith.divf %24, %25 : vector<2x64xf32>
    %cst_23 = arith.constant dense<0.000000e+00> : vector<2x64xf32>
    %27 = tpu.matmul %22, %16, %cst_23 {dimension_numbers = #tpu.dot_dimension_numbers<[1], [0], [0], [1], [0, 0, 1, 1], [], []>} : vector<2x64xf32>, vector<64x64xf32>, vector<2x64xf32> -> vector<2x64xf32>
    %cst_24 = arith.constant dense<0.000000e+00> : vector<2x64xf32>
    %28 = tpu.matmul %26, %16, %cst_24 {dimension_numbers = #tpu.dot_dimension_numbers<[1], [0], [0], [1], [0, 0, 1, 1], [], []>} : vector<2x64xf32>, vector<64x64xf32>, vector<2x64xf32> -> vector<2x64xf32>
    %29 = arith.mulf %27, %27 : vector<2x64xf32>
    %30 = arith.subf %28, %29 : vector<2x64xf32>
    %cst_25 = arith.constant 9.99999974E-6 : f32
    %31 = vector.broadcast %cst_25 : f32 to vector<2x64xf32>
    %32 = arith.addf %30, %31 : vector<2x64xf32>
    %33 = math.rsqrt %32 : vector<2x64xf32>
    %34 = vector.shape_cast %27 : vector<2x64xf32> to vector<2x1x64xf32>
    %35 = vector.broadcast %34 : vector<2x1x64xf32> to vector<2x64x64xf32>
    %36 = arith.subf %19, %35 : vector<2x64x64xf32>
    %37 = vector.shape_cast %33 : vector<2x64xf32> to vector<2x1x64xf32>
    %38 = vector.broadcast %37 : vector<2x1x64xf32> to vector<2x64x64xf32>
    %39 = arith.mulf %36, %38 : vector<2x64x64xf32>
    %40 = vector.shape_cast %39 : vector<2x64x64xf32> to vector<128x64xf32>
    %41 = vector.broadcast %17 : vector<1x64xf32> to vector<128x64xf32>
    %42 = arith.mulf %40, %41 : vector<128x64xf32>
    %43 = vector.broadcast %18 : vector<1x64xf32> to vector<128x64xf32>
    %44 = arith.addf %42, %43 : vector<128x64xf32>
    %45 = vector.extract_strided_slice %44 {offsets = [0, 0], sizes = [128, 32], strides = [1, 1]} : vector<128x64xf32> to vector<128x32xf32>
    %46 = arith.negf %45 : vector<128x32xf32>
    %47 = math.exp %46 : vector<128x32xf32>
    %cst_26 = arith.constant 1.000000e+00 : f32
    %48 = vector.broadcast %cst_26 : f32 to vector<128x32xf32>
    %49 = arith.addf %48, %47 : vector<128x32xf32>
    %50 = arith.divf %48, %49 : vector<128x32xf32>
    %51 = vector.extract_strided_slice %44 {offsets = [0, 32], sizes = [128, 32], strides = [1, 1]} : vector<128x64xf32> to vector<128x32xf32>
    %52 = arith.negf %51 : vector<128x32xf32>
    %53 = math.exp %52 : vector<128x32xf32>
    %cst_27 = arith.constant 1.000000e+00 : f32
    %54 = vector.broadcast %cst_27 : f32 to vector<128x32xf32>
    %55 = arith.addf %54, %53 : vector<128x32xf32>
    %56 = arith.divf %54, %55 : vector<128x32xf32>
    %57 = vector.extract_strided_slice %3 {offsets = [0, 128], sizes = [128, 32], strides = [1, 1]} : vector<128x288xf32> to vector<128x32xf32>
    %c0_28 = arith.constant 0 : index
    %c0_29 = arith.constant 0 : index
    %58 = vector.load %arg10[%c0_28, %c0_29] : memref<144x32xf32, #tpu.memory_space<vmem>>, vector<144x32xf32>
    %cst_30 = arith.constant dense<0.000000e+00> : vector<128x32xf32>
    %59 = tpu.matmul %7, %58, %cst_30 {dimension_numbers = #tpu.dot_dimension_numbers<[1], [0], [0], [1], [0, 0, 1, 1], [], []>} : vector<128x144xf32>, vector<144x32xf32>, vector<128x32xf32> -> vector<128x32xf32>
    %c0_31 = arith.constant 0 : index
    %c0_32 = arith.constant 0 : index
    %60 = vector.load %arg12[%c0_31, %c0_32] : memref<1x32xf32, #tpu.memory_space<vmem>>, vector<1x32xf32>
    %61 = vector.broadcast %60 : vector<1x32xf32> to vector<128x32xf32>
    %62 = arith.addf %59, %61 : vector<128x32xf32>
    %63 = arith.mulf %56, %57 : vector<128x32xf32>
    %64 = vector.shape_cast %63 : vector<128x32xf32> to vector<2x8x8x32xf32>
    %c0_33 = arith.constant 0 : index
    %c1 = arith.constant 1 : index
    %c1_34 = arith.constant 1 : index
    %c0_35 = arith.constant 0 : index
    %65 = vector.load %arg19[%c0_33, %c1, %c1_34, %c0_35] : memref<2x10x10x32xf32, #tpu.memory_space<vmem>>, vector<2x8x8x32xf32>
    tpu.vector_store %arg19[%c0_33, %c1, %c1_34, %c0_35], %64 {strides = array<i32>} : memref<2x10x10x32xf32, #tpu.memory_space<vmem>>, vector<2x8x8x32xf32>,
    %c0_36 = arith.constant 0 : index
    %c0_37 = arith.constant 0 : index
    %c0_38 = arith.constant 0 : index
    %c0_39 = arith.constant 0 : index
    %66 = vector.load %arg19[%c0_36, %c0_37, %c0_38, %c0_39] : memref<2x10x10x32xf32, #tpu.memory_space<vmem>>, vector<2x8x8x32xf32>
    %67 = vector.shape_cast %66 : vector<2x8x8x32xf32> to vector<128x32xf32>
    %c0_40 = arith.constant 0 : index
    %c0_41 = arith.constant 0 : index
    %c0_42 = arith.constant 0 : index
    %68 = vector.load %arg11[%c0_40, %c0_41, %c0_42] : memref<9x32x32xf32, #tpu.memory_space<vmem>>, vector<1x32x32xf32>
    %69 = vector.shape_cast %68 : vector<1x32x32xf32> to vector<32x32xf32>
    %cst_43 = arith.constant dense<0.000000e+00> : vector<128x32xf32>
    %70 = tpu.matmul %67, %69, %cst_43 {dimension_numbers = #tpu.dot_dimension_numbers<[1], [0], [0], [1], [0, 0, 1, 1], [], []>} : vector<128x32xf32>, vector<32x32xf32>, vector<128x32xf32> -> vector<128x32xf32>
    %71 = arith.addf %62, %70 : vector<128x32xf32>
    %c0_44 = arith.constant 0 : index
    %c0_45 = arith.constant 0 : index
    %c1_46 = arith.constant 1 : index
    %c0_47 = arith.constant 0 : index
    %72 = vector.load %arg19[%c0_44, %c0_45, %c1_46, %c0_47] : memref<2x10x10x32xf32, #tpu.memory_space<vmem>>, vector<2x8x8x32xf32>
    %73 = vector.shape_cast %72 : vector<2x8x8x32xf32> to vector<128x32xf32>
    %c1_48 = arith.constant 1 : index
    %c0_49 = arith.constant 0 : index
    %c0_50 = arith.constant 0 : index
    %74 = vector.load %arg11[%c1_48, %c0_49, %c0_50] : memref<9x32x32xf32, #tpu.memory_space<vmem>>, vector<1x32x32xf32>
    %75 = vector.shape_cast %74 : vector<1x32x32xf32> to vector<32x32xf32>
    %cst_51 = arith.constant dense<0.000000e+00> : vector<128x32xf32>
    %76 = tpu.matmul %73, %75, %cst_51 {dimension_numbers = #tpu.dot_dimension_numbers<[1], [0], [0], [1], [0, 0, 1, 1], [], []>} : vector<128x32xf32>, vector<32x32xf32>, vector<128x32xf32> -> vector<128x32xf32>
    %77 = arith.addf %71, %76 : vector<128x32xf32>
    %c0_52 = arith.constant 0 : index
    %c0_53 = arith.constant 0 : index
    %c2 = arith.constant 2 : index
    %c0_54 = arith.constant 0 : index
    %78 = vector.load %arg19[%c0_52, %c0_53, %c2, %c0_54] : memref<2x10x10x32xf32, #tpu.memory_space<vmem>>, vector<2x8x8x32xf32>
    %79 = vector.shape_cast %78 : vector<2x8x8x32xf32> to vector<128x32xf32>
    %c2_55 = arith.constant 2 : index
    %c0_56 = arith.constant 0 : index
    %c0_57 = arith.constant 0 : index
    %80 = vector.load %arg11[%c2_55, %c0_56, %c0_57] : memref<9x32x32xf32, #tpu.memory_space<vmem>>, vector<1x32x32xf32>
    %81 = vector.shape_cast %80 : vector<1x32x32xf32> to vector<32x32xf32>
    %cst_58 = arith.constant dense<0.000000e+00> : vector<128x32xf32>
    %82 = tpu.matmul %79, %81, %cst_58 {dimension_numbers = #tpu.dot_dimension_numbers<[1], [0], [0], [1], [0, 0, 1, 1], [], []>} : vector<128x32xf32>, vector<32x32xf32>, vector<128x32xf32> -> vector<128x32xf32>
    %83 = arith.addf %77, %82 : vector<128x32xf32>
    %c0_59 = arith.constant 0 : index
    %c1_60 = arith.constant 1 : index
    %c0_61 = arith.constant 0 : index
    %c0_62 = arith.constant 0 : index
    %84 = vector.load %arg19[%c0_59, %c1_60, %c0_61, %c0_62] : memref<2x10x10x32xf32, #tpu.memory_space<vmem>>, vector<2x8x8x32xf32>
    %85 = vector.shape_cast %84 : vector<2x8x8x32xf32> to vector<128x32xf32>
    %c3 = arith.constant 3 : index
    %c0_63 = arith.constant 0 : index
    %c0_64 = arith.constant 0 : index
    %86 = vector.load %arg11[%c3, %c0_63, %c0_64] : memref<9x32x32xf32, #tpu.memory_space<vmem>>, vector<1x32x32xf32>
    %87 = vector.shape_cast %86 : vector<1x32x32xf32> to vector<32x32xf32>
    %cst_65 = arith.constant dense<0.000000e+00> : vector<128x32xf32>
    %88 = tpu.matmul %85, %87, %cst_65 {dimension_numbers = #tpu.dot_dimension_numbers<[1], [0], [0], [1], [0, 0, 1, 1], [], []>} : vector<128x32xf32>, vector<32x32xf32>, vector<128x32xf32> -> vector<128x32xf32>
    %89 = arith.addf %83, %88 : vector<128x32xf32>
    %c0_66 = arith.constant 0 : index
    %c1_67 = arith.constant 1 : index
    %c1_68 = arith.constant 1 : index
    %c0_69 = arith.constant 0 : index
    %90 = vector.load %arg19[%c0_66, %c1_67, %c1_68, %c0_69] : memref<2x10x10x32xf32, #tpu.memory_space<vmem>>, vector<2x8x8x32xf32>
    %91 = vector.shape_cast %90 : vector<2x8x8x32xf32> to vector<128x32xf32>
    %c4 = arith.constant 4 : index
    %c0_70 = arith.constant 0 : index
    %c0_71 = arith.constant 0 : index
    %92 = vector.load %arg11[%c4, %c0_70, %c0_71] : memref<9x32x32xf32, #tpu.memory_space<vmem>>, vector<1x32x32xf32>
    %93 = vector.shape_cast %92 : vector<1x32x32xf32> to vector<32x32xf32>
    %cst_72 = arith.constant dense<0.000000e+00> : vector<128x32xf32>
    %94 = tpu.matmul %91, %93, %cst_72 {dimension_numbers = #tpu.dot_dimension_numbers<[1], [0], [0], [1], [0, 0, 1, 1], [], []>} : vector<128x32xf32>, vector<32x32xf32>, vector<128x32xf32> -> vector<128x32xf32>
    %95 = arith.addf %89, %94 : vector<128x32xf32>
    %c0_73 = arith.constant 0 : index
    %c1_74 = arith.constant 1 : index
    %c2_75 = arith.constant 2 : index
    %c0_76 = arith.constant 0 : index
    %96 = vector.load %arg19[%c0_73, %c1_74, %c2_75, %c0_76] : memref<2x10x10x32xf32, #tpu.memory_space<vmem>>, vector<2x8x8x32xf32>
    %97 = vector.shape_cast %96 : vector<2x8x8x32xf32> to vector<128x32xf32>
    %c5 = arith.constant 5 : index
    %c0_77 = arith.constant 0 : index
    %c0_78 = arith.constant 0 : index
    %98 = vector.load %arg11[%c5, %c0_77, %c0_78] : memref<9x32x32xf32, #tpu.memory_space<vmem>>, vector<1x32x32xf32>
    %99 = vector.shape_cast %98 : vector<1x32x32xf32> to vector<32x32xf32>
    %cst_79 = arith.constant dense<0.000000e+00> : vector<128x32xf32>
    %100 = tpu.matmul %97, %99, %cst_79 {dimension_numbers = #tpu.dot_dimension_numbers<[1], [0], [0], [1], [0, 0, 1, 1], [], []>} : vector<128x32xf32>, vector<32x32xf32>, vector<128x32xf32> -> vector<128x32xf32>
    %101 = arith.addf %95, %100 : vector<128x32xf32>
    %c0_80 = arith.constant 0 : index
    %c2_81 = arith.constant 2 : index
    %c0_82 = arith.constant 0 : index
    %c0_83 = arith.constant 0 : index
    %102 = vector.load %arg19[%c0_80, %c2_81, %c0_82, %c0_83] : memref<2x10x10x32xf32, #tpu.memory_space<vmem>>, vector<2x8x8x32xf32>
    %103 = vector.shape_cast %102 : vector<2x8x8x32xf32> to vector<128x32xf32>
    %c6 = arith.constant 6 : index
    %c0_84 = arith.constant 0 : index
    %c0_85 = arith.constant 0 : index
    %104 = vector.load %arg11[%c6, %c0_84, %c0_85] : memref<9x32x32xf32, #tpu.memory_space<vmem>>, vector<1x32x32xf32>
    %105 = vector.shape_cast %104 : vector<1x32x32xf32> to vector<32x32xf32>
    %cst_86 = arith.constant dense<0.000000e+00> : vector<128x32xf32>
    %106 = tpu.matmul %103, %105, %cst_86 {dimension_numbers = #tpu.dot_dimension_numbers<[1], [0], [0], [1], [0, 0, 1, 1], [], []>} : vector<128x32xf32>, vector<32x32xf32>, vector<128x32xf32> -> vector<128x32xf32>
    %107 = arith.addf %101, %106 : vector<128x32xf32>
    %c0_87 = arith.constant 0 : index
    %c2_88 = arith.constant 2 : index
    %c1_89 = arith.constant 1 : index
    %c0_90 = arith.constant 0 : index
    %108 = vector.load %arg19[%c0_87, %c2_88, %c1_89, %c0_90] : memref<2x10x10x32xf32, #tpu.memory_space<vmem>>, vector<2x8x8x32xf32>
    %109 = vector.shape_cast %108 : vector<2x8x8x32xf32> to vector<128x32xf32>
    %c7 = arith.constant 7 : index
    %c0_91 = arith.constant 0 : index
    %c0_92 = arith.constant 0 : index
    %110 = vector.load %arg11[%c7, %c0_91, %c0_92] : memref<9x32x32xf32, #tpu.memory_space<vmem>>, vector<1x32x32xf32>
    %111 = vector.shape_cast %110 : vector<1x32x32xf32> to vector<32x32xf32>
    %cst_93 = arith.constant dense<0.000000e+00> : vector<128x32xf32>
    %112 = tpu.matmul %109, %111, %cst_93 {dimension_numbers = #tpu.dot_dimension_numbers<[1], [0], [0], [1], [0, 0, 1, 1], [], []>} : vector<128x32xf32>, vector<32x32xf32>, vector<128x32xf32> -> vector<128x32xf32>
    %113 = arith.addf %107, %112 : vector<128x32xf32>
    %c0_94 = arith.constant 0 : index
    %c2_95 = arith.constant 2 : index
    %c2_96 = arith.constant 2 : index
    %c0_97 = arith.constant 0 : index
    %114 = vector.load %arg19[%c0_94, %c2_95, %c2_96, %c0_97] : memref<2x10x10x32xf32, #tpu.memory_space<vmem>>, vector<2x8x8x32xf32>
    %115 = vector.shape_cast %114 : vector<2x8x8x32xf32> to vector<128x32xf32>
    %c8 = arith.constant 8 : index
    %c0_98 = arith.constant 0 : index
    %c0_99 = arith.constant 0 : index
    %116 = vector.load %arg11[%c8, %c0_98, %c0_99] : memref<9x32x32xf32, #tpu.memory_space<vmem>>, vector<1x32x32xf32>
    %117 = vector.shape_cast %116 : vector<1x32x32xf32> to vector<32x32xf32>
    %cst_100 = arith.constant dense<0.000000e+00> : vector<128x32xf32>
    %118 = tpu.matmul %115, %117, %cst_100 {dimension_numbers = #tpu.dot_dimension_numbers<[1], [0], [0], [1], [0, 0, 1, 1], [], []>} : vector<128x32xf32>, vector<32x32xf32>, vector<128x32xf32> -> vector<128x32xf32>
    %119 = arith.addf %113, %118 : vector<128x32xf32>
    %c0_101 = arith.constant 0 : index
    %c0_102 = arith.constant 0 : index
    %120 = vector.load %arg15[%c0_101, %c0_102] : memref<32x32xf32, #tpu.memory_space<vmem>>, vector<32x32xf32>
    %c0_103 = arith.constant 0 : index
    %c0_104 = arith.constant 0 : index
    %121 = vector.load %arg13[%c0_103, %c0_104] : memref<1x32xf32, #tpu.memory_space<vmem>>, vector<1x32xf32>
    %c0_105 = arith.constant 0 : index
    %c0_106 = arith.constant 0 : index
    %122 = vector.load %arg14[%c0_105, %c0_106] : memref<1x32xf32, #tpu.memory_space<vmem>>, vector<1x32xf32>
    %123 = vector.shape_cast %119 : vector<128x32xf32> to vector<2x64x32xf32>
    %cst_107 = arith.constant dense<0.000000e+00> : vector<2x32xf32>
    %124 = vector.multi_reduction <add>, %123, %cst_107 [1] : vector<2x64x32xf32> to vector<2x32xf32>
    %cst_108 = arith.constant 6.400000e+01 : f32
    %125 = vector.broadcast %cst_108 : f32 to vector<2x32xf32>
    %126 = arith.divf %124, %125 : vector<2x32xf32>
    %127 = arith.mulf %123, %123 : vector<2x64x32xf32>
    %cst_109 = arith.constant dense<0.000000e+00> : vector<2x32xf32>
    %128 = vector.multi_reduction <add>, %127, %cst_109 [1] : vector<2x64x32xf32> to vector<2x32xf32>
    %cst_110 = arith.constant 6.400000e+01 : f32
    %129 = vector.broadcast %cst_110 : f32 to vector<2x32xf32>
    %130 = arith.divf %128, %129 : vector<2x32xf32>
    %cst_111 = arith.constant dense<0.000000e+00> : vector<2x32xf32>
    %131 = tpu.matmul %126, %120, %cst_111 {dimension_numbers = #tpu.dot_dimension_numbers<[1], [0], [0], [1], [0, 0, 1, 1], [], []>} : vector<2x32xf32>, vector<32x32xf32>, vector<2x32xf32> -> vector<2x32xf32>
    %cst_112 = arith.constant dense<0.000000e+00> : vector<2x32xf32>
    %132 = tpu.matmul %130, %120, %cst_112 {dimension_numbers = #tpu.dot_dimension_numbers<[1], [0], [0], [1], [0, 0, 1, 1], [], []>} : vector<2x32xf32>, vector<32x32xf32>, vector<2x32xf32> -> vector<2x32xf32>
    %133 = arith.mulf %131, %131 : vector<2x32xf32>
    %134 = arith.subf %132, %133 : vector<2x32xf32>
    %cst_113 = arith.constant 9.99999974E-6 : f32
    %135 = vector.broadcast %cst_113 : f32 to vector<2x32xf32>
    %136 = arith.addf %134, %135 : vector<2x32xf32>
    %137 = math.rsqrt %136 : vector<2x32xf32>
    %138 = vector.shape_cast %131 : vector<2x32xf32> to vector<2x1x32xf32>
    %139 = vector.broadcast %138 : vector<2x1x32xf32> to vector<2x64x32xf32>
    %140 = arith.subf %123, %139 : vector<2x64x32xf32>
    %141 = vector.shape_cast %137 : vector<2x32xf32> to vector<2x1x32xf32>
    %142 = vector.broadcast %141 : vector<2x1x32xf32> to vector<2x64x32xf32>
    %143 = arith.mulf %140, %142 : vector<2x64x32xf32>
    %144 = vector.shape_cast %143 : vector<2x64x32xf32> to vector<128x32xf32>
    %145 = vector.broadcast %121 : vector<1x32xf32> to vector<128x32xf32>
    %146 = arith.mulf %144, %145 : vector<128x32xf32>
    %147 = vector.broadcast %122 : vector<1x32xf32> to vector<128x32xf32>
    %148 = arith.addf %146, %147 : vector<128x32xf32>
    %149 = math.tanh %148 : vector<128x32xf32>
    %cst_114 = arith.constant 1.000000e+00 : f32
    %150 = vector.broadcast %cst_114 : f32 to vector<128x32xf32>
    %151 = arith.subf %150, %50 : vector<128x32xf32>
    %152 = arith.mulf %151, %57 : vector<128x32xf32>
    %153 = arith.mulf %50, %149 : vector<128x32xf32>
    %154 = arith.addf %152, %153 : vector<128x32xf32>
    %155 = vector.shape_cast %154 : vector<128x32xf32> to vector<2x8x8x32xf32>
    %c0_115 = arith.constant 0 : index
    %c1_116 = arith.constant 1 : index
    %c1_117 = arith.constant 1 : index
    %c0_118 = arith.constant 0 : index
    %156 = vector.load %arg19[%c0_115, %c1_116, %c1_117, %c0_118] : memref<2x10x10x32xf32, #tpu.memory_space<vmem>>, vector<2x8x8x32xf32>
    tpu.vector_store %arg19[%c0_115, %c1_116, %c1_117, %c0_118], %155 {strides = array<i32>} : memref<2x10x10x32xf32, #tpu.memory_space<vmem>>, vector<2x8x8x32xf32>,
    %c0_119 = arith.constant 0 : index
    %c0_120 = arith.constant 0 : index
    %c0_121 = arith.constant 0 : index
    %c0_122 = arith.constant 0 : index
    %157 = vector.load %arg19[%c0_119, %c0_120, %c0_121, %c0_122] : memref<2x10x10x32xf32, #tpu.memory_space<vmem>>, vector<2x8x8x32xf32>
    %158 = vector.shape_cast %157 : vector<2x8x8x32xf32> to vector<128x32xf32>
    %c0_123 = arith.constant 0 : index
    %c0_124 = arith.constant 0 : index
    %c1_125 = arith.constant 1 : index
    %c0_126 = arith.constant 0 : index
    %159 = vector.load %arg19[%c0_123, %c0_124, %c1_125, %c0_126] : memref<2x10x10x32xf32, #tpu.memory_space<vmem>>, vector<2x8x8x32xf32>
    %160 = vector.shape_cast %159 : vector<2x8x8x32xf32> to vector<128x32xf32>
    %c0_127 = arith.constant 0 : index
    %c0_128 = arith.constant 0 : index
    %c2_129 = arith.constant 2 : index
    %c0_130 = arith.constant 0 : index
    %161 = vector.load %arg19[%c0_127, %c0_128, %c2_129, %c0_130] : memref<2x10x10x32xf32, #tpu.memory_space<vmem>>, vector<2x8x8x32xf32>
    %162 = vector.shape_cast %161 : vector<2x8x8x32xf32> to vector<128x32xf32>
    %c0_131 = arith.constant 0 : index
    %c1_132 = arith.constant 1 : index
    %c0_133 = arith.constant 0 : index
    %c0_134 = arith.constant 0 : index
    %163 = vector.load %arg19[%c0_131, %c1_132, %c0_133, %c0_134] : memref<2x10x10x32xf32, #tpu.memory_space<vmem>>, vector<2x8x8x32xf32>
    %164 = vector.shape_cast %163 : vector<2x8x8x32xf32> to vector<128x32xf32>
    %c0_135 = arith.constant 0 : index
    %c1_136 = arith.constant 1 : index
    %c1_137 = arith.constant 1 : index
    %c0_138 = arith.constant 0 : index
    %165 = vector.load %arg19[%c0_135, %c1_136, %c1_137, %c0_138] : memref<2x10x10x32xf32, #tpu.memory_space<vmem>>, vector<2x8x8x32xf32>
    %166 = vector.shape_cast %165 : vector<2x8x8x32xf32> to vector<128x32xf32>
    %c0_139 = arith.constant 0 : index
    %c1_140 = arith.constant 1 : index
    %c2_141 = arith.constant 2 : index
    %c0_142 = arith.constant 0 : index
    %167 = vector.load %arg19[%c0_139, %c1_140, %c2_141, %c0_142] : memref<2x10x10x32xf32, #tpu.memory_space<vmem>>, vector<2x8x8x32xf32>
    %168 = vector.shape_cast %167 : vector<2x8x8x32xf32> to vector<128x32xf32>
    %c0_143 = arith.constant 0 : index
    %c2_144 = arith.constant 2 : index
    %c0_145 = arith.constant 0 : index
    %c0_146 = arith.constant 0 : index
    %169 = vector.load %arg19[%c0_143, %c2_144, %c0_145, %c0_146] : memref<2x10x10x32xf32, #tpu.memory_space<vmem>>, vector<2x8x8x32xf32>
    %170 = vector.shape_cast %169 : vector<2x8x8x32xf32> to vector<128x32xf32>
    %c0_147 = arith.constant 0 : index
    %c2_148 = arith.constant 2 : index
    %c1_149 = arith.constant 1 : index
    %c0_150 = arith.constant 0 : index
    %171 = vector.load %arg19[%c0_147, %c2_148, %c1_149, %c0_150] : memref<2x10x10x32xf32, #tpu.memory_space<vmem>>, vector<2x8x8x32xf32>
    %172 = vector.shape_cast %171 : vector<2x8x8x32xf32> to vector<128x32xf32>
    %c0_151 = arith.constant 0 : index
    %c2_152 = arith.constant 2 : index
    %c2_153 = arith.constant 2 : index
    %c0_154 = arith.constant 0 : index
    %173 = vector.load %arg19[%c0_151, %c2_152, %c2_153, %c0_154] : memref<2x10x10x32xf32, #tpu.memory_space<vmem>>, vector<2x8x8x32xf32>
    %174 = vector.shape_cast %173 : vector<2x8x8x32xf32> to vector<128x32xf32>
    %175 = tpu.concatenate %158, %160, %162, %164, %166, %168, %170, %172, %174 in 1 : vector<128x32xf32>, vector<128x32xf32>, vector<128x32xf32>, vector<128x32xf32>, vector<128x32xf32>, vector<128x32xf32>, vector<128x32xf32>, vector<128x32xf32>, vector<128x32xf32> -> vector<128x288xf32>
    %176 = arith.truncf %175 : vector<128x288xf32> to vector<128x288xbf16>
    %c0_155 = arith.constant 0 : index
    %c0_156 = arith.constant 0 : index
    %177 = vector.load %arg16[%c0_155, %c0_156] : memref<288x64xbf16, #tpu.memory_space<vmem>>, vector<288x64xbf16>
    %cst_157 = arith.constant dense<0.000000e+00> : vector<128x64xf32>
    %178 = tpu.matmul %176, %177, %cst_157 {dimension_numbers = #tpu.dot_dimension_numbers<[1], [0], [0], [1], [0, 0, 1, 1], [], []>} : vector<128x288xbf16>, vector<288x64xbf16>, vector<128x64xf32> -> vector<128x64xf32>
    %c0_158 = arith.constant 0 : index
    %c0_159 = arith.constant 0 : index
    %179 = vector.load %arg17[%c0_158, %c0_159] : memref<1x64xf32, #tpu.memory_space<vmem>>, vector<1x64xf32>
    %180 = vector.broadcast %179 : vector<1x64xf32> to vector<128x64xf32>
    %181 = arith.addf %178, %180 : vector<128x64xf32>
    %cst_160 = arith.constant 0.000000e+00 : f32
    %182 = vector.broadcast %cst_160 : f32 to vector<128x64xf32>
    %183 = arith.cmpf oge, %181, %182 : vector<128x64xf32>
    %cst_161 = arith.constant 2.000000e-01 : f32
    %184 = vector.broadcast %cst_161 : f32 to vector<128x64xf32>
    %185 = arith.mulf %184, %181 : vector<128x64xf32>
    %186 = arith.select %183, %181, %185 : vector<128x64xi1>, vector<128x64xf32>
    %187 = vector.shape_cast %186 : vector<128x64xf32> to vector<2x64x64xf32>
    %c0_162 = arith.constant 0 : index
    %c0_163 = arith.constant 0 : index
    %c0_164 = arith.constant 0 : index
    %c0_165 = arith.constant 0 : index
    %188 = vector.load %arg18[%c0_162, %c0_163, %c0_164, %c0_165] : memref<2x2x64x64xf32, #tpu.memory_space<vmem>>, vector<1x2x64x64xf32>
    %189 = vector.shape_cast %188 : vector<1x2x64x64xf32> to vector<2x64x64xf32>
    %190 = vector.shape_cast %187 : vector<2x64x64xf32> to vector<1x2x64x64xf32>
    tpu.vector_store %arg18[%c0_162, %c0_163, %c0_164, %c0_165], %190 {strides = array<i32>} : memref<2x2x64x64xf32, #tpu.memory_space<vmem>>, vector<1x2x64x64xf32>,
    %c1_166 = arith.constant 1 : index
    %c0_167 = arith.constant 0 : index
    %c0_168 = arith.constant 0 : index
    %c0_169 = arith.constant 0 : index
    %191 = vector.load %arg3[%c1_166, %c0_167, %c0_168, %c0_169] : memref<2x2x64x144xbf16, #tpu.memory_space<vmem>>, vector<1x2x64x144xbf16>
    %192 = vector.shape_cast %191 : vector<1x2x64x144xbf16> to vector<2x64x144xbf16>
    %193 = vector.shape_cast %192 : vector<2x64x144xbf16> to vector<128x144xbf16>
    %194 = arith.extf %193 : vector<128x144xbf16> to vector<128x144xf32>
    %c0_170 = arith.constant 0 : index
    %c0_171 = arith.constant 0 : index
    %195 = vector.load %arg4[%c0_170, %c0_171] : memref<144x64xf32, #tpu.memory_space<vmem>>, vector<144x64xf32>
    %cst_172 = arith.constant dense<0.000000e+00> : vector<128x64xf32>
    %196 = tpu.matmul %194, %195, %cst_172 {dimension_numbers = #tpu.dot_dimension_numbers<[1], [0], [0], [1], [0, 0, 1, 1], [], []>} : vector<128x144xf32>, vector<144x64xf32>, vector<128x64xf32> -> vector<128x64xf32>
    %c0_173 = arith.constant 0 : index
    %c0_174 = arith.constant 0 : index
    %197 = vector.load %arg5[%c0_173, %c0_174] : memref<288x64xf32, #tpu.memory_space<vmem>>, vector<288x64xf32>
    %cst_175 = arith.constant dense<0.000000e+00> : vector<128x64xf32>
    %198 = tpu.matmul %175, %197, %cst_175 {dimension_numbers = #tpu.dot_dimension_numbers<[1], [0], [0], [1], [0, 0, 1, 1], [], []>} : vector<128x288xf32>, vector<288x64xf32>, vector<128x64xf32> -> vector<128x64xf32>
    %199 = arith.addf %196, %198 : vector<128x64xf32>
    %c0_176 = arith.constant 0 : index
    %c0_177 = arith.constant 0 : index
    %200 = vector.load %arg6[%c0_176, %c0_177] : memref<1x64xf32, #tpu.memory_space<vmem>>, vector<1x64xf32>
    %201 = vector.broadcast %200 : vector<1x64xf32> to vector<128x64xf32>
    %202 = arith.addf %199, %201 : vector<128x64xf32>
    %c0_178 = arith.constant 0 : index
    %c0_179 = arith.constant 0 : index
    %203 = vector.load %arg9[%c0_178, %c0_179] : memref<64x64xf32, #tpu.memory_space<vmem>>, vector<64x64xf32>
    %c0_180 = arith.constant 0 : index
    %c0_181 = arith.constant 0 : index
    %204 = vector.load %arg7[%c0_180, %c0_181] : memref<1x64xf32, #tpu.memory_space<vmem>>, vector<1x64xf32>
    %c0_182 = arith.constant 0 : index
    %c0_183 = arith.constant 0 : index
    %205 = vector.load %arg8[%c0_182, %c0_183] : memref<1x64xf32, #tpu.memory_space<vmem>>, vector<1x64xf32>
    %206 = vector.shape_cast %202 : vector<128x64xf32> to vector<2x64x64xf32>
    %cst_184 = arith.constant dense<0.000000e+00> : vector<2x64xf32>
    %207 = vector.multi_reduction <add>, %206, %cst_184 [1] : vector<2x64x64xf32> to vector<2x64xf32>
    %cst_185 = arith.constant 6.400000e+01 : f32
    %208 = vector.broadcast %cst_185 : f32 to vector<2x64xf32>
    %209 = arith.divf %207, %208 : vector<2x64xf32>
    %210 = arith.mulf %206, %206 : vector<2x64x64xf32>
    %cst_186 = arith.constant dense<0.000000e+00> : vector<2x64xf32>
    %211 = vector.multi_reduction <add>, %210, %cst_186 [1] : vector<2x64x64xf32> to vector<2x64xf32>
    %cst_187 = arith.constant 6.400000e+01 : f32
    %212 = vector.broadcast %cst_187 : f32 to vector<2x64xf32>
    %213 = arith.divf %211, %212 : vector<2x64xf32>
    %cst_188 = arith.constant dense<0.000000e+00> : vector<2x64xf32>
    %214 = tpu.matmul %209, %203, %cst_188 {dimension_numbers = #tpu.dot_dimension_numbers<[1], [0], [0], [1], [0, 0, 1, 1], [], []>} : vector<2x64xf32>, vector<64x64xf32>, vector<2x64xf32> -> vector<2x64xf32>
    %cst_189 = arith.constant dense<0.000000e+00> : vector<2x64xf32>
    %215 = tpu.matmul %213, %203, %cst_189 {dimension_numbers = #tpu.dot_dimension_numbers<[1], [0], [0], [1], [0, 0, 1, 1], [], []>} : vector<2x64xf32>, vector<64x64xf32>, vector<2x64xf32> -> vector<2x64xf32>
    %216 = arith.mulf %214, %214 : vector<2x64xf32>
    %217 = arith.subf %215, %216 : vector<2x64xf32>
    %cst_190 = arith.constant 9.99999974E-6 : f32
    %218 = vector.broadcast %cst_190 : f32 to vector<2x64xf32>
    %219 = arith.addf %217, %218 : vector<2x64xf32>
    %220 = math.rsqrt %219 : vector<2x64xf32>
    %221 = vector.shape_cast %214 : vector<2x64xf32> to vector<2x1x64xf32>
    %222 = vector.broadcast %221 : vector<2x1x64xf32> to vector<2x64x64xf32>
    %223 = arith.subf %206, %222 : vector<2x64x64xf32>
    %224 = vector.shape_cast %220 : vector<2x64xf32> to vector<2x1x64xf32>
    %225 = vector.broadcast %224 : vector<2x1x64xf32> to vector<2x64x64xf32>
    %226 = arith.mulf %223, %225 : vector<2x64x64xf32>
    %227 = vector.shape_cast %226 : vector<2x64x64xf32> to vector<128x64xf32>
    %228 = vector.broadcast %204 : vector<1x64xf32> to vector<128x64xf32>
    %229 = arith.mulf %227, %228 : vector<128x64xf32>
    %230 = vector.broadcast %205 : vector<1x64xf32> to vector<128x64xf32>
    %231 = arith.addf %229, %230 : vector<128x64xf32>
    %232 = vector.extract_strided_slice %231 {offsets = [0, 0], sizes = [128, 32], strides = [1, 1]} : vector<128x64xf32> to vector<128x32xf32>
    %233 = arith.negf %232 : vector<128x32xf32>
    %234 = math.exp %233 : vector<128x32xf32>
    %cst_191 = arith.constant 1.000000e+00 : f32
    %235 = vector.broadcast %cst_191 : f32 to vector<128x32xf32>
    %236 = arith.addf %235, %234 : vector<128x32xf32>
    %237 = arith.divf %235, %236 : vector<128x32xf32>
    %238 = vector.extract_strided_slice %231 {offsets = [0, 32], sizes = [128, 32], strides = [1, 1]} : vector<128x64xf32> to vector<128x32xf32>
    %239 = arith.negf %238 : vector<128x32xf32>
    %240 = math.exp %239 : vector<128x32xf32>
    %cst_192 = arith.constant 1.000000e+00 : f32
    %241 = vector.broadcast %cst_192 : f32 to vector<128x32xf32>
    %242 = arith.addf %241, %240 : vector<128x32xf32>
    %243 = arith.divf %241, %242 : vector<128x32xf32>
    %244 = vector.extract_strided_slice %175 {offsets = [0, 128], sizes = [128, 32], strides = [1, 1]} : vector<128x288xf32> to vector<128x32xf32>
    %c0_193 = arith.constant 0 : index
    %c0_194 = arith.constant 0 : index
    %245 = vector.load %arg10[%c0_193, %c0_194] : memref<144x32xf32, #tpu.memory_space<vmem>>, vector<144x32xf32>
    %cst_195 = arith.constant dense<0.000000e+00> : vector<128x32xf32>
    %246 = tpu.matmul %194, %245, %cst_195 {dimension_numbers = #tpu.dot_dimension_numbers<[1], [0], [0], [1], [0, 0, 1, 1], [], []>} : vector<128x144xf32>, vector<144x32xf32>, vector<128x32xf32> -> vector<128x32xf32>
    %c0_196 = arith.constant 0 : index
    %c0_197 = arith.constant 0 : index
    %247 = vector.load %arg12[%c0_196, %c0_197] : memref<1x32xf32, #tpu.memory_space<vmem>>, vector<1x32xf32>
    %248 = vector.broadcast %247 : vector<1x32xf32> to vector<128x32xf32>
    %249 = arith.addf %246, %248 : vector<128x32xf32>
    %250 = arith.mulf %243, %244 : vector<128x32xf32>
    %251 = vector.shape_cast %250 : vector<128x32xf32> to vector<2x8x8x32xf32>
    %c0_198 = arith.constant 0 : index
    %c1_199 = arith.constant 1 : index
    %c1_200 = arith.constant 1 : index
    %c0_201 = arith.constant 0 : index
    %252 = vector.load %arg19[%c0_198, %c1_199, %c1_200, %c0_201] : memref<2x10x10x32xf32, #tpu.memory_space<vmem>>, vector<2x8x8x32xf32>
    tpu.vector_store %arg19[%c0_198, %c1_199, %c1_200, %c0_201], %251 {strides = array<i32>} : memref<2x10x10x32xf32, #tpu.memory_space<vmem>>, vector<2x8x8x32xf32>,
    %c0_202 = arith.constant 0 : index
    %c0_203 = arith.constant 0 : index
    %c0_204 = arith.constant 0 : index
    %c0_205 = arith.constant 0 : index
    %253 = vector.load %arg19[%c0_202, %c0_203, %c0_204, %c0_205] : memref<2x10x10x32xf32, #tpu.memory_space<vmem>>, vector<2x8x8x32xf32>
    %254 = vector.shape_cast %253 : vector<2x8x8x32xf32> to vector<128x32xf32>
    %c0_206 = arith.constant 0 : index
    %c0_207 = arith.constant 0 : index
    %c0_208 = arith.constant 0 : index
    %255 = vector.load %arg11[%c0_206, %c0_207, %c0_208] : memref<9x32x32xf32, #tpu.memory_space<vmem>>, vector<1x32x32xf32>
    %256 = vector.shape_cast %255 : vector<1x32x32xf32> to vector<32x32xf32>
    %cst_209 = arith.constant dense<0.000000e+00> : vector<128x32xf32>
    %257 = tpu.matmul %254, %256, %cst_209 {dimension_numbers = #tpu.dot_dimension_numbers<[1], [0], [0], [1], [0, 0, 1, 1], [], []>} : vector<128x32xf32>, vector<32x32xf32>, vector<128x32xf32> -> vector<128x32xf32>
    %258 = arith.addf %249, %257 : vector<128x32xf32>
    %c0_210 = arith.constant 0 : index
    %c0_211 = arith.constant 0 : index
    %c1_212 = arith.constant 1 : index
    %c0_213 = arith.constant 0 : index
    %259 = vector.load %arg19[%c0_210, %c0_211, %c1_212, %c0_213] : memref<2x10x10x32xf32, #tpu.memory_space<vmem>>, vector<2x8x8x32xf32>
    %260 = vector.shape_cast %259 : vector<2x8x8x32xf32> to vector<128x32xf32>
    %c1_214 = arith.constant 1 : index
    %c0_215 = arith.constant 0 : index
    %c0_216 = arith.constant 0 : index
    %261 = vector.load %arg11[%c1_214, %c0_215, %c0_216] : memref<9x32x32xf32, #tpu.memory_space<vmem>>, vector<1x32x32xf32>
    %262 = vector.shape_cast %261 : vector<1x32x32xf32> to vector<32x32xf32>
    %cst_217 = arith.constant dense<0.000000e+00> : vector<128x32xf32>
    %263 = tpu.matmul %260, %262, %cst_217 {dimension_numbers = #tpu.dot_dimension_numbers<[1], [0], [0], [1], [0, 0, 1, 1], [], []>} : vector<128x32xf32>, vector<32x32xf32>, vector<128x32xf32> -> vector<128x32xf32>
    %264 = arith.addf %258, %263 : vector<128x32xf32>
    %c0_218 = arith.constant 0 : index
    %c0_219 = arith.constant 0 : index
    %c2_220 = arith.constant 2 : index
    %c0_221 = arith.constant 0 : index
    %265 = vector.load %arg19[%c0_218, %c0_219, %c2_220, %c0_221] : memref<2x10x10x32xf32, #tpu.memory_space<vmem>>, vector<2x8x8x32xf32>
    %266 = vector.shape_cast %265 : vector<2x8x8x32xf32> to vector<128x32xf32>
    %c2_222 = arith.constant 2 : index
    %c0_223 = arith.constant 0 : index
    %c0_224 = arith.constant 0 : index
    %267 = vector.load %arg11[%c2_222, %c0_223, %c0_224] : memref<9x32x32xf32, #tpu.memory_space<vmem>>, vector<1x32x32xf32>
    %268 = vector.shape_cast %267 : vector<1x32x32xf32> to vector<32x32xf32>
    %cst_225 = arith.constant dense<0.000000e+00> : vector<128x32xf32>
    %269 = tpu.matmul %266, %268, %cst_225 {dimension_numbers = #tpu.dot_dimension_numbers<[1], [0], [0], [1], [0, 0, 1, 1], [], []>} : vector<128x32xf32>, vector<32x32xf32>, vector<128x32xf32> -> vector<128x32xf32>
    %270 = arith.addf %264, %269 : vector<128x32xf32>
    %c0_226 = arith.constant 0 : index
    %c1_227 = arith.constant 1 : index
    %c0_228 = arith.constant 0 : index
    %c0_229 = arith.constant 0 : index
    %271 = vector.load %arg19[%c0_226, %c1_227, %c0_228, %c0_229] : memref<2x10x10x32xf32, #tpu.memory_space<vmem>>, vector<2x8x8x32xf32>
    %272 = vector.shape_cast %271 : vector<2x8x8x32xf32> to vector<128x32xf32>
    %c3_230 = arith.constant 3 : index
    %c0_231 = arith.constant 0 : index
    %c0_232 = arith.constant 0 : index
    %273 = vector.load %arg11[%c3_230, %c0_231, %c0_232] : memref<9x32x32xf32, #tpu.memory_space<vmem>>, vector<1x32x32xf32>
    %274 = vector.shape_cast %273 : vector<1x32x32xf32> to vector<32x32xf32>
    %cst_233 = arith.constant dense<0.000000e+00> : vector<128x32xf32>
    %275 = tpu.matmul %272, %274, %cst_233 {dimension_numbers = #tpu.dot_dimension_numbers<[1], [0], [0], [1], [0, 0, 1, 1], [], []>} : vector<128x32xf32>, vector<32x32xf32>, vector<128x32xf32> -> vector<128x32xf32>
    %276 = arith.addf %270, %275 : vector<128x32xf32>
    %c0_234 = arith.constant 0 : index
    %c1_235 = arith.constant 1 : index
    %c1_236 = arith.constant 1 : index
    %c0_237 = arith.constant 0 : index
    %277 = vector.load %arg19[%c0_234, %c1_235, %c1_236, %c0_237] : memref<2x10x10x32xf32, #tpu.memory_space<vmem>>, vector<2x8x8x32xf32>
    %278 = vector.shape_cast %277 : vector<2x8x8x32xf32> to vector<128x32xf32>
    %c4_238 = arith.constant 4 : index
    %c0_239 = arith.constant 0 : index
    %c0_240 = arith.constant 0 : index
    %279 = vector.load %arg11[%c4_238, %c0_239, %c0_240] : memref<9x32x32xf32, #tpu.memory_space<vmem>>, vector<1x32x32xf32>
    %280 = vector.shape_cast %279 : vector<1x32x32xf32> to vector<32x32xf32>
    %cst_241 = arith.constant dense<0.000000e+00> : vector<128x32xf32>
    %281 = tpu.matmul %278, %280, %cst_241 {dimension_numbers = #tpu.dot_dimension_numbers<[1], [0], [0], [1], [0, 0, 1, 1], [], []>} : vector<128x32xf32>, vector<32x32xf32>, vector<128x32xf32> -> vector<128x32xf32>
    %282 = arith.addf %276, %281 : vector<128x32xf32>
    %c0_242 = arith.constant 0 : index
    %c1_243 = arith.constant 1 : index
    %c2_244 = arith.constant 2 : index
    %c0_245 = arith.constant 0 : index
    %283 = vector.load %arg19[%c0_242, %c1_243, %c2_244, %c0_245] : memref<2x10x10x32xf32, #tpu.memory_space<vmem>>, vector<2x8x8x32xf32>
    %284 = vector.shape_cast %283 : vector<2x8x8x32xf32> to vector<128x32xf32>
    %c5_246 = arith.constant 5 : index
    %c0_247 = arith.constant 0 : index
    %c0_248 = arith.constant 0 : index
    %285 = vector.load %arg11[%c5_246, %c0_247, %c0_248] : memref<9x32x32xf32, #tpu.memory_space<vmem>>, vector<1x32x32xf32>
    %286 = vector.shape_cast %285 : vector<1x32x32xf32> to vector<32x32xf32>
    %cst_249 = arith.constant dense<0.000000e+00> : vector<128x32xf32>
    %287 = tpu.matmul %284, %286, %cst_249 {dimension_numbers = #tpu.dot_dimension_numbers<[1], [0], [0], [1], [0, 0, 1, 1], [], []>} : vector<128x32xf32>, vector<32x32xf32>, vector<128x32xf32> -> vector<128x32xf32>
    %288 = arith.addf %282, %287 : vector<128x32xf32>
    %c0_250 = arith.constant 0 : index
    %c2_251 = arith.constant 2 : index
    %c0_252 = arith.constant 0 : index
    %c0_253 = arith.constant 0 : index
    %289 = vector.load %arg19[%c0_250, %c2_251, %c0_252, %c0_253] : memref<2x10x10x32xf32, #tpu.memory_space<vmem>>, vector<2x8x8x32xf32>
    %290 = vector.shape_cast %289 : vector<2x8x8x32xf32> to vector<128x32xf32>
    %c6_254 = arith.constant 6 : index
    %c0_255 = arith.constant 0 : index
    %c0_256 = arith.constant 0 : index
    %291 = vector.load %arg11[%c6_254, %c0_255, %c0_256] : memref<9x32x32xf32, #tpu.memory_space<vmem>>, vector<1x32x32xf32>
    %292 = vector.shape_cast %291 : vector<1x32x32xf32> to vector<32x32xf32>
    %cst_257 = arith.constant dense<0.000000e+00> : vector<128x32xf32>
    %293 = tpu.matmul %290, %292, %cst_257 {dimension_numbers = #tpu.dot_dimension_numbers<[1], [0], [0], [1], [0, 0, 1, 1], [], []>} : vector<128x32xf32>, vector<32x32xf32>, vector<128x32xf32> -> vector<128x32xf32>
    %294 = arith.addf %288, %293 : vector<128x32xf32>
    %c0_258 = arith.constant 0 : index
    %c2_259 = arith.constant 2 : index
    %c1_260 = arith.constant 1 : index
    %c0_261 = arith.constant 0 : index
    %295 = vector.load %arg19[%c0_258, %c2_259, %c1_260, %c0_261] : memref<2x10x10x32xf32, #tpu.memory_space<vmem>>, vector<2x8x8x32xf32>
    %296 = vector.shape_cast %295 : vector<2x8x8x32xf32> to vector<128x32xf32>
    %c7_262 = arith.constant 7 : index
    %c0_263 = arith.constant 0 : index
    %c0_264 = arith.constant 0 : index
    %297 = vector.load %arg11[%c7_262, %c0_263, %c0_264] : memref<9x32x32xf32, #tpu.memory_space<vmem>>, vector<1x32x32xf32>
    %298 = vector.shape_cast %297 : vector<1x32x32xf32> to vector<32x32xf32>
    %cst_265 = arith.constant dense<0.000000e+00> : vector<128x32xf32>
    %299 = tpu.matmul %296, %298, %cst_265 {dimension_numbers = #tpu.dot_dimension_numbers<[1], [0], [0], [1], [0, 0, 1, 1], [], []>} : vector<128x32xf32>, vector<32x32xf32>, vector<128x32xf32> -> vector<128x32xf32>
    %300 = arith.addf %294, %299 : vector<128x32xf32>
    %c0_266 = arith.constant 0 : index
    %c2_267 = arith.constant 2 : index
    %c2_268 = arith.constant 2 : index
    %c0_269 = arith.constant 0 : index
    %301 = vector.load %arg19[%c0_266, %c2_267, %c2_268, %c0_269] : memref<2x10x10x32xf32, #tpu.memory_space<vmem>>, vector<2x8x8x32xf32>
    %302 = vector.shape_cast %301 : vector<2x8x8x32xf32> to vector<128x32xf32>
    %c8_270 = arith.constant 8 : index
    %c0_271 = arith.constant 0 : index
    %c0_272 = arith.constant 0 : index
    %303 = vector.load %arg11[%c8_270, %c0_271, %c0_272] : memref<9x32x32xf32, #tpu.memory_space<vmem>>, vector<1x32x32xf32>
    %304 = vector.shape_cast %303 : vector<1x32x32xf32> to vector<32x32xf32>
    %cst_273 = arith.constant dense<0.000000e+00> : vector<128x32xf32>
    %305 = tpu.matmul %302, %304, %cst_273 {dimension_numbers = #tpu.dot_dimension_numbers<[1], [0], [0], [1], [0, 0, 1, 1], [], []>} : vector<128x32xf32>, vector<32x32xf32>, vector<128x32xf32> -> vector<128x32xf32>
    %306 = arith.addf %300, %305 : vector<128x32xf32>
    %c0_274 = arith.constant 0 : index
    %c0_275 = arith.constant 0 : index
    %307 = vector.load %arg15[%c0_274, %c0_275] : memref<32x32xf32, #tpu.memory_space<vmem>>, vector<32x32xf32>
    %c0_276 = arith.constant 0 : index
    %c0_277 = arith.constant 0 : index
    %308 = vector.load %arg13[%c0_276, %c0_277] : memref<1x32xf32, #tpu.memory_space<vmem>>, vector<1x32xf32>
    %c0_278 = arith.constant 0 : index
    %c0_279 = arith.constant 0 : index
    %309 = vector.load %arg14[%c0_278, %c0_279] : memref<1x32xf32, #tpu.memory_space<vmem>>, vector<1x32xf32>
    %310 = vector.shape_cast %306 : vector<128x32xf32> to vector<2x64x32xf32>
    %cst_280 = arith.constant dense<0.000000e+00> : vector<2x32xf32>
    %311 = vector.multi_reduction <add>, %310, %cst_280 [1] : vector<2x64x32xf32> to vector<2x32xf32>
    %cst_281 = arith.constant 6.400000e+01 : f32
    %312 = vector.broadcast %cst_281 : f32 to vector<2x32xf32>
    %313 = arith.divf %311, %312 : vector<2x32xf32>
    %314 = arith.mulf %310, %310 : vector<2x64x32xf32>
    %cst_282 = arith.constant dense<0.000000e+00> : vector<2x32xf32>
    %315 = vector.multi_reduction <add>, %314, %cst_282 [1] : vector<2x64x32xf32> to vector<2x32xf32>
    %cst_283 = arith.constant 6.400000e+01 : f32
    %316 = vector.broadcast %cst_283 : f32 to vector<2x32xf32>
    %317 = arith.divf %315, %316 : vector<2x32xf32>
    %cst_284 = arith.constant dense<0.000000e+00> : vector<2x32xf32>
    %318 = tpu.matmul %313, %307, %cst_284 {dimension_numbers = #tpu.dot_dimension_numbers<[1], [0], [0], [1], [0, 0, 1, 1], [], []>} : vector<2x32xf32>, vector<32x32xf32>, vector<2x32xf32> -> vector<2x32xf32>
    %cst_285 = arith.constant dense<0.000000e+00> : vector<2x32xf32>
    %319 = tpu.matmul %317, %307, %cst_285 {dimension_numbers = #tpu.dot_dimension_numbers<[1], [0], [0], [1], [0, 0, 1, 1], [], []>} : vector<2x32xf32>, vector<32x32xf32>, vector<2x32xf32> -> vector<2x32xf32>
    %320 = arith.mulf %318, %318 : vector<2x32xf32>
    %321 = arith.subf %319, %320 : vector<2x32xf32>
    %cst_286 = arith.constant 9.99999974E-6 : f32
    %322 = vector.broadcast %cst_286 : f32 to vector<2x32xf32>
    %323 = arith.addf %321, %322 : vector<2x32xf32>
    %324 = math.rsqrt %323 : vector<2x32xf32>
    %325 = vector.shape_cast %318 : vector<2x32xf32> to vector<2x1x32xf32>
    %326 = vector.broadcast %325 : vector<2x1x32xf32> to vector<2x64x32xf32>
    %327 = arith.subf %310, %326 : vector<2x64x32xf32>
    %328 = vector.shape_cast %324 : vector<2x32xf32> to vector<2x1x32xf32>
    %329 = vector.broadcast %328 : vector<2x1x32xf32> to vector<2x64x32xf32>
    %330 = arith.mulf %327, %329 : vector<2x64x32xf32>
    %331 = vector.shape_cast %330 : vector<2x64x32xf32> to vector<128x32xf32>
    %332 = vector.broadcast %308 : vector<1x32xf32> to vector<128x32xf32>
    %333 = arith.mulf %331, %332 : vector<128x32xf32>
    %334 = vector.broadcast %309 : vector<1x32xf32> to vector<128x32xf32>
    %335 = arith.addf %333, %334 : vector<128x32xf32>
    %336 = math.tanh %335 : vector<128x32xf32>
    %cst_287 = arith.constant 1.000000e+00 : f32
    %337 = vector.broadcast %cst_287 : f32 to vector<128x32xf32>
    %338 = arith.subf %337, %237 : vector<128x32xf32>
    %339 = arith.mulf %338, %244 : vector<128x32xf32>
    %340 = arith.mulf %237, %336 : vector<128x32xf32>
    %341 = arith.addf %339, %340 : vector<128x32xf32>
    %342 = vector.shape_cast %341 : vector<128x32xf32> to vector<2x8x8x32xf32>
    %c0_288 = arith.constant 0 : index
    %c1_289 = arith.constant 1 : index
    %c1_290 = arith.constant 1 : index
    %c0_291 = arith.constant 0 : index
    %343 = vector.load %arg19[%c0_288, %c1_289, %c1_290, %c0_291] : memref<2x10x10x32xf32, #tpu.memory_space<vmem>>, vector<2x8x8x32xf32>
    tpu.vector_store %arg19[%c0_288, %c1_289, %c1_290, %c0_291], %342 {strides = array<i32>} : memref<2x10x10x32xf32, #tpu.memory_space<vmem>>, vector<2x8x8x32xf32>,
    %c0_292 = arith.constant 0 : index
    %c0_293 = arith.constant 0 : index
    %c0_294 = arith.constant 0 : index
    %c0_295 = arith.constant 0 : index
    %344 = vector.load %arg19[%c0_292, %c0_293, %c0_294, %c0_295] : memref<2x10x10x32xf32, #tpu.memory_space<vmem>>, vector<2x8x8x32xf32>
    %345 = vector.shape_cast %344 : vector<2x8x8x32xf32> to vector<128x32xf32>
    %c0_296 = arith.constant 0 : index
    %c0_297 = arith.constant 0 : index
    %c1_298 = arith.constant 1 : index
    %c0_299 = arith.constant 0 : index
    %346 = vector.load %arg19[%c0_296, %c0_297, %c1_298, %c0_299] : memref<2x10x10x32xf32, #tpu.memory_space<vmem>>, vector<2x8x8x32xf32>
    %347 = vector.shape_cast %346 : vector<2x8x8x32xf32> to vector<128x32xf32>
    %c0_300 = arith.constant 0 : index
    %c0_301 = arith.constant 0 : index
    %c2_302 = arith.constant 2 : index
    %c0_303 = arith.constant 0 : index
    %348 = vector.load %arg19[%c0_300, %c0_301, %c2_302, %c0_303] : memref<2x10x10x32xf32, #tpu.memory_space<vmem>>, vector<2x8x8x32xf32>
    %349 = vector.shape_cast %348 : vector<2x8x8x32xf32> to vector<128x32xf32>
    %c0_304 = arith.constant 0 : index
    %c1_305 = arith.constant 1 : index
    %c0_306 = arith.constant 0 : index
    %c0_307 = arith.constant 0 : index
    %350 = vector.load %arg19[%c0_304, %c1_305, %c0_306, %c0_307] : memref<2x10x10x32xf32, #tpu.memory_space<vmem>>, vector<2x8x8x32xf32>
    %351 = vector.shape_cast %350 : vector<2x8x8x32xf32> to vector<128x32xf32>
    %c0_308 = arith.constant 0 : index
    %c1_309 = arith.constant 1 : index
    %c1_310 = arith.constant 1 : index
    %c0_311 = arith.constant 0 : index
    %352 = vector.load %arg19[%c0_308, %c1_309, %c1_310, %c0_311] : memref<2x10x10x32xf32, #tpu.memory_space<vmem>>, vector<2x8x8x32xf32>
    %353 = vector.shape_cast %352 : vector<2x8x8x32xf32> to vector<128x32xf32>
    %c0_312 = arith.constant 0 : index
    %c1_313 = arith.constant 1 : index
    %c2_314 = arith.constant 2 : index
    %c0_315 = arith.constant 0 : index
    %354 = vector.load %arg19[%c0_312, %c1_313, %c2_314, %c0_315] : memref<2x10x10x32xf32, #tpu.memory_space<vmem>>, vector<2x8x8x32xf32>
    %355 = vector.shape_cast %354 : vector<2x8x8x32xf32> to vector<128x32xf32>
    %c0_316 = arith.constant 0 : index
    %c2_317 = arith.constant 2 : index
    %c0_318 = arith.constant 0 : index
    %c0_319 = arith.constant 0 : index
    %356 = vector.load %arg19[%c0_316, %c2_317, %c0_318, %c0_319] : memref<2x10x10x32xf32, #tpu.memory_space<vmem>>, vector<2x8x8x32xf32>
    %357 = vector.shape_cast %356 : vector<2x8x8x32xf32> to vector<128x32xf32>
    %c0_320 = arith.constant 0 : index
    %c2_321 = arith.constant 2 : index
    %c1_322 = arith.constant 1 : index
    %c0_323 = arith.constant 0 : index
    %358 = vector.load %arg19[%c0_320, %c2_321, %c1_322, %c0_323] : memref<2x10x10x32xf32, #tpu.memory_space<vmem>>, vector<2x8x8x32xf32>
    %359 = vector.shape_cast %358 : vector<2x8x8x32xf32> to vector<128x32xf32>
    %c0_324 = arith.constant 0 : index
    %c2_325 = arith.constant 2 : index
    %c2_326 = arith.constant 2 : index
    %c0_327 = arith.constant 0 : index
    %360 = vector.load %arg19[%c0_324, %c2_325, %c2_326, %c0_327] : memref<2x10x10x32xf32, #tpu.memory_space<vmem>>, vector<2x8x8x32xf32>
    %361 = vector.shape_cast %360 : vector<2x8x8x32xf32> to vector<128x32xf32>
    %362 = tpu.concatenate %345, %347, %349, %351, %353, %355, %357, %359, %361 in 1 : vector<128x32xf32>, vector<128x32xf32>, vector<128x32xf32>, vector<128x32xf32>, vector<128x32xf32>, vector<128x32xf32>, vector<128x32xf32>, vector<128x32xf32>, vector<128x32xf32> -> vector<128x288xf32>
    %363 = arith.truncf %362 : vector<128x288xf32> to vector<128x288xbf16>
    %c0_328 = arith.constant 0 : index
    %c0_329 = arith.constant 0 : index
    %364 = vector.load %arg16[%c0_328, %c0_329] : memref<288x64xbf16, #tpu.memory_space<vmem>>, vector<288x64xbf16>
    %cst_330 = arith.constant dense<0.000000e+00> : vector<128x64xf32>
    %365 = tpu.matmul %363, %364, %cst_330 {dimension_numbers = #tpu.dot_dimension_numbers<[1], [0], [0], [1], [0, 0, 1, 1], [], []>} : vector<128x288xbf16>, vector<288x64xbf16>, vector<128x64xf32> -> vector<128x64xf32>
    %c0_331 = arith.constant 0 : index
    %c0_332 = arith.constant 0 : index
    %366 = vector.load %arg17[%c0_331, %c0_332] : memref<1x64xf32, #tpu.memory_space<vmem>>, vector<1x64xf32>
    %367 = vector.broadcast %366 : vector<1x64xf32> to vector<128x64xf32>
    %368 = arith.addf %365, %367 : vector<128x64xf32>
    %cst_333 = arith.constant 0.000000e+00 : f32
    %369 = vector.broadcast %cst_333 : f32 to vector<128x64xf32>
    %370 = arith.cmpf oge, %368, %369 : vector<128x64xf32>
    %cst_334 = arith.constant 2.000000e-01 : f32
    %371 = vector.broadcast %cst_334 : f32 to vector<128x64xf32>
    %372 = arith.mulf %371, %368 : vector<128x64xf32>
    %373 = arith.select %370, %368, %372 : vector<128x64xi1>, vector<128x64xf32>
    %374 = vector.shape_cast %373 : vector<128x64xf32> to vector<2x64x64xf32>
    %c1_335 = arith.constant 1 : index
    %c0_336 = arith.constant 0 : index
    %c0_337 = arith.constant 0 : index
    %c0_338 = arith.constant 0 : index
    %375 = vector.load %arg18[%c1_335, %c0_336, %c0_337, %c0_338] : memref<2x2x64x64xf32, #tpu.memory_space<vmem>>, vector<1x2x64x64xf32>
    %376 = vector.shape_cast %375 : vector<1x2x64x64xf32> to vector<2x64x64xf32>
    %377 = vector.shape_cast %374 : vector<2x64x64xf32> to vector<1x2x64x64xf32>
    tpu.vector_store %arg18[%c1_335, %c0_336, %c0_337, %c0_338], %377 {strides = array<i32>} : memref<2x2x64x64xf32, #tpu.memory_space<vmem>>, vector<1x2x64x64xf32>,
    %c0_339 = arith.constant 0 : index
    %c0_340 = arith.constant 0 : index
    %378 = vector.load %arg20[%c0_339, %c0_340] : memref<128x288xf32, #tpu.memory_space<vmem>>, vector<128x288xf32>
    tpu.vector_store %arg20[%c0_339, %c0_340], %362 {strides = array<i32>} : memref<128x288xf32, #tpu.memory_space<vmem>>, vector<128x288xf32>,
    return
  }
  func.func @transform_0(%arg0: i32, %arg1: i32) -> (i32, i32, i32) {
    %c0_i32 = arith.constant 0 : i32
    %c0_i32_0 = arith.constant 0 : i32
    %c0_i32_1 = arith.constant 0 : i32
    return %arg0, %c0_i32, %c0_i32_0 : i32, i32, i32
  }
  func.func @transform_1(%arg0: i32, %arg1: i32) -> (i32, i32, i32, i32) {
    %c0_i32 = arith.constant 0 : i32
    %c0_i32_0 = arith.constant 0 : i32
    %c0_i32_1 = arith.constant 0 : i32
    return %arg1, %arg0, %c0_i32, %c0_i32_0 : i32, i32, i32, i32
  }
  func.func @transform_2(%arg0: i32, %arg1: i32) -> (i32, i32) {
    %c0_i32 = arith.constant 0 : i32
    %c0_i32_0 = arith.constant 0 : i32
    %c0_i32_1 = arith.constant 0 : i32
    return %c0_i32, %c0_i32_0 : i32, i32
  }
  func.func @transform_3(%arg0: i32, %arg1: i32) -> (i32, i32) {
    %c0_i32 = arith.constant 0 : i32
    %c0_i32_0 = arith.constant 0 : i32
    %c0_i32_1 = arith.constant 0 : i32
    return %c0_i32, %c0_i32_0 : i32, i32
  }
  func.func @transform_4(%arg0: i32, %arg1: i32) -> (i32, i32) {
    %c0_i32 = arith.constant 0 : i32
    %c0_i32_0 = arith.constant 0 : i32
    %c0_i32_1 = arith.constant 0 : i32
    return %c0_i32, %c0_i32_0 : i32, i32
  }
  func.func @transform_5(%arg0: i32, %arg1: i32) -> (i32, i32) {
    %c0_i32 = arith.constant 0 : i32
    %c0_i32_0 = arith.constant 0 : i32
    %c0_i32_1 = arith.constant 0 : i32
    return %c0_i32, %c0_i32_0 : i32, i32
  }
  func.func @transform_6(%arg0: i32, %arg1: i32) -> (i32, i32) {
    %c0_i32 = arith.constant 0 : i32
    %c0_i32_0 = arith.constant 0 : i32
    %c0_i32_1 = arith.constant 0 : i32
    return %c0_i32, %c0_i32_0 : i32, i32
  }
  func.func @transform_7(%arg0: i32, %arg1: i32) -> (i32, i32) {
    %c0_i32 = arith.constant 0 : i32
    %c0_i32_0 = arith.constant 0 : i32
    %c0_i32_1 = arith.constant 0 : i32
    return %c0_i32, %c0_i32_0 : i32, i32
  }
  func.func @transform_8(%arg0: i32, %arg1: i32) -> (i32, i32) {
    %c0_i32 = arith.constant 0 : i32
    %c0_i32_0 = arith.constant 0 : i32
    %c0_i32_1 = arith.constant 0 : i32
    return %c0_i32, %c0_i32_0 : i32, i32
  }
  func.func @transform_9(%arg0: i32, %arg1: i32) -> (i32, i32, i32) {
    %c0_i32 = arith.constant 0 : i32
    %c0_i32_0 = arith.constant 0 : i32
    %c0_i32_1 = arith.constant 0 : i32
    %c0_i32_2 = arith.constant 0 : i32
    return %c0_i32, %c0_i32_0, %c0_i32_1 : i32, i32, i32
  }
  func.func @transform_10(%arg0: i32, %arg1: i32) -> (i32, i32) {
    %c0_i32 = arith.constant 0 : i32
    %c0_i32_0 = arith.constant 0 : i32
    %c0_i32_1 = arith.constant 0 : i32
    return %c0_i32, %c0_i32_0 : i32, i32
  }
  func.func @transform_11(%arg0: i32, %arg1: i32) -> (i32, i32) {
    %c0_i32 = arith.constant 0 : i32
    %c0_i32_0 = arith.constant 0 : i32
    %c0_i32_1 = arith.constant 0 : i32
    return %c0_i32, %c0_i32_0 : i32, i32
  }
  func.func @transform_12(%arg0: i32, %arg1: i32) -> (i32, i32) {
    %c0_i32 = arith.constant 0 : i32
    %c0_i32_0 = arith.constant 0 : i32
    %c0_i32_1 = arith.constant 0 : i32
    return %c0_i32, %c0_i32_0 : i32, i32
  }
  func.func @transform_13(%arg0: i32, %arg1: i32) -> (i32, i32) {
    %c0_i32 = arith.constant 0 : i32
    %c0_i32_0 = arith.constant 0 : i32
    %c0_i32_1 = arith.constant 0 : i32
    return %c0_i32, %c0_i32_0 : i32, i32
  }
  func.func @transform_14(%arg0: i32, %arg1: i32) -> (i32, i32) {
    %c0_i32 = arith.constant 0 : i32
    %c0_i32_0 = arith.constant 0 : i32
    %c0_i32_1 = arith.constant 0 : i32
    return %c0_i32, %c0_i32_0 : i32, i32
  }
  func.func @transform_15(%arg0: i32, %arg1: i32) -> (i32, i32) {
    %c0_i32 = arith.constant 0 : i32
    %c0_i32_0 = arith.constant 0 : i32
    %c0_i32_1 = arith.constant 0 : i32
    return %c0_i32, %c0_i32_0 : i32, i32
  }
  func.func @transform_16(%arg0: i32, %arg1: i32) -> (i32, i32, i32, i32) {
    %c0_i32 = arith.constant 0 : i32
    %c0_i32_0 = arith.constant 0 : i32
    %c0_i32_1 = arith.constant 0 : i32
    return %arg1, %arg0, %c0_i32, %c0_i32_0 : i32, i32, i32, i32
  }
}

</mosaic_0001>

<bundles_post_ra>
// kernel: tile.8
= control target key start
LH: loop header
LB: loop body
LE: loop exit
PB: predicated region body
PF: predicated region fallthrough
CT: control target
= control target key end

     0   :  { %s22_s0 = inlined_call_operand.vmem [shape: f32[16], index: 0, kind: input, shape index: {}]   ;;  %s23_s1 = inlined_call_operand.vmem [shape: f32[4,16], index: 1, kind: output, shape index: {}]  }
   0x1   :  { %v4_v0 = vld [vmem:[%s22_s0] ss:$0 sm:$0xff] }
   0x2   :  { %5 = vst [vmem:[%s23_s1] sm:$0xf] %v4_v0 }

// kernel: tile.9
= control target key start
LH: loop header
LB: loop body
LE: loop exit
PB: predicated region body
PF: predicated region fallthrough
CT: control target
= control target key end

     0   :  { %vm7_vm0 = vcmask 130048   ;;  %s37_s8 = smov 16   ;;  %s38_s9 = smov 32   ;;  %vm13_vm1 = vcmask 523648   ;;  %vm19_vm2 = vcmask 392448   ;;  %vm25_vm3 = vcmask 261248   ;;  %s55_s0 = inlined_call_operand.vmem [shape: f32[4,16], index: 0, kind: input, shape index: {}]   ;;  %s56_s1 = inlined_call_operand.vmem [shape: f32[1,64], index: 1, kind: output, shape index: {}]  }
   0x1   :  { %v4_v0 = vld [vmem:[%s55_s0] sm:$0xf]  ;;  %s36_s0 = smov 48  }
   0x2   :  { %5 = vst [vmem:[#allocation1] sm:$0xf] %v4_v0 }
   0x9   :  { %v10_v1 = vld [vmem:[#allocation1 + $0x3] sm:$0x1]   ;;  %v22_v2 = vld [vmem:[#allocation1 + $0x1] sm:$0x1]   ;;  %v6_v3 = vld [vmem:[#allocation1] sm:$0x1]  }
   0xa   :  { %11 = vrot.lane.b32.xlu0 %v10_v1, %s36_s0  ;;  %23 = vrot.lane.b32.xlu1 %v22_v2, %s37_s8  ;;  %v16_v4 = vld [vmem:[#allocation1 + $0x2] sm:$0x1]   ;;  %8 = vst.msk [vmem:[#allocation0] sm:$0x1] %vm7_vm0, %v6_v3  }
   0xe   :  { %17 = vrot.lane.b32.xlu0 %v16_v4, %s38_s9 }
  0x7c   :  { %v12_v5 = vpop.permute.xlu0 %11   ;;  %v24_v6 = vpop.permute.xlu1 %23  }
  0x7d   :  { %14 = vst.msk [vmem:[#allocation0] sm:$0x1] %vm13_vm1, %v12_v5  }
  0x80   :  { %v18_v7 = vpop.permute.xlu0 %17  }
  0x81   :  { %20 = vst.msk [vmem:[#allocation0] sm:$0x1] %vm19_vm2, %v18_v7  }
  0x82   :  { %26 = vst.msk [vmem:[#allocation0] sm:$0x1] %vm25_vm3, %v24_v6  }
  0x89   :  { %v30_v8 = vld [vmem:[#allocation0] sm:$0x1] }
  0x8a   :  { %32 = vst [vmem:[%s56_s1] sm:$0x1] %v30_v8 }

// kernel: conv_gru_decoder_forward.1
= control target key start
LH: loop header
LB: loop body
LE: loop exit
PB: predicated region body
PF: predicated region fallthrough
CT: control target
= control target key end

     0   :  { %s14365_s21 = smov 0   ;;  %s14367_s22 = smov 0   ;;  %s19617_s0 = inlined_call_operand.vmem [shape: f32[2,64,288], index: 0, kind: input, shape index: {}]   ;;  %s19618_s1 = inlined_call_operand.vmem [shape: bf16[4,2,64,144], index: 1, kind: input, shape index: {}]   ;;  %s19619_s2 = inlined_call_operand.vmem [shape: f32[144,64], index: 2, kind: input, shape index: {}]   ;;  %s19620_s3 = inlined_call_operand.vmem [shape: f32[288,64], index: 3, kind: input, shape index: {}]   ;;  %s19621_s4 = inlined_call_operand.vmem [shape: f32[1,64], index: 4, kind: input, shape index: {}]   ;;  %s19622_s5 = inlined_call_operand.vmem [shape: f32[1,64], index: 5, kind: input, shape index: {}]   ;;  %s19623_s6 = inlined_call_operand.vmem [shape: f32[1,64], index: 6, kind: input, shape index: {}]   ;;  %s19624_s7 = inlined_call_operand.vmem [shape: f32[64,64], index: 7, kind: input, shape index: {}]   ;;  %s19625_s8 = inlined_call_operand.vmem [shape: f32[144,32], index: 8, kind: input, shape index: {}]   ;;  %s19626_s9 = inlined_call_operand.vmem [shape: f32[9,32,32], index: 9, kind: input, shape index: {}]   ;;  %s19627_s10 = inlined_call_operand.vmem [shape: f32[1,32], index: 10, kind: input, shape index: {}]   ;;  %s19628_s11 = inlined_call_operand.vmem [shape: f32[1,32], index: 11, kind: input, shape index: {}]   ;;  %s19629_s12 = inlined_call_operand.vmem [shape: f32[1,32], index: 12, kind: input, shape index: {}]   ;;  %s19630_s13 = inlined_call_operand.vmem [shape: f32[32,32], index: 13, kind: input, shape index: {}]   ;;  %s19631_s14 = inlined_call_operand.vmem [shape: bf16[288,64], index: 14, kind: input, shape index: {}]   ;;  %s19632_s15 = inlined_call_operand.vmem [shape: f32[1,64], index: 15, kind: input, shape index: {}]   ;;  %s19633_s16 = inlined_call_operand.vmem [shape: f32[4,2,64,64], index: 16, kind: output, shape index: {}]  }
   0x1   :  { %19804 = sst [smem:[#allocation45_spill]] %s19617_s0  ;;  %s14369_s23 = smov 0  }
   0x2   :  { %19805 = sst [smem:[#allocation46_spill]] %s19618_s1 }
   0x3 LB: > { %s35_s24 = sadd.s32 1, %s14266_s22  ;;  %p11247_p0 = scmp.ge.s32.totalorder %s14270_s23, 1  ;;  %s14270_s23 = sphi %s14369_s23, %s26_s23   ;;  %s14266_s22 = sphi %s14367_s22, %s20008_s22   ;;  %s14262_s21 = sphi %s14365_s21, %s20007_s21  }
   0x4   : > { %p36_p1 = scmp.ge.s32.totalorder %s35_s24, 2  ;;  %p498_p2 = scmp.lt.s32.totalorder %s14270_s23, 3 }
   0x6   : > { %s20010_s24 = smov (%p36_p1, %s35_s24), 0  ;;  %p499_p3 = pnand %p11247_p0, %p498_p2 }
   0x7   : > { %19806 = sst [smem:[#allocation4_spill]] %s20010_s24 }
   0x8   : > { %502 = sbr.rel (%p499_p3) target bundleno = 3739 (0xe9b), region = 84 }
   0xf   : > { %s11248_s25 = sshll.u32 %s14262_s21, 1  ;;  %s19807_s1 = sld [smem:[#allocation46_spill]] }
  0x10   : > { %p575_p4 = scmp.lt.s32.totalorder %s11248_s25, 3  ;;  %p11254_p5 = scmp.ne.s32.totalorder %s14262_s21, 0 }
  0x11   : > { %vm604_vm0 = vcmask (!%p11254_p5), 261120   ;;  %vm606_vm1 = vcmask (!%p11254_p5), 254976   ;;  %s19808_s20 = sld [smem:[#allocation45_spill]] (!%p11254_p5)  ;;  %v14272_v3 = vmov (!%p11254_p5), 0.0  }
  0x12   : > { %s20012_s25 = smov (!%p575_p4, %s11248_s25), 3  ;;  %603 = sbr.rel (%p11254_p5) target bundleno = 64 (0x40), region = 88 }
  0x13   : > { %s11843_s26 = sshll.u32 %s20012_s25, 7  ;;  %605 = vst.msk [vmem:[#allocation2] sm:$0xff] (!%p11254_p5), %vm604_vm0, %v14272_v3  ;;  %608 = vst.msk [vmem:[#allocation2 + $0x10] sm:$0xff] (!%p11254_p5), %vm604_vm0, %v14272_v3 }
  0x14   : > { %s14391_s17 = scalar_lea.vmem %s19633_s16, %s11843_s26  ;;  %610 = vst.msk [vmem:[#allocation2 + $0x20] sm:$0xff] (!%p11254_p5), %vm604_vm0, %v14272_v3  ;;  %612 = vst.msk [vmem:[#allocation2 + $0x30] sm:$0xff] (!%p11254_p5), %vm604_vm0, %v14272_v3 }
  0x15   : > { %s14386_s29 = scalar_lea.vmem %s19807_s1, %s11843_s26  ;;  %614 = vst.msk [vmem:[#allocation2 + $0x40] sm:$0xff] (!%p11254_p5), %vm604_vm0, %v14272_v3  ;;  %616 = vst.msk [vmem:[#allocation2 + $0x50] sm:$0xff] (!%p11254_p5), %vm604_vm0, %v14272_v3 }
  0x16   : > { %618 = vst.msk [vmem:[#allocation2 + $0x60] sm:$0xff] (!%p11254_p5), %vm604_vm0, %v14272_v3  ;;  %620 = vst.msk [vmem:[#allocation2 + $0x70] sm:$0xff] (!%p11254_p5), %vm604_vm0, %v14272_v3 }
  0x17   : > { %v646_v0 = vld [vmem:[%s19808_s20] sm:$0xff] (!%p11254_p5)  ;;  %v647_v1 = vld [vmem:[%s19808_s20 + $0x8] sm:$0xff] (!%p11254_p5)  ;;  %v648_v2 = vld [vmem:[%s19808_s20 + $0x10] sm:$0xff] (!%p11254_p5)  ;;  %622 = vst.msk [vmem:[#allocation2 + $0x80] sm:$0xff] (!%p11254_p5), %vm604_vm0, %v14272_v3 }
  0x18   : > { %624 = vst.msk [vmem:[#allocation2 + $0x90] sm:$0xff] (!%p11254_p5), %vm604_vm0, %v14272_v3  ;;  %626 = vst.msk [vmem:[#allocation2 + $0xa0] sm:$0xff] (!%p11254_p5), %vm604_vm0, %v14272_v3  ;;  %v649_v4 = vld [vmem:[%s19808_s20 + $0x18] sm:$0xff] (!%p11254_p5)  ;;  %v650_v5 = vld [vmem:[%s19808_s20 + $0x20] sm:$0xff] (!%p11254_p5) }
  0x19   : > { %628 = vst.msk [vmem:[#allocation2 + $0xb0] sm:$0xff] %vm604_vm0, %v14272_v3  ;;  %630 = vst.msk [vmem:[#allocation2 + $0xc0] sm:$0xff] %vm604_vm0, %v14272_v3  ;;  %v651_v6 = vld [vmem:[%s19808_s20 + $0x28] sm:$0xff]  ;;  %v652_v7 = vld [vmem:[%s19808_s20 + $0x30] sm:$0xff] }
  0x1a   : > { %632 = vst.msk [vmem:[#allocation2 + $0xd0] sm:$0xff] %vm604_vm0, %v14272_v3  ;;  %634 = vst.msk [vmem:[#allocation2 + $0xe0] sm:$0xff] %vm604_vm0, %v14272_v3  ;;  %v653_v8 = vld [vmem:[%s19808_s20 + $0x38] sm:$0xff]  ;;  %v654_v9 = vld [vmem:[%s19808_s20 + $0x40] sm:$0xff] }
  0x1b   : > { %636 = vst.msk [vmem:[#allocation2 + $0xf0] sm:$0xff] %vm604_vm0, %v14272_v3  ;;  %638 = vst.msk [vmem:[#allocation2 + $0x100] sm:$0xff] %vm604_vm0, %v14272_v3  ;;  %v655_v10 = vld [vmem:[%s19808_s20 + $0x48] sm:$0xff]  ;;  %v656_v11 = vld [vmem:[%s19808_s20 + $0x50] sm:$0xff] }
  0x1c   : > { %640 = vst.msk [vmem:[#allocation2 + $0x110] sm:$0xff] %vm604_vm0, %v14272_v3  ;;  %642 = vst.msk [vmem:[#allocation2 + $0x120] sm:$0xff] %vm604_vm0, %v14272_v3  ;;  %v657_v12 = vld [vmem:[%s19808_s20 + $0x58] sm:$0xff]  ;;  %v658_v13 = vld [vmem:[%s19808_s20 + $0x60] sm:$0xff] }
  0x1d   : > { %644 = vst.msk [vmem:[#allocation2 + $0x130] sm:$0xff] %vm604_vm0, %v14272_v3  ;;  %694 = vst [vmem:[#allocation3] sm:$0xff] %v646_v0  ;;  %v659_v14 = vld [vmem:[%s19808_s20 + $0x68] sm:$0xff]  ;;  %v660_v15 = vld [vmem:[%s19808_s20 + $0x70] sm:$0xff] }
  0x1e   : > { %607 = vst.msk [vmem:[#allocation2 + $0x8] sm:$0x3] %vm606_vm1, %v14272_v3  ;;  %609 = vst.msk [vmem:[#allocation2 + $0x18] sm:$0x3] %vm606_vm1, %v14272_v3  ;;  %v661_v16 = vld [vmem:[%s19808_s20 + $0x78] sm:$0xff]  ;;  %v662_v17 = vld [vmem:[%s19808_s20 + $0x80] sm:$0xff] }
  0x1f   : > { %611 = vst.msk [vmem:[#allocation2 + $0x28] sm:$0x3] %vm606_vm1, %v14272_v3  ;;  %613 = vst.msk [vmem:[#allocation2 + $0x38] sm:$0x3] %vm606_vm1, %v14272_v3  ;;  %v663_v18 = vld [vmem:[%s19808_s20 + $0x88] sm:$0xff]  ;;  %v664_v19 = vld [vmem:[%s19808_s20 + $0x90] sm:$0xff] }
  0x20   : > { %615 = vst.msk [vmem:[#allocation2 + $0x48] sm:$0x3] %vm606_vm1, %v14272_v3  ;;  %617 = vst.msk [vmem:[#allocation2 + $0x58] sm:$0x3] %vm606_vm1, %v14272_v3  ;;  %v665_v20 = vld [vmem:[%s19808_s20 + $0x98] sm:$0xff]  ;;  %v666_v21 = vld [vmem:[%s19808_s20 + $0xa0] sm:$0xff] }
  0x21   : > { %619 = vst.msk [vmem:[#allocation2 + $0x68] sm:$0x3] %vm606_vm1, %v14272_v3  ;;  %621 = vst.msk [vmem:[#allocation2 + $0x78] sm:$0x3] %vm606_vm1, %v14272_v3  ;;  %v667_v22 = vld [vmem:[%s19808_s20 + $0xa8] sm:$0xff]  ;;  %v668_v23 = vld [vmem:[%s19808_s20 + $0xb0] sm:$0xff] }
  0x22   : > { %623 = vst.msk [vmem:[#allocation2 + $0x88] sm:$0x3] %vm606_vm1, %v14272_v3  ;;  %625 = vst.msk [vmem:[#allocation2 + $0x98] sm:$0x3] %vm606_vm1, %v14272_v3  ;;  %v669_v24 = vld [vmem:[%s19808_s20 + $0xb8] sm:$0xff]  ;;  %v670_v25 = vld [vmem:[%s19808_s20 + $0xc0] sm:$0xff] }
  0x23   : > { %627 = vst.msk [vmem:[#allocation2 + $0xa8] sm:$0x3] %vm606_vm1, %v14272_v3  ;;  %629 = vst.msk [vmem:[#allocation2 + $0xb8] sm:$0x3] %vm606_vm1, %v14272_v3  ;;  %v671_v26 = vld [vmem:[%s19808_s20 + $0xc8] sm:$0xff]  ;;  %v672_v27 = vld [vmem:[%s19808_s20 + $0xd0] sm:$0xff] }
  0x24   : > { %631 = vst.msk [vmem:[#allocation2 + $0xc8] sm:$0x3] %vm606_vm1, %v14272_v3  ;;  %633 = vst.msk [vmem:[#allocation2 + $0xd8] sm:$0x3] %vm606_vm1, %v14272_v3  ;;  %v673_v28 = vld [vmem:[%s19808_s20 + $0xd8] sm:$0xff]  ;;  %v674_v29 = vld [vmem:[%s19808_s20 + $0xe0] sm:$0xff] }
  0x25   : > { %635 = vst.msk [vmem:[#allocation2 + $0xe8] sm:$0x3] %vm606_vm1, %v14272_v3  ;;  %637 = vst.msk [vmem:[#allocation2 + $0xf8] sm:$0x3] %vm606_vm1, %v14272_v3  ;;  %v675_v30 = vld [vmem:[%s19808_s20 + $0xe8] sm:$0xff]  ;;  %v676_v31 = vld [vmem:[%s19808_s20 + $0xf0] sm:$0xff] }
  0x26   : > { %639 = vst.msk [vmem:[#allocation2 + $0x108] sm:$0x3] %vm606_vm1, %v14272_v3  ;;  %641 = vst.msk [vmem:[#allocation2 + $0x118] sm:$0x3] %vm606_vm1, %v14272_v3  ;;  %v677_v32 = vld [vmem:[%s19808_s20 + $0xf8] sm:$0xff]  ;;  %v678_v33 = vld [vmem:[%s19808_s20 + $0x100] sm:$0xff] }
  0x27   : > { %643 = vst.msk [vmem:[#allocation2 + $0x128] sm:$0x3] %vm606_vm1, %v14272_v3  ;;  %645 = vst.msk [vmem:[#allocation2 + $0x138] sm:$0x3] %vm606_vm1, %v14272_v3  ;;  %v679_v34 = vld [vmem:[%s19808_s20 + $0x108] sm:$0xff]  ;;  %v680_v35 = vld [vmem:[%s19808_s20 + $0x110] sm:$0xff] }
  0x28   : > { %695 = vst [vmem:[#allocation3 + $0x8] sm:$0xff] %v647_v1  ;;  %696 = vst.msk [vmem:[#allocation3 + $0x10] sm:$0xff] %vm604_vm0, %v648_v2  ;;  %v681_v36 = vld [vmem:[%s19808_s20 + $0x118] sm:$0xff]  ;;  %v682_v37 = vld [vmem:[%s19808_s20 + $0x120] sm:$0xff] }
  0x29   : > { %697 = vst [vmem:[#allocation3 + $0x18] sm:$0xff] %v649_v4  ;;  %698 = vst [vmem:[#allocation3 + $0x20] sm:$0xff] %v650_v5  ;;  %v683_v38 = vld [vmem:[%s19808_s20 + $0x128] sm:$0xff]  ;;  %v684_v39 = vld [vmem:[%s19808_s20 + $0x130] sm:$0xff] }
  0x2a   : > { %699 = vst.msk [vmem:[#allocation3 + $0x28] sm:$0xff] %vm604_vm0, %v651_v6  ;;  %700 = vst [vmem:[#allocation3 + $0x30] sm:$0xff] %v652_v7  ;;  %v685_v40 = vld [vmem:[%s19808_s20 + $0x138] sm:$0xff]  ;;  %v686_v41 = vld [vmem:[%s19808_s20 + $0x140] sm:$0xff] }
  0x2b   : > { %701 = vst [vmem:[#allocation3 + $0x38] sm:$0xff] %v653_v8  ;;  %702 = vst.msk [vmem:[#allocation3 + $0x40] sm:$0xff] %vm604_vm0, %v654_v9  ;;  %v687_v42 = vld [vmem:[%s19808_s20 + $0x148] sm:$0xff]  ;;  %v688_v43 = vld [vmem:[%s19808_s20 + $0x150] sm:$0xff] }
  0x2c   : > { %703 = vst [vmem:[#allocation3 + $0x48] sm:$0xff] %v655_v10  ;;  %704 = vst [vmem:[#allocation3 + $0x50] sm:$0xff] %v656_v11  ;;  %v689_v44 = vld [vmem:[%s19808_s20 + $0x158] sm:$0xff]  ;;  %v690_v45 = vld [vmem:[%s19808_s20 + $0x160] sm:$0xff] }
  0x2d   : > { %705 = vst.msk [vmem:[#allocation3 + $0x58] sm:$0xff] %vm604_vm0, %v657_v12  ;;  %706 = vst [vmem:[#allocation3 + $0x60] sm:$0xff] %v658_v13  ;;  %v691_v46 = vld [vmem:[%s19808_s20 + $0x168] sm:$0xff]  ;;  %v692_v47 = vld [vmem:[%s19808_s20 + $0x170] sm:$0xff] }
  0x2e   : > { %707 = vst [vmem:[#allocation3 + $0x68] sm:$0xff] %v659_v14  ;;  %708 = vst.msk [vmem:[#allocation3 + $0x70] sm:$0xff] %vm604_vm0, %v660_v15  ;;  %v693_v48 = vld [vmem:[%s19808_s20 + $0x178] sm:$0xff] }
  0x2f   : > { %709 = vst [vmem:[#allocation3 + $0x78] sm:$0xff] %v661_v16  ;;  %710 = vst [vmem:[#allocation3 + $0x80] sm:$0xff] %v662_v17 }
  0x30   : > { %711 = vst.msk [vmem:[#allocation3 + $0x88] sm:$0xff] %vm604_vm0, %v663_v18  ;;  %712 = vst [vmem:[#allocation3 + $0x90] sm:$0xff] %v664_v19 }
  0x31   : > { %713 = vst [vmem:[#allocation3 + $0x98] sm:$0xff] %v665_v20  ;;  %714 = vst.msk [vmem:[#allocation3 + $0xa0] sm:$0xff] %vm604_vm0, %v666_v21 }
  0x32   : > { %715 = vst [vmem:[#allocation3 + $0xa8] sm:$0xff] %v667_v22  ;;  %716 = vst [vmem:[#allocation3 + $0xb0] sm:$0xff] %v668_v23 }
  0x33   : > { %717 = vst.msk [vmem:[#allocation3 + $0xb8] sm:$0xff] %vm604_vm0, %v669_v24  ;;  %718 = vst [vmem:[#allocation3 + $0xc0] sm:$0xff] %v670_v25 }
  0x34   : > { %719 = vst [vmem:[#allocation3 + $0xc8] sm:$0xff] %v671_v26  ;;  %720 = vst.msk [vmem:[#allocation3 + $0xd0] sm:$0xff] %vm604_vm0, %v672_v27 }
  0x35   : > { %721 = vst [vmem:[#allocation3 + $0xd8] sm:$0xff] %v673_v28  ;;  %722 = vst [vmem:[#allocation3 + $0xe0] sm:$0xff] %v674_v29 }
  0x36   : > { %723 = vst.msk [vmem:[#allocation3 + $0xe8] sm:$0xff] %vm604_vm0, %v675_v30  ;;  %724 = vst [vmem:[#allocation3 + $0xf0] sm:$0xff] %v676_v31 }
  0x37   : > { %725 = vst [vmem:[#allocation3 + $0xf8] sm:$0xff] %v677_v32  ;;  %726 = vst.msk [vmem:[#allocation3 + $0x100] sm:$0xff] %vm604_vm0, %v678_v33 }
  0x38   : > { %727 = vst [vmem:[#allocation3 + $0x108] sm:$0xff] %v679_v34  ;;  %728 = vst [vmem:[#allocation3 + $0x110] sm:$0xff] %v680_v35 }
  0x39   : > { %729 = vst.msk [vmem:[#allocation3 + $0x118] sm:$0xff] %vm604_vm0, %v681_v36  ;;  %730 = vst [vmem:[#allocation3 + $0x120] sm:$0xff] %v682_v37 }
  0x3a   : > { %731 = vst [vmem:[#allocation3 + $0x128] sm:$0xff] %v683_v38  ;;  %732 = vst.msk [vmem:[#allocation3 + $0x130] sm:$0xff] %vm604_vm0, %v684_v39 }
  0x3b   : > { %733 = vst [vmem:[#allocation3 + $0x138] sm:$0xff] %v685_v40  ;;  %734 = vst [vmem:[#allocation3 + $0x140] sm:$0xff] %v686_v41 }
  0x3c   : > { %735 = vst.msk [vmem:[#allocation3 + $0x148] sm:$0xff] %vm604_vm0, %v687_v42  ;;  %736 = vst [vmem:[#allocation3 + $0x150] sm:$0xff] %v688_v43 }
  0x3d   : > { %737 = vst [vmem:[#allocation3 + $0x158] sm:$0xff] %v689_v44  ;;  %738 = vst.msk [vmem:[#allocation3 + $0x160] sm:$0xff] %vm604_vm0, %v690_v45 }
  0x3e   : > { %739 = vst [vmem:[#allocation3 + $0x168] sm:$0xff] %v691_v46  ;;  %740 = vst [vmem:[#allocation3 + $0x170] sm:$0xff] %v692_v47 }
  0x3f   : > { %741 = vst.msk [vmem:[#allocation3 + $0x178] sm:$0xff] %vm604_vm0, %v693_v48 }
  0x40 PF: > { %v872_v49 = vld [vmem:[%s19620_s3 + $0x80] sm:$0xff]  ;;  %v873_v50 = vld [vmem:[%s19620_s3 + $0x88] sm:$0xff]  ;;  %v874_v54 = vld [vmem:[%s19620_s3 + $0x90] sm:$0xff]  ;;  %vm892_vm2 = vcmask 261120   ;;  %v19668_v25 = vmov 0.0|0.0   ;;  %vm1231_vm3 = vcmask 130048  }
  0x41   : > { %v856_v51 = vld [vmem:[%s19620_s3] sm:$0xff]  ;;  %v13409_v52 = vpack.c.bf16 %v873_v50, %v872_v49  ;;  %v857_v53 = vld [vmem:[%s19620_s3 + $0x8] sm:$0xff]  ;;  %v875_v55 = vld [vmem:[%s19620_s3 + $0x98] sm:$0xff]  ;;  %vm14274_vm4 = vmmov 0   ;;  %s19768_s30 = smov 32   ;;  %vm1458_vm5 = vcmask 523264  }
  0x42   : > { %v13411_v56 = vpack.c.bf16 %v857_v53, %v856_v51  ;;  %v13413_v57 = vpack.c.bf16 %v875_v55, %v874_v54  ;;  %v858_v58 = vld [vmem:[%s19620_s3 + $0x10] sm:$0xff]  ;;  %v859_v59 = vld [vmem:[%s19620_s3 + $0x18] sm:$0xff]  ;;  %v876_v60 = vld [vmem:[%s19620_s3 + $0xa0] sm:$0xff]  ;;  %vm1566_vm6 = vcmask 1041409   ;;  %s14278_s24 = smov 96   ;;  %s19708_s19 = smov 64  }
  0x43   : > { %13410 = vmatprep.subr.bf16.mxu0 %v13409_v52  ;;  %v877_v61 = vld [vmem:[%s19620_s3 + $0xa8] sm:$0xff]  ;;  %v13415_v62 = vpack.c.bf16 %v859_v59, %v858_v58  ;;  %v888_v63 = vld [vmem:[%s19620_s3 + $0x100] sm:$0xff]  ;;  %v878_v5 = vld [vmem:[%s19620_s3 + $0xb0] sm:$0xff]  ;;  %s19884_s27 = smov 64   ;;  %vm5420_vm7 = vcmask 785408  }
  0x44   : > { %13412 = vmatpush3.bf16.msra.mxu0 %v13411_v56  ;;  %v889_v0 = vld [vmem:[%s19620_s3 + $0x108] sm:$0xff]  ;;  %v13417_v1 = vpack.c.bf16 %v877_v61, %v876_v60  ;;  %v860_v2 = vld [vmem:[%s19620_s3 + $0x20] sm:$0xff]  ;;  %v879_v6 = vld [vmem:[%s19620_s3 + $0xb8] sm:$0xff] }
  0x45   : > { %13414 = vmatprep.subr.bf16.mxu0 %v13413_v57  ;;  %v861_v3 = vld [vmem:[%s19620_s3 + $0x28] sm:$0xff]  ;;  %v13441_v4 = vpack.c.bf16 %v889_v0, %v888_v63  ;;  %v890_v7 = vld [vmem:[%s19620_s3 + $0x110] sm:$0xff]  ;;  %v891_v8 = vld [vmem:[%s19620_s3 + $0x118] sm:$0xff]  ;;  %v13421_v13 = vpack.c.bf16 %v879_v6, %v878_v5 }
  0x46   : > { %v13445_v9 = vpack.c.bf16 %v891_v8, %v890_v7  ;;  %v13419_v10 = vpack.c.bf16 %v861_v3, %v860_v2  ;;  %v862_v11 = vld [vmem:[%s19620_s3 + $0x30] sm:$0xff]  ;;  %v863_v14 = vld [vmem:[%s19620_s3 + $0x38] sm:$0xff]  ;;  %v838_v15 = vld [vmem:[%s19619_s2] sm:$0xff] }
  0x47   : > { %13442 = vmatprep.subr.bf16.mxu1 %v13441_v4  ;;  %v744_v12 = vld [vmem:[#allocation3 + $0x10] sm:$0xff]  ;;  %v839_v16 = vld [vmem:[%s19619_s2 + $0x8] sm:$0xff]  ;;  %v880_v17 = vld [vmem:[%s19620_s3 + $0xc0] sm:$0xff]  ;;  %v13423_v19 = vpack.c.bf16 %v863_v14, %v862_v11 }
  0x48   : > { %13416 = vmatpush3.bf16.msra.mxu0 %v13415_v62  ;;  %13444 = vmatpush3.bf16.msra.mxu1 %v13441_v4  ;;  %v881_v18 = vld [vmem:[%s19620_s3 + $0xc8] sm:$0xff]  ;;  %v864_v20 = vld [vmem:[%s19620_s3 + $0x40] sm:$0xff]  ;;  %v14669_v22 = vpack.c.bf16 %v839_v16, %v838_v15  ;;  %v840_v26 = vld [vmem:[%s19619_s2 + $0x10] sm:$0xff] }
  0x49   : > { %13418 = vmatprep.subr.bf16.mxu0 %v13417_v1  ;;  %13446 = vmatprep.subr.bf16.mxu1 %v13445_v9  ;;  %v747_v21 = vld [vmem:[#allocation3 + $0x28] sm:$0xff]  ;;  %v13425_v23 = vpack.c.bf16 %v881_v18, %v880_v17  ;;  %v841_v27 = vld [vmem:[%s19619_s2 + $0x18] sm:$0xff]  ;;  %v882_v28 = vld [vmem:[%s19620_s3 + $0xd0] sm:$0xff] }
  0x4a   : > { %12617 = vmatprep.mubr.msk.f32.mxu1 %vm892_vm2, %v744_v12  ;;  %v865_v24 = vld [vmem:[%s19620_s3 + $0x48] sm:$0xff]  ;;  %v883_v29 = vld [vmem:[%s19620_s3 + $0xd8] sm:$0xff]  ;;  %v866_v30 = vld [vmem:[%s19620_s3 + $0x50] sm:$0xff]  ;;  %v14695_v34 = vpack.c.bf16 %v841_v27, %v840_v26 }
  0x4b   : > { %v750_v31 = vld [vmem:[#allocation3 + $0x40] sm:$0xff]  ;;  %v13427_v32 = vpack.c.bf16 %v865_v24, %v864_v20  ;;  %v867_v33 = vld [vmem:[%s19620_s3 + $0x58] sm:$0xff]  ;;  %v14697_v36 = vld [vmem:[#allocation3 + $0x8] sm:$0xff]  ;;  %v13429_v37 = vpack.c.bf16 %v883_v29, %v882_v28 }
  0x4c   : > { %13420 = vmatpush3.bf16.msra.mxu0 %v13419_v10  ;;  %13448 = vmatpush3.bf16.msra.mxu1 %v13445_v9  ;;  %v753_v35 = vld [vmem:[#allocation3 + $0x58] sm:$0xff]  ;;  %v884_v38 = vld [vmem:[%s19620_s3 + $0xe0] sm:$0xff]  ;;  %v843_v40 = vld [vmem:[%s19619_s2 + $0x28] sm:$0xff]  ;;  %v13431_v45 = vpack.c.bf16 %v867_v33, %v866_v30 }
  0x4d   : > { %13422 = vmatprep.subr.bf16.mxu0 %v13421_v13  ;;  %13813 = vmatprep.subr.bf16.mxu1 %v19668_v25  ;;  %v842_v39 = vld [vmem:[%s19619_s2 + $0x20] sm:$0xff]  ;;  %v885_v41 = vld [vmem:[%s19620_s3 + $0xe8] sm:$0xff]  ;;  %v765_v42 = vld [vmem:[#allocation3 + $0xb8] sm:$0xff] }
  0x4e   : > { %1005 = vmatprep.mubr.f32.mxu0 %v14697_v36  ;;  %v14714_v43 = vld [vmem:[#allocation2 + $0x92] sm:$0xff]  ;;  %v868_v46 = vld [vmem:[%s19620_s3 + $0x60] sm:$0xff]  ;;  %v14723_v47 = vpack.c.bf16 %v843_v40, %v842_v39  ;;  %v759_v48 = vld [vmem:[#allocation3 + $0x88] sm:$0xff]  ;;  %v13433_v49 = vpack.c.bf16 %v885_v41, %v884_v38  ;;  %2143 = vrot.lane.b32.xlu0 %v14697_v36, %s19768_s30 }
  0x4f   : > { %12618 = vmatmul.mubr.msk.f32.vlgmr.msra.gmra.mrb[0].mxu1 %vm892_vm2, %v747_v21  ;;  %19809 = vst [vmem:[#allocation5_spill] sm:$0xff] %v14714_v43  ;;  %v756_v44 = vld [vmem:[#allocation3 + $0x70] sm:$0xff]  ;;  %11103 = vst.msk [vmem:[#allocation3 + $0xb8] sm:$0xff] %vm892_vm2, %v14714_v43  ;;  %v869_v50 = vld [vmem:[%s19620_s3 + $0x68] sm:$0xff] }
  0x50   : > { %13424 = vmatpush3.bf16.msra.mxu0 %v13423_v19  ;;  %13822 = vmatpush1.bf16.msra.mxu1 %v14669_v22  ;;  %v844_v51 = vld [vmem:[%s19619_s2 + $0x30] sm:$0xff]  ;;  %v845_v52 = vld [vmem:[%s19619_s2 + $0x38] sm:$0xff]  ;;  %v762_v55 = vld [vmem:[#allocation3 + $0xa0] sm:$0xff]  ;;  %v13435_v56 = vpack.c.bf16 %v869_v50, %v868_v46 }
  0x51   : > { %13426 = vmatprep.subr.bf16.mxu0 %v13425_v23  ;;  %13814 = vmatprep.subr.bf16.mxu1 %v19668_v25  ;;  %v886_v53 = vld [vmem:[%s19620_s3 + $0xf0] sm:$0xff]  ;;  %v887_v54 = vld [vmem:[%s19620_s3 + $0xf8] sm:$0xff]  ;;  %v14747_v58 = vpack.c.bf16 %v845_v52, %v844_v51  ;;  %v846_v61 = vld [vmem:[%s19619_s2 + $0x40] sm:$0xff] }
  0x52   : > { %12620 = vmatprep.mubr.msk.f32.mxu1 %vm892_vm2, %v750_v31  ;;  %v870_v57 = vld [vmem:[%s19620_s3 + $0x70] sm:$0xff]  ;;  %v13437_v59 = vpack.c.bf16 %v887_v54, %v886_v53  ;;  %v871_v60 = vld [vmem:[%s19620_s3 + $0x78] sm:$0xff]  ;;  %v847_v62 = vld [vmem:[%s19619_s2 + $0x48] sm:$0xff] }
  0x53   : > { %12621 = vmatmul.mubr.msk.f32.gmra.mrb[2].mxu1 %vm892_vm2, %v753_v35  ;;  %v14760_v63 = vld [vmem:[#allocation3 + $0x178] sm:$0xff]  ;;  %v768_v1 = vld [vmem:[#allocation3 + $0xd0] sm:$0xff]  ;;  %v13439_v2 = vpack.c.bf16 %v871_v60, %v870_v57  ;;  %v14768_v3 = vpack.c.bf16 %v847_v62, %v846_v61  ;;  %v771_v4 = vld [vmem:[#allocation3 + $0xe8] sm:$0xff] }
  0x54   : > { %13428 = vmatpush3.bf16.msra.mxu0 %v13427_v32  ;;  %13823 = vmatpush1.bf16.msra.mxu1 %v14695_v34  ;;  %v14762_v0 = vld [vmem:[#allocation2 + $0x132] sm:$0xff]  ;;  %v774_v7 = vld [vmem:[#allocation3 + $0x100] sm:$0xff]  ;;  %v851_v13 = vld [vmem:[%s19619_s2 + $0x68] sm:$0xff] }
  0x55   : > { %13430 = vmatprep.subr.bf16.mxu0 %v13429_v37  ;;  %13815 = vmatprep.subr.bf16.mxu1 %v19668_v25  ;;  %19810 = vst [vmem:[#allocation6_spill] sm:$0xff] %v14762_v0  ;;  %11127 = vst.msk [vmem:[#allocation3 + $0x178] sm:$0xff] %vm892_vm2, %v14762_v0  ;;  %v848_v5 = vld [vmem:[%s19619_s2 + $0x50] sm:$0xff]  ;;  %v849_v6 = vld [vmem:[%s19619_s2 + $0x58] sm:$0xff] }
  0x56   : > { %12623 = vmatprep.mubr.msk.f32.mxu1 %vm892_vm2, %v756_v44  ;;  %v742_v8 = vld [vmem:[#allocation3] sm:$0xff]  ;;  %v777_v9 = vld [vmem:[#allocation3 + $0x118] sm:$0xff]  ;;  %v14784_v11 = vpack.c.bf16 %v849_v6, %v848_v5  ;;  %v780_v14 = vld [vmem:[#allocation3 + $0x130] sm:$0xff] }
  0x57   : > { %12624 = vmatmul.mubr.msk.f32.gmra.mrb[4].mxu1 %vm892_vm2, %v759_v48  ;;  %v14781_v10 = vld [vmem:[#allocation3 + $0x20] sm:$0xff]  ;;  %v745_v15 = vld [vmem:[#allocation3 + $0x18] sm:$0xff]  ;;  %v783_v16 = vld [vmem:[#allocation3 + $0x148] sm:$0xff] }
  0x58   : > { %13432 = vmatpush3.bf16.msra.mxu0 %v13431_v45  ;;  %13824 = vmatpush1.bf16.msra.mxu1 %v14723_v47  ;;  %v850_v12 = vld [vmem:[%s19619_s2 + $0x60] sm:$0xff]  ;;  %v14797_v17 = vld [vmem:[#allocation3 + $0x38] sm:$0xff]  ;;  %v852_v19 = vld [vmem:[%s19619_s2 + $0x70] sm:$0xff] }
  0x59   : > { %13434 = vmatprep.subr.bf16.mxu0 %v13433_v49  ;;  %13816 = vmatprep.subr.bf16.mxu1 %v19668_v25  ;;  %v14800_v18 = vpack.c.bf16 %v851_v13, %v850_v12  ;;  %v853_v20 = vld [vmem:[%s19619_s2 + $0x78] sm:$0xff]  ;;  %v14811_v21 = vld [vmem:[%s14386_s29 + $0x20] sm:$0xff]  ;;  %v14813_v23 = vld [vmem:[#allocation3 + $0x50] sm:$0xff] }
  0x5a   : > { %12626 = vmatprep.mubr.msk.f32.mxu1 %vm892_vm2, %v762_v55  ;;  %v786_v24 = vld [vmem:[#allocation3 + $0x160] sm:$0xff]  ;;  %v855_v27 = vld [vmem:[%s19619_s2 + $0x88] sm:$0xff]  ;;  %v14825_v28 = vpack.c.bf16 %v853_v20, %v852_v19  ;;  %v19660_v29 = vunpack.c.h.bf16 %v14811_v21  ;;  %v19659_v37 = vunpack.c.l.bf16 %v14811_v21  ;;  %v14854_v38 = vld [vmem:[%s14386_s29 + $0x30] sm:$0xff]  ;;  %2147 = vrot.lane.b32.xlu1 %v14797_v17, %s19768_s30 }
  0x5b   : > { %12627 = vmatmul.mubr.msk.f32.gmra.mrb[6].mxu1 %vm892_vm2, %v765_v42  ;;  %v854_v26 = vld [vmem:[%s19619_s2 + $0x80] sm:$0xff]  ;;  %v751_v30 = vld [vmem:[#allocation3 + $0x48] sm:$0xff]  ;;  %v757_v40 = vld [vmem:[#allocation3 + $0x78] sm:$0xff]  ;;  %v19656_v45 = vunpack.c.h.bf16 %v14854_v38  ;;  %v19655_v48 = vunpack.c.l.bf16 %v14854_v38  ;;  %2145 = vrot.lane.b32.xlu0 %v14781_v10, %s19768_s30 }
  0x5c   : > { %13436 = vmatpush3.bf16.msra.mxu0 %v13435_v56  ;;  %13825 = vmatpush1.bf16.msra.mxu1 %v14747_v58  ;;  %v14831_v31 = vld [vmem:[#allocation3 + $0x68] sm:$0xff]  ;;  %v14841_v33 = vpack.c.bf16 %v855_v27, %v854_v26  ;;  %v14848_v35 = vld [vmem:[#allocation3 + $0x80] sm:$0xff]  ;;  %v14860_v41 = vld [vmem:[#allocation3 + $0x98] sm:$0xff] }
  0x5d   : > { %13438 = vmatprep.subr.bf16.mxu0 %v13437_v59  ;;  %13817 = vmatprep.subr.bf16.mxu1 %v19668_v25  ;;  %v14838_v32 = vld [vmem:[%s14386_s29 + $0x28] sm:$0xff]  ;;  %v14867_v44 = vld [vmem:[%s14386_s29 + $0x38] sm:$0xff]  ;;  %v760_v46 = vld [vmem:[#allocation3 + $0x90] sm:$0xff] }
  0x5e   : > { %12629 = vmatprep.mubr.msk.f32.mxu1 %vm892_vm2, %v768_v1  ;;  %v19658_v39 = vunpack.c.h.bf16 %v14838_v32  ;;  %v19657_v42 = vunpack.c.l.bf16 %v14838_v32  ;;  %v14880_v49 = vld [vmem:[%s14386_s29 + $0x40] sm:$0xff]  ;;  %v19654_v50 = vunpack.c.h.bf16 %v14867_v44  ;;  %v763_v51 = vld [vmem:[#allocation3 + $0xa8] sm:$0xff]  ;;  %v19653_v53 = vunpack.c.l.bf16 %v14867_v44  ;;  %v14914_v60 = vld [vmem:[%s14386_s29 + $0x50] sm:$0xff]  ;;  %2149 = vrot.lane.b32.xlu1 %v14813_v23, %s19768_s30 }
  0x5f   : > { %12630 = vmatmul.mubr.msk.f32.gmra.mrb[8].mxu1 %vm892_vm2, %v771_v4  ;;  %v14888_v52 = vld [vmem:[#allocation3 + $0xc8] sm:$0xff]  ;;  %v19652_v55 = vunpack.c.h.bf16 %v14880_v49  ;;  %v766_v56 = vld [vmem:[#allocation3 + $0xc0] sm:$0xff]  ;;  %v19651_v57 = vunpack.c.l.bf16 %v14880_v49  ;;  %v769_v61 = vld [vmem:[#allocation3 + $0xd8] sm:$0xff]  ;;  %v19648_v1 = vunpack.c.h.bf16 %v14914_v60  ;;  %v19647_v4 = vunpack.c.l.bf16 %v14914_v60  ;;  %2151 = vrot.lane.b32.xlu0 %v14831_v31, %s19768_s30 }
  0x60   : > { %13440 = vmatpush3.bf16.msra.mxu0 %v13439_v2  ;;  %13826 = vmatpush1.bf16.msra.mxu1 %v14768_v3  ;;  %v14894_v54 = vld [vmem:[%s14386_s29 + $0x48] sm:$0xff]  ;;  %v14929_v2 = vld [vmem:[%s14386_s29 + $0x58] sm:$0xff]  ;;  %v14936_v5 = vld [vmem:[#allocation3 + $0x110] sm:$0xff] }
  0x61   : > { %13449 = vmatprep.subr.bf16.mxu0 %v19668_v25  ;;  %13818 = vmatprep.subr.bf16.mxu1 %v19668_v25  ;;  %v19650_v59 = vunpack.c.h.bf16 %v14894_v54  ;;  %v19649_v62 = vunpack.c.l.bf16 %v14894_v54  ;;  %v19646_v6 = vunpack.c.h.bf16 %v14929_v2  ;;  %v14956_v13 = vld [vmem:[%s14386_s29 + $0x68] sm:$0xff]  ;;  %v14969_v19 = vld [vmem:[%s14386_s29 + $0x70] sm:$0xff]  ;;  %v781_v20 = vld [vmem:[#allocation3 + $0x138] sm:$0xff] }
  0x62   : > { %12632 = vmatprep.mubr.msk.f32.mxu1 %vm892_vm2, %v774_v7  ;;  %v14943_v7 = vld [vmem:[%s14386_s29 + $0x60] sm:$0xff]  ;;  %v19638_v26 = vunpack.c.h.bf16 %v14969_v19  ;;  %v14982_v27 = vld [vmem:[%s14386_s29 + $0x78] sm:$0xff]  ;;  %2153 = vrot.lane.b32.xlu1 %v14848_v35, %s19768_s30 }
  0x63   : > { %1006 = vmatmul.mubr.f32.vlgmr.msra.gmra.mrb[0].mxu0 %v742_v8  ;;  %12633 = vmatmul.mubr.msk.f32.gmra.mrb[10].mxu1 %vm892_vm2, %v777_v9  ;;  %v775_v8 = vld [vmem:[#allocation3 + $0x108] sm:$0xff]  ;;  %v19645_v9 = vunpack.c.l.bf16 %v14929_v2  ;;  %v19642_v12 = vunpack.c.h.bf16 %v14943_v7 }
  0x64   : > { %13451 = vmatpush1.bf16.msra.mxu0 %v14669_v22  ;;  %1010 = vmatprep.mubr.f32.mxu0 %v14781_v10  ;;  %v748_v22 = vld [vmem:[#allocation3 + $0x30] sm:$0xff] }
  0x65   : > { %13827 = vmatpush1.bf16.msra.mxu1 %v14784_v11  ;;  %13452 = vmatprep.subr.bf16.mxu0 %v19668_v25 }
  0x66   : > { %13819 = vmatprep.subr.bf16.mxu1 %v19668_v25  ;;  %12635 = vmatprep.mubr.msk.f32.mxu1 %vm892_vm2, %v780_v14  ;;  %v778_v14 = vld [vmem:[#allocation3 + $0x120] sm:$0xff] }
  0x67   : > { %1011 = vmatmul.mubr.f32.gmra.mrb[2].mxu0 %v745_v15  ;;  %12636 = vmatmul.mubr.msk.f32.gmra.mrb[12].mxu1 %vm892_vm2, %v783_v16  ;;  %v19641_v15 = vunpack.c.l.bf16 %v14943_v7  ;;  %v14962_v16 = vld [vmem:[#allocation3 + $0x140] sm:$0xff] }
  0x68   : > { %1015 = vmatprep.mubr.f32.mxu0 %v14797_v17  ;;  %13454 = vmatpush1.bf16.msra.mxu0 %v14695_v34  ;;  %v754_v34 = vld [vmem:[#allocation3 + $0x60] sm:$0xff] }
  0x69   : > { %13828 = vmatpush1.bf16.msra.mxu1 %v14800_v18  ;;  %13455 = vmatprep.subr.bf16.mxu0 %v19668_v25 }
  0x6a   : > { %13820 = vmatprep.subr.bf16.mxu1 %v19668_v25  ;;  %12638 = vmatprep.mubr.msk.f32.mxu1 %vm892_vm2, %v786_v24  ;;  %v14975_v24 = vld [vmem:[#allocation3 + $0x158] sm:$0xff] }
  0x6b   : > { %1016 = vmatmul.mubr.f32.gmra.mrb[4].mxu0 %v748_v22  ;;  %12639 = vmatmul.mubr.msk.f32.gmra.mrb[14].mxu1 %vm892_vm2, %v14760_v63  ;;  %v14921_v63 = vld [vmem:[#allocation3 + $0xf8] sm:$0xff]  ;;  %v19639_v22 = vunpack.c.l.bf16 %v14956_v13 }
  0x6c   : > { %1020 = vmatprep.mubr.f32.mxu0 %v14813_v23  ;;  %13457 = vmatpush1.bf16.msra.mxu0 %v14723_v47  ;;  %v764_v47 = vld [vmem:[#allocation3 + $0xb0] sm:$0xff] }
  0x6d   : > { %13829 = vmatpush1.bf16.msra.mxu1 %v14825_v28  ;;  %11275 = vmatprep.mubr.msk.f32.mxu1 %vm1231_vm3, %v19660_v29 }
  0x6e   : > { %13821 = vmatprep.subr.bf16.mxu1 %v19668_v25  ;;  %13458 = vmatprep.subr.bf16.mxu0 %v19668_v25 }
  0x6f   : > { %1021 = vmatmul.mubr.f32.gmra.mrb[6].mxu0 %v751_v30  ;;  %v19637_v30 = vunpack.c.l.bf16 %v14969_v19  ;;  %2159 = vrot.lane.b32.xlu1 %v14888_v52, %s19768_s30 }
  0x70   : > { %1025 = vmatprep.mubr.f32.mxu0 %v14831_v31  ;;  %13460 = vmatpush1.bf16.msra.mxu0 %v14747_v58  ;;  %v14906_v58 = vld [vmem:[#allocation3 + $0xe0] sm:$0xff] }
  0x71   : > { %13830 = vmatpush1.bf16.msra.mxu1 %v14841_v33  ;;  %13461 = vmatprep.subr.bf16.mxu0 %v19668_v25 }
  0x72   : > { %13488 = vmatprep.subr.bf16.mxu1 %v19668_v25  ;;  %2155 = vrot.lane.b32.xlu0 %v14860_v41, %s19768_s30 }
  0x73   : > { %1026 = vmatmul.mubr.f32.gmra.mrb[8].mxu0 %v754_v34  ;;  %v14992_v34 = vld [vmem:[%s14386_s29] sm:$0xff]  ;;  %2163 = vrot.lane.b32.xlu1 %v14921_v63, %s19768_s30 }
  0x74   : > { %1030 = vmatprep.mubr.f32.mxu0 %v14848_v35  ;;  %1365 = vmatmul.mubr.f32.vlgmr.msra.gmra.mrb[16].mxu1 %v19659_v37 }
  0x75   : > { %11276 = vmatprep.mubr.msk.f32.mxu1 %vm1231_vm3, %v19658_v39  ;;  %13463 = vmatpush1.bf16.msra.mxu0 %v14768_v3  ;;  %v772_v3 = vld [vmem:[#allocation3 + $0xf0] sm:$0xff] }
  0x76   : > { %13464 = vmatprep.subr.bf16.mxu0 %v19668_v25  ;;  %2161 = vrot.lane.b32.xlu0 %v14906_v58, %s19768_s30 }
  0x77   : > { %1031 = vmatmul.mubr.f32.gmra.mrb[10].mxu0 %v757_v40  ;;  %v19636_v40 = vunpack.c.h.bf16 %v14982_v27 }
  0x78   : > { %1035 = vmatprep.mubr.f32.mxu0 %v14860_v41  ;;  %1370 = vmatmul.mubr.f32.gmra.mrb[18].mxu1 %v19657_v42 }
  0x79   : > { %11277 = vmatprep.mubr.msk.f32.mxu1 %vm1231_vm3, %v19656_v45  ;;  %13466 = vmatpush1.bf16.msra.mxu0 %v14784_v11  ;;  %v14949_v11 = vld [vmem:[#allocation3 + $0x128] sm:$0xff] }
  0x7a   : > { %13467 = vmatprep.subr.bf16.mxu0 %v19668_v25  ;;  %2167 = vrot.lane.b32.xlu1 %v14949_v11, %s19768_s30 }
  0x7b   : > { %1036 = vmatmul.mubr.f32.gmra.mrb[12].mxu0 %v760_v46  ;;  %v787_v46 = vld [vmem:[#allocation3 + $0x168] sm:$0xff]  ;;  %2165 = vrot.lane.b32.xlu0 %v14936_v5, %s19768_s30 }
  0x7c   : > { %1040 = vmatprep.mubr.f32.mxu0 %v764_v47  ;;  %1375 = vmatmul.mubr.f32.gmra.mrb[20].mxu1 %v19655_v48  ;;  %v807_v47 = vunpack.c.h.bf16 %v14992_v34 }
  0x7d   : > { %11278 = vmatprep.mubr.msk.f32.mxu1 %vm1231_vm3, %v19654_v50  ;;  %13469 = vmatpush1.bf16.msra.mxu0 %v14800_v18  ;;  %v19640_v18 = vunpack.c.h.bf16 %v14956_v13 }
  0x7e   : > { %13470 = vmatprep.subr.bf16.mxu0 %v19668_v25  ;;  %2171 = vrot.lane.b32.xlu1 %v14975_v24, %s19768_s30 }
  0x7f   : > { %1041 = vmatmul.mubr.f32.gmra.mrb[14].mxu0 %v763_v51  ;;  %v19635_v51 = vunpack.c.l.bf16 %v14982_v27  ;;  %2169 = vrot.lane.b32.xlu0 %v14962_v16, %s19768_s30 }
  0x80   : > { %1045 = vmatprep.mubr.f32.mxu0 %v14888_v52  ;;  %1380 = vmatmul.mubr.f32.gmra.mrb[22].mxu1 %v19653_v53 }
  0x81   : > { %11279 = vmatprep.mubr.msk.f32.mxu1 %vm1231_vm3, %v19652_v55  ;;  %13472 = vmatpush1.bf16.msra.mxu0 %v14825_v28  ;;  %v784_v28 = vld [vmem:[#allocation3 + $0x150] sm:$0xff] }
  0x82   : > { %13473 = vmatprep.subr.bf16.mxu0 %v19668_v25 }
  0x83   : > { %1046 = vmatmul.mubr.f32.gmra.mrb[16].mxu0 %v766_v56  ;;  %v15003_v56 = vld [vmem:[%s14386_s29 + $0x8] sm:$0xff] }
  0x84   : > { %1050 = vmatprep.mubr.f32.mxu0 %v14906_v58  ;;  %1385 = vmatmul.mubr.f32.gmra.mrb[24].mxu1 %v19651_v57 }
  0x85   : > { %11280 = vmatprep.mubr.msk.f32.mxu1 %vm1231_vm3, %v19650_v59  ;;  %13475 = vmatpush1.bf16.msra.mxu0 %v14841_v33  ;;  %v788_v33 = vld [vmem:[#allocation3 + $0x170] sm:$0xff] }
  0x86   : > { %13476 = vmatprep.subr.bf16.mxu0 %v19668_v25 }
  0x87   : > { %1051 = vmatmul.mubr.f32.gmra.mrb[18].mxu0 %v769_v61  ;;  %v19667_v61 = vunpack.c.l.bf16 %v14992_v34 }
  0x88   : > { %1055 = vmatprep.mubr.f32.mxu0 %v14921_v63  ;;  %1390 = vmatmul.mubr.f32.gmra.mrb[26].mxu1 %v19649_v62 }
  0x89   : > { %11281 = vmatprep.mubr.msk.f32.mxu1 %vm1231_vm3, %v19648_v1 }
  0x8b   : > { %1056 = vmatmul.mubr.f32.gmra.mrb[20].mxu0 %v772_v3  ;;  %v19666_v3 = vunpack.c.h.bf16 %v15003_v56 }
  0x8c   : > { %1060 = vmatprep.mubr.f32.mxu0 %v14936_v5  ;;  %1395 = vmatmul.mubr.f32.gmra.mrb[28].mxu1 %v19647_v4 }
  0x8d   : > { %11282 = vmatprep.mubr.msk.f32.mxu1 %vm1231_vm3, %v19646_v6 }
  0x8f   : > { %1061 = vmatmul.mubr.f32.gmra.mrb[22].mxu0 %v775_v8  ;;  %v15013_v8 = vld [vmem:[%s14386_s29 + $0x10] sm:$0xff] }
  0x90   : > { %1065 = vmatprep.mubr.f32.mxu0 %v14949_v11  ;;  %1400 = vmatmul.mubr.f32.gmra.mrb[30].mxu1 %v19645_v9 }
  0x91   : > { %11283 = vmatprep.mubr.msk.f32.mxu1 %vm1231_vm3, %v19642_v12 }
  0x93   : > { %1066 = vmatmul.mubr.f32.gmra.mrb[24].mxu0 %v778_v14  ;;  %v19665_v14 = vunpack.c.l.bf16 %v15003_v56 }
  0x94   : > { %1070 = vmatprep.mubr.f32.mxu0 %v14962_v16  ;;  %1405 = vmatmul.mubr.f32.gmra.mrb[32].mxu1 %v19641_v15 }
  0x95   : > { %11284 = vmatprep.mubr.msk.f32.mxu1 %vm1231_vm3, %v19640_v18  ;;  %v1451_v18 = vld [vmem:[%s19624_s7 + $0x18] sm:$0xff] }
  0x97   : > { %1071 = vmatmul.mubr.f32.gmra.mrb[26].mxu0 %v781_v20  ;;  %v19664_v20 = vunpack.c.h.bf16 %v15013_v8 }
  0x98   : > { %1075 = vmatprep.mubr.f32.mxu0 %v14975_v24  ;;  %1410 = vmatmul.mubr.f32.gmra.mrb[34].mxu1 %v19639_v22  ;;  %v1450_v22 = vld [vmem:[%s19624_s7 + $0x10] sm:$0xff] }
  0x99   : > { %11285 = vmatprep.mubr.msk.f32.mxu1 %vm1231_vm3, %v19638_v26  ;;  %v13480_v15 = vpack.c.bf16 %v1451_v18, %v1450_v22  ;;  %v19643_v18 = vmov 0.0  }
  0x9b   : > { %1076 = vmatmul.mubr.f32.gmra.mrb[28].mxu0 %v784_v28  ;;  %v15023_v28 = vld [vmem:[%s14386_s29 + $0x18] sm:$0xff] }
  0x9c   : > { %1080 = vmatprep.mubr.f32.mxu0 %v788_v33  ;;  %1415 = vmatmul.mubr.f32.gmra.mrb[36].mxu1 %v19637_v30  ;;  %v19663_v33 = vunpack.c.l.bf16 %v15013_v8  ;;  %v1449_v30 = vld [vmem:[%s19624_s7 + $0x8] sm:$0xff] }
  0x9d   : > { %11286 = vmatprep.mubr.msk.f32.mxu1 %vm1231_vm3, %v19636_v40  ;;  %v1448_v40 = vld [vmem:[%s19624_s7] sm:$0xff] }
  0x9e   : > { %v13477_v26 = vpack.c.bf16 %v1449_v30, %v1448_v40  ;;  %v1453_v30 = vld [vmem:[%s19624_s7 + $0x28] sm:$0xff]  ;;  %v1454_v40 = vld [vmem:[%s19624_s7 + $0x30] sm:$0xff] }
  0x9f   : > { %1081 = vmatmul.mubr.f32.gmra.mrb[30].mxu0 %v787_v46  ;;  %v19662_v46 = vunpack.c.h.bf16 %v15023_v28 }
  0xa0   : > { %11271 = vmatprep.mubr.msk.f32.mxu0 %vm1231_vm3, %v807_v47  ;;  %1420 = vmatmul.mubr.f32.gmra.mrb[38].mxu1 %v19635_v51  ;;  %v19661_v51 = vunpack.c.l.bf16 %v15023_v28 }
  0xa1   : > { %13490 = vmatpush3.bf16.msra.mxu1 %v13477_v26  ;;  %12676 = vmatprep.mubr.msk.f32.mxu1 %vm14274_vm4, %v19643_v18 }
  0xa2   : > { %13491 = vmatprep.subr.bf16.mxu1 %v19668_v25 }
  0xa3   : > { %1345 = vmatmul.mubr.f32.vlgmr.msra.gmra.mrb[32].mxu0 %v19667_v61 }
  0xa4   : > { %11272 = vmatprep.mubr.msk.f32.mxu0 %vm1231_vm3, %v19666_v3  ;;  %13478 = vmatpush3.bf16.msra.mxu0 %v13477_v26  ;;  %v1452_v26 = vld [vmem:[%s19624_s7 + $0x20] sm:$0xff] }
  0xa5   : > { %13479 = vmatprep.subr.bf16.mxu0 %v19668_v25  ;;  %13493 = vmatpush3.bf16.msra.mxu1 %v13480_v15  ;;  %v13483_v12 = vpack.c.bf16 %v1453_v30, %v1452_v26 }
  0xa6   : > { %13494 = vmatprep.subr.bf16.mxu1 %v19668_v25 }
  0xa7   : > { %1350 = vmatmul.mubr.f32.gmra.mrb[34].mxu0 %v19665_v14 }
  0xa8   : > { %11273 = vmatprep.mubr.msk.f32.mxu0 %vm1231_vm3, %v19664_v20  ;;  %13481 = vmatpush3.bf16.msra.mxu0 %v13480_v15  ;;  %v1455_v15 = vld [vmem:[%s19624_s7 + $0x38] sm:$0xff] }
  0xa9   : > { %13482 = vmatprep.subr.bf16.mxu0 %v19668_v25  ;;  %13496 = vmatpush3.bf16.msra.mxu1 %v13483_v12  ;;  %v13486_v22 = vpack.c.bf16 %v1455_v15, %v1454_v40 }
  0xaa   : > { %13497 = vmatprep.subr.bf16.mxu1 %v19668_v25 }
  0xab   : > { %1355 = vmatmul.mubr.f32.gmra.mrb[36].mxu0 %v19663_v33 }
  0xac   : > { %11274 = vmatprep.mubr.msk.f32.mxu0 %vm1231_vm3, %v19662_v46  ;;  %13484 = vmatpush3.bf16.msra.mxu0 %v13483_v12 }
  0xad   : > { %13485 = vmatprep.subr.bf16.mxu0 %v19668_v25  ;;  %13499 = vmatpush3.bf16.msra.mxu1 %v13486_v22 }
  0xaf   : > { %1360 = vmatmul.mubr.f32.gmra.mrb[38].mxu0 %v19661_v51 }
  0xb0   : > { %12657 = vmatprep.mubr.msk.f32.mxu0 %vm14274_vm4, %v19643_v18  ;;  %13487 = vmatpush3.bf16.msra.mxu0 %v13486_v22 }
  0xb1   : > { %13500 = vmatprep.subr.bf16.mxu0 %v19668_v25 }
 0x122   : > { %v12619_v26 = vpop.f32.mrb[0].mxu1 }
 0x123   : > { %v1152_v30 = vpop.f32.mrb[1].mxu1 }
 0x126   : > { %v12622_v18 = vpop.f32.mrb[2].mxu1 }
 0x127   : > { %v1162_v40 = vpop.f32.mrb[3].mxu1 }
 0x12a   : > { %v12625_v12 = vpop.f32.mrb[4].mxu1 }
 0x12b   : > { %v1172_v15 = vpop.f32.mrb[5].mxu1 }
 0x12e   : > { %v12628_v17 = vpop.f32.mrb[6].mxu1 }
 0x12f   : > { %v1182_v22 = vpop.f32.mrb[7].mxu1 }
 0x132   : > { %v15091_v36 = vpop.f32.mrb[8].mxu1 }
 0x133   : > { %v15093_v23 = vpop.f32.mrb[9].mxu1 }
 0x136   : > { %v11877_v10 = vpop.f32.mrb[0].mxu0  ;;  %v15099_v31 = vpop.f32.mrb[10].mxu1 }
 0x137   : > { %v11878_v35 = vpop.f32.mrb[1].mxu0  ;;  %v15101_v9 = vpop.f32.mrb[11].mxu1 }
 0x138   : > { %v11879_v52 = vadd.f32 %v11878_v35, %v11877_v10 }
 0x13a   : > { %v15107_v41 = vadd.f32 %v11879_v52, %v1152_v30  ;;  %v11880_v6 = vpop.f32.mrb[2].mxu0  ;;  %v15109_v63 = vpop.f32.mrb[12].mxu1 }
 0x13b   : > { %v11881_v4 = vpop.f32.mrb[3].mxu0  ;;  %v15111_v58 = vpop.f32.mrb[13].mxu1 }
 0x13c   : > { %v11882_v1 = vadd.f32 %v11881_v4, %v11880_v6 }
 0x13e   : > { %v11883_v10 = vpop.f32.mrb[4].mxu0  ;;  %v15117_v11 = vpop.f32.mrb[14].mxu1  ;;  %v15119_v35 = vadd.f32 %v12619_v26, %v11882_v1 }
 0x13f   : > { %v11884_v5 = vpop.f32.mrb[5].mxu0  ;;  %v15121_v30 = vpop.f32.mrb[15].mxu1 }
 0x140   : > { %v11885_v52 = vadd.f32 %v11884_v5, %v11883_v10 }
 0x142   : > { %v11886_v62 = vpop.f32.mrb[6].mxu0  ;;  %v15123_v59 = vadd.f32 %v11885_v52, %v1162_v40 }
 0x143   : > { %v11887_v57 = vpop.f32.mrb[7].mxu0 }
 0x144   : > { %v11888_v4 = vadd.f32 %v11887_v57, %v11886_v62 }
 0x146   : > { %v11889_v6 = vpop.f32.mrb[8].mxu0  ;;  %v15125_v55 = vadd.f32 %v12622_v18, %v11888_v4 }
 0x147   : > { %v11890_v24 = vpop.f32.mrb[9].mxu0  ;;  %v1366_v53 = vpop.f32.mrb[16].mxu1 }
 0x148   : > { %v11891_v16 = vadd.f32 %v11890_v24, %v11889_v6  ;;  %v1368_v50 = vpop.f32.mrb[17].mxu1 }
 0x14a   : > { %v11892_v48 = vpop.f32.mrb[10].mxu0  ;;  %v1173_v45 = vadd.f32 %v11891_v16, %v1172_v15 }
 0x14b   : > { %v11893_v1 = vpop.f32.mrb[11].mxu0  ;;  %v1371_v26 = vpop.f32.mrb[18].mxu1 }
 0x14c   : > { %v11894_v42 = vadd.f32 %v11893_v1, %v11892_v48  ;;  %v15127_v39 = vadd.f32 %v1366_v53, %v1173_v45  ;;  %v1373_v10 = vpop.f32.mrb[19].mxu1 }
 0x14e   : > { %v11895_v5 = vpop.f32.mrb[12].mxu0  ;;  %v1178_v40 = vadd.f32 %v12625_v12, %v11894_v42 }
 0x14f   : > { %v11896_v52 = vpop.f32.mrb[13].mxu0  ;;  %v1376_v37 = vpop.f32.mrb[20].mxu1 }
 0x150   : > { %v11897_v57 = vadd.f32 %v11896_v52, %v11895_v5  ;;  %v15129_v62 = vadd.f32 %v1371_v26, %v1178_v40  ;;  %v1378_v18 = vpop.f32.mrb[21].mxu1 }
 0x152   : > { %v11898_v4 = vpop.f32.mrb[14].mxu0  ;;  %v1183_v29 = vadd.f32 %v11897_v57, %v1182_v22 }
 0x153   : > { %v11899_v6 = vpop.f32.mrb[15].mxu0  ;;  %v1381_v50 = vpop.f32.mrb[22].mxu1 }
 0x154   : > { %v11900_v24 = vadd.f32 %v11899_v6, %v11898_v4  ;;  %v15131_v15 = vadd.f32 %v1376_v37, %v1183_v29  ;;  %v1383_v16 = vpop.f32.mrb[23].mxu1 }
 0x156   : > { %v11901_v48 = vpop.f32.mrb[16].mxu0  ;;  %v1188_v45 = vadd.f32 %v12628_v17, %v11900_v24 }
 0x157   : > { %v11902_v53 = vpop.f32.mrb[17].mxu0  ;;  %v1386_v1 = vpop.f32.mrb[24].mxu1 }
 0x158   : > { %v11903_v10 = vadd.f32 %v11902_v53, %v11901_v48  ;;  %v15133_v42 = vadd.f32 %v1381_v50, %v1188_v45  ;;  %v1388_v12 = vpop.f32.mrb[25].mxu1 }
 0x15a   : > { %v11904_v5 = vpop.f32.mrb[18].mxu0  ;;  %v1193_v26 = vadd.f32 %v11903_v10, %v15093_v23 }
 0x15b   : > { %v11905_v40 = vpop.f32.mrb[19].mxu0  ;;  %v1391_v52 = vpop.f32.mrb[26].mxu1 }
 0x15c   : > { %v11906_v22 = vadd.f32 %v11905_v40, %v11904_v5  ;;  %v1387_v57 = vadd.f32 %v1386_v1, %v1193_v26  ;;  %v1393_v18 = vpop.f32.mrb[27].mxu1 }
 0x15e   : > { %v11907_v4 = vpop.f32.mrb[20].mxu0  ;;  %v1198_v29 = vadd.f32 %v15091_v36, %v11906_v22 }
 0x15f   : > { %v11908_v37 = vpop.f32.mrb[21].mxu0  ;;  %v1396_v6 = vpop.f32.mrb[28].mxu1 }
 0x160   : > { %v11909_v17 = vadd.f32 %v11908_v37, %v11907_v4  ;;  %v1392_v24 = vadd.f32 %v1391_v52, %v1198_v29  ;;  %v1398_v16 = vpop.f32.mrb[29].mxu1 }
 0x162   : > { %v11910_v48 = vpop.f32.mrb[22].mxu0  ;;  %v1203_v50 = vadd.f32 %v11909_v17, %v15101_v9  ;;  %v15143_v9 = vld [vmem:[%s19621_s4] ss:$0 sm:$0xff] }
 0x163   : > { %v11911_v45 = vpop.f32.mrb[23].mxu0  ;;  %v1401_v53 = vpop.f32.mrb[30].mxu1 }
 0x164   : > { %v11912_v12 = vadd.f32 %v11911_v45, %v11910_v48  ;;  %v1397_v23 = vadd.f32 %v1396_v6, %v1203_v50  ;;  %v1403_v10 = vpop.f32.mrb[31].mxu1 }
 0x166   : > { %v11913_v51 = vpop.f32.mrb[24].mxu0  ;;  %v1208_v1 = vadd.f32 %v15099_v31, %v11912_v12  ;;  %v15146_v31 = vadd.f32 %v15143_v9, %v1392_v24  ;;  %v15152_v16 = vadd.f32 %v15143_v9, %v1397_v23 }
 0x167   : > { %v11914_v5 = vpop.f32.mrb[25].mxu0  ;;  %v1406_v26 = vpop.f32.mrb[32].mxu1 }
 0x168   : > { %v11915_v40 = vadd.f32 %v11914_v5, %v11913_v51  ;;  %v1402_v36 = vadd.f32 %v1401_v53, %v1208_v1  ;;  %v1408_v22 = vpop.f32.mrb[33].mxu1  ;;  %v15149_v51 = vadd.f32 %v15143_v9, %v1387_v57  ;;  %v1513_v1 = vmul.f32 %v15146_v31, %v15146_v31 }
 0x169   : > { %v1514_v23 = vmul.f32 %v15152_v16, %v15152_v16 }
 0x16a   : > { %v11916_v18 = vpop.f32.mrb[26].mxu0  ;;  %v1213_v52 = vadd.f32 %v11915_v40, %v15111_v58  ;;  %v15158_v24 = vadd.f32 %v15143_v9, %v1402_v36  ;;  %v1512_v57 = vmul.f32 %v15149_v51, %v15149_v51 }
 0x16b   : > { %v11917_v4 = vpop.f32.mrb[27].mxu0  ;;  %v1411_v29 = vpop.f32.mrb[34].mxu1 }
 0x16c   : > { %v11918_v37 = vadd.f32 %v11917_v4, %v11916_v18  ;;  %v1407_v6 = vadd.f32 %v1406_v26, %v1213_v52  ;;  %v1413_v17 = vpop.f32.mrb[35].mxu1  ;;  %v1481_v26 = vsel %vm1458_vm5, %v15146_v31, 0.0 }
 0x16d   : > { %v1542_v17 = vsel %vm1458_vm5, %v1513_v1, 0.0 }
 0x16e   : > { %v11919_v58 = vpop.f32.mrb[28].mxu0  ;;  %v1218_v48 = vadd.f32 %v15109_v63, %v11918_v37  ;;  %v15168_v40 = vadd.f32 %v15143_v9, %v1407_v6  ;;  %v1480_v37 = vsel %vm1458_vm5, %v15149_v51, 0.0  ;;  %v1515_v6 = vmul.f32 %v15158_v24, %v15158_v24 }
 0x16f   : > { %v11920_v50 = vpop.f32.mrb[29].mxu0  ;;  %v1416_v45 = vpop.f32.mrb[36].mxu1 }
 0x170   : > { %v11921_v53 = vadd.f32 %v11920_v50, %v11919_v58  ;;  %v1412_v12 = vadd.f32 %v1411_v29, %v1218_v48  ;;  %v1418_v10 = vpop.f32.mrb[37].mxu1  ;;  %v1541_v58 = vsel %vm1458_vm5, %v1512_v57, 0.0  ;;  %v1482_v48 = vadd.f32 %v1481_v26, %v1480_v37 }
 0x171   : > { %v1544_v50 = vsel %vm1458_vm5, %v1514_v23, 0.0  ;;  %v1516_v10 = vmul.f32 %v15168_v40, %v15168_v40 }
 0x172   : > { %v11922_v5 = vpop.f32.mrb[30].mxu0  ;;  %v1223_v63 = vadd.f32 %v11921_v53, %v15121_v30  ;;  %v15171_v36 = vadd.f32 %v15143_v9, %v1412_v12  ;;  %v1483_v30 = vsel %vm1458_vm5, %v15152_v16, 0.0  ;;  %v1485_v12 = vsel %vm1458_vm5, %v15158_v24, 0.0 }
 0x173   : > { %v11923_v22 = vpop.f32.mrb[31].mxu0  ;;  %v1421_v18 = vpop.f32.mrb[38].mxu1  ;;  %v1484_v57 = vadd.f32 %v1483_v30, %v1482_v48 }
 0x174   : > { %v11924_v52 = vadd.f32 %v11923_v22, %v11922_v5  ;;  %v1417_v4 = vadd.f32 %v1416_v45, %v1223_v63  ;;  %v1423_v29 = vpop.f32.mrb[39].mxu1  ;;  %v1543_v22 = vadd.f32 %v1542_v17, %v1541_v58  ;;  %v1517_v23 = vmul.f32 %v15171_v36, %v15171_v36 }
 0x175   : > { %v1486_v29 = vadd.f32 %v1485_v12, %v1484_v57  ;;  %v1489_v17 = vsel %vm1458_vm5, %v15171_v36, 0.0 }
 0x176   : > { %v1346_v53 = vpop.f32.mrb[32].mxu0  ;;  %v1228_v45 = vadd.f32 %v15117_v11, %v11924_v52  ;;  %v15188_v1 = vadd.f32 %v15143_v9, %v1417_v4  ;;  %v1546_v11 = vsel %vm1458_vm5, %v1515_v6, 0.0  ;;  %v1487_v52 = vsel %vm1458_vm5, %v15168_v40, 0.0 }
 0x177   : > { %v1347_v5 = vadd.f32 %v1346_v53, %v15107_v41  ;;  %v1348_v63 = vpop.f32.mrb[33].mxu0  ;;  %v1545_v37 = vadd.f32 %v1544_v50, %v1543_v22  ;;  %v1548_v41 = vsel %vm1458_vm5, %v1516_v10, 0.0  ;;  %v1488_v48 = vadd.f32 %v1487_v52, %v1486_v29 }
 0x178   : > { %v1422_v26 = vadd.f32 %v1421_v18, %v1228_v45  ;;  %v1518_v30 = vmul.f32 %v15188_v1, %v15188_v1  ;;  %v1550_v53 = vsel %vm1458_vm5, %v1517_v23, 0.0  ;;  %v1491_v50 = vsel %vm1458_vm5, %v15188_v1, 0.0 }
 0x179   : > { %v1547_v58 = vadd.f32 %v1546_v11, %v1545_v37  ;;  %v15209_v45 = vadd.f32 %v15143_v9, %v1347_v5  ;;  %v1490_v22 = vadd.f32 %v1489_v17, %v1488_v48 }
 0x17a   : > { %v15197_v46 = vadd.f32 %v15143_v9, %v1422_v26  ;;  %v1351_v4 = vpop.f32.mrb[34].mxu0  ;;  %v1552_v57 = vsel %vm1458_vm5, %v1518_v30, 0.0 }
 0x17b   : > { %v1352_v18 = vadd.f32 %v1351_v4, %v15119_v35  ;;  %v1353_v6 = vpop.f32.mrb[35].mxu0  ;;  %v1549_v63 = vadd.f32 %v1548_v41, %v1547_v58  ;;  %v1492_v52 = vadd.f32 %v1491_v50, %v1490_v22  ;;  %v1504_v37 = vmul.f32 %v15209_v45, %v15209_v45 }
 0x17c   : > { %v1519_v12 = vmul.f32 %v15197_v46, %v15197_v46  ;;  %v1493_v23 = vsel %vm1458_vm5, %v15197_v46, 0.0  ;;  %v15232_v58 = vadd.f32 %v15143_v9, %v15127_v39  ;;  %v15244_v39 = vadd.f32 %v15143_v9, %v15129_v62 }
 0x17d   : > { %v15214_v10 = vadd.f32 %v15143_v9, %v1352_v18  ;;  %v1551_v5 = vadd.f32 %v1550_v53, %v1549_v63  ;;  %v1494_v30 = vadd.f32 %v1493_v23, %v1492_v52 }
 0x17e   : > { %v1356_v35 = vpop.f32.mrb[36].mxu0  ;;  %v1554_v4 = vsel %vm1458_vm5, %v1519_v12, 0.0  ;;  %v1508_v52 = vmul.f32 %v15232_v58, %v15232_v58 }
 0x17f   : > { %v1505_v26 = vmul.f32 %v15214_v10, %v15214_v10  ;;  %v1358_v11 = vpop.f32.mrb[37].mxu0  ;;  %v1357_v29 = vadd.f32 %v1356_v35, %v15123_v59  ;;  %v1460_v41 = vsel %vm1458_vm5, %v15214_v10, 0.0  ;;  %v1553_v17 = vadd.f32 %v1552_v57, %v1551_v5 }
 0x180   : > { %v1459_v59 = vsel %vm1458_vm5, %v15209_v45, 0.0  ;;  %v1520_v57 = vsel %vm1458_vm5, %v1504_v37, 0.0 }
 0x181   : > { %v15228_v18 = vadd.f32 %v15143_v9, %v1357_v29  ;;  %v1521_v48 = vsel %vm1458_vm5, %v1505_v26, 0.0  ;;  %v1555_v12 = vadd.f32 %v1554_v4, %v1553_v17  ;;  %v1461_v63 = vadd.f32 %v1460_v41, %v1459_v59 }
 0x182   : > { %v1361_v6 = vpop.f32.mrb[38].mxu0  ;;  %v1495_v26 = vrot.slane %v1494_v30, 4  ;;  %v15255_v29 = vadd.f32 %v15143_v9, %v15131_v15  ;;  %v1509_v59 = vmul.f32 %v15244_v39, %v15244_v39 }
 0x183   : > { %v1362_v53 = vadd.f32 %v1361_v6, %v15125_v55  ;;  %v1363_v50 = vpop.f32.mrb[39].mxu0  ;;  %v1462_v22 = vsel %vm1458_vm5, %v15228_v18, 0.0  ;;  %v1506_v35 = vmul.f32 %v15228_v18, %v15228_v18  ;;  %v1522_v55 = vadd.f32 %v1521_v48, %v1520_v57 }
 0x184   : > { %v1463_v11 = vadd.f32 %v1462_v22, %v1461_v63  ;;  %v1556_v4 = vrot.slane %v1555_v12, 4  ;;  %v1466_v6 = vsel %vm1458_vm5, %v15232_v58, 0.0  ;;  %v15267_v48 = vadd.f32 %v15143_v9, %v15133_v42 }
 0x185   : > { %v15248_v23 = vadd.f32 %v15143_v9, %v1362_v53  ;;  %v1523_v5 = vsel %vm1458_vm5, %v1506_v35, 0.0  ;;  %v1496_v53 = vadd.f32 %v1495_v26, %v1494_v30  ;;  %v1527_v22 = vsel %vm1458_vm5, %v1508_v52, 0.0 }
 0x186   : > { %v1524_v41 = vadd.f32 %v1523_v5, %v1522_v55  ;;  %v1468_v35 = vsel %vm1458_vm5, %v15244_v39, 0.0  ;;  %v1510_v57 = vmul.f32 %v15255_v29, %v15255_v29  ;;  %v1557_v55 = vadd.f32 %v1556_v4, %v1555_v12 }
 0x187   : > { %v1464_v62 = vsel %vm1458_vm5, %v15248_v23, 0.0  ;;  %v1507_v37 = vmul.f32 %v15248_v23, %v15248_v23  ;;  %v1470_v42 = vsel %vm1458_vm5, %v15255_v29, 0.0  ;;  %v1511_v9 = vmul.f32 %v15267_v48, %v15267_v48 }
 0x188   : > { %v1465_v17 = vadd.f32 %v1464_v62, %v1463_v11  ;;  %v1529_v62 = vsel %vm1458_vm5, %v1509_v59, 0.0  ;;  %v1497_v30 = vrot.slane %v1496_v53, 2 }
 0x189   : > { %v1525_v15 = vsel %vm1458_vm5, %v1507_v37, 0.0  ;;  %v1531_v37 = vsel %vm1458_vm5, %v1510_v57, 0.0 }
 0x18a   : > { %v1467_v50 = vadd.f32 %v1466_v6, %v1465_v17  ;;  %v1526_v63 = vadd.f32 %v1525_v15, %v1524_v41  ;;  %v1472_v41 = vsel %vm1458_vm5, %v15267_v48, 0.0  ;;  %v1558_v17 = vrot.slane %v1557_v55, 2 }
 0x18b   : > { %v1533_v6 = vsel %vm1458_vm5, %v1511_v9, 0.0  ;;  %v1498_v59 = vadd.f32 %v1497_v30, %v1496_v53 }
 0x18c   : > { %v1469_v11 = vadd.f32 %v1468_v35, %v1467_v50  ;;  %v1528_v5 = vadd.f32 %v1527_v22, %v1526_v63  ;;  %v1559_v35 = vadd.f32 %v1558_v17, %v1557_v55  ;;  %v1961_v17 = vld [vmem:[%s19625_s8 + $0x20] sm:$0xff] }
 0x18d   : > { %v1499_v20 = vrot.slane %v1498_v59, 1 }
 0x18e   : > { %v1471_v26 = vadd.f32 %v1470_v42, %v1469_v11  ;;  %v1530_v52 = vadd.f32 %v1529_v62, %v1528_v5  ;;  %v1560_v57 = vrot.slane %v1559_v35, 1 }
 0x18f   : > { %v1500_v14 = vadd.f32 %v1499_v20, %v1498_v59  ;;  %v1959_v20 = vld [vmem:[%s19625_s8 + $0x10] sm:$0xff] }
 0x190   : > { %v1473_v12 = vadd.f32 %v1472_v41, %v1471_v26  ;;  %v1532_v4 = vadd.f32 %v1531_v37, %v1530_v52  ;;  %v1561_v52 = vadd.f32 %v1560_v57, %v1559_v35  ;;  %v1963_v59 = vld [vmem:[%s19625_s8 + $0x30] sm:$0xff]  ;;  %v1969_v57 = vld [vmem:[%s19625_s8 + $0x60] sm:$0xff] }
 0x191   : > { %v1503_v53 = vmul.f32 0.015625, %v1500_v14 }
 0x192   : > { %v1474_v15 = vrot.slane %v1473_v12, 4  ;;  %v1534_v50 = vadd.f32 %v1533_v6, %v1532_v4  ;;  %v1563_v55 = vmul.f32 0.015625, %v1561_v52  ;;  %v1962_v4 = vld [vmem:[%s19625_s8 + $0x28] sm:$0xff]  ;;  %v1971_v52 = vld [vmem:[%s19625_s8 + $0x70] sm:$0xff] }
 0x193   : > { %v13507_v6 = vpack.c.bf16 %v1962_v4, %v1961_v17  ;;  %v19813_v17 = vunpack.c.l.bf16 %v15003_v56  ;;  %v19814_v4 = vunpack.c.h.bf16 %v15013_v8 }
 0x194   : > { %v1475_v63 = vadd.f32 %v1474_v15, %v1473_v12  ;;  %v1535_v22 = vrot.slane %v1534_v50, 4  ;;  %v1964_v15 = vld [vmem:[%s19625_s8 + $0x38] sm:$0xff] }
 0x196   : > { %v1476_v33 = vrot.slane %v1475_v63, 2  ;;  %v1536_v11 = vadd.f32 %v1535_v22, %v1534_v50  ;;  %v13510_v50 = vpack.c.bf16 %v1964_v15, %v1963_v59  ;;  %v1966_v22 = vld [vmem:[%s19625_s8 + $0x48] sm:$0xff] }
 0x198   : > { %v1477_v5 = vadd.f32 %v1476_v33, %v1475_v63  ;;  %v1537_v62 = vrot.slane %v1536_v11, 2  ;;  %v1965_v63 = vld [vmem:[%s19625_s8 + $0x40] sm:$0xff] }
 0x199   : > { %v13513_v35 = vpack.c.bf16 %v1966_v22, %v1965_v63  ;;  %v19816_v22 = vunpack.c.l.bf16 %v15013_v8 }
 0x19a   : > { %v1478_v42 = vrot.slane %v1477_v5, 1  ;;  %v1538_v3 = vadd.f32 %v1537_v62, %v1536_v11  ;;  %v1967_v11 = vld [vmem:[%s19625_s8 + $0x50] sm:$0xff] }
 0x19c   : > { %v1479_v61 = vadd.f32 %v1478_v42, %v1477_v5  ;;  %v1539_v26 = vrot.slane %v1538_v3, 1  ;;  %v1968_v5 = vld [vmem:[%s19625_s8 + $0x58] sm:$0xff]  ;;  %v1970_v42 = vld [vmem:[%s19625_s8 + $0x68] sm:$0xff] }
 0x19d   : > { %v13516_v62 = vpack.c.bf16 %v1968_v5, %v1967_v11  ;;  %v19818_v5 = vunpack.c.l.bf16 %v15023_v28 }
 0x19e   : > { %v1502_v9 = vmul.f32 0.015625, %v1479_v61  ;;  %v1540_v30 = vadd.f32 %v1539_v26, %v1538_v3  ;;  %v1957_v61 = vld [vmem:[%s19625_s8] sm:$0xff]  ;;  %v1958_v3 = vld [vmem:[%s19625_s8 + $0x8] sm:$0xff]  ;;  %v13519_v26 = vpack.c.bf16 %v1970_v42, %v1969_v57  ;;  %v19820_v42 = vunpack.c.l.bf16 %v14811_v21 }
 0x19f   : > { %v13501_v14 = vpack.c.bf16 %v1958_v3, %v1957_v61  ;;  %v1723_v61 = vlaneseq  ;;  %v19811_v3 = vunpack.c.l.bf16 %v14992_v34 }
 0x1a0   : > { %v1567_v37 = vsel %vm1566_vm6, %v1503_v53, %v1502_v9  ;;  %v1562_v41 = vmul.f32 0.015625, %v1540_v30  ;;  %v1972_v9 = vld [vmem:[%s19625_s8 + $0x78] sm:$0xff]  ;;  %v1973_v30 = vld [vmem:[%s19625_s8 + $0x80] sm:$0xff] }
 0x1a1   : > { %12658 = vmatmul.mubr.msk.f32.vlgmr.msra.gmra.mrb[40].mxu0 %vm1458_vm5, %v1567_v37  ;;  %v13522_v53 = vpack.c.bf16 %v1972_v9, %v1971_v52  ;;  %v1974_v37 = vld [vmem:[%s19625_s8 + $0x88] sm:$0xff]  ;;  %v19822_v52 = vunpack.c.h.bf16 %v14838_v32 }
 0x1a2   : > { %v1642_v33 = vsel %vm1566_vm6, %v1563_v55, %v1562_v41  ;;  %11309 = vmatprep.mubr.msk.f32.mxu0 %vm1231_vm3, %v807_v47  ;;  %13502 = vmatpush1.bf16.msra.mxu0 %v13501_v14  ;;  %v1960_v47 = vld [vmem:[%s19625_s8 + $0x18] sm:$0xff]  ;;  %v13525_v41 = vpack.c.bf16 %v1974_v37, %v1973_v30  ;;  %v14277_v55 = vmov 1966171168   ;;  %v19812_v14 = vunpack.c.h.bf16 %v15003_v56 }
 0x1a3   : > { %12677 = vmatmul.mubr.msk.f32.vlgmr.msra.gmra.mrb[40].mxu1 %vm1458_vm5, %v1642_v33  ;;  %13503 = vmatprep.subr.bf16.mxu0 %v19668_v25  ;;  %v13504_v12 = vpack.c.bf16 %v1960_v47, %v1959_v20  ;;  %v1721_v33 = vunpack.c.l.s4 %v14277_v55  ;;  %v1724_v47 = vshrl.u32 %v1723_v61, 7  ;;  %v19824_v30 = vunpack.c.h.bf16 %v14854_v38 }
 0x1a4   : > { %v19825_v55 = vunpack.c.l.bf16 %v14854_v38 }
 0x1a5   : > { %v1722_v20 = vunpack.c.0.s8 %v1721_v33 }
 0x1a6   : > { %13505 = vmatpush1.bf16.msra.mxu0 %v13504_v12 }
 0x1a7   : > { %13506 = vmatprep.subr.bf16.mxu0 %v19668_v25  ;;  %v15363_v15 = vsub.s32 %v1722_v20, %v1724_v47 }
 0x1a9   : > { %19815 = vst [vmem:[#allocation7_spill] sm:$0xff] %v15363_v15 }
 0x1aa   : > { %13508 = vmatpush1.bf16.msra.mxu0 %v13507_v6 }
 0x1ab   : > { %13509 = vmatprep.subr.bf16.mxu0 %v19668_v25 }
 0x1ae   : > { %13511 = vmatpush1.bf16.msra.mxu0 %v13510_v50 }
 0x1af   : > { %13512 = vmatprep.subr.bf16.mxu0 %v19668_v25 }
 0x1b2   : > { %13514 = vmatpush1.bf16.msra.mxu0 %v13513_v35  ;;  %v19817_v35 = vunpack.c.h.bf16 %v15023_v28  ;;  %v19823_v28 = vunpack.c.l.bf16 %v14838_v32 }
 0x1b3   : > { %13515 = vmatprep.subr.bf16.mxu0 %v19668_v25 }
 0x1b6   : > { %13517 = vmatpush1.bf16.msra.mxu0 %v13516_v62  ;;  %v19819_v62 = vunpack.c.h.bf16 %v14811_v21 }
 0x1b7   : > { %13518 = vmatprep.subr.bf16.mxu0 %v19668_v25 }
 0x1ba   : > { %13520 = vmatpush1.bf16.msra.mxu0 %v13519_v26  ;;  %v15379_v26 = vsub.s32 0, %v1724_v47 }
 0x1bb   : > { %13521 = vmatprep.subr.bf16.mxu0 %v19668_v25 }
 0x1bc   : > { %19821 = vst [vmem:[#allocation8_spill] sm:$0xff] %v15379_v26 }
 0x1be   : > { %13523 = vmatpush1.bf16.msra.mxu0 %v13522_v53 }
 0x1bf   : > { %13524 = vmatprep.subr.bf16.mxu0 %v19668_v25 }
 0x1c2   : > { %13526 = vmatpush1.bf16.msra.mxu0 %v13525_v41 }
 0x1c5   : > { %2047 = vmatmul.mubr.f32.vlgmr.msra.gmra.mrb[42].mxu0 %v19811_v3 }
 0x1c6   : > { %11310 = vmatprep.mubr.msk.f32.mxu0 %vm1231_vm3, %v19812_v14  ;;  %v19826_v14 = vunpack.c.h.bf16 %v14867_v44 }
 0x1c9   : > { %2052 = vmatmul.mubr.f32.gmra.mrb[44].mxu0 %v19813_v17 }
 0x1ca   : > { %11311 = vmatprep.mubr.msk.f32.mxu0 %vm1231_vm3, %v19814_v4 }
 0x1cd   : > { %2057 = vmatmul.mubr.f32.gmra.mrb[46].mxu0 %v19816_v22 }
 0x1ce   : > { %11312 = vmatprep.mubr.msk.f32.mxu0 %vm1231_vm3, %v19817_v35 }
 0x1d1   : > { %2062 = vmatmul.mubr.f32.gmra.mrb[48].mxu0 %v19818_v5 }
 0x1d2   : > { %11313 = vmatprep.mubr.msk.f32.mxu0 %vm1231_vm3, %v19819_v62 }
 0x1d5   : > { %2067 = vmatmul.mubr.f32.gmra.mrb[50].mxu0 %v19820_v42 }
 0x1d6   : > { %11314 = vmatprep.mubr.msk.f32.mxu0 %vm1231_vm3, %v19822_v52 }
 0x1d9   : > { %2072 = vmatmul.mubr.f32.gmra.mrb[52].mxu0 %v19823_v28 }
 0x1da   : > { %11315 = vmatprep.mubr.msk.f32.mxu0 %vm1231_vm3, %v19824_v30 }
 0x1dd   : > { %2077 = vmatmul.mubr.f32.gmra.mrb[54].mxu0 %v19825_v55 }
 0x1de   : > { %11316 = vmatprep.mubr.msk.f32.mxu0 %vm1231_vm3, %v19826_v14 }
 0x274   : > { %v1636_v12 = vpop.f32.mrb[40].mxu0 }
 0x275   : > { %v12659_v6 = vpop.f32.mrb[41].mxu0  ;;  %v1715_v59 = vmul.f32 %v1636_v12, %v1636_v12  ;;  %v1726_v11 = vrot.slane %v1636_v12, %v15363_v15 }
 0x276   : > { %v1711_v34 = vpop.f32.mrb[40].mxu1  ;;  %v19827_v6 = vunpack.c.l.bf16 %v14867_v44 }
 0x277   : > { %v1716_v50 = vsub.f32 %v1711_v34, %v1715_v59  ;;  %v12678_v63 = vpop.f32.mrb[41].mxu1  ;;  %v1727_v57 = vcombine.high %v1726_v11, %v1726_v11  ;;  %v1734_v8 = vrot.slane %v1726_v11, %v15363_v15 }
 0x278   : > { %2082 = vmatmul.mubr.f32.gmra.mrb[56].mxu0 %v19827_v6  ;;  %v19832_v6 = vunpack.c.h.bf16 %v14914_v60 }
 0x279   : > { %v1717_v56 = vadd.f32 1e-05, %v1716_v50  ;;  %v1741_v9 = vrot.slane %v1727_v57, %v15363_v15  ;;  %v15388_v53 = vrot.slane %v1734_v8, %v15379_v26  ;;  %v19829_v8 = vunpack.c.l.bf16 %v14880_v49 }
 0x27b   : > { %14014 = vrsqrt.f32 %v1717_v56  ;;  %v15394_v37 = vrot.slane %v1741_v9, %v15379_v26  ;;  %v1754_v61 = vsub.f32 %v15228_v18, %v15388_v53  ;;  %v1752_v3 = vsub.f32 %v15209_v45, %v15388_v53 }
 0x27c   : > { %v1755_v20 = vsub.f32 %v15248_v23, %v15388_v53  ;;  %v1753_v38 = vsub.f32 %v15214_v10, %v15388_v53  ;;  %v1757_v47 = vsub.f32 %v15244_v39, %v15388_v53  ;;  %v1756_v17 = vsub.f32 %v15232_v58, %v15388_v53  ;;  %v15426_v10 = vld [vmem:[%s19622_s5] ss:$0 sm:$0xff] }
 0x27d   : > { %v1760_v12 = vsub.f32 %v15149_v51, %v15394_v37  ;;  %v1758_v23 = vsub.f32 %v15255_v29, %v15388_v53  ;;  %v1762_v39 = vsub.f32 %v15152_v16, %v15394_v37  ;;  %v1761_v58 = vsub.f32 %v15146_v31, %v15394_v37 }
 0x27e   : > { %v1764_v4 = vsub.f32 %v15168_v40, %v15394_v37  ;;  %v1763_v51 = vsub.f32 %v15158_v24, %v15394_v37  ;;  %v19828_v31 = vunpack.c.h.bf16 %v14880_v49  ;;  %v15450_v24 = vld [vmem:[%s19623_s6] ss:$0 sm:$0xff]  ;;  %v1766_v49 = vsub.f32 %v15188_v1, %v15394_v37 }
 0x27f   : > { %v1765_v14 = vsub.f32 %v15171_v36, %v15394_v37 }
 0x280   : > { %11317 = vmatprep.mubr.msk.f32.mxu0 %vm1231_vm3, %v19828_v31 }
 0x281   : > { %2087 = vmatmul.mubr.f32.gmra.mrb[58].mxu0 %v19829_v8 }
 0x285   : > { %v14015_v21 = vpop.eup %14014 }
 0x286   : > { %v1775_v41 = vrot.slane %v14015_v21, %v15363_v15  ;;  %v19830_v21 = vunpack.c.h.bf16 %v14894_v54 }
 0x288   : > { %v1776_v33 = vcombine.high %v1775_v41, %v1775_v41  ;;  %v1783_v32 = vrot.slane %v1775_v41, %v15363_v15  ;;  %11318 = vmatprep.mubr.msk.f32.mxu0 %vm1231_vm3, %v19830_v21  ;;  %v15527_v21 = vpop.permute.xlu1 %2147 }
 0x28a   : > { %v1790_v18 = vrot.slane %v1776_v33, %v15363_v15  ;;  %v15417_v45 = vrot.slane %v1783_v32, %v15379_v26  ;;  %v11482_v15 = vld [vmem:[%s19626_s9 + $0x108] sm:$0xff] }
 0x28c   : > { %v15439_v29 = vrot.slane %v1790_v18, %v15379_v26  ;;  %v1803_v59 = vmul.f32 %v15417_v45, %v1754_v61  ;;  %v1801_v34 = vmul.f32 %v15417_v45, %v1752_v3  ;;  %v1804_v16 = vmul.f32 %v15417_v45, %v1755_v20  ;;  %v11481_v26 = vld [vmem:[%s19626_s9 + $0x100] sm:$0xff] }
 0x28d   : > { %v1802_v44 = vmul.f32 %v15417_v45, %v1753_v38  ;;  %v1806_v40 = vmul.f32 %v15417_v45, %v1757_v47  ;;  %v1805_v50 = vmul.f32 %v15417_v45, %v1756_v17  ;;  %v1807_v63 = vmul.f32 %v15417_v45, %v1758_v23 }
 0x28e   : > { %v1825_v22 = vmul.f32 %v15426_v10, %v1803_v59  ;;  %v1823_v35 = vmul.f32 %v15426_v10, %v1801_v34  ;;  %v1826_v56 = vmul.f32 %v15426_v10, %v1804_v16  ;;  %v1809_v11 = vmul.f32 %v15439_v29, %v1760_v12 }
 0x28f   : > { %v1824_v5 = vmul.f32 %v15426_v10, %v1802_v44  ;;  %v1828_v62 = vmul.f32 %v15426_v10, %v1806_v40  ;;  %v1827_v57 = vmul.f32 %v15426_v10, %v1805_v50  ;;  %v1829_v42 = vmul.f32 %v15426_v10, %v1807_v63 }
 0x290   : > { %v1847_v52 = vadd.f32 %v15450_v24, %v1825_v22  ;;  %v1845_v9 = vadd.f32 %v15450_v24, %v1823_v35  ;;  %v1848_v28 = vadd.f32 %v15450_v24, %v1826_v56  ;;  %v1831_v30 = vmul.f32 %v15426_v10, %v1809_v11 }
 0x291   : > { %v1846_v41 = vadd.f32 %v15450_v24, %v1824_v5  ;;  %v1850_v55 = vadd.f32 %v15450_v24, %v1828_v62  ;;  %v1849_v33 = vadd.f32 %v15450_v24, %v1827_v57  ;;  %v1851_v47 = vadd.f32 %v15450_v24, %v1829_v42 }
 0x292   : > { %v11294_v32 = vmul.f32 -1.442695, %v1847_v52  ;;  %v11292_v61 = vmul.f32 -1.442695, %v1845_v9  ;;  %v11295_v3 = vmul.f32 -1.442695, %v1848_v28  ;;  %v1853_v38 = vadd.f32 %v15450_v24, %v1831_v30  ;;  %v15520_v9 = vpop.permute.xlu0 %2143 }
 0x293   : > { %v11293_v20 = vmul.f32 -1.442695, %v1846_v41  ;;  %v1811_v17 = vmul.f32 %v15439_v29, %v1762_v39  ;;  %v19831_v18 = vunpack.c.l.bf16 %v14894_v54  ;;  %v11297_v12 = vmul.f32 -1.442695, %v1850_v55 }
 0x294   : > { %14016 = vpow2.f32 %v11294_v32  ;;  %v11296_v23 = vmul.f32 -1.442695, %v1849_v33  ;;  %v1810_v1 = vmul.f32 %v15439_v29, %v1761_v58  ;;  %v1813_v59 = vmul.f32 %v15439_v29, %v1764_v4 }
 0x295   : > { %2092 = vmatmul.mubr.f32.gmra.mrb[60].mxu0 %v19831_v18  ;;  %14018 = vpow2.f32 %v11292_v61  ;;  %v1833_v36 = vmul.f32 %v15426_v10, %v1811_v17  ;;  %v1812_v34 = vmul.f32 %v15439_v29, %v1763_v51  ;;  %v1815_v39 = vmul.f32 %v15439_v29, %v1766_v49 }
 0x296   : > { %11319 = vmatprep.mubr.msk.f32.mxu0 %vm1231_vm3, %v19832_v6  ;;  %14020 = vpow2.f32 %v11295_v3  ;;  %v1832_v54 = vmul.f32 %v15426_v10, %v1810_v1  ;;  %v1814_v16 = vmul.f32 %v15439_v29, %v1765_v14  ;;  %v11298_v58 = vmul.f32 -1.442695, %v1851_v47  ;;  %v2146_v1 = vpop.permute.xlu0 %2145 }
 0x297   : > { %14022 = vpow2.f32 %v11293_v20  ;;  %v1834_v31 = vmul.f32 %v15426_v10, %v1812_v34  ;;  %v19833_v44 = vunpack.c.l.bf16 %v14914_v60  ;;  %v11300_v40 = vmul.f32 -1.442695, %v1853_v38 }
 0x298   : > { %14024 = vpow2.f32 %v11297_v12  ;;  %v1855_v4 = vadd.f32 %v15450_v24, %v1833_v36  ;;  %v1854_v51 = vadd.f32 %v15450_v24, %v1832_v54  ;;  %v19834_v50 = vunpack.c.h.bf16 %v14929_v2  ;;  %v2304_v12 = vld [vmem:[%s19626_s9] sm:$0xff]  ;;  %v2150_v54 = vpop.permute.xlu1 %2149 }
 0x299   : > { %2097 = vmatmul.mubr.f32.gmra.mrb[62].mxu0 %v19833_v44  ;;  %14026 = vpow2.f32 %v11296_v23  ;;  %v1835_v63 = vmul.f32 %v15426_v10, %v1813_v59  ;;  %v1856_v22 = vadd.f32 %v15450_v24, %v1834_v31  ;;  %v1759_v35 = vsub.f32 %v15267_v48, %v15388_v53  ;;  %v2305_v23 = vld [vmem:[%s19626_s9 + $0x8] sm:$0xff] }
 0x29a   : > { %11320 = vmatprep.mubr.msk.f32.mxu0 %vm1231_vm3, %v19834_v50  ;;  %v1767_v60 = vsub.f32 %v15197_v46, %v15394_v37  ;;  %14028 = vpow2.f32 %v11298_v58  ;;  %v11301_v56 = vmul.f32 -1.442695, %v1854_v51  ;;  %v19835_v11 = vunpack.c.l.bf16 %v14929_v2  ;;  %v11382_v59 = vld [vmem:[%s19626_s9 + $0x68] sm:$0xff] }
 0x29b   : > { %v1808_v5 = vmul.f32 %v15417_v45, %v1759_v35  ;;  %14030 = vpow2.f32 %v11300_v40  ;;  %v11302_v62 = vmul.f32 -1.442695, %v1855_v4  ;;  %v19836_v57 = vunpack.c.h.bf16 %v14943_v7  ;;  %v2306_v40 = vld [vmem:[%s19626_s9 + $0x10] sm:$0xff]  ;;  %v2307_v4 = vld [vmem:[%s19626_s9 + $0x18] sm:$0xff]  ;;  %v2288_v35 = vld [vmem:[#allocation2] sm:$0xff] }
 0x29c   : > { %v1816_v42 = vmul.f32 %v15439_v29, %v1767_v60  ;;  %v1857_v48 = vadd.f32 %v15450_v24, %v1835_v63  ;;  %v11303_v53 = vmul.f32 -1.442695, %v1856_v22  ;;  %v1837_v46 = vmul.f32 %v15426_v10, %v1815_v39  ;;  %v11384_v22 = vld [vmem:[%s19626_s9 + $0x78] sm:$0xff]  ;;  %12687 = vmatprep.mubr.msk.f32.mxu1 %vm892_vm2, %v2288_v35  ;;  %v14215_v35 = vld [vmem:[#allocation3 + $0x170] sm:$0xff] }
 0x29d   : > { %2102 = vmatmul.mubr.f32.gmra.mrb[64].mxu0 %v19835_v11  ;;  %v1830_v37 = vmul.f32 %v15426_v10, %v1808_v5  ;;  %14032 = vpow2.f32 %v11301_v56  ;;  %v19837_v28 = vunpack.c.l.bf16 %v14943_v7  ;;  %v19838_v55 = vunpack.c.h.bf16 %v14956_v13 }
 0x29e   : > { %11321 = vmatprep.mubr.msk.f32.mxu0 %vm1231_vm3, %v19836_v57  ;;  %v14017_v8 = vpop.eup %14016  ;;  %v1838_v2 = vmul.f32 %v15426_v10, %v1816_v42  ;;  %14034 = vpow2.f32 %v11302_v62  ;;  %v11304_v32 = vmul.f32 -1.442695, %v1857_v48  ;;  %v1859_v7 = vadd.f32 %v15450_v24, %v1837_v46  ;;  %v2152_v62 = vpop.permute.xlu0 %2151 }
 0x29f   : > { %v14019_v52 = vpop.eup %14018  ;;  %v1911_v45 = vadd.f32 1.0, %v14017_v8  ;;  %v15525_v29 = vadd.f32 %v15450_v24, %v1830_v37  ;;  %14036 = vpow2.f32 %v11303_v53  ;;  %v1836_v20 = vmul.f32 %v15426_v10, %v1814_v16  ;;  %v11381_v10 = vld [vmem:[%s19626_s9 + $0x60] sm:$0xff]  ;;  %v2154_v48 = vpop.permute.xlu1 %2153 }
 0x2a0   : > { %v14021_v30 = vpop.eup %14020  ;;  %v1909_v41 = vadd.f32 1.0, %v14019_v52  ;;  %v15533_v33 = vadd.f32 %v15450_v24, %v1838_v2  ;;  %v19839_v47 = vunpack.c.l.bf16 %v14956_v13  ;;  %v19840_v18 = vunpack.c.h.bf16 %v14969_v19 }
 0x2a1   : > { %2107 = vmatmul.mubr.f32.gmra.mrb[66].mxu0 %v19837_v28  ;;  %v14023_v49 = vpop.eup %14022  ;;  %v1912_v3 = vadd.f32 1.0, %v14021_v30  ;;  %v11306_v6 = vmul.f32 -1.442695, %v1859_v7  ;;  %v13527_v36 = vpack.c.bf16 %v2305_v23, %v2304_v12  ;;  %v1858_v16 = vadd.f32 %v15450_v24, %v1836_v20  ;;  %v11383_v24 = vld [vmem:[%s19626_s9 + $0x70] sm:$0xff] }
 0x2a2   : > { %11322 = vmatprep.mubr.msk.f32.mxu0 %vm1231_vm3, %v19838_v55  ;;  %v14025_v61 = vpop.eup %14024  ;;  %14038 = vrcp.f32 %v1909_v41  ;;  %v1910_v14 = vadd.f32 1.0, %v14023_v49  ;;  %v13551_v58 = vpack.c.bf16 %v11382_v59, %v11381_v10  ;;  %v19841_v31 = vunpack.c.l.bf16 %v14969_v19 }
 0x2a3   : > { %v14027_v38 = vpop.eup %14026  ;;  %14040 = vrcp.f32 %v1911_v45  ;;  %v1914_v39 = vadd.f32 1.0, %v14025_v61  ;;  %13528 = vmatprep.subr.bf16.mxu1 %v13527_v36  ;;  %v19842_v19 = vunpack.c.h.bf16 %v14982_v27  ;;  %v13531_v63 = vpack.c.bf16 %v2307_v4, %v2306_v40  ;;  %v2160_v55 = vpop.permute.xlu1 %2159 }
 0x2a4   : > { %14042 = vrcp.f32 %v1910_v14  ;;  %v1913_v17 = vadd.f32 1.0, %v14027_v38  ;;  %v14029_v13 = vpop.eup %14028  ;;  %13530 = vmatpush3.bf16.msra.mxu1 %v13527_v36  ;;  %13552 = vmatprep.subr.bf16.mxu0 %v13551_v58  ;;  %v11305_v56 = vmul.f32 -1.442695, %v1858_v16  ;;  %v13555_v11 = vpack.c.bf16 %v11384_v22, %v11383_v24  ;;  %v14214_v22 = vld [vmem:[#allocation3 + $0xb0] sm:$0xff] }
 0x2a5   : > { %2112 = vmatmul.mubr.f32.gmra.mrb[68].mxu0 %v19839_v47  ;;  %14044 = vpow2.f32 %v11304_v32  ;;  %v14031_v34 = vpop.eup %14030  ;;  %v1915_v44 = vadd.f32 1.0, %v14029_v13  ;;  %13532 = vmatprep.subr.bf16.mxu1 %v13531_v63  ;;  %v19843_v57 = vunpack.c.l.bf16 %v14982_v27 }
 0x2a6   : > { %11323 = vmatprep.mubr.msk.f32.mxu0 %vm1231_vm3, %v19840_v18  ;;  %14046 = vrcp.f32 %v1912_v3  ;;  %v1917_v50 = vadd.f32 1.0, %v14031_v34  ;;  %13554 = vmatpush3.bf16.msra.mxu0 %v13551_v58  ;;  %v11341_v58 = vld [vmem:[%s19626_s9 + $0x20] sm:$0xff] }
 0x2a7   : > { %14048 = vrcp.f32 %v1913_v17  ;;  %v14033_v51 = vpop.eup %14032  ;;  %13556 = vmatprep.subr.bf16.mxu0 %v13555_v11  ;;  %v2164_v18 = vpop.permute.xlu1 %2163 }
 0x2a8   : > { %14050 = vpow2.f32 %v11306_v6  ;;  %v14035_v60 = vpop.eup %14034  ;;  %v1918_v53 = vadd.f32 1.0, %v14033_v51  ;;  %13534 = vmatpush3.bf16.msra.mxu1 %v13531_v63 }
 0x2a9   : > { %2117 = vmatmul.mubr.f32.gmra.mrb[70].mxu0 %v19841_v31  ;;  %14052 = vrcp.f32 %v1914_v39  ;;  %v14037_v5 = vpop.eup %14036  ;;  %v1919_v2 = vadd.f32 1.0, %v14035_v60  ;;  %v11342_v31 = vld [vmem:[%s19626_s9 + $0x28] sm:$0xff]  ;;  %v11421_v60 = vld [vmem:[%s19626_s9 + $0xa0] sm:$0xff] }
 0x2aa   : > { %11324 = vmatprep.mubr.msk.f32.mxu0 %vm1231_vm3, %v19842_v19  ;;  %14054 = vrcp.f32 %v1915_v44  ;;  %13558 = vmatpush3.bf16.msra.mxu0 %v13555_v11  ;;  %v1920_v28 = vadd.f32 1.0, %v14037_v5  ;;  %v13535_v4 = vpack.c.bf16 %v11342_v31, %v11341_v58  ;;  %v11299_v5 = vmul.f32 -1.442695, %v15525_v29  ;;  %v11344_v29 = vld [vmem:[%s19626_s9 + $0x38] sm:$0xff] }
 0x2ab   : > { %14056 = vrcp.f32 %v1917_v50  ;;  %v2168_v34 = vpop.permute.xlu1 %2167 }
 0x2ac   : > { %v15575_v42 = vpop.eup %14038  ;;  %14058 = vpow2.f32 %v11305_v56  ;;  %13536 = vmatprep.subr.bf16.mxu1 %v13535_v4  ;;  %v11422_v56 = vld [vmem:[%s19626_s9 + $0xa8] sm:$0xff] }
 0x2ad   : > { %2122 = vmatmul.mubr.f32.gmra.mrb[72].mxu0 %v19843_v57  ;;  %19844 = vst [vmem:[#allocation9_spill] sm:$0xff] %v15575_v42  ;;  %v15577_v46 = vpop.eup %14040  ;;  %v2191_v37 = vmul.f32 %v15575_v42, %v15520_v9  ;;  %14060 = vrcp.f32 %v1918_v53  ;;  %v2156_v9 = vpop.permute.xlu0 %2155  ;;  %v13567_v11 = vpack.c.bf16 %v11422_v56, %v11421_v60  ;;  %v11443_v42 = vld [vmem:[%s19626_s9 + $0xd0] sm:$0xff] }
 0x2ae   : > { %19845 = vst [vmem:[#allocation10_spill] sm:$0xff] %v15577_v46  ;;  %v15581_v8 = vpop.eup %14042  ;;  %v2193_v30 = vmul.f32 %v15577_v46, %v15527_v21  ;;  %14062 = vrcp.f32 %v1919_v2 }
 0x2af   : > { %19846 = vst [vmem:[#allocation11_spill] sm:$0xff] %v15581_v8  ;;  %v14045_v27 = vpop.eup %14044  ;;  %v2192_v52 = vmul.f32 %v15581_v8, %v2146_v1  ;;  %2223 = vrot.lane.b32.xlu0 %v2191_v37, %s14278_s24  ;;  %14064 = vrcp.f32 %v1920_v28  ;;  %v2172_v51 = vpop.permute.xlu1 %2171  ;;  %13568 = vmatprep.subr.bf16.mxu0 %v13567_v11  ;;  %v11343_v37 = vld [vmem:[%s19626_s9 + $0x30] sm:$0xff]  ;;  %v11361_v28 = vld [vmem:[%s19626_s9 + $0x40] sm:$0xff] }
 0x2b0   : > { %v15585_v45 = vpop.eup %14046  ;;  %v1921_v49 = vadd.f32 1.0, %v14045_v27 }
 0x2b1   : > { %19847 = vst [vmem:[#allocation12_spill] sm:$0xff] %v15585_v45  ;;  %2225 = vrot.lane.b32.xlu1 %v2192_v52, %s14278_s24  ;;  %v15590_v41 = vpop.eup %14048  ;;  %v2194_v7 = vmul.f32 %v15585_v45, %v2150_v54  ;;  %v2162_v47 = vpop.permute.xlu0 %2161  ;;  %v13539_v52 = vpack.c.bf16 %v11344_v29, %v11343_v37  ;;  %v11363_v29 = vld [vmem:[%s19626_s9 + $0x50] sm:$0xff] }
 0x2b2   : > { %19848 = vst [vmem:[#allocation13_spill] sm:$0xff] %v15590_v41  ;;  %v14051_v32 = vpop.eup %14050  ;;  %v2195_v3 = vmul.f32 %v15590_v41, %v2152_v62  ;;  %14066 = vrcp.f32 %v1921_v49  ;;  %v11307_v62 = vmul.f32 -1.442695, %v15533_v33 }
 0x2b3   : > { %2227 = vrot.lane.b32.xlu0 %v2193_v30, %s14278_s24  ;;  %v15594_v61 = vpop.eup %14052  ;;  %v1923_v14 = vadd.f32 1.0, %v14051_v32  ;;  %v11362_v30 = vld [vmem:[%s19626_s9 + $0x48] sm:$0xff] }
 0x2b4   : > { %19849 = vst [vmem:[#allocation14_spill] sm:$0xff] %v15594_v61  ;;  %v15598_v21 = vpop.eup %14054  ;;  %v2196_v38 = vmul.f32 %v15594_v61, %v2154_v48 }
 0x2b5   : > { %2229 = vrot.lane.b32.xlu1 %v2194_v7, %s14278_s24  ;;  %19850 = vst [vmem:[#allocation15_spill] sm:$0xff] %v15598_v21  ;;  %v15600_v20 = vpop.eup %14056  ;;  %v2197_v12 = vmul.f32 %v15598_v21, %v2156_v9  ;;  %14068 = vrcp.f32 %v1923_v14  ;;  %v2166_v36 = vpop.permute.xlu0 %2165 }
 0x2b6   : > { %19851 = vst [vmem:[#allocation16_spill] sm:$0xff] %v15600_v20  ;;  %v14059_v17 = vpop.eup %14058  ;;  %v2199_v13 = vmul.f32 %v15600_v20, %v2160_v55 }
 0x2b7   : > { %2231 = vrot.lane.b32.xlu0 %v2195_v3, %s14278_s24  ;;  %v1922_v23 = vadd.f32 1.0, %v14059_v17  ;;  %v15606_v10 = vpop.eup %14060  ;;  %v15677_v3 = vpack.c.bf16 %v11362_v30, %v11361_v28  ;;  %v11402_v28 = vld [vmem:[%s19626_s9 + $0x88] sm:$0xff] }
 0x2b8   : > { %19852 = vst [vmem:[#allocation17_spill] sm:$0xff] %v15606_v10  ;;  %v15610_v1 = vpop.eup %14062  ;;  %v2200_v6 = vmul.f32 %v15606_v10, %v2162_v47 }
 0x2b9   : > { %2233 = vrot.lane.b32.xlu1 %v2196_v38, %s14278_s24  ;;  %14070 = vrcp.f32 %v1922_v23  ;;  %19853 = vst [vmem:[#allocation18_spill] sm:$0xff] %v15610_v1  ;;  %v15614_v59 = vpop.eup %14064  ;;  %v2201_v54 = vmul.f32 %v15610_v1, %v2164_v18  ;;  %v2170_v40 = vpop.permute.xlu0 %2169 }
 0x2ba   : > { %19854 = vst [vmem:[#allocation19_spill] sm:$0xff] %v15614_v59  ;;  %v2202_v16 = vmul.f32 %v15614_v59, %v2166_v36  ;;  %14072 = vpow2.f32 %v11299_v5  ;;  %v2296_v36 = vld [vmem:[#allocation2 + $0xa0] sm:$0xff]  ;;  %v11424_v5 = vld [vmem:[%s19626_s9 + $0xb8] sm:$0xff] }
 0x2bb   : > { %2235 = vrot.lane.b32.xlu0 %v2197_v12, %s14278_s24  ;;  %14074 = vpow2.f32 %v11307_v62  ;;  %v2755_v59 = vld [vmem:[#allocation2 + $0xa2] sm:$0xff] }
 0x2bc   : > { %v15618_v39 = vpop.eup %14066 }
 0x2bd   : > { %2239 = vrot.lane.b32.xlu1 %v2199_v13, %s14278_s24  ;;  %19855 = vst [vmem:[#allocation20_spill] sm:$0xff] %v15618_v39  ;;  %v2203_v44 = vmul.f32 %v15618_v39, %v2168_v34 }
 0x2bf   : > { %2241 = vrot.lane.b32.xlu0 %v2200_v6, %s14278_s24  ;;  %v15630_v24 = vpop.eup %14068 }
 0x2c0   : > { %19856 = vst [vmem:[#allocation21_spill] sm:$0xff] %v15630_v24  ;;  %v2205_v63 = vmul.f32 %v15630_v24, %v2172_v51 }
 0x2c1   : > { %2243 = vrot.lane.b32.xlu1 %v2201_v54, %s14278_s24 }
 0x2c3   : > { %2245 = vrot.lane.b32.xlu0 %v2202_v16, %s14278_s24  ;;  %v15632_v50 = vpop.eup %14070 }
 0x2c4   : > { %19857 = vst [vmem:[#allocation22_spill] sm:$0xff] %v15632_v50  ;;  %v2204_v19 = vmul.f32 %v15632_v50, %v2170_v40  ;;  %v14073_v49 = vpop.eup %14072 }
 0x2c5   : > { %2247 = vrot.lane.b32.xlu1 %v2203_v44, %s14278_s24  ;;  %v14075_v14 = vpop.eup %14074  ;;  %v1916_v17 = vadd.f32 1.0, %v14073_v49 }
 0x2c6   : > { %v1924_v23 = vadd.f32 1.0, %v14075_v14  ;;  %v11461_v14 = vld [vmem:[%s19626_s9 + $0xe0] sm:$0xff] }
 0x2c7   : > { %2249 = vrot.lane.b32.xlu0 %v2204_v19, %s14278_s24  ;;  %14076 = vrcp.f32 %v1916_v17 }
 0x2c8   : > { %14078 = vrcp.f32 %v1924_v23  ;;  %v2525_v23 = vld [vmem:[#allocation2 + $0xa1] sm:$0xff] }
 0x2c9   : > { %2251 = vrot.lane.b32.xlu1 %v2205_v63, %s14278_s24 }
 0x2cb   : > { %2157 = vrot.lane.b32.xlu0 %v14214_v22, %s19768_s30 }
 0x2cd   : > { %2173 = vrot.lane.b32.xlu1 %v14215_v35, %s19768_s30 }
 0x2d1   : > { %v15729_v19 = vpop.eup %14076 }
 0x2d2   : > { %19858 = vst [vmem:[#allocation23_spill] sm:$0xff] %v15729_v19  ;;  %v15733_v22 = vpop.eup %14078 }
 0x2d3   : > { %19859 = vst [vmem:[#allocation24_spill] sm:$0xff] %v15733_v22 }
 0x321   : > { %v2224_v57 = vpop.permute.xlu0 %2223 }
 0x322   : > { %2272 = vst.msk [vmem:[#allocation2 + $0x11] sm:$0xff] %vm892_vm2, %v2224_v57 }
 0x323   : > { %v2226_v48 = vpop.permute.xlu1 %2225 }
 0x324   : > { %2273 = vst.msk [vmem:[#allocation2 + $0x21] sm:$0xff] %vm892_vm2, %v2226_v48 }
 0x325   : > { %v2228_v53 = vpop.permute.xlu0 %2227 }
 0x326   : > { %2274 = vst.msk [vmem:[#allocation2 + $0x31] sm:$0xff] %vm892_vm2, %v2228_v53  ;;  %v2517_v53 = vld [vmem:[#allocation2 + $0x1] sm:$0xff] }
 0x327   : > { %v2230_v33 = vpop.permute.xlu1 %2229 }
 0x328   : > { %2275 = vst.msk [vmem:[#allocation2 + $0x41] sm:$0xff] %vm892_vm2, %v2230_v33  ;;  %v11364_v33 = vld [vmem:[%s19626_s9 + $0x58] sm:$0xff] }
 0x329   : > { %v2232_v2 = vpop.permute.xlu0 %2231  ;;  %v2289_v27 = vld [vmem:[#allocation2 + $0x10] sm:$0xff] }
 0x32a   : > { %2276 = vst.msk [vmem:[#allocation2 + $0x51] sm:$0xff] %vm892_vm2, %v2232_v2  ;;  %12688 = vmatmul.mubr.msk.f32.vlgmr.msra.gmra.mrb[42].mxu1 %vm892_vm2, %v2289_v27  ;;  %12783 = vmatprep.mubr.msk.f32.mxu0 %vm892_vm2, %v2289_v27  ;;  %v13547_v2 = vpack.c.bf16 %v11364_v33, %v11363_v29  ;;  %v15766_v27 = vld [vmem:[#allocation2 + $0x11] sm:$0xff] }
 0x32b   : > { %v2234_v9 = vpop.permute.xlu1 %2233  ;;  %v15668_v55 = vld [vmem:[#allocation2 + $0x20] sm:$0xff]  ;;  %13538 = vmatpush3.bf16.msra.mxu1 %v13535_v4 }
 0x32c   : > { %2277 = vst.msk [vmem:[#allocation2 + $0x61] sm:$0xff] %vm892_vm2, %v2234_v9  ;;  %12690 = vmatprep.mubr.msk.f32.mxu1 %vm892_vm2, %v15668_v55  ;;  %12784 = vmatmul.mubr.msk.f32.vlgmr.msra.gmra.mrb[74].mxu0 %vm892_vm2, %v15668_v55  ;;  %v15776_v30 = vld [vmem:[#allocation2 + $0x21] sm:$0xff] }
 0x32d   : > { %v2236_v32 = vpop.permute.xlu0 %2235  ;;  %v15675_v7 = vld [vmem:[#allocation2 + $0x30] sm:$0xff]  ;;  %13540 = vmatprep.subr.bf16.mxu1 %v13539_v52  ;;  %13570 = vmatpush3.bf16.msra.mxu0 %v13567_v11  ;;  %v15868_v0 = vld [vmem:[#allocation2 + $0x22] sm:$0xff] }
 0x32e   : > { %2278 = vst.msk [vmem:[#allocation2 + $0x71] sm:$0xff] %vm892_vm2, %v2236_v32  ;;  %12691 = vmatmul.mubr.msk.f32.gmra.mrb[44].mxu1 %vm892_vm2, %v15675_v7  ;;  %12786 = vmatprep.mubr.msk.f32.mxu0 %vm892_vm2, %v15675_v7  ;;  %v11423_v11 = vld [vmem:[%s19626_s9 + $0xb0] sm:$0xff] }
 0x32f   : > { %v2240_v38 = vpop.permute.xlu1 %2239  ;;  %v15684_v47 = vld [vmem:[#allocation2 + $0x40] sm:$0xff]  ;;  %13542 = vmatpush3.bf16.msra.mxu1 %v13539_v52  ;;  %v13571_v57 = vpack.c.bf16 %v11424_v5, %v11423_v11  ;;  %v15781_v49 = vld [vmem:[#allocation2 + $0x31] sm:$0xff] }
 0x330   : > { %2280 = vst.msk [vmem:[#allocation2 + $0xb1] sm:$0xff] %vm892_vm2, %v2240_v38  ;;  %12693 = vmatprep.mubr.msk.f32.mxu1 %vm892_vm2, %v15684_v47  ;;  %12787 = vmatmul.mubr.msk.f32.gmra.mrb[76].mxu0 %vm892_vm2, %v15684_v47  ;;  %v11401_v52 = vld [vmem:[%s19626_s9 + $0x80] sm:$0xff]  ;;  %v15876_v43 = vld [vmem:[#allocation2 + $0x32] sm:$0xff] }
 0x331   : > { %v2242_v18 = vpop.permute.xlu0 %2241  ;;  %v15691_v12 = vld [vmem:[#allocation2 + $0x50] sm:$0xff]  ;;  %13544 = vmatprep.subr.bf16.mxu1 %v15677_v3  ;;  %13572 = vmatprep.subr.bf16.mxu0 %v13571_v57  ;;  %v13559_v9 = vpack.c.bf16 %v11402_v28, %v11401_v52  ;;  %v15785_v32 = vld [vmem:[#allocation2 + $0x41] sm:$0xff]  ;;  %v11404_v52 = vld [vmem:[%s19626_s9 + $0x98] sm:$0xff] }
 0x332   : > { %2281 = vst.msk [vmem:[#allocation2 + $0xc1] sm:$0xff] %vm892_vm2, %v2242_v18  ;;  %12694 = vmatmul.mubr.msk.f32.gmra.mrb[46].mxu1 %vm892_vm2, %v15691_v12  ;;  %12789 = vmatprep.mubr.msk.f32.mxu0 %vm892_vm2, %v15691_v12  ;;  %v15795_v38 = vld [vmem:[#allocation2 + $0x51] sm:$0xff] }
 0x333   : > { %v2244_v13 = vpop.permute.xlu1 %2243  ;;  %v15699_v6 = vld [vmem:[#allocation2 + $0x60] sm:$0xff]  ;;  %13574 = vmatpush3.bf16.msra.mxu0 %v13571_v57 }
 0x334   : > { %2282 = vst.msk [vmem:[#allocation2 + $0xd1] sm:$0xff] %vm892_vm2, %v2244_v13  ;;  %12696 = vmatprep.mubr.msk.f32.mxu1 %vm892_vm2, %v15699_v6  ;;  %12790 = vmatmul.mubr.msk.f32.gmra.mrb[78].mxu0 %vm892_vm2, %v15699_v6  ;;  %v15801_v18 = vld [vmem:[#allocation2 + $0x61] sm:$0xff] }
 0x335   : > { %v2246_v34 = vpop.permute.xlu0 %2245  ;;  %v15706_v54 = vld [vmem:[#allocation2 + $0x70] sm:$0xff] }
 0x336   : > { %2283 = vst.msk [vmem:[#allocation2 + $0xe1] sm:$0xff] %vm892_vm2, %v2246_v34  ;;  %12697 = vmatmul.mubr.msk.f32.gmra.mrb[48].mxu1 %vm892_vm2, %v15706_v54  ;;  %12792 = vmatprep.mubr.msk.f32.mxu0 %vm892_vm2, %v15706_v54  ;;  %v15806_v13 = vld [vmem:[#allocation2 + $0x71] sm:$0xff] }
 0x337   : > { %v2248_v16 = vpop.permute.xlu1 %2247  ;;  %12699 = vmatprep.mubr.msk.f32.mxu1 %vm892_vm2, %v2296_v36  ;;  %v15715_v58 = vld [vmem:[#allocation2 + $0xb0] sm:$0xff] }
 0x338   : > { %2284 = vst.msk [vmem:[#allocation2 + $0xf1] sm:$0xff] %vm892_vm2, %v2248_v16  ;;  %v15811_v36 = vld [vmem:[#allocation2 + $0xb1] sm:$0xff] }
 0x339   : > { %v15717_v31 = vld [vmem:[#allocation2 + $0xc0] sm:$0xff]  ;;  %v2250_v44 = vpop.permute.xlu0 %2249  ;;  %v15909_v21 = vld [vmem:[#allocation2 + $0xb2] sm:$0xff] }
 0x33a   : > { %12700 = vmatmul.mubr.msk.f32.gmra.mrb[50].mxu1 %vm892_vm2, %v15715_v58  ;;  %2285 = vst.msk [vmem:[#allocation2 + $0x101] sm:$0xff] %vm892_vm2, %v2250_v44  ;;  %v15815_v34 = vld [vmem:[#allocation2 + $0xc1] sm:$0xff]  ;;  %v15821_v44 = vpop.f32.mrb[42].mxu0 }
 0x33b   : > { %v2252_v40 = vpop.permute.xlu1 %2251  ;;  %12702 = vmatprep.mubr.msk.f32.mxu1 %vm892_vm2, %v15717_v31  ;;  %v15725_v4 = vld [vmem:[#allocation2 + $0xd0] sm:$0xff] }
 0x33c   : > { %2286 = vst.msk [vmem:[#allocation2 + $0x111] sm:$0xff] %vm892_vm2, %v2252_v40  ;;  %v15819_v16 = vld [vmem:[#allocation2 + $0xd1] sm:$0xff] }
 0x33d   : > { %v15727_v51 = vld [vmem:[#allocation2 + $0xe0] sm:$0xff]  ;;  %v2158_v63 = vpop.permute.xlu0 %2157  ;;  %v15919_v61 = vld [vmem:[#allocation2 + $0xd2] sm:$0xff] }
 0x33e   : > { %12703 = vmatmul.mubr.msk.f32.gmra.mrb[52].mxu1 %vm892_vm2, %v15725_v4  ;;  %v2198_v35 = vmul.f32 %v15729_v19, %v2158_v63  ;;  %v15825_v40 = vld [vmem:[#allocation2 + $0xe1] sm:$0xff]  ;;  %v2050_v63 = vpop.f32.mrb[43].mxu0 }
 0x33f   : > { %v2174_v60 = vpop.permute.xlu1 %2173  ;;  %12705 = vmatprep.mubr.msk.f32.mxu1 %vm892_vm2, %v15727_v51  ;;  %v15746_v62 = vld [vmem:[#allocation2 + $0xf0] sm:$0xff] }
 0x340   : > { %v2206_v56 = vmul.f32 %v15733_v22, %v2174_v60  ;;  %2237 = vrot.lane.b32.xlu0 %v2198_v35, %s14278_s24  ;;  %v15829_v35 = vpop.f32.mrb[44].mxu0  ;;  %v15831_v60 = vld [vmem:[#allocation2 + $0xf1] sm:$0xff] }
 0x341   : > { %v15751_v48 = vld [vmem:[#allocation2 + $0x100] sm:$0xff]  ;;  %v15929_v8 = vld [vmem:[#allocation2 + $0xf2] sm:$0xff] }
 0x342   : > { %2253 = vrot.lane.b32.xlu1 %v2206_v56, %s14278_s24  ;;  %12706 = vmatmul.mubr.msk.f32.gmra.mrb[54].mxu1 %vm892_vm2, %v15746_v62  ;;  %v2055_v56 = vpop.f32.mrb[45].mxu0  ;;  %v15835_v11 = vld [vmem:[#allocation2 + $0x101] sm:$0xff] }
 0x343   : > { %12708 = vmatprep.mubr.msk.f32.mxu1 %vm892_vm2, %v15751_v48  ;;  %v15755_v37 = vld [vmem:[#allocation2 + $0x110] sm:$0xff]  ;;  %v15837_v5 = vpop.f32.mrb[46].mxu0  ;;  %v15933_v45 = vld [vmem:[#allocation2 + $0x102] sm:$0xff] }
 0x344   : > { %v2060_v57 = vpop.f32.mrb[47].mxu0  ;;  %v15843_v33 = vld [vmem:[#allocation2 + $0x111] sm:$0xff] }
 0x345   : > { %v15841_v29 = vpop.f32.mrb[48].mxu0  ;;  %v15858_v56 = vld [vmem:[#allocation2 + $0x12] sm:$0xff]  ;;  %v11441_v57 = vld [vmem:[%s19626_s9 + $0xc0] sm:$0xff] }
 0x346   : > { %12709 = vmatmul.mubr.msk.f32.gmra.mrb[56].mxu1 %vm892_vm2, %v15755_v37  ;;  %v2065_v28 = vpop.f32.mrb[49].mxu0 }
 0x347   : > { %12719 = vmatprep.mubr.msk.f32.mxu1 %vm892_vm2, %v2517_v53  ;;  %v2747_v53 = vld [vmem:[#allocation2 + $0x2] sm:$0xff] }
 0x348   : > { %v11442_v28 = vld [vmem:[%s19626_s9 + $0xc8] sm:$0xff] }
 0x34a   : > { %12720 = vmatmul.mubr.msk.f32.vlgmr.msra.gmra.mrb[58].mxu1 %vm892_vm2, %v15766_v27 }
 0x34b   : > { %12722 = vmatprep.mubr.msk.f32.mxu1 %vm892_vm2, %v15776_v30  ;;  %13546 = vmatpush3.bf16.msra.mxu1 %v15677_v3  ;;  %v11462_v3 = vld [vmem:[%s19626_s9 + $0xe8] sm:$0xff] }
 0x34c   : > { %13548 = vmatprep.subr.bf16.mxu1 %v13547_v2  ;;  %v15797_v17 = vpack.c.bf16 %v11462_v3, %v11461_v14  ;;  %v15853_v14 = vpop.f32.mrb[50].mxu0 }
 0x34d   : > { %v2070_v3 = vpop.f32.mrb[51].mxu0 }
 0x34e   : > { %12723 = vmatmul.mubr.msk.f32.gmra.mrb[60].mxu1 %vm892_vm2, %v15781_v49  ;;  %13584 = vmatprep.subr.bf16.mxu0 %v15797_v17  ;;  %v15856_v63 = vpop.f32.mrb[52].mxu0 }
 0x34f   : > { %12725 = vmatprep.mubr.msk.f32.mxu1 %vm892_vm2, %v15785_v32  ;;  %13550 = vmatpush3.bf16.msra.mxu1 %v13547_v2  ;;  %v11403_v2 = vld [vmem:[%s19626_s9 + $0x90] sm:$0xff]  ;;  %v2075_v25 = vpop.f32.mrb[53].mxu0 }
 0x350   : > { %13560 = vmatprep.subr.bf16.mxu1 %v13559_v9  ;;  %v15880_v25 = vld [vmem:[#allocation2 + $0x42] sm:$0xff] }
 0x352   : > { %12726 = vmatmul.mubr.msk.f32.gmra.mrb[62].mxu1 %vm892_vm2, %v15795_v38 }
 0x353   : > { %12728 = vmatprep.mubr.msk.f32.mxu1 %vm892_vm2, %v15801_v18 }
 0x356   : > { %12729 = vmatmul.mubr.msk.f32.gmra.mrb[64].mxu1 %vm892_vm2, %v15806_v13 }
 0x357   : > { %12731 = vmatprep.mubr.msk.f32.mxu1 %vm892_vm2, %v2525_v23  ;;  %v13563_v23 = vpack.c.bf16 %v11404_v52, %v11403_v2  ;;  %v13575_v52 = vpack.c.bf16 %v11442_v28, %v11441_v57  ;;  %v15888_v57 = vld [vmem:[#allocation2 + $0x52] sm:$0xff] }
 0x35a   : > { %12732 = vmatmul.mubr.msk.f32.gmra.mrb[66].mxu1 %vm892_vm2, %v15811_v36 }
 0x35b   : > { %12734 = vmatprep.mubr.msk.f32.mxu1 %vm892_vm2, %v15815_v34 }
 0x35e   : > { %12735 = vmatmul.mubr.msk.f32.gmra.mrb[68].mxu1 %vm892_vm2, %v15819_v16 }
 0x35f   : > { %12737 = vmatprep.mubr.msk.f32.mxu1 %vm892_vm2, %v15825_v40 }
 0x362   : > { %12738 = vmatmul.mubr.msk.f32.gmra.mrb[70].mxu1 %vm892_vm2, %v15831_v60 }
 0x363   : > { %12740 = vmatprep.mubr.msk.f32.mxu1 %vm892_vm2, %v15835_v11 }
 0x366   : > { %12741 = vmatmul.mubr.msk.f32.gmra.mrb[72].mxu1 %vm892_vm2, %v15843_v33 }
 0x367   : > { %12751 = vmatprep.mubr.msk.f32.mxu1 %vm892_vm2, %v2747_v53  ;;  %v15870_v53 = vpop.f32.mrb[54].mxu0 }
 0x368   : > { %v2080_v2 = vpop.f32.mrb[55].mxu0 }
 0x369   : > { %v15874_v3 = vpop.f32.mrb[56].mxu0 }
 0x36a   : > { %12752 = vmatmul.mubr.msk.f32.vlgmr.msra.gmra.mrb[74].mxu1 %vm892_vm2, %v15858_v56  ;;  %v2085_v22 = vpop.f32.mrb[57].mxu0 }
 0x36b   : > { %12754 = vmatprep.mubr.msk.f32.mxu1 %vm892_vm2, %v15868_v0  ;;  %13562 = vmatpush3.bf16.msra.mxu1 %v13559_v9  ;;  %v15882_v24 = vpop.f32.mrb[58].mxu0  ;;  %v15892_v22 = vld [vmem:[#allocation2 + $0x62] sm:$0xff] }
 0x36c   : > { %13564 = vmatprep.subr.bf16.mxu1 %v13563_v23  ;;  %v2090_v9 = vpop.f32.mrb[59].mxu0 }
 0x36d   : > { %v15886_v2 = vpop.f32.mrb[60].mxu0  ;;  %v15900_v9 = vld [vmem:[#allocation2 + $0x72] sm:$0xff] }
 0x36e   : > { %12755 = vmatmul.mubr.msk.f32.gmra.mrb[76].mxu1 %vm892_vm2, %v15876_v43  ;;  %v2095_v28 = vpop.f32.mrb[61].mxu0 }
 0x36f   : > { %12757 = vmatprep.mubr.msk.f32.mxu1 %vm892_vm2, %v15880_v25  ;;  %13566 = vmatpush3.bf16.msra.mxu1 %v13563_v23  ;;  %v15894_v50 = vpop.f32.mrb[62].mxu0 }
 0x370   : > { %13576 = vmatprep.subr.bf16.mxu1 %v13575_v52  ;;  %v2100_v39 = vpop.f32.mrb[63].mxu0 }
 0x371   : > { %v15898_v23 = vpop.f32.mrb[64].mxu0  ;;  %v15913_v39 = vld [vmem:[#allocation2 + $0xc2] sm:$0xff] }
 0x372   : > { %12758 = vmatmul.mubr.msk.f32.gmra.mrb[78].mxu1 %vm892_vm2, %v15888_v57  ;;  %v2105_v1 = vpop.f32.mrb[65].mxu0 }
 0x373   : > { %12760 = vmatprep.mubr.msk.f32.mxu1 %vm892_vm2, %v15892_v22 }
 0x374   : > { %v15904_v28 = vpop.f32.mrb[66].mxu0 }
 0x375   : > { %v2110_v10 = vpop.f32.mrb[67].mxu0 }
 0x376   : > { %12761 = vmatmul.mubr.msk.f32.gmra.mrb[80].mxu1 %vm892_vm2, %v15900_v9  ;;  %v15923_v10 = vld [vmem:[#allocation2 + $0xe2] sm:$0xff] }
 0x377   : > { %12763 = vmatprep.mubr.msk.f32.mxu1 %vm892_vm2, %v2755_v59 }
 0x378   : > { %v15907_v19 = vpop.f32.mrb[68].mxu0 }
 0x379   : > { %v2115_v20 = vpop.f32.mrb[69].mxu0 }
 0x37a   : > { %12764 = vmatmul.mubr.msk.f32.gmra.mrb[82].mxu1 %vm892_vm2, %v15909_v21 }
 0x37b   : > { %12766 = vmatprep.mubr.msk.f32.mxu1 %vm892_vm2, %v15913_v39 }
 0x37c   : > { %v15915_v41 = vpop.f32.mrb[70].mxu0 }
 0x37d   : > { %19860 = vst [vmem:[#allocation25_spill] sm:$0xff] %v15915_v41  ;;  %v2120_v1 = vpop.f32.mrb[71].mxu0  ;;  %v13591_v41 = vpack.c.bf16 %v11482_v15, %v11481_v26 }
 0x37e   : > { %12767 = vmatmul.mubr.msk.f32.gmra.mrb[84].mxu1 %vm892_vm2, %v15919_v61  ;;  %v15937_v1 = vld [vmem:[#allocation2 + $0x112] sm:$0xff] }
 0x37f   : > { %12769 = vmatprep.mubr.msk.f32.mxu1 %vm892_vm2, %v15923_v10 }
 0x380   : > { %v15925_v59 = vpop.f32.mrb[72].mxu0 }
 0x381   : > { %19861 = vst [vmem:[#allocation26_spill] sm:$0xff] %v15925_v59  ;;  %v2125_v20 = vpop.f32.mrb[73].mxu0 }
 0x382   : > { %12770 = vmatmul.mubr.msk.f32.gmra.mrb[86].mxu1 %vm892_vm2, %v15929_v8  ;;  %v11444_v20 = vld [vmem:[%s19626_s9 + $0xd8] sm:$0xff] }
 0x383   : > { %12772 = vmatprep.mubr.msk.f32.mxu1 %vm892_vm2, %v15933_v45  ;;  %v13579_v46 = vpack.c.bf16 %v11444_v20, %v11443_v42  ;;  %v11483_v20 = vld [vmem:[%s19626_s9 + $0x110] sm:$0xff] }
 0x386   : > { %12773 = vmatmul.mubr.msk.f32.gmra.mrb[88].mxu1 %vm892_vm2, %v15937_v1 }
 0x387   : > { %12815 = vmatprep.mubr.msk.f32.mxu1 %vm892_vm2, %v15766_v27 }
 0x38a   : > { %12816 = vmatmul.mubr.msk.f32.vlgmr.msra.gmra.mrb[90].mxu1 %vm892_vm2, %v15776_v30 }
 0x38b   : > { %12818 = vmatprep.mubr.msk.f32.mxu1 %vm892_vm2, %v15781_v49  ;;  %13578 = vmatpush3.bf16.msra.mxu1 %v13575_v52  ;;  %v11464_v52 = vld [vmem:[%s19626_s9 + $0xf8] sm:$0xff] }
 0x38c   : > { %13580 = vmatprep.subr.bf16.mxu1 %v13579_v46 }
 0x38e   : > { %12819 = vmatmul.mubr.msk.f32.gmra.mrb[92].mxu1 %vm892_vm2, %v15785_v32 }
 0x38f   : > { %12821 = vmatprep.mubr.msk.f32.mxu1 %vm892_vm2, %v15795_v38  ;;  %13582 = vmatpush3.bf16.msra.mxu1 %v13579_v46 }
 0x390   : > { %13592 = vmatprep.subr.bf16.mxu1 %v13591_v41 }
 0x392   : > { %12822 = vmatmul.mubr.msk.f32.gmra.mrb[94].mxu1 %vm892_vm2, %v15801_v18 }
 0x393   : > { %12824 = vmatprep.mubr.msk.f32.mxu1 %vm892_vm2, %v15806_v13 }
 0x3b2   : > { %v2238_v42 = vpop.permute.xlu0 %2237 }
 0x3b3   : > { %2279 = vst.msk [vmem:[#allocation2 + $0x81] sm:$0xff] %vm892_vm2, %v2238_v42  ;;  %v11484_v42 = vld [vmem:[%s19626_s9 + $0x118] sm:$0xff] }
 0x3b4   : > { %v2254_v27 = vpop.permute.xlu1 %2253  ;;  %v13595_v59 = vpack.c.bf16 %v11484_v42, %v11483_v20 }
 0x3b5   : > { %2287 = vst.msk [vmem:[#allocation2 + $0x121] sm:$0xff] %vm892_vm2, %v2254_v27 }
 0x3ba   : > { %v2984_v15 = vld [vmem:[#allocation2 + $0x80] sm:$0xff] }
 0x3bb   : > { %v15969_v26 = vld [vmem:[#allocation2 + $0x81] sm:$0xff]  ;;  %12793 = vmatmul.mubr.msk.f32.gmra.mrb[80].mxu0 %vm892_vm2, %v2984_v15 }
 0x3bc   : > { %12825 = vmatmul.mubr.msk.f32.gmra.mrb[96].mxu1 %vm892_vm2, %v15969_v26  ;;  %12795 = vmatprep.mubr.msk.f32.mxu0 %vm892_vm2, %v15715_v58  ;;  %v2992_v46 = vld [vmem:[#allocation2 + $0x120] sm:$0xff] }
 0x3bd   : > { %12827 = vmatprep.mubr.msk.f32.mxu1 %vm892_vm2, %v15811_v36  ;;  %v16002_v58 = vld [vmem:[#allocation2 + $0x121] sm:$0xff]  ;;  %v11463_v36 = vld [vmem:[%s19626_s9 + $0xf0] sm:$0xff] }
 0x3be   : > { %v13587_v27 = vpack.c.bf16 %v11464_v52, %v11463_v36  ;;  %v19864_v52 = vld [vmem:[#allocation26_spill] sm:$0xff] }
 0x3bf   : > { %12796 = vmatmul.mubr.msk.f32.gmra.mrb[82].mxu0 %vm892_vm2, %v15717_v31 }
 0x3c0   : > { %12828 = vmatmul.mubr.msk.f32.gmra.mrb[98].mxu1 %vm892_vm2, %v15815_v34  ;;  %12798 = vmatprep.mubr.msk.f32.mxu0 %vm892_vm2, %v15725_v4 }
 0x3c1   : > { %12830 = vmatprep.mubr.msk.f32.mxu1 %vm892_vm2, %v15819_v16 }
 0x3c3   : > { %12799 = vmatmul.mubr.msk.f32.gmra.mrb[84].mxu0 %vm892_vm2, %v15727_v51 }
 0x3c4   : > { %12831 = vmatmul.mubr.msk.f32.gmra.mrb[100].mxu1 %vm892_vm2, %v15825_v40  ;;  %12801 = vmatprep.mubr.msk.f32.mxu0 %vm892_vm2, %v15746_v62 }
 0x3c5   : > { %12833 = vmatprep.mubr.msk.f32.mxu1 %vm892_vm2, %v15831_v60 }
 0x3c7   : > { %12802 = vmatmul.mubr.msk.f32.gmra.mrb[86].mxu0 %vm892_vm2, %v15751_v48 }
 0x3c8   : > { %12834 = vmatmul.mubr.msk.f32.gmra.mrb[102].mxu1 %vm892_vm2, %v15835_v11  ;;  %12804 = vmatprep.mubr.msk.f32.mxu0 %vm892_vm2, %v15755_v37 }
 0x3c9   : > { %12836 = vmatprep.mubr.msk.f32.mxu1 %vm892_vm2, %v15843_v33 }
 0x3cb   : > { %12805 = vmatmul.mubr.msk.f32.gmra.mrb[88].mxu0 %vm892_vm2, %v2992_v46 }
 0x3cc   : > { %12837 = vmatmul.mubr.msk.f32.gmra.mrb[104].mxu1 %vm892_vm2, %v16002_v58  ;;  %12847 = vmatprep.mubr.msk.f32.mxu0 %vm892_vm2, %v15858_v56 }
 0x3cd   : > { %12879 = vmatprep.mubr.msk.f32.mxu1 %vm892_vm2, %v15668_v55  ;;  %v19862_v55 = vmov 0.0|0.0  }
 0x3cf   : > { %12848 = vmatmul.mubr.msk.f32.vlgmr.msra.gmra.mrb[90].mxu0 %vm892_vm2, %v15868_v0 }
 0x3d0   : > { %12880 = vmatmul.mubr.msk.f32.vlgmr.msra.gmra.mrb[106].mxu1 %vm892_vm2, %v15675_v7  ;;  %12850 = vmatprep.mubr.msk.f32.mxu0 %vm892_vm2, %v15876_v43  ;;  %v3444_v7 = vld [vmem:[#allocation2 + $0x82] sm:$0xff] }
 0x3d1   : > { %12882 = vmatprep.mubr.msk.f32.mxu1 %vm892_vm2, %v15684_v47  ;;  %13586 = vmatpush3.bf16.msra.mxu0 %v15797_v17  ;;  %v3452_v47 = vld [vmem:[#allocation2 + $0x122] sm:$0xff] }
 0x3d2   : > { %13594 = vmatpush3.bf16.msra.mxu1 %v13591_v41  ;;  %13588 = vmatprep.subr.bf16.mxu0 %v13587_v27  ;;  %v3675_v41 = vld [vmem:[#allocation2 + $0x90] sm:$0xff] }
 0x3d3   : > { %13596 = vmatprep.subr.bf16.mxu1 %v13595_v59  ;;  %12851 = vmatmul.mubr.msk.f32.gmra.mrb[92].mxu0 %vm892_vm2, %v15880_v25 }
 0x3d4   : > { %12883 = vmatmul.mubr.msk.f32.gmra.mrb[108].mxu1 %vm892_vm2, %v15691_v12  ;;  %12853 = vmatprep.mubr.msk.f32.mxu0 %vm892_vm2, %v15888_v57  ;;  %v4135_v12 = vld [vmem:[#allocation2 + $0x92] sm:$0xff] }
 0x3d5   : > { %12885 = vmatprep.mubr.msk.f32.mxu1 %vm892_vm2, %v15699_v6  ;;  %13590 = vmatpush3.bf16.msra.mxu0 %v13587_v27  ;;  %v19865_v27 = vld [vmem:[#allocation25_spill] sm:$0xff] }
 0x3d6   : > { %13598 = vmatpush3.bf16.msra.mxu1 %v13595_v59  ;;  %13599 = vmatprep.subr.bf16.mxu0 %v19862_v55 }
 0x3d7   : > { %12854 = vmatmul.mubr.msk.f32.gmra.mrb[94].mxu0 %vm892_vm2, %v15892_v22 }
 0x3d8   : > { %12886 = vmatmul.mubr.msk.f32.gmra.mrb[110].mxu1 %vm892_vm2, %v15706_v54  ;;  %12856 = vmatprep.mubr.msk.f32.mxu0 %vm892_vm2, %v15900_v9 }
 0x3d9   : > { %12888 = vmatprep.mubr.msk.f32.mxu1 %vm892_vm2, %v2984_v15 }
 0x3db   : > { %12857 = vmatmul.mubr.msk.f32.gmra.mrb[96].mxu0 %vm892_vm2, %v3444_v7 }
 0x3dc   : > { %12889 = vmatmul.mubr.msk.f32.gmra.mrb[112].mxu1 %vm892_vm2, %v3675_v41  ;;  %12859 = vmatprep.mubr.msk.f32.mxu0 %vm892_vm2, %v15909_v21  ;;  %v3683_v21 = vld [vmem:[#allocation2 + $0x130] sm:$0xff] }
 0x3dd   : > { %12891 = vmatprep.mubr.msk.f32.mxu1 %vm892_vm2, %v15717_v31 }
 0x3df   : > { %12860 = vmatmul.mubr.msk.f32.gmra.mrb[98].mxu0 %vm892_vm2, %v15913_v39 }
 0x3e0   : > { %12892 = vmatmul.mubr.msk.f32.gmra.mrb[114].mxu1 %vm892_vm2, %v15725_v4  ;;  %12862 = vmatprep.mubr.msk.f32.mxu0 %vm892_vm2, %v15919_v61 }
 0x3e1   : > { %12894 = vmatprep.mubr.msk.f32.mxu1 %vm892_vm2, %v15727_v51 }
 0x3e3   : > { %12863 = vmatmul.mubr.msk.f32.gmra.mrb[100].mxu0 %vm892_vm2, %v15923_v10 }
 0x3e4   : > { %12895 = vmatmul.mubr.msk.f32.gmra.mrb[116].mxu1 %vm892_vm2, %v15746_v62  ;;  %12865 = vmatprep.mubr.msk.f32.mxu0 %vm892_vm2, %v15929_v8 }
 0x3e5   : > { %12897 = vmatprep.mubr.msk.f32.mxu1 %vm892_vm2, %v15751_v48 }
 0x3e7   : > { %12866 = vmatmul.mubr.msk.f32.gmra.mrb[102].mxu0 %vm892_vm2, %v15933_v45 }
 0x3e8   : > { %12898 = vmatmul.mubr.msk.f32.gmra.mrb[118].mxu1 %vm892_vm2, %v15755_v37  ;;  %12868 = vmatprep.mubr.msk.f32.mxu0 %vm892_vm2, %v15937_v1 }
 0x3e9   : > { %12900 = vmatprep.mubr.msk.f32.mxu1 %vm892_vm2, %v2992_v46 }
 0x3eb   : > { %12869 = vmatmul.mubr.msk.f32.gmra.mrb[104].mxu0 %vm892_vm2, %v3452_v47 }
 0x3ec   : > { %12901 = vmatmul.mubr.msk.f32.gmra.mrb[120].mxu1 %vm892_vm2, %v3683_v21  ;;  %12911 = vmatprep.mubr.msk.f32.mxu0 %vm892_vm2, %v15776_v30 }
 0x3ed   : > { %12943 = vmatprep.mubr.msk.f32.mxu1 %vm892_vm2, %v15868_v0  ;;  %v3905_v0 = vld [vmem:[#allocation2 + $0x91] sm:$0xff] }
 0x3ef   : > { %12912 = vmatmul.mubr.msk.f32.vlgmr.msra.gmra.mrb[106].mxu0 %vm892_vm2, %v15781_v49 }
 0x3f0   : > { %12944 = vmatmul.mubr.msk.f32.vlgmr.msra.gmra.mrb[122].mxu1 %vm892_vm2, %v15876_v43  ;;  %12914 = vmatprep.mubr.msk.f32.mxu0 %vm892_vm2, %v15785_v32  ;;  %v16102_v43 = vld [vmem:[%s19627_s10] ss:$0 sm:$0xff] }
 0x3f1   : > { %12946 = vmatprep.mubr.msk.f32.mxu1 %vm892_vm2, %v15880_v25  ;;  %v2054_v6 = vadd.f32 %v16102_v43, %v15829_v35  ;;  %v2049_v54 = vadd.f32 %v16102_v43, %v15821_v44  ;;  %v2064_v4 = vadd.f32 %v16102_v43, %v15841_v29  ;;  %v2059_v48 = vadd.f32 %v16102_v43, %v15837_v5 }
 0x3f2   : > { %v2079_v29 = vadd.f32 %v16102_v43, %v15870_v53  ;;  %v2094_v56 = vadd.f32 %v16102_v43, %v15886_v2  ;;  %v2089_v25 = vadd.f32 %v16102_v43, %v15882_v24  ;;  %v2099_v2 = vadd.f32 %v16102_v43, %v15894_v50 }
 0x3f3   : > { %12915 = vmatmul.mubr.msk.f32.gmra.mrb[108].mxu0 %vm892_vm2, %v15795_v38  ;;  %v2074_v38 = vadd.f32 %v16102_v43, %v15856_v63  ;;  %v2114_v24 = vadd.f32 %v16102_v43, %v15907_v19  ;;  %v2109_v46 = vadd.f32 %v16102_v43, %v15904_v28  ;;  %v2119_v50 = vadd.f32 %v16102_v43, %v19865_v27 }
 0x3f4   : > { %12947 = vmatmul.mubr.msk.f32.gmra.mrb[124].mxu1 %vm892_vm2, %v15888_v57  ;;  %12917 = vmatprep.mubr.msk.f32.mxu0 %vm892_vm2, %v15801_v18 }
 0x3f5   : > { %12949 = vmatprep.mubr.msk.f32.mxu1 %vm892_vm2, %v15892_v22  ;;  %v19863_v22 = vmov 0.0  }
 0x3f7   : > { %12918 = vmatmul.mubr.msk.f32.gmra.mrb[110].mxu0 %vm892_vm2, %v15806_v13  ;;  %v2069_v13 = vadd.f32 %v16102_v43, %v15853_v14 }
 0x3f8   : > { %12950 = vmatmul.mubr.msk.f32.gmra.mrb[126].mxu1 %vm892_vm2, %v15900_v9  ;;  %12920 = vmatprep.mubr.msk.f32.mxu0 %vm892_vm2, %v15969_v26  ;;  %v2104_v9 = vadd.f32 %v16102_v43, %v15898_v23  ;;  %v2124_v23 = vadd.f32 %v16102_v43, %v19864_v52 }
 0x3f9   : > { %12952 = vmatprep.mubr.msk.f32.mxu1 %vm892_vm2, %v3444_v7 }
 0x3fb   : > { %12921 = vmatmul.mubr.msk.f32.gmra.mrb[112].mxu0 %vm892_vm2, %v3905_v0 }
 0x3fc   : > { %12953 = vmatmul.mubr.msk.f32.gmra.mrb[128].mxu1 %vm892_vm2, %v4135_v12  ;;  %12923 = vmatprep.mubr.msk.f32.mxu0 %vm892_vm2, %v15815_v34 }
 0x3fd   : > { %12955 = vmatprep.mubr.msk.f32.mxu1 %vm892_vm2, %v15913_v39  ;;  %v12689_v31 = vpop.f32.mrb[42].mxu1 }
 0x3fe   : > { %v16123_v51 = vadd.f32 %v12689_v31, %v2054_v6  ;;  %v2422_v62 = vpop.f32.mrb[43].mxu1 }
 0x3ff   : > { %v16127_v37 = vadd.f32 %v2422_v62, %v2049_v54  ;;  %v16129_v30 = vpop.f32.mrb[74].mxu0  ;;  %12924 = vmatmul.mubr.msk.f32.gmra.mrb[114].mxu0 %vm892_vm2, %v15819_v16 }
 0x400   : > { %v16131_v49 = vpop.f32.mrb[75].mxu0  ;;  %12956 = vmatmul.mubr.msk.f32.gmra.mrb[130].mxu1 %vm892_vm2, %v15919_v61  ;;  %12926 = vmatprep.mubr.msk.f32.mxu0 %vm892_vm2, %v15825_v40  ;;  %v2084_v40 = vadd.f32 %v16102_v43, %v15874_v3 }
 0x401   : > { %12958 = vmatprep.mubr.msk.f32.mxu1 %vm892_vm2, %v15923_v10  ;;  %v12692_v32 = vpop.f32.mrb[44].mxu1 }
 0x402   : > { %v2504_v17 = vadd.f32 %v12692_v32, %v2064_v4  ;;  %v2432_v18 = vpop.f32.mrb[45].mxu1 }
 0x403   : > { %v2503_v34 = vadd.f32 %v2432_v18, %v2059_v48  ;;  %v16145_v16 = vpop.f32.mrb[76].mxu0  ;;  %12927 = vmatmul.mubr.msk.f32.gmra.mrb[116].mxu0 %vm892_vm2, %v15831_v60 }
 0x404   : > { %v16147_v44 = vpop.f32.mrb[77].mxu0  ;;  %12959 = vmatmul.mubr.msk.f32.gmra.mrb[132].mxu1 %vm892_vm2, %v15929_v8  ;;  %12929 = vmatprep.mubr.msk.f32.mxu0 %vm892_vm2, %v15835_v11  ;;  %v4143_v11 = vld [vmem:[#allocation2 + $0x132] sm:$0xff] }
 0x405   : > { %12961 = vmatprep.mubr.msk.f32.mxu1 %vm892_vm2, %v15933_v45  ;;  %v12695_v61 = vpop.f32.mrb[46].mxu1  ;;  %v3913_v45 = vld [vmem:[#allocation2 + $0x131] sm:$0xff] }
 0x406   : > { %v2506_v35 = vadd.f32 %v12695_v61, %v2074_v38  ;;  %v2442_v5 = vpop.f32.mrb[47].mxu1 }
 0x407   : > { %v2505_v14 = vadd.f32 %v2442_v5, %v2069_v13  ;;  %v16161_v60 = vpop.f32.mrb[78].mxu0  ;;  %12930 = vmatmul.mubr.msk.f32.gmra.mrb[118].mxu0 %vm892_vm2, %v15843_v33 }
 0x408   : > { %v16163_v63 = vpop.f32.mrb[79].mxu0  ;;  %12962 = vmatmul.mubr.msk.f32.gmra.mrb[134].mxu1 %vm892_vm2, %v15937_v1  ;;  %12932 = vmatprep.mubr.msk.f32.mxu0 %vm892_vm2, %v16002_v58 }
 0x409   : > { %12964 = vmatprep.mubr.msk.f32.mxu1 %vm892_vm2, %v3452_v47  ;;  %v12698_v8 = vpop.f32.mrb[48].mxu1 }
 0x40a   : > { %v2452_v53 = vpop.f32.mrb[49].mxu1  ;;  %v2508_v3 = vadd.f32 %v12698_v8, %v2084_v40 }
 0x40b   : > { %v2507_v33 = vadd.f32 %v2452_v53, %v2079_v29  ;;  %12933 = vmatmul.mubr.msk.f32.gmra.mrb[120].mxu0 %vm892_vm2, %v3913_v45 }
 0x40c   : > { %12965 = vmatmul.mubr.msk.f32.gmra.mrb[136].mxu1 %vm892_vm2, %v4143_v11  ;;  %12975 = vmatprep.mubr.msk.f32.mxu0 %vm14274_vm4, %v19863_v22 }
 0x40d   : > { %v12701_v57 = vpop.f32.mrb[50].mxu1 }
 0x40e   : > { %v2462_v39 = vpop.f32.mrb[51].mxu1  ;;  %v2510_v10 = vadd.f32 %v12701_v57, %v2094_v56 }
 0x40f   : > { %v2509_v59 = vadd.f32 %v2462_v39, %v2089_v25 }
 0x411   : > { %v12704_v1 = vpop.f32.mrb[52].mxu1 }
 0x412   : > { %v2472_v15 = vpop.f32.mrb[53].mxu1  ;;  %v2512_v26 = vadd.f32 %v12704_v1, %v2104_v9 }
 0x413   : > { %v2511_v58 = vadd.f32 %v2472_v15, %v2099_v2 }
 0x415   : > { %v12707_v36 = vpop.f32.mrb[54].mxu1 }
 0x416   : > { %v2482_v20 = vpop.f32.mrb[55].mxu1  ;;  %v2514_v42 = vadd.f32 %v12707_v36, %v2114_v24 }
 0x417   : > { %v2513_v41 = vadd.f32 %v2482_v20, %v2109_v46 }
 0x419   : > { %v12710_v7 = vpop.f32.mrb[56].mxu1 }
 0x41a   : > { %v2492_v21 = vpop.f32.mrb[57].mxu1  ;;  %v2516_v47 = vadd.f32 %v12710_v7, %v2124_v23 }
 0x41b   : > { %v2515_v19 = vadd.f32 %v2492_v21, %v2119_v50 }
 0x41d   : > { %v12721_v0 = vpop.f32.mrb[58].mxu1 }
 0x41e   : > { %v2652_v12 = vpop.f32.mrb[59].mxu1  ;;  %v2732_v6 = vadd.f32 %v12721_v0, %v16123_v51 }
 0x41f   : > { %v2731_v28 = vadd.f32 %v2652_v12, %v16127_v37 }
 0x421   : > { %v12724_v54 = vpop.f32.mrb[60].mxu1 }
 0x422   : > { %v2662_v31 = vpop.f32.mrb[61].mxu1  ;;  %v2734_v4 = vadd.f32 %v12724_v54, %v2504_v17 }
 0x423   : > { %v2733_v62 = vadd.f32 %v2662_v31, %v2503_v34 }
 0x425   : > { %v12727_v48 = vpop.f32.mrb[62].mxu1 }
 0x426   : > { %v2672_v32 = vpop.f32.mrb[63].mxu1  ;;  %v2736_v38 = vadd.f32 %v12727_v48, %v2506_v35 }
 0x427   : > { %v2735_v18 = vadd.f32 %v2672_v32, %v2505_v14 }
 0x429   : > { %v12730_v43 = vpop.f32.mrb[64].mxu1 }
 0x42a   : > { %v2738_v13 = vadd.f32 %v12730_v43, %v2508_v3  ;;  %v2682_v61 = vpop.f32.mrb[65].mxu1 }
 0x42b   : > { %v2737_v40 = vadd.f32 %v2682_v61, %v2507_v33 }
 0x42d   : > { %v12733_v5 = vpop.f32.mrb[66].mxu1 }
 0x42e   : > { %v2740_v29 = vadd.f32 %v12733_v5, %v2510_v10  ;;  %v2692_v8 = vpop.f32.mrb[67].mxu1  ;;  %v4359_v5 = vld [vmem:[%s19630_s13 + $0x8] sm:$0xff] }
 0x42f   : > { %v2739_v45 = vadd.f32 %v2692_v8, %v2509_v59 }
 0x431   : > { %v12736_v11 = vpop.f32.mrb[68].mxu1 }
 0x432   : > { %v2742_v51 = vadd.f32 %v12736_v11, %v2512_v26  ;;  %v2702_v56 = vpop.f32.mrb[69].mxu1 }
 0x433   : > { %v2741_v37 = vadd.f32 %v2702_v56, %v2511_v58 }
 0x435   : > { %v12739_v53 = vpop.f32.mrb[70].mxu1 }
 0x436   : > { %v2744_v25 = vadd.f32 %v12739_v53, %v2514_v42  ;;  %v2712_v17 = vpop.f32.mrb[71].mxu1  ;;  %v4361_v53 = vld [vmem:[%s19630_s13 + $0x18] sm:$0xff] }
 0x437   : > { %v2743_v34 = vadd.f32 %v2712_v17, %v2513_v41 }
 0x439   : > { %v12742_v57 = vpop.f32.mrb[72].mxu1 }
 0x43a   : > { %v2746_v9 = vadd.f32 %v12742_v57, %v2516_v47  ;;  %v2722_v35 = vpop.f32.mrb[73].mxu1 }
 0x43b   : > { %v2745_v14 = vadd.f32 %v2722_v35, %v2515_v19 }
 0x43d   : > { %v12753_v39 = vpop.f32.mrb[74].mxu1 }
 0x43e   : > { %v2962_v3 = vadd.f32 %v12753_v39, %v2732_v6  ;;  %v2882_v2 = vpop.f32.mrb[75].mxu1 }
 0x43f   : > { %v2961_v33 = vadd.f32 %v2882_v2, %v2731_v28 }
 0x440   : > { %v3192_v10 = vadd.f32 %v16129_v30, %v2962_v3 }
 0x441   : > { %v12756_v1 = vpop.f32.mrb[76].mxu1  ;;  %v3191_v59 = vadd.f32 %v16131_v49, %v2961_v33 }
 0x442   : > { %v2964_v24 = vadd.f32 %v12756_v1, %v2734_v4  ;;  %v2892_v15 = vpop.f32.mrb[77].mxu1 }
 0x443   : > { %v2963_v26 = vadd.f32 %v2892_v15, %v2733_v62 }
 0x444   : > { %v3194_v46 = vadd.f32 %v16145_v16, %v2964_v24 }
 0x445   : > { %v12759_v58 = vpop.f32.mrb[78].mxu1  ;;  %v3193_v36 = vadd.f32 %v16147_v44, %v2963_v26 }
 0x446   : > { %v2966_v52 = vadd.f32 %v12759_v58, %v2736_v38  ;;  %v2902_v23 = vpop.f32.mrb[79].mxu1 }
 0x447   : > { %v2965_v20 = vadd.f32 %v2902_v23, %v2735_v18 }
 0x448   : > { %v3196_v42 = vadd.f32 %v16161_v60, %v2966_v52 }
 0x449   : > { %v12762_v27 = vpop.f32.mrb[80].mxu1  ;;  %v3195_v50 = vadd.f32 %v16163_v63, %v2965_v20 }
 0x44a   : > { %v2968_v30 = vadd.f32 %v12762_v27, %v2738_v13  ;;  %v2912_v41 = vpop.f32.mrb[81].mxu1 }
 0x44b   : > { %v2967_v7 = vadd.f32 %v2912_v41, %v2737_v40  ;;  %v4358_v40 = vld [vmem:[%s19630_s13] sm:$0xff] }
 0x44c   : > { %v16214_v8 = vpack.c.bf16 %v4359_v5, %v4358_v40 }
 0x44d   : > { %v12765_v49 = vpop.f32.mrb[82].mxu1 }
 0x44e   : > { %v2970_v21 = vadd.f32 %v12765_v49, %v2740_v29  ;;  %v2922_v47 = vpop.f32.mrb[83].mxu1  ;;  %13601 = vmatpush3.bf16.msra.mxu0 %v16214_v8 }
 0x44f   : > { %v2969_v19 = vadd.f32 %v2922_v47, %v2739_v45  ;;  %13602 = vmatprep.subr.bf16.mxu0 %v19862_v55 }
 0x451   : > { %v12768_v0 = vpop.f32.mrb[84].mxu1 }
 0x452   : > { %v2972_v16 = vadd.f32 %v12768_v0, %v2742_v51  ;;  %v2932_v12 = vpop.f32.mrb[85].mxu1 }
 0x453   : > { %v2971_v6 = vadd.f32 %v2932_v12, %v2741_v37  ;;  %v4360_v37 = vld [vmem:[%s19630_s13 + $0x10] sm:$0xff] }
 0x455   : > { %v12771_v44 = vpop.f32.mrb[86].mxu1 }
 0x456   : > { %v2974_v28 = vadd.f32 %v12771_v44, %v2744_v25  ;;  %v2942_v54 = vpop.f32.mrb[87].mxu1  ;;  %v16228_v25 = vpack.c.bf16 %v4361_v53, %v4360_v37 }
 0x457   : > { %v2973_v31 = vadd.f32 %v2942_v54, %v2743_v34 }
 0x458   : > { %13604 = vmatpush3.bf16.msra.mxu0 %v16228_v25 }
 0x459   : > { %v12774_v4 = vpop.f32.mrb[88].mxu1  ;;  %13605 = vmatprep.subr.bf16.mxu0 %v19862_v55 }
 0x45a   : > { %v2976_v60 = vadd.f32 %v12774_v4, %v2746_v9  ;;  %v2952_v62 = vpop.f32.mrb[89].mxu1 }
 0x45b   : > { %v2975_v48 = vadd.f32 %v2952_v62, %v2745_v14 }
 0x45d   : > { %v12817_v63 = vpop.f32.mrb[90].mxu1 }
 0x45e   : > { %v16200_v32 = vadd.f32 %v12817_v63, %v3192_v10  ;;  %v3342_v38 = vpop.f32.mrb[91].mxu1 }
 0x45f   : > { %v16202_v18 = vadd.f32 %v3342_v38, %v3191_v59 }
 0x461   : > { %v12820_v43 = vpop.f32.mrb[92].mxu1 }
 0x462   : > { %v16204_v13 = vadd.f32 %v12820_v43, %v3194_v46  ;;  %v3352_v61 = vpop.f32.mrb[93].mxu1 }
 0x463   : > { %v16212_v29 = vadd.f32 %v3352_v61, %v3193_v36 }
 0x465   : > { %v12823_v45 = vpop.f32.mrb[94].mxu1 }
 0x466   : > { %v16217_v11 = vadd.f32 %v12823_v45, %v3196_v42  ;;  %v3362_v51 = vpop.f32.mrb[95].mxu1 }
 0x467   : > { %v16220_v56 = vadd.f32 %v3362_v51, %v3195_v50 }
 0x48e   : > { %v12794_v17 = vpop.f32.mrb[80].mxu0 }
 0x48f   : > { %v12826_v34 = vpop.f32.mrb[96].mxu1  ;;  %v3198_v57 = vadd.f32 %v12794_v17, %v2968_v30  ;;  %v3142_v9 = vpop.f32.mrb[81].mxu0 }
 0x490   : > { %v3372_v35 = vpop.f32.mrb[97].mxu1  ;;  %v3197_v14 = vadd.f32 %v3142_v9, %v2967_v7 }
 0x491   : > { %v3428_v39 = vadd.f32 %v12826_v34, %v3198_v57 }
 0x492   : > { %v3427_v3 = vadd.f32 %v3372_v35, %v3197_v14  ;;  %v12797_v2 = vpop.f32.mrb[82].mxu0 }
 0x493   : > { %v12829_v33 = vpop.f32.mrb[98].mxu1  ;;  %v3200_v10 = vadd.f32 %v12797_v2, %v2970_v21  ;;  %v3152_v1 = vpop.f32.mrb[83].mxu0 }
 0x494   : > { %v3382_v59 = vpop.f32.mrb[99].mxu1  ;;  %v3199_v24 = vadd.f32 %v3152_v1, %v2969_v19 }
 0x495   : > { %v3430_v15 = vadd.f32 %v12829_v33, %v3200_v10 }
 0x496   : > { %v3429_v26 = vadd.f32 %v3382_v59, %v3199_v24  ;;  %v12800_v46 = vpop.f32.mrb[84].mxu0 }
 0x497   : > { %v12832_v58 = vpop.f32.mrb[100].mxu1  ;;  %v3202_v36 = vadd.f32 %v12800_v46, %v2972_v16  ;;  %v3162_v52 = vpop.f32.mrb[85].mxu0 }
 0x498   : > { %v3392_v23 = vpop.f32.mrb[101].mxu1  ;;  %v3201_v20 = vadd.f32 %v3162_v52, %v2971_v6 }
 0x499   : > { %v3432_v42 = vadd.f32 %v12832_v58, %v3202_v36 }
 0x49a   : > { %v3431_v27 = vadd.f32 %v3392_v23, %v3201_v20  ;;  %v12803_v50 = vpop.f32.mrb[86].mxu0 }
 0x49b   : > { %v12835_v30 = vpop.f32.mrb[102].mxu1  ;;  %v3204_v41 = vadd.f32 %v12803_v50, %v2974_v28  ;;  %v3172_v7 = vpop.f32.mrb[87].mxu0 }
 0x49c   : > { %v3402_v49 = vpop.f32.mrb[103].mxu1  ;;  %v3203_v47 = vadd.f32 %v3172_v7, %v2973_v31 }
 0x49d   : > { %v3434_v21 = vadd.f32 %v12835_v30, %v3204_v41 }
 0x49e   : > { %v3433_v0 = vadd.f32 %v3402_v49, %v3203_v47  ;;  %v12806_v12 = vpop.f32.mrb[88].mxu0 }
 0x49f   : > { %v12838_v19 = vpop.f32.mrb[104].mxu1  ;;  %v3206_v44 = vadd.f32 %v12806_v12, %v2976_v60  ;;  %v3182_v54 = vpop.f32.mrb[89].mxu0 }
 0x4a0   : > { %v3412_v4 = vpop.f32.mrb[105].mxu1  ;;  %v3205_v62 = vadd.f32 %v3182_v54, %v2975_v48 }
 0x4a1   : > { %v3436_v16 = vadd.f32 %v12838_v19, %v3206_v44 }
 0x4a2   : > { %v3435_v63 = vadd.f32 %v3412_v4, %v3205_v62  ;;  %v12849_v38 = vpop.f32.mrb[90].mxu0 }
 0x4a3   : > { %v12881_v6 = vpop.f32.mrb[106].mxu1  ;;  %v3652_v43 = vadd.f32 %v12849_v38, %v16200_v32  ;;  %v3572_v61 = vpop.f32.mrb[91].mxu0 }
 0x4a4   : > { %v3803_v40 = vpop.f32.mrb[107].mxu1  ;;  %v3651_v28 = vadd.f32 %v3572_v61, %v16202_v18 }
 0x4a5   : > { %v3883_v5 = vadd.f32 %v12881_v6, %v3652_v43 }
 0x4a6   : > { %v3882_v31 = vadd.f32 %v3803_v40, %v3651_v28  ;;  %v12852_v45 = vpop.f32.mrb[92].mxu0 }
 0x4a7   : > { %v12884_v51 = vpop.f32.mrb[108].mxu1  ;;  %v3654_v37 = vadd.f32 %v12852_v45, %v16204_v13  ;;  %v3582_v60 = vpop.f32.mrb[93].mxu0 }
 0x4a8   : > { %v3813_v53 = vpop.f32.mrb[109].mxu1  ;;  %v3653_v48 = vadd.f32 %v3582_v60, %v16212_v29 }
 0x4a9   : > { %v3885_v17 = vadd.f32 %v12884_v51, %v3654_v37 }
 0x4aa   : > { %v16236_v34 = vadd.f32 %v3813_v53, %v3653_v48  ;;  %v12855_v57 = vpop.f32.mrb[94].mxu0 }
 0x4ab   : > { %v12887_v9 = vpop.f32.mrb[110].mxu1  ;;  %v3656_v32 = vadd.f32 %v12855_v57, %v16217_v11  ;;  %v3592_v35 = vpop.f32.mrb[95].mxu0 }
 0x4ac   : > { %v3823_v14 = vpop.f32.mrb[111].mxu1  ;;  %v3655_v18 = vadd.f32 %v3592_v35, %v16220_v56 }
 0x4ad   : > { %v16240_v2 = vadd.f32 %v12887_v9, %v3656_v32 }
 0x4ae   : > { %v16242_v33 = vadd.f32 %v3823_v14, %v3655_v18  ;;  %v12858_v13 = vpop.f32.mrb[96].mxu0 }
 0x4af   : > { %v12890_v10 = vpop.f32.mrb[112].mxu1  ;;  %v3658_v1 = vadd.f32 %v12858_v13, %v3428_v39  ;;  %v3602_v59 = vpop.f32.mrb[97].mxu0 }
 0x4b0   : > { %v3833_v29 = vpop.f32.mrb[113].mxu1  ;;  %v3657_v24 = vadd.f32 %v3602_v59, %v3427_v3 }
 0x4b1   : > { %v16244_v46 = vadd.f32 %v12890_v10, %v3658_v1 }
 0x4b2   : > { %v16246_v58 = vadd.f32 %v3833_v29, %v3657_v24  ;;  %v12861_v36 = vpop.f32.mrb[98].mxu0 }
 0x4b3   : > { %v12893_v11 = vpop.f32.mrb[114].mxu1  ;;  %v3660_v52 = vadd.f32 %v12861_v36, %v3430_v15  ;;  %v3612_v23 = vpop.f32.mrb[99].mxu0 }
 0x4b4   : > { %v3843_v20 = vpop.f32.mrb[115].mxu1  ;;  %v3659_v56 = vadd.f32 %v3612_v23, %v3429_v26 }
 0x4b5   : > { %v16248_v50 = vadd.f32 %v12893_v11, %v3660_v52 }
 0x4b6   : > { %v16250_v30 = vadd.f32 %v3843_v20, %v3659_v56  ;;  %v12864_v41 = vpop.f32.mrb[100].mxu0 }
 0x4b7   : > { %v12896_v7 = vpop.f32.mrb[116].mxu1  ;;  %v3662_v39 = vadd.f32 %v12864_v41, %v3432_v42  ;;  %v3622_v49 = vpop.f32.mrb[101].mxu0 }
 0x4b8   : > { %v3853_v47 = vpop.f32.mrb[117].mxu1  ;;  %v3661_v3 = vadd.f32 %v3622_v49, %v3431_v27 }
 0x4b9   : > { %v16252_v12 = vadd.f32 %v12896_v7, %v3662_v39 }
 0x4ba   : > { %v16254_v19 = vadd.f32 %v3853_v47, %v3661_v3  ;;  %v12867_v44 = vpop.f32.mrb[102].mxu0 }
 0x4bb   : > { %v12899_v54 = vpop.f32.mrb[118].mxu1  ;;  %v3664_v15 = vadd.f32 %v12867_v44, %v3434_v21  ;;  %v3632_v4 = vpop.f32.mrb[103].mxu0 }
 0x4bc   : > { %v3863_v62 = vpop.f32.mrb[119].mxu1  ;;  %v3663_v26 = vadd.f32 %v3632_v4, %v3433_v0 }
 0x4bd   : > { %v16256_v38 = vadd.f32 %v12899_v54, %v3664_v15 }
 0x4be   : > { %v16258_v6 = vadd.f32 %v3863_v62, %v3663_v26  ;;  %v12870_v43 = vpop.f32.mrb[104].mxu0 }
 0x4bf   : > { %v12902_v61 = vpop.f32.mrb[120].mxu1  ;;  %v3666_v42 = vadd.f32 %v12870_v43, %v3436_v16  ;;  %v3642_v40 = vpop.f32.mrb[105].mxu0 }
 0x4c0   : > { %v3873_v28 = vpop.f32.mrb[121].mxu1  ;;  %v3665_v27 = vadd.f32 %v3642_v40, %v3435_v63 }
 0x4c1   : > { %v16260_v45 = vadd.f32 %v12902_v61, %v3666_v42 }
 0x4c2   : > { %v16262_v51 = vadd.f32 %v3873_v28, %v3665_v27  ;;  %v12913_v37 = vpop.f32.mrb[106].mxu0 }
 0x4c3   : > { %v12945_v60 = vpop.f32.mrb[122].mxu1  ;;  %v4113_v21 = vadd.f32 %v12913_v37, %v3883_v5  ;;  %v4033_v53 = vpop.f32.mrb[107].mxu0 }
 0x4c4   : > { %v4263_v48 = vpop.f32.mrb[123].mxu1  ;;  %v4112_v0 = vadd.f32 %v4033_v53, %v3882_v31 }
 0x4c5   : > { %v16264_v57 = vadd.f32 %v12945_v60, %v4113_v21 }
 0x4c6   : > { %v16266_v9 = vadd.f32 %v4263_v48, %v4112_v0  ;;  %v12916_v32 = vpop.f32.mrb[108].mxu0 }
 0x4c7   : > { %v12948_v35 = vpop.f32.mrb[124].mxu1  ;;  %v4409_v16 = vmul.f32 %v16264_v57, %v16264_v57  ;;  %v4115_v63 = vadd.f32 %v12916_v32, %v3885_v17  ;;  %v4043_v14 = vpop.f32.mrb[109].mxu0  ;;  %v4365_v13 = vsel %vm892_vm2, %v16264_v57, 0.0 }
 0x4c8   : > { %v4273_v18 = vpop.f32.mrb[125].mxu1  ;;  %v4364_v5 = vsel %vm892_vm2, %v16266_v9, 0.0  ;;  %v4408_v31 = vmul.f32 %v16266_v9, %v16266_v9  ;;  %v4114_v10 = vadd.f32 %v4043_v14, %v16236_v34 }
 0x4c9   : > { %v16277_v1 = vadd.f32 %v12948_v35, %v4115_v63  ;;  %v4425_v59 = vsel %vm892_vm2, %v4409_v16, 0.0  ;;  %v4366_v11 = vadd.f32 %v4365_v13, %v4364_v5 }
 0x4ca   : > { %v4424_v29 = vsel %vm892_vm2, %v4408_v31, 0.0  ;;  %v16281_v17 = vadd.f32 %v4273_v18, %v4114_v10  ;;  %v12919_v24 = vpop.f32.mrb[110].mxu0 }
 0x4cb   : > { %v12951_v36 = vpop.f32.mrb[126].mxu1  ;;  %v4411_v52 = vmul.f32 %v16277_v1, %v16277_v1  ;;  %v4117_v23 = vadd.f32 %v12919_v24, %v16240_v2  ;;  %v4053_v20 = vpop.f32.mrb[111].mxu0  ;;  %v4426_v39 = vadd.f32 %v4425_v59, %v4424_v29  ;;  %v4369_v3 = vsel %vm892_vm2, %v16277_v1, 0.0 }
 0x4cc   : > { %v4283_v56 = vpop.f32.mrb[127].mxu1  ;;  %v4367_v34 = vsel %vm892_vm2, %v16281_v17, 0.0  ;;  %v4410_v41 = vmul.f32 %v16281_v17, %v16281_v17  ;;  %v4116_v7 = vadd.f32 %v4053_v20, %v16242_v33 }
 0x4cd   : > { %v4368_v49 = vadd.f32 %v4367_v34, %v4366_v11  ;;  %v16291_v47 = vadd.f32 %v12951_v36, %v4117_v23  ;;  %v4429_v4 = vsel %vm892_vm2, %v4411_v52, 0.0 }
 0x4ce   : > { %v4427_v44 = vsel %vm892_vm2, %v4410_v41, 0.0  ;;  %v16296_v2 = vadd.f32 %v4283_v56, %v4116_v7  ;;  %v12922_v54 = vpop.f32.mrb[112].mxu0 }
 0x4cf   : > { %v12954_v15 = vpop.f32.mrb[128].mxu1  ;;  %v4428_v62 = vadd.f32 %v4427_v44, %v4426_v39  ;;  %v4370_v26 = vadd.f32 %v4369_v3, %v4368_v49  ;;  %v4063_v43 = vpop.f32.mrb[113].mxu0  ;;  %v4119_v40 = vadd.f32 %v12922_v54, %v16244_v46  ;;  %v4373_v60 = vsel %vm892_vm2, %v16291_v47, 0.0 }
 0x4d0   : > { %v4293_v61 = vpop.f32.mrb[129].mxu1  ;;  %v4371_v33 = vsel %vm892_vm2, %v16296_v2, 0.0  ;;  %v4412_v42 = vmul.f32 %v16296_v2, %v16296_v2  ;;  %v4118_v28 = vadd.f32 %v4063_v43, %v16246_v58  ;;  %v4413_v35 = vmul.f32 %v16291_v47, %v16291_v47 }
 0x4d1   : > { %v4372_v27 = vadd.f32 %v4371_v33, %v4370_v26  ;;  %v4430_v37 = vadd.f32 %v4429_v4, %v4428_v62  ;;  %v16308_v53 = vadd.f32 %v12954_v15, %v4119_v40 }
 0x4d2   : > { %v4431_v21 = vsel %vm892_vm2, %v4412_v42, 0.0  ;;  %v16310_v48 = vadd.f32 %v4293_v61, %v4118_v28  ;;  %v12925_v0 = vpop.f32.mrb[114].mxu0  ;;  %v4433_v29 = vsel %vm892_vm2, %v4413_v35, 0.0 }
 0x4d3   : > { %v12957_v32 = vpop.f32.mrb[130].mxu1  ;;  %v4374_v16 = vadd.f32 %v4373_v60, %v4372_v27  ;;  %v4121_v46 = vadd.f32 %v12925_v0, %v16248_v50  ;;  %v4073_v58 = vpop.f32.mrb[115].mxu0  ;;  %v4432_v18 = vadd.f32 %v4431_v21, %v4430_v37  ;;  %v4415_v33 = vmul.f32 %v16308_v53, %v16308_v53 }
 0x4d4   : > { %v4303_v63 = vpop.f32.mrb[131].mxu1  ;;  %v4375_v14 = vsel %vm892_vm2, %v16310_v48, 0.0  ;;  %v4414_v13 = vmul.f32 %v16310_v48, %v16310_v48  ;;  %v4120_v31 = vadd.f32 %v4073_v58, %v16250_v30  ;;  %v4377_v30 = vsel %vm892_vm2, %v16308_v53, 0.0 }
 0x4d5   : > { %v16319_v5 = vadd.f32 %v12957_v32, %v4121_v46  ;;  %v4376_v24 = vadd.f32 %v4375_v14, %v4374_v16  ;;  %v4434_v34 = vadd.f32 %v4433_v29, %v4432_v18 }
 0x4d6   : > { %v12928_v10 = vpop.f32.mrb[116].mxu0  ;;  %v16327_v23 = vadd.f32 %v4303_v63, %v4120_v31  ;;  %v4435_v41 = vsel %vm892_vm2, %v4414_v13, 0.0  ;;  %v4437_v13 = vsel %vm892_vm2, %v4415_v33, 0.0 }
 0x4d7   : > { %v12960_v59 = vpop.f32.mrb[132].mxu1  ;;  %v4386_v50 = vsel %vm892_vm2, %v16319_v5, 0.0  ;;  %v4083_v36 = vpop.f32.mrb[117].mxu0  ;;  %v4417_v52 = vmul.f32 %v16319_v5, %v16319_v5  ;;  %v4123_v20 = vadd.f32 %v12928_v10, %v16252_v12  ;;  %v4378_v54 = vadd.f32 %v4377_v30, %v4376_v24 }
 0x4d8   : > { %v4313_v11 = vpop.f32.mrb[133].mxu1  ;;  %v4122_v56 = vadd.f32 %v4083_v36, %v16254_v19  ;;  %v4385_v7 = vsel %vm892_vm2, %v16327_v23, 0.0  ;;  %v4416_v39 = vmul.f32 %v16327_v23, %v16327_v23  ;;  %v4436_v42 = vadd.f32 %v4435_v41, %v4434_v34 }
 0x4d9   : > { %v16338_v49 = vadd.f32 %v12960_v59, %v4123_v20  ;;  %v4387_v19 = vadd.f32 %v4386_v50, %v4385_v7  ;;  %v4446_v26 = vsel %vm892_vm2, %v4417_v52, 0.0  ;;  %v4379_v32 = vrot.slane %v4378_v54, 4 }
 0x4da   : > { %v16340_v3 = vadd.f32 %v4313_v11, %v4122_v56  ;;  %v12931_v44 = vpop.f32.mrb[118].mxu0  ;;  %v4445_v43 = vsel %vm892_vm2, %v4416_v39, 0.0  ;;  %v4438_v36 = vadd.f32 %v4437_v13, %v4436_v42 }
 0x4db   : > { %v12963_v12 = vpop.f32.mrb[134].mxu1  ;;  %v4125_v15 = vadd.f32 %v12931_v44, %v16256_v38  ;;  %v4093_v4 = vpop.f32.mrb[119].mxu0  ;;  %v4390_v40 = vsel %vm892_vm2, %v16338_v49, 0.0  ;;  %v4419_v38 = vmul.f32 %v16338_v49, %v16338_v49  ;;  %v4447_v35 = vadd.f32 %v4446_v26, %v4445_v43 }
 0x4dc   : > { %v4323_v62 = vpop.f32.mrb[135].mxu1  ;;  %v4388_v61 = vsel %vm892_vm2, %v16340_v3, 0.0  ;;  %v4418_v27 = vmul.f32 %v16340_v3, %v16340_v3  ;;  %v4124_v60 = vadd.f32 %v4093_v4, %v16258_v6  ;;  %v4380_v50 = vadd.f32 %v4379_v32, %v4378_v54 }
 0x4dd   : > { %v4389_v28 = vadd.f32 %v4388_v61, %v4387_v19  ;;  %v16355_v37 = vadd.f32 %v12963_v12, %v4125_v15  ;;  %v4450_v6 = vsel %vm892_vm2, %v4419_v38, 0.0  ;;  %v4439_v54 = vrot.slane %v4438_v36, 4 }
 0x4de   : > { %v12934_v21 = vpop.f32.mrb[120].mxu0  ;;  %v4448_v14 = vsel %vm892_vm2, %v4418_v27, 0.0  ;;  %v16360_v18 = vadd.f32 %v4323_v62, %v4124_v60  ;;  %v4381_v12 = vrot.slane %v4380_v50, 2 }
 0x4df   : > { %v12966_v0 = vpop.f32.mrb[136].mxu1  ;;  %v4391_v16 = vadd.f32 %v4390_v40, %v4389_v28  ;;  %v4127_v46 = vadd.f32 %v12934_v21, %v16260_v45  ;;  %v4103_v58 = vpop.f32.mrb[121].mxu0  ;;  %v4449_v31 = vadd.f32 %v4448_v14, %v4447_v35  ;;  %v4421_v29 = vmul.f32 %v16355_v37, %v16355_v37 }
 0x4e0   : > { %v4333_v63 = vpop.f32.mrb[137].mxu1  ;;  %v4126_v10 = vadd.f32 %v4103_v58, %v16262_v51  ;;  %v4392_v45 = vsel %vm892_vm2, %v16360_v18, 0.0  ;;  %v4420_v24 = vmul.f32 %v16360_v18, %v16360_v18  ;;  %v4394_v51 = vsel %vm892_vm2, %v16355_v37, 0.0 }
 0x4e1   : > { %v16364_v59 = vadd.f32 %v12966_v0, %v4127_v46  ;;  %v4393_v11 = vadd.f32 %v4392_v45, %v4391_v16  ;;  %v4451_v52 = vadd.f32 %v4450_v6, %v4449_v31  ;;  %v4454_v41 = vsel %vm892_vm2, %v4421_v29, 0.0 }
 0x4e2   : > { %v4452_v20 = vsel %vm892_vm2, %v4420_v24, 0.0  ;;  %v16376_v56 = vadd.f32 %v4333_v63, %v4126_v10  ;;  %v4382_v33 = vadd.f32 %v4381_v12, %v4380_v50  ;;  %v4440_v42 = vadd.f32 %v4439_v54, %v4438_v36  ;;  %v19866_v54 = vld [vmem:[#allocation7_spill] sm:$0xff] }
 0x4e3   : > { %v4453_v30 = vadd.f32 %v4452_v20, %v4451_v52  ;;  %v4395_v34 = vadd.f32 %v4394_v51, %v4393_v11  ;;  %v4423_v7 = vmul.f32 %v16364_v59, %v16364_v59  ;;  %v4398_v4 = vsel %vm892_vm2, %v16364_v59, 0.0  ;;  %v4963_v51 = vld [vmem:[#allocation2 + $0x90] sm:$0xff] }
 0x4e4   : > { %v4396_v39 = vsel %vm892_vm2, %v16376_v56, 0.0  ;;  %v4422_v44 = vmul.f32 %v16376_v56, %v16376_v56  ;;  %v4383_v60 = vrot.slane %v4382_v33, 1  ;;  %v4441_v21 = vrot.slane %v4440_v42, 2  ;;  %5290 = vrot.lane.b32.xlu0 %v4963_v51, %s19708_s19  ;;  %v4971_v20 = vld [vmem:[#allocation2 + $0x130] sm:$0xff] }
 0x4e5   : > { %v4397_v19 = vadd.f32 %v4396_v39, %v4395_v34  ;;  %v4455_v15 = vadd.f32 %v4454_v41, %v4453_v30  ;;  %v4458_v61 = vsel %vm892_vm2, %v4423_v7, 0.0  ;;  %v4979_v30 = vld [vmem:[#allocation2 + $0x91] sm:$0xff] }
 0x4e6   : > { %v4456_v62 = vsel %vm892_vm2, %v4422_v44, 0.0  ;;  %v4384_v58 = vadd.f32 %v4383_v60, %v4382_v33  ;;  %v4442_v63 = vadd.f32 %v4441_v21, %v4440_v42  ;;  %5354 = vrot.lane.b32.xlu1 %v4979_v30, %s14278_s24 }
 0x4e7   : > { %v4399_v26 = vadd.f32 %v4398_v4, %v4397_v19  ;;  %v4457_v43 = vadd.f32 %v4456_v62, %v4455_v15 }
 0x4e8   : > { %v4406_v10 = vmul.f32 0.015625, %v4384_v58  ;;  %v4443_v29 = vrot.slane %v4442_v63, 1  ;;  %5306 = vrot.lane.b32.xlu0 %v4971_v20, %s19708_s19 }
 0x4e9   : > { %v4400_v40 = vrot.slane %v4399_v26, 4  ;;  %v4459_v28 = vadd.f32 %v4458_v61, %v4457_v43  ;;  %v19867_v43 = vld [vmem:[#allocation8_spill] sm:$0xff] }
 0x4ea   : > { %v4444_v50 = vadd.f32 %v4443_v29, %v4442_v63 }
 0x4eb   : > { %v4401_v38 = vadd.f32 %v4400_v40, %v4399_v26  ;;  %v4460_v27 = vrot.slane %v4459_v28, 4 }
 0x4ec   : > { %v4466_v11 = vmul.f32 0.015625, %v4444_v50 }
 0x4ed   : > { %v4402_v0 = vrot.slane %v4401_v38, 2  ;;  %v4461_v32 = vadd.f32 %v4460_v27, %v4459_v28 }
 0x4ef   : > { %v4403_v35 = vadd.f32 %v4402_v0, %v4401_v38  ;;  %v4462_v16 = vrot.slane %v4461_v32, 2 }
 0x4f1   : > { %v4404_v46 = vrot.slane %v4403_v35, 1  ;;  %v4463_v14 = vadd.f32 %v4462_v16, %v4461_v32 }
 0x4f3   : > { %v4405_v13 = vadd.f32 %v4404_v46, %v4403_v35  ;;  %v4464_v31 = vrot.slane %v4463_v14, 1 }
 0x4f5   : > { %v4407_v6 = vmul.f32 0.015625, %v4405_v13  ;;  %v4465_v24 = vadd.f32 %v4464_v31, %v4463_v14 }
 0x4f7   : > { %v4470_v45 = vsel %vm1566_vm6, %v4407_v6, %v4406_v10  ;;  %v4467_v36 = vmul.f32 0.015625, %v4465_v24 }
 0x4f8   : > { %12976 = vmatmul.mubr.msk.f32.vlgmr.msra.gmra.mrb[122].mxu0 %vm892_vm2, %v4470_v45 }
 0x4f9   : > { %13607 = vmatpush3.bf16.msra.mxu0 %v16214_v8  ;;  %12986 = vmatprep.mubr.msk.f32.mxu0 %vm14274_vm4, %v19863_v22  ;;  %v4545_v52 = vsel %vm1566_vm6, %v4467_v36, %v4466_v11  ;;  %v13978_v8 = vld [vmem:[%s19631_s14 + $0x80] sm:$0xff]  }
 0x4fa   : > { %13608 = vmatprep.subr.bf16.mxu0 %v19862_v55 }
 0x4fd   : > { %13610 = vmatpush3.bf16.msra.mxu0 %v16228_v25  ;;  %v13979_v25 = vld [vmem:[%s19631_s14 + $0x88] sm:$0xff]  }
 0x4fe   : > { %12989 = vmatprep.subr.bf16.mxu0 %v13978_v8 }
 0x500   : > { %12987 = vmatmul.mubr.msk.f32.vlgmr.msra.gmra.mrb[124].mxu0 %vm892_vm2, %v4545_v52  ;;  %v16442_v52 = vld [vmem:[%s19629_s12] ss:$0 sm:$0xff] }
 0x501   : > { %12990 = vmatpush3.bf16.msra.mxu0 %v13978_v8 }
 0x502   : > { %12991 = vmatprep.subr.bf16.mxu0 %v13979_v25 }
 0x505   : > { %12992 = vmatpush3.bf16.msra.mxu0 %v13979_v25 }
 0x5cb   : > { %v4539_v34 = vpop.f32.mrb[122].mxu0 }
 0x5cc   : > { %v12977_v41 = vpop.f32.mrb[123].mxu0  ;;  %v4618_v39 = vmul.f32 %v4539_v34, %v4539_v34  ;;  %v4629_v19 = vrot.slane %v4539_v34, %v19866_v54  ;;  %v6025_v34 = vld [vmem:[%s19620_s3 + $0x80] sm:$0xff] }
 0x5ce   : > { %v4630_v4 = vcombine.high %v4629_v19, %v4629_v19  ;;  %v4637_v62 = vrot.slane %v4629_v19, %v19866_v54 }
 0x5d0   : > { %v4644_v26 = vrot.slane %v4630_v4, %v19866_v54  ;;  %v4648_v61 = vrot.slane %v4637_v62, %v19867_v43 }
 0x5d2   : > { %v4652_v42 = vrot.slane %v4644_v26, %v19867_v43  ;;  %v4655_v28 = vsub.f32 %v16266_v9, %v4648_v61  ;;  %v4656_v38 = vsub.f32 %v16264_v57, %v4648_v61  ;;  %v4657_v27 = vsub.f32 %v16281_v17, %v4648_v61 }
 0x5d3   : > { %v4614_v7 = vpop.f32.mrb[124].mxu0  ;;  %v4658_v60 = vsub.f32 %v16277_v1, %v4648_v61  ;;  %v4659_v21 = vsub.f32 %v16296_v2, %v4648_v61  ;;  %v4660_v0 = vsub.f32 %v16291_v47, %v4648_v61  ;;  %v4661_v16 = vsub.f32 %v16310_v48, %v4648_v61 }
 0x5d4   : > { %v12988_v44 = vpop.f32.mrb[125].mxu0  ;;  %v4619_v12 = vsub.f32 %v4614_v7, %v4618_v39  ;;  %v4662_v46 = vsub.f32 %v16308_v53, %v4648_v61  ;;  %v4663_v58 = vsub.f32 %v16327_v23, %v4652_v42  ;;  %v4664_v9 = vsub.f32 %v16319_v5, %v4652_v42  ;;  %v6026_v39 = vld [vmem:[%s19620_s3 + $0x88] sm:$0xff] }
 0x5d5   : > { %v4665_v57 = vsub.f32 %v16340_v3, %v4652_v42  ;;  %v4666_v17 = vsub.f32 %v16338_v49, %v4652_v42  ;;  %v4667_v47 = vsub.f32 %v16360_v18, %v4652_v42  ;;  %v4668_v63 = vsub.f32 %v16355_v37, %v4652_v42  ;;  %v16436_v49 = vld [vmem:[%s19628_s11] ss:$0 sm:$0xff] }
 0x5d6   : > { %v4620_v15 = vadd.f32 1e-05, %v4619_v12  ;;  %v4669_v48 = vsub.f32 %v16376_v56, %v4652_v42  ;;  %v4670_v53 = vsub.f32 %v16364_v59, %v4652_v42  ;;  %v13980_v44 = vld [vmem:[%s19631_s14 + $0x40] sm:$0xff]  }
 0x5d7   : > { %v13981_v12 = vld [vmem:[%s19631_s14] sm:$0xff]   ;;  %12153 = vmatprep.subr.bf16.mxu1 %v13980_v44 }
 0x5d8   : > { %14080 = vrsqrt.f32 %v4620_v15  ;;  %12154 = vmatpush3.bf16.msra.mxu1 %v13981_v12 }
 0x5e2   : > { %v14081_v33 = vpop.eup %14080 }
 0x5e3   : > { %v4678_v40 = vrot.slane %v14081_v33, %v19866_v54  ;;  %v13611_v33 = vpack.c.bf16 %v6026_v39, %v6025_v34  ;;  %v14219_v34 = vld [vmem:[#allocation3 + $0x20] sm:$0xff] }
 0x5e5   : > { %v4679_v32 = vcombine.high %v4678_v40, %v4678_v40  ;;  %v4686_v35 = vrot.slane %v4678_v40, %v19866_v54  ;;  %13612 = vmatprep.subr.bf16.mxu0 %v13611_v33 }
 0x5e7   : > { %v4693_v1 = vrot.slane %v4679_v32, %v19866_v54  ;;  %v4697_v2 = vrot.slane %v4686_v35, %v19867_v43  ;;  %v19868_v32 = vld [vmem:[#allocation10_spill] sm:$0xff] }
 0x5e8   : > { %v4782_v35 = vsub.f32 1.0, %v19868_v32 }
 0x5e9   : > { %v4701_v23 = vrot.slane %v4693_v1, %v19867_v43  ;;  %v4704_v14 = vmul.f32 %v4697_v2, %v4655_v28  ;;  %v4705_v5 = vmul.f32 %v4697_v2, %v4656_v38  ;;  %v4706_v13 = vmul.f32 %v4697_v2, %v4657_v27  ;;  %v13982_v28 = vld [vmem:[%s19631_s14 + $0x48] sm:$0xff]   ;;  %v13984_v1 = vld [vmem:[%s19631_s14 + $0x50] sm:$0xff]  }
 0x5ea   : > { %v4707_v3 = vmul.f32 %v4697_v2, %v4658_v60  ;;  %v4708_v31 = vmul.f32 %v4697_v2, %v4659_v21  ;;  %v4709_v10 = vmul.f32 %v4697_v2, %v4660_v0  ;;  %v4710_v18 = vmul.f32 %v4697_v2, %v4661_v16  ;;  %v13983_v38 = vld [vmem:[%s19631_s14 + $0x8] sm:$0xff]   ;;  %12155 = vmatprep.subr.bf16.mxu1 %v13982_v28 }
 0x5eb   : > { %v4711_v6 = vmul.f32 %v4697_v2, %v4662_v46  ;;  %v4712_v37 = vmul.f32 %v4701_v23, %v4663_v58  ;;  %v4713_v29 = vmul.f32 %v4701_v23, %v4664_v9  ;;  %v4714_v56 = vmul.f32 %v4701_v23, %v4665_v57  ;;  %12156 = vmatpush3.bf16.msra.mxu1 %v13983_v38  ;;  %v19869_v58 = vld [vmem:[#allocation9_spill] sm:$0xff]  ;;  %v13985_v2 = vld [vmem:[%s19631_s14 + $0x10] sm:$0xff]   ;;  %v14220_v38 = vld [vmem:[#allocation3 + $0x68] sm:$0xff] }
 0x5ec   : > { %v4715_v45 = vmul.f32 %v4701_v23, %v4666_v17  ;;  %v4716_v59 = vmul.f32 %v4701_v23, %v4667_v47  ;;  %v4717_v24 = vmul.f32 %v4701_v23, %v4668_v63  ;;  %v4718_v50 = vmul.f32 %v4701_v23, %v4669_v48  ;;  %v19870_v47 = vld [vmem:[#allocation12_spill] sm:$0xff]  ;;  %12157 = vmatprep.subr.bf16.mxu1 %v13984_v1 }
 0x5ed   : > { %v4719_v36 = vmul.f32 %v4701_v23, %v4670_v53  ;;  %v4726_v11 = vmul.f32 %v16436_v49, %v4704_v14  ;;  %v4727_v51 = vmul.f32 %v16436_v49, %v4705_v5  ;;  %v4728_v8 = vmul.f32 %v16436_v49, %v4706_v13  ;;  %v19871_v5 = vld [vmem:[#allocation11_spill] sm:$0xff]  ;;  %v14222_v1 = vld [vmem:[#allocation3 + $0x98] sm:$0xff] }
 0x5ee   : > { %v4729_v20 = vmul.f32 %v16436_v49, %v4707_v3  ;;  %v4730_v30 = vmul.f32 %v16436_v49, %v4708_v31  ;;  %v4731_v41 = vmul.f32 %v16436_v49, %v4709_v10  ;;  %v4732_v19 = vmul.f32 %v16436_v49, %v4710_v18  ;;  %v14216_v31 = vld [vmem:[#allocation3 + $0x38] sm:$0xff]  ;;  %v14217_v18 = vld [vmem:[#allocation3 + $0x8] sm:$0xff] }
 0x5ef   : > { %v4748_v25 = vadd.f32 %v16442_v52, %v4726_v11  ;;  %v4749_v7 = vadd.f32 %v16442_v52, %v4727_v51  ;;  %v4750_v15 = vadd.f32 %v16442_v52, %v4728_v8  ;;  %v4733_v4 = vmul.f32 %v16436_v49, %v4711_v6  ;;  %12158 = vmatpush3.bf16.msra.mxu1 %v13985_v2  ;;  %v19873_v51 = vld [vmem:[#allocation13_spill] sm:$0xff] }
 0x5f0   : > { %v4751_v62 = vadd.f32 %v16442_v52, %v4729_v20  ;;  %v4734_v26 = vmul.f32 %v16436_v49, %v4712_v37  ;;  %v4752_v61 = vadd.f32 %v16442_v52, %v4730_v30  ;;  %v4735_v42 = vmul.f32 %v16436_v49, %v4713_v29 }
 0x5f1   : > { %14082 = vtanh.f32 %v4748_v25  ;;  %v4753_v40 = vadd.f32 %v16442_v52, %v4731_v41  ;;  %v4736_v27 = vmul.f32 %v16436_v49, %v4714_v56  ;;  %v4754_v60 = vadd.f32 %v16442_v52, %v4732_v19  ;;  %v14218_v56 = vld [vmem:[#allocation3 + $0x50] sm:$0xff] }
 0x5f2   : > { %14084 = vtanh.f32 %v4749_v7  ;;  %v4737_v21 = vmul.f32 %v16436_v49, %v4715_v45  ;;  %v4755_v0 = vadd.f32 %v16442_v52, %v4733_v4  ;;  %v4738_v16 = vmul.f32 %v16436_v49, %v4716_v59  ;;  %v19872_v45 = vld [vmem:[#allocation14_spill] sm:$0xff]  ;;  %v19874_v7 = vld [vmem:[#allocation16_spill] sm:$0xff]  ;;  %v19875_v19 = vld [vmem:[#allocation15_spill] sm:$0xff] }
 0x5f3   : > { %14086 = vtanh.f32 %v4750_v15  ;;  %v4756_v46 = vadd.f32 %v16442_v52, %v4734_v26  ;;  %v4780_v9 = vsub.f32 1.0, %v19869_v58  ;;  %v4739_v57 = vmul.f32 %v16436_v49, %v4717_v24  ;;  %v19876_v26 = vld [vmem:[#allocation23_spill] sm:$0xff] }
 0x5f4   : > { %14088 = vtanh.f32 %v4751_v62  ;;  %v4757_v17 = vadd.f32 %v16442_v52, %v4735_v42  ;;  %v4783_v63 = vsub.f32 1.0, %v19870_v47  ;;  %v4740_v48 = vmul.f32 %v16436_v49, %v4718_v50  ;;  %v13986_v50 = vld [vmem:[%s19631_s14 + $0x58] sm:$0xff]  }
 0x5f5   : > { %14090 = vtanh.f32 %v4752_v61  ;;  %v4758_v53 = vadd.f32 %v16442_v52, %v4736_v27  ;;  %v4741_v23 = vmul.f32 %v16436_v49, %v4719_v36  ;;  %v4759_v14 = vadd.f32 %v16442_v52, %v4737_v21  ;;  %v13987_v36 = vld [vmem:[%s19631_s14 + $0x18] sm:$0xff]   ;;  %12159 = vmatprep.subr.bf16.mxu1 %v13986_v50 }
 0x5f6   : > { %14092 = vtanh.f32 %v4753_v40  ;;  %v4781_v13 = vsub.f32 1.0, %v19871_v5  ;;  %v4760_v3 = vadd.f32 %v16442_v52, %v4738_v16  ;;  %v4798_v10 = vmul.f32 %v14216_v31, %v4782_v35  ;;  %12160 = vmatpush3.bf16.msra.mxu1 %v13987_v36  ;;  %v13988_v40 = vld [vmem:[%s19631_s14 + $0x60] sm:$0xff]  }
 0x5f7   : > { %14094 = vtanh.f32 %v4754_v60  ;;  %v4796_v6 = vmul.f32 %v14217_v18, %v4780_v9  ;;  %v4761_v37 = vadd.f32 %v16442_v52, %v4739_v57  ;;  %v4799_v49 = vmul.f32 %v14218_v56, %v4783_v63  ;;  %v14221_v35 = vld [vmem:[#allocation3 + $0x80] sm:$0xff]  ;;  %12161 = vmatprep.subr.bf16.mxu1 %v13988_v40  ;;  %v13990_v18 = vld [vmem:[%s19631_s14 + $0x68] sm:$0xff]  }
 0x5f8   : > { %14096 = vtanh.f32 %v4755_v0  ;;  %v4785_v59 = vsub.f32 1.0, %v19872_v45  ;;  %v4762_v24 = vadd.f32 %v16442_v52, %v4740_v48  ;;  %v4784_v8 = vsub.f32 1.0, %v19873_v51  ;;  %v13989_v0 = vld [vmem:[%s19631_s14 + $0x20] sm:$0xff]  }
 0x5f9   : > { %14098 = vtanh.f32 %v4756_v46  ;;  %v4763_v20 = vadd.f32 %v16442_v52, %v4741_v23  ;;  %v4797_v41 = vmul.f32 %v14219_v34, %v4781_v13  ;;  %v4788_v39 = vsub.f32 1.0, %v19874_v7  ;;  %v19877_v46 = vld [vmem:[#allocation17_spill] sm:$0xff]  ;;  %v14223_v13 = vld [vmem:[#allocation3 + $0xb0] sm:$0xff] }
 0x5fa   : > { %14100 = vtanh.f32 %v4757_v17  ;;  %v4786_v15 = vsub.f32 1.0, %v19875_v19  ;;  %v4787_v61 = vsub.f32 1.0, %v19876_v26  ;;  %v4800_v27 = vmul.f32 %v14220_v38, %v4784_v8  ;;  %12162 = vmatpush3.bf16.msra.mxu1 %v13989_v0  ;;  %v14225_v36 = vld [vmem:[#allocation3 + $0xe0] sm:$0xff]  ;;  %v14228_v38 = vld [vmem:[#allocation3 + $0x128] sm:$0xff] }
 0x5fb   : > { %v14083_v29 = vpop.eup %14082  ;;  %14102 = vtanh.f32 %v4758_v53  ;;  %v4801_v16 = vmul.f32 %v14221_v35, %v4785_v59  ;;  %12163 = vmatprep.subr.bf16.mxu1 %v13990_v18  ;;  %v6009_v35 = vld [vmem:[%s19620_s3] sm:$0xff] }
 0x5fc   : > { %v14085_v11 = vpop.eup %14084  ;;  %14104 = vtanh.f32 %v4759_v14  ;;  %v4812_v30 = vmul.f32 %v14083_v29, %v19869_v58  ;;  %v4789_v58 = vsub.f32 1.0, %v19877_v46  ;;  %v4802_v2 = vmul.f32 %v14222_v1, %v4786_v15  ;;  %v19879_v14 = vld [vmem:[#allocation19_spill] sm:$0xff]  ;;  %v14224_v29 = vld [vmem:[#allocation3 + $0xc8] sm:$0xff] }
 0x5fd   : > { %v14087_v25 = vpop.eup %14086  ;;  %14106 = vtanh.f32 %v4760_v3  ;;  %v4813_v44 = vmul.f32 %v14085_v11, %v19871_v5  ;;  %v4791_v5 = vsub.f32 1.0, %v19879_v14  ;;  %v4803_v3 = vmul.f32 %v14223_v13, %v4787_v61  ;;  %v6027_v13 = vld [vmem:[%s19620_s3 + $0x90] sm:$0xff] }
 0x5fe   : > { %v14089_v12 = vpop.eup %14088  ;;  %14108 = vtanh.f32 %v4761_v37  ;;  %v4814_v4 = vmul.f32 %v14087_v25, %v19868_v32  ;;  %v4828_v62 = vadd.f32 %v4812_v30, %v4796_v6  ;;  %v13991_v6 = vld [vmem:[%s19631_s14 + $0x28] sm:$0xff]   ;;  %v4804_v56 = vmul.f32 %v14224_v29, %v4788_v39 }
 0x5ff   : > { %v14091_v52 = vpop.eup %14090  ;;  %14110 = vtanh.f32 %v4762_v24  ;;  %v4815_v33 = vmul.f32 %v14089_v12, %v19870_v47  ;;  %v4829_v42 = vadd.f32 %v4813_v44, %v4797_v41  ;;  %v19878_v47 = vld [vmem:[#allocation18_spill] sm:$0xff]  ;;  %v4805_v11 = vmul.f32 %v14225_v36, %v4789_v58  ;;  %v14226_v41 = vld [vmem:[#allocation3 + $0xf8] sm:$0xff]  ;;  %v19882_v44 = vld [vmem:[#allocation21_spill] sm:$0xff]  ;;  %12164 = vmatpush3.bf16.msra.mxu1 %v13991_v6 }
 0x600   : > { %v14093_v28 = vpop.eup %14092  ;;  %14112 = vtanh.f32 %v4763_v20  ;;  %v4816_v60 = vmul.f32 %v14091_v52, %v19873_v51  ;;  %v4830_v21 = vadd.f32 %v4814_v4, %v4798_v10  ;;  %4844 = vst.msk [vmem:[#allocation2 + $0x11] sm:$0xff] %vm892_vm2, %v4828_v62  ;;  %v4790_v63 = vsub.f32 1.0, %v19878_v47  ;;  %v19881_v51 = vld [vmem:[#allocation22_spill] sm:$0xff]  ;;  %v14227_v4 = vld [vmem:[#allocation3 + $0x110] sm:$0xff]  ;;  %v19883_v52 = vld [vmem:[#allocation24_spill] sm:$0xff] }
 0x601   : > { %v14095_v32 = vpop.eup %14094  ;;  %v4817_v9 = vmul.f32 %v14093_v28, %v19872_v45  ;;  %v4831_v57 = vadd.f32 %v4815_v33, %v4799_v49  ;;  %4845 = vst.msk [vmem:[#allocation2 + $0x21] sm:$0xff] %vm892_vm2, %v4829_v42  ;;  %v19880_v49 = vld [vmem:[#allocation20_spill] sm:$0xff]  ;;  %v4793_v8 = vsub.f32 1.0, %v19881_v51  ;;  %v4876_v25 = vld [vmem:[#allocation2 + $0x1] sm:$0xff]  ;;  %v4807_v62 = vmul.f32 %v14227_v4, %v4791_v5 }
 0x602   : > { %v14097_v17 = vpop.eup %14096  ;;  %v4818_v48 = vmul.f32 %v14095_v32, %v19875_v19  ;;  %v4832_v53 = vadd.f32 %v4816_v60, %v4800_v27  ;;  %4846 = vst.msk [vmem:[#allocation2 + $0x31] sm:$0xff] %vm892_vm2, %v4830_v21  ;;  %v4792_v45 = vsub.f32 1.0, %v19880_v49  ;;  %v4806_v39 = vmul.f32 %v14226_v41, %v4790_v63  ;;  %v14229_v58 = vld [vmem:[#allocation3 + $0x140] sm:$0xff]  ;;  %v14230_v63 = vld [vmem:[#allocation3 + $0x158] sm:$0xff] }
 0x603   : > { %v14099_v23 = vpop.eup %14098  ;;  %v4819_v31 = vmul.f32 %v14097_v17, %v19876_v26  ;;  %v4833_v10 = vadd.f32 %v4817_v9, %v4801_v16  ;;  %4847 = vst.msk [vmem:[#allocation2 + $0x41] sm:$0xff] %vm892_vm2, %v4831_v57  ;;  %v4795_v26 = vsub.f32 1.0, %v19883_v52  ;;  %v6010_v16 = vld [vmem:[%s19620_s3 + $0x8] sm:$0xff]  ;;  %v4809_v9 = vmul.f32 %v14229_v58, %v4793_v8  ;;  %v6012_v36 = vld [vmem:[%s19620_s3 + $0x18] sm:$0xff] }
 0x604   : > { %v14101_v37 = vpop.eup %14100  ;;  %v4820_v59 = vmul.f32 %v14099_v23, %v19874_v7  ;;  %v4834_v24 = vadd.f32 %v4818_v48, %v4802_v2  ;;  %4848 = vst.msk [vmem:[#allocation2 + $0x51] sm:$0xff] %vm892_vm2, %v4832_v53  ;;  %v4794_v7 = vsub.f32 1.0, %v19882_v44  ;;  %v4808_v27 = vmul.f32 %v14228_v38, %v4792_v45  ;;  %v4892_v2 = vld [vmem:[#allocation2 + $0x2] sm:$0xff]  ;;  %v6015_v38 = vld [vmem:[%s19620_s3 + $0x30] sm:$0xff] }
 0x605   : > { %v14103_v50 = vpop.eup %14102  ;;  %v4821_v20 = vmul.f32 %v14101_v37, %v19877_v46  ;;  %v4835_v30 = vadd.f32 %v4819_v31, %v4803_v3  ;;  %4849 = vst.msk [vmem:[#allocation2 + $0x61] sm:$0xff] %vm892_vm2, %v4833_v10  ;;  %v6028_v3 = vld [vmem:[%s19620_s3 + $0x98] sm:$0xff]  ;;  %v14231_v31 = vld [vmem:[#allocation3 + $0x170] sm:$0xff] }
 0x606   : > { %v14105_v34 = vpop.eup %14104  ;;  %v4822_v12 = vmul.f32 %v14103_v50, %v19878_v47  ;;  %v4836_v19 = vadd.f32 %v4820_v59, %v4804_v56  ;;  %4850 = vst.msk [vmem:[#allocation2 + $0x71] sm:$0xff] %vm892_vm2, %v4834_v24  ;;  %v4810_v48 = vmul.f32 %v14230_v63, %v4794_v7  ;;  %v4811_v10 = vmul.f32 %v14231_v31, %v4795_v26  ;;  %v4995_v7 = vld [vmem:[#allocation2 + $0x92] sm:$0xff] }
 0x607   : > { %v14107_v15 = vpop.eup %14106  ;;  %v4823_v61 = vmul.f32 %v14105_v34, %v19879_v14  ;;  %v4837_v33 = vadd.f32 %v4821_v20, %v4805_v11  ;;  %4851 = vst.msk [vmem:[#allocation2 + $0x81] sm:$0xff] %vm892_vm2, %v4835_v30  ;;  %v4940_v42 = vld [vmem:[#allocation2 + $0x12] sm:$0xff]  ;;  %v13613_v56 = vpack.c.bf16 %v6010_v16, %v6009_v35  ;;  %v6029_v11 = vld [vmem:[%s19620_s3 + $0xa0] sm:$0xff]  ;;  %v13615_v30 = vpack.c.bf16 %v6028_v3, %v6027_v13  ;;  %v6034_v35 = vld [vmem:[%s19620_s3 + $0xc8] sm:$0xff] }
 0x608   : > { %v16553_v40 = vld [vmem:[#allocation2 + $0x11] sm:$0xff]  ;;  %v14109_v28 = vpop.eup %14108  ;;  %v4824_v60 = vmul.f32 %v14107_v15, %v19880_v49  ;;  %v4838_v21 = vadd.f32 %v4822_v12, %v4806_v39  ;;  %4852 = vst.msk [vmem:[#allocation2 + $0xb1] sm:$0xff] %vm892_vm2, %v4836_v19  ;;  %5212 = vrot.lane.b32.xlu0 %v4940_v42, %s19768_s30  ;;  %v16558_v0 = vld [vmem:[#allocation2 + $0x22] sm:$0xff]  ;;  %v13868_v50 = vpack.i.bf16 %v4940_v42, %v4892_v2 }
 0x609   : > { %v13863_v32 = vpack.i.bf16 %v16553_v40, %v4876_v25  ;;  %v14111_v46 = vpop.eup %14110  ;;  %v4825_v57 = vmul.f32 %v14109_v28, %v19881_v51  ;;  %v4839_v17 = vadd.f32 %v4823_v61, %v4807_v62  ;;  %4853 = vst.msk [vmem:[#allocation2 + $0xc1] sm:$0xff] %vm892_vm2, %v4837_v33  ;;  %v16569_v1 = vld [vmem:[#allocation2 + $0x32] sm:$0xff]  ;;  %v16588_v29 = vld [vmem:[#allocation2 + $0x20] sm:$0xff]  ;;  %v6030_v25 = vld [vmem:[%s19620_s3 + $0xa8] sm:$0xff] }
 0x60a   : > { %v14113_v47 = vpop.eup %14112  ;;  %v4826_v53 = vmul.f32 %v14111_v46, %v19882_v44  ;;  %v4840_v23 = vadd.f32 %v4824_v60, %v4808_v27  ;;  %4854 = vst.msk [vmem:[#allocation2 + $0xd1] sm:$0xff] %vm892_vm2, %v4838_v21  ;;  %v5487_v14 = vpack.c.bf16 %v16569_v1, %v16558_v0  ;;  %v16576_v5 = vld [vmem:[#allocation2 + $0x42] sm:$0xff]  ;;  %v6011_v49 = vld [vmem:[%s19620_s3 + $0x10] sm:$0xff]  ;;  %v13619_v12 = vpack.c.bf16 %v6030_v25, %v6029_v11  ;;  %v6016_v27 = vld [vmem:[%s19620_s3 + $0x38] sm:$0xff] }
 0x60b   : > { %13864 = vrot.lane.b32.xlu1 %v13863_v32, %s19768_s30  ;;  %v4827_v18 = vmul.f32 %v14113_v47, %v19883_v52  ;;  %v4841_v6 = vadd.f32 %v4825_v57, %v4809_v9  ;;  %4855 = vst.msk [vmem:[#allocation2 + $0xe1] sm:$0xff] %vm892_vm2, %v4839_v17  ;;  %v16586_v37 = vld [vmem:[#allocation2 + $0x52] sm:$0xff]  ;;  %v16621_v41 = vld [vmem:[#allocation2 + $0x21] sm:$0xff]  ;;  %v13617_v39 = vpack.c.bf16 %v6012_v36, %v6011_v49 }
 0x60c   : > { %v4842_v45 = vadd.f32 %v4826_v53, %v4810_v48  ;;  %4856 = vst.msk [vmem:[#allocation2 + $0xf1] sm:$0xff] %vm892_vm2, %v4840_v23  ;;  %12993 = vmatprep.mubr.msk.bf16.mxu0 %vm892_vm2, %v5487_v14  ;;  %v5490_v59 = vpack.c.bf16 %v16586_v37, %v16576_v5  ;;  %v16597_v24 = vld [vmem:[#allocation2 + $0x62] sm:$0xff]  ;;  %5276 = vrot.lane.b32.xlu0 %v16588_v29, %s19708_s19  ;;  %v16610_v20 = vld [vmem:[#allocation2 + $0x10] sm:$0xff]  ;;  %v6032_v52 = vld [vmem:[%s19620_s3 + $0xb8] sm:$0xff] }
 0x60d   : > { %v4843_v51 = vadd.f32 %v4827_v18, %v4811_v10  ;;  %4857 = vst.msk [vmem:[#allocation2 + $0x101] sm:$0xff] %vm892_vm2, %v4841_v6  ;;  %v16608_v8 = vld [vmem:[#allocation2 + $0x72] sm:$0xff]  ;;  %v13873_v44 = vpack.i.bf16 %v16588_v29, %v16610_v20  ;;  %v6013_v19 = vld [vmem:[%s19620_s3 + $0x20] sm:$0xff]  ;;  %v6014_v15 = vld [vmem:[%s19620_s3 + $0x28] sm:$0xff]  ;;  %v13625_v58 = vpack.c.bf16 %v6016_v27, %v6015_v38  ;;  %v13883_v11 = vpack.i.bf16 %v16569_v1, %v16558_v0 }
 0x60e   : > { %4858 = vst.msk [vmem:[#allocation2 + $0x111] sm:$0xff] %vm892_vm2, %v4842_v45  ;;  %12994 = vmatmul.mubr.msk.bf16.vlgmr.msra.gmra.mrb[128].mxu0 %vm892_vm2, %v5490_v59  ;;  %v5493_v34 = vpack.c.bf16 %v16608_v8, %v16597_v24  ;;  %v16634_v4 = vld [vmem:[#allocation2 + $0x82] sm:$0xff]  ;;  %v6031_v62 = vld [vmem:[%s19620_s3 + $0xb0] sm:$0xff]  ;;  %v13621_v33 = vpack.c.bf16 %v6014_v15, %v6013_v19  ;;  %v13994_v57 = vld [vmem:[%s19631_s14 + $0x78] sm:$0xff]  }
 0x60f   : > { %13869 = vrot.lane.b32.xlu1 %v13868_v50, %s19708_s19  ;;  %4859 = vst.msk [vmem:[#allocation2 + $0x121] sm:$0xff] %vm892_vm2, %v4843_v51  ;;  %13614 = vmatpush3.bf16.msra.mxu0 %v13613_v56  ;;  %v5496_v42 = vpack.c.bf16 %v4995_v7, %v16634_v4  ;;  %v13623_v28 = vpack.c.bf16 %v6032_v52, %v6031_v62  ;;  %v16658_v21 = vld [vmem:[#allocation2 + $0x30] sm:$0xff]  ;;  %v6033_v32 = vld [vmem:[%s19620_s3 + $0xc0] sm:$0xff]  ;;  %v6018_v47 = vld [vmem:[%s19620_s3 + $0x48] sm:$0xff] }
 0x610   : > { %12997 = vmatprep.mubr.msk.bf16.mxu0 %vm892_vm2, %v5493_v34  ;;  %5340 = vrot.lane.b32.xlu0 %v16621_v41, %s14278_s24  ;;  %v16643_v26 = vld [vmem:[#allocation2 + $0xc2] sm:$0xff]  ;;  %v13992_v16 = vld [vmem:[%s19631_s14 + $0x70] sm:$0xff]   ;;  %v13627_v17 = vpack.c.bf16 %v6034_v35, %v6033_v32  ;;  %v6036_v23 = vld [vmem:[%s19620_s3 + $0xd8] sm:$0xff]  ;;  %v13898_v32 = vpack.i.bf16 %v16586_v37, %v16576_v5 }
 0x611   : > { %13616 = vmatprep.subr.bf16.mxu0 %v13615_v30  ;;  %v16645_v61 = vld [vmem:[#allocation2 + $0xd2] sm:$0xff]  ;;  %v6017_v2 = vld [vmem:[%s19620_s3 + $0x40] sm:$0xff]  ;;  %12165 = vmatprep.subr.bf16.mxu1 %v13992_v16  ;;  %v6038_v50 = vld [vmem:[%s19620_s3 + $0xe8] sm:$0xff] }
 0x612   : > { %v5499_v60 = vpack.c.bf16 %v16645_v61, %v16643_v26  ;;  %v16673_v46 = vld [vmem:[#allocation2 + $0x31] sm:$0xff]  ;;  %v16692_v48 = vld [vmem:[#allocation2 + $0xe2] sm:$0xff]  ;;  %v13629_v31 = vpack.c.bf16 %v6018_v47, %v6017_v2 }
 0x613   : > { %13874 = vrot.lane.b32.xlu1 %v13873_v44, %s14278_s24  ;;  %13618 = vmatpush3.bf16.msra.mxu0 %v13617_v39  ;;  %v13993_v9 = vld [vmem:[%s19631_s14 + $0x30] sm:$0xff]   ;;  %v13878_v14 = vpack.i.bf16 %v16673_v46, %v16621_v41  ;;  %v6020_v56 = vld [vmem:[%s19620_s3 + $0x58] sm:$0xff]  ;;  %v6037_v49 = vld [vmem:[%s19620_s3 + $0xe0] sm:$0xff] }
 0x614   : > { %5214 = vrot.lane.b32.xlu0 %v16558_v0, %s19768_s30  ;;  %13620 = vmatprep.subr.bf16.mxu0 %v13619_v12  ;;  %v6035_v63 = vld [vmem:[%s19620_s3 + $0xd0] sm:$0xff]  ;;  %v16703_v13 = vld [vmem:[#allocation2 + $0x102] sm:$0xff]  ;;  %v13995_v36 = vld [vmem:[%s19631_s14 + $0x38] sm:$0xff]   ;;  %v13635_v25 = vpack.c.bf16 %v6038_v50, %v6037_v49  ;;  %v13943_v50 = vpack.i.bf16 %v16645_v61, %v16643_v26 }
 0x615   : > { %v16694_v53 = vld [vmem:[#allocation2 + $0xf2] sm:$0xff]  ;;  %12166 = vmatpush3.bf16.msra.mxu1 %v13993_v9  ;;  %v13631_v18 = vpack.c.bf16 %v6036_v23, %v6035_v63  ;;  %v16721_v59 = vld [vmem:[#allocation2 + $0x40] sm:$0xff]  ;;  %v6022_v39 = vld [vmem:[%s19620_s3 + $0x68] sm:$0xff] }
 0x616   : > { %12998 = vmatmul.mubr.msk.bf16.gmra.mrb[132].mxu0 %vm892_vm2, %v5496_v42  ;;  %v16705_v3 = vld [vmem:[#allocation2 + $0x112] sm:$0xff]  ;;  %12167 = vmatprep.subr.bf16.mxu1 %v13994_v57  ;;  %v5502_v10 = vpack.c.bf16 %v16694_v53, %v16692_v48  ;;  %v6021_v34 = vld [vmem:[%s19620_s3 + $0x60] sm:$0xff]  ;;  %v13888_v12 = vpack.i.bf16 %v16721_v59, %v16658_v21  ;;  %v13913_v57 = vpack.i.bf16 %v16608_v8, %v16597_v24 }
 0x617   : > { %5278 = vrot.lane.b32.xlu1 %v16658_v21, %s19708_s19  ;;  %13001 = vmatprep.mubr.msk.bf16.mxu0 %vm892_vm2, %v5499_v60  ;;  %v6019_v6 = vld [vmem:[%s19620_s3 + $0x50] sm:$0xff]  ;;  %v5505_v45 = vpack.c.bf16 %v16705_v3, %v16703_v13  ;;  %v16747_v44 = vld [vmem:[#allocation2 + $0x122] sm:$0xff]  ;;  %v6040_v7 = vld [vmem:[%s19620_s3 + $0xf8] sm:$0xff]  ;;  %v13637_v19 = vpack.c.bf16 %v6022_v39, %v6021_v34  ;;  %v16889_v34 = vpop.permute.xlu0 %5290  ;;  %s19952_s19 = smov 32  }
 0x618   : > { %13622 = vmatpush3.bf16.msra.mxu0 %v13621_v33  ;;  %5342 = vrot.lane.b32.xlu0 %v16673_v46, %s14278_s24  ;;  %v5003_v51 = vld [vmem:[#allocation2 + $0x132] sm:$0xff]  ;;  %v13633_v30 = vpack.c.bf16 %v6020_v56, %v6019_v6  ;;  %v16781_v60 = vld [vmem:[#allocation2 + $0x60] sm:$0xff] }
 0x619   : > { %13624 = vmatprep.subr.bf16.mxu0 %v13623_v28  ;;  %v6039_v0 = vld [vmem:[%s19620_s3 + $0xf0] sm:$0xff]  ;;  %12168 = vmatpush3.bf16.msra.mxu1 %v13995_v36  ;;  %v5508_v15 = vpack.c.bf16 %v5003_v51, %v16747_v44  ;;  %v6024_v33 = vld [vmem:[%s19620_s3 + $0x78] sm:$0xff]  ;;  %v16788_v35 = vld [vmem:[#allocation2 + $0x61] sm:$0xff] }
 0x61a   : > { %v13639_v62 = vpack.c.bf16 %v6040_v7, %v6039_v0  ;;  %v6023_v52 = vld [vmem:[%s19620_s3 + $0x70] sm:$0xff]  ;;  %v4962_v9 = vld [vmem:[#allocation2 + $0x80] sm:$0xff]  ;;  %v6042_v51 = vld [vmem:[%s19620_s3 + $0x108] sm:$0xff] }
 0x61b   : > { %5216 = vrot.lane.b32.xlu1 %v16569_v1, %s19768_s30  ;;  %v16745_v1 = vld [vmem:[#allocation2 + $0x41] sm:$0xff]  ;;  %v16767_v42 = vld [vmem:[#allocation2 + $0x50] sm:$0xff]  ;;  %v13641_v28 = vpack.c.bf16 %v6024_v33, %v6023_v52  ;;  %v16900_v7 = vpop.permute.xlu0 %5306 }
 0x61c   : > { %13626 = vmatpush3.bf16.msra.mxu0 %v13625_v58  ;;  %13879 = vrot.lane.b32.xlu0 %v13878_v14, %s19768_s30  ;;  %v16771_v38 = vld [vmem:[#allocation2 + $0x51] sm:$0xff]  ;;  %v13903_v16 = vpack.i.bf16 %v16781_v60, %v16767_v42  ;;  %v4884_v47 = vld [vmem:[#allocation2 + $0xa1] sm:$0xff] }
 0x61d   : > { %13628 = vmatprep.subr.bf16.mxu0 %v13627_v17  ;;  %v13893_v27 = vpack.i.bf16 %v16771_v38, %v16745_v1  ;;  %v16797_v58 = vld [vmem:[#allocation2 + $0x70] sm:$0xff]  ;;  %v16814_v17 = vld [vmem:[#allocation2 + $0x81] sm:$0xff] }
 0x61e   : > { %13002 = vmatmul.mubr.msk.bf16.gmra.mrb[136].mxu0 %vm892_vm2, %v5502_v10  ;;  %v13918_v2 = vpack.i.bf16 %v4962_v9, %v16797_v58  ;;  %v16820_v63 = vld [vmem:[#allocation2 + $0xb1] sm:$0xff]  ;;  %v16827_v14 = vld [vmem:[#allocation2 + $0xc0] sm:$0xff] }
 0x61f   : > { %5280 = vrot.lane.b32.xlu1 %v16721_v59, %s19884_s27  ;;  %13005 = vmatprep.mubr.msk.bf16.mxu0 %vm892_vm2, %v5505_v45  ;;  %v4948_v23 = vld [vmem:[#allocation2 + $0xb2] sm:$0xff]  ;;  %v16856_v45 = vld [vmem:[#allocation2 + $0xe0] sm:$0xff] }
 0x620   : > { %13630 = vmatpush3.bf16.msra.mxu0 %v13629_v31  ;;  %13884 = vrot.lane.b32.xlu0 %v13883_v11, %s19884_s27  ;;  %v16831_v10 = vld [vmem:[#allocation2 + $0xb0] sm:$0xff]  ;;  %v16863_v36 = vld [vmem:[#allocation2 + $0xe1] sm:$0xff] }
 0x621   : > { %13632 = vmatprep.subr.bf16.mxu0 %v13631_v18  ;;  %v16834_v18 = vld [vmem:[#allocation2 + $0xc1] sm:$0xff]  ;;  %v16843_v6 = vld [vmem:[#allocation2 + $0xd0] sm:$0xff] }
 0x622   : > { %v16847_v56 = vld [vmem:[#allocation2 + $0xd1] sm:$0xff]  ;;  %v6041_v11 = vld [vmem:[%s19620_s3 + $0x100] sm:$0xff] }
 0x623   : > { %5344 = vrot.lane.b32.xlu1 %v16745_v1, %s14278_s24  ;;  %v13938_v49 = vpack.i.bf16 %v16847_v56, %v16834_v18  ;;  %v16896_v0 = vld [vmem:[#allocation2 + $0x100] sm:$0xff] }
 0x624   : > { %13634 = vmatpush3.bf16.msra.mxu0 %v13633_v30  ;;  %13889 = vrot.lane.b32.xlu0 %v13888_v12, %s14278_s24  ;;  %v13948_v30 = vpack.i.bf16 %v16856_v45, %v16843_v6  ;;  %v13958_v12 = vpack.i.bf16 %v16694_v53, %v16692_v48 }
 0x625   : > { %13636 = vmatprep.subr.bf16.mxu0 %v13635_v25  ;;  %v16875_v25 = vpack.c.bf16 %v6042_v51, %v6041_v11  ;;  %v4970_v11 = vld [vmem:[#allocation2 + $0x120] sm:$0xff] }
 0x626   : > { %13006 = vmatmul.mubr.msk.bf16.gmra.mrb[140].mxu0 %vm892_vm2, %v5508_v15  ;;  %v16907_v15 = vld [vmem:[#allocation2 + $0x101] sm:$0xff] }
 0x627   : > { %5218 = vrot.lane.b32.xlu1 %v16576_v5, %s19768_s30  ;;  %v16801_v5 = vld [vmem:[#allocation2 + $0x71] sm:$0xff]  ;;  %13644 = vmatprep.subr.bf16.mxu1 %v16875_v25 }
 0x628   : > { %13638 = vmatpush3.bf16.msra.mxu0 %v13637_v19  ;;  %5282 = vrot.lane.b32.xlu0 %v16767_v42, %s19884_s27  ;;  %v16905_v19 = vpop.permute.xlu1 %5354 }
 0x629   : > { %13640 = vmatprep.subr.bf16.mxu0 %v13639_v62 }
 0x62b   : > { %5346 = vrot.lane.b32.xlu1 %v16771_v38, %s14278_s24 }
 0x62c   : > { %13642 = vmatpush3.bf16.msra.mxu0 %v13641_v28  ;;  %5220 = vrot.lane.b32.xlu0 %v16586_v37, %s19768_s30  ;;  %v13908_v37 = vpack.i.bf16 %v16801_v5, %v16788_v35  ;;  %v16920_v28 = vld [vmem:[#allocation2 + $0x111] sm:$0xff] }
 0x62d   : > { %13651 = vmatprep.subr.bf16.mxu0 %v19862_v55 }
 0x62f   : > { %13894 = vrot.lane.b32.xlu1 %v13893_v27, %s19768_s30 }
 0x630   : > { %5284 = vrot.lane.b32.xlu0 %v16781_v60, %s19884_s27 }
 0x633   : > { %13899 = vrot.lane.b32.xlu1 %v13898_v32, %s19884_s27 }
 0x634   : > { %5348 = vrot.lane.b32.xlu0 %v16788_v35, %s14278_s24 }
 0x637   : > { %13904 = vrot.lane.b32.xlu1 %v13903_v16, %s14278_s24 }
 0x638   : > { %5222 = vrot.lane.b32.xlu0 %v16597_v24, %s19768_s30  ;;  %v13923_v24 = vpack.i.bf16 %v16820_v63, %v4884_v47  ;;  %v13968_v47 = vpack.i.bf16 %v16920_v28, %v16907_v15 }
 0x63b   : > { %5286 = vrot.lane.b32.xlu1 %v16797_v58, %s19884_s27 }
 0x63c   : > { %5350 = vrot.lane.b32.xlu0 %v16801_v5, %s14278_s24 }
 0x63f   : > { %5224 = vrot.lane.b32.xlu1 %v16608_v8, %s19768_s30  ;;  %v4900_v8 = vld [vmem:[#allocation2 + $0xa2] sm:$0xff] }
 0x640   : > { %13909 = vrot.lane.b32.xlu0 %v13908_v37, %s19768_s30  ;;  %v13928_v31 = vpack.i.bf16 %v4948_v23, %v4900_v8  ;;  %v4860_v37 = vld [vmem:[#allocation2] sm:$0xff] }
 0x643   : > { %5288 = vrot.lane.b32.xlu1 %v4962_v9, %s19884_s27 }
 0x644   : > { %13914 = vrot.lane.b32.xlu0 %v13913_v57, %s19884_s27 }
 0x647   : > { %5352 = vrot.lane.b32.xlu1 %v16814_v17, %s14278_s24 }
 0x648   : > { %13919 = vrot.lane.b32.xlu0 %v13918_v2, %s14278_s24 }
 0x64b   : > { %5226 = vrot.lane.b32.xlu1 %v16634_v4, %s19768_s30  ;;  %v13933_v4 = vpack.i.bf16 %v16827_v14, %v16831_v10 }
 0x64c   : > { %5228 = vrot.lane.b32.xlu0 %v4948_v23, %s19768_s30  ;;  %v5991_v23 = vld [vmem:[%s19619_s2] sm:$0xff] }
 0x64f   : > { %13924 = vrot.lane.b32.xlu1 %v13923_v24, %s19768_s30 }
 0x650   : > { %5292 = vrot.lane.b32.xlu0 %v16827_v14, %s19884_s27 }
 0x653   : > { %13929 = vrot.lane.b32.xlu1 %v13928_v31, %s19884_s27 }
 0x654   : > { %5356 = vrot.lane.b32.xlu0 %v16834_v18, %s14278_s24 }
 0x657   : > { %13934 = vrot.lane.b32.xlu1 %v13933_v4, %s14278_s24 }
 0x658   : > { %5230 = vrot.lane.b32.xlu0 %v16643_v26, %s19768_s30  ;;  %v16881_v26 = vld [vmem:[#allocation2 + $0xf0] sm:$0xff] }
 0x659   : > { %v13963_v62 = vpack.i.bf16 %v16896_v0, %v16881_v26 }
 0x65b   : > { %5294 = vrot.lane.b32.xlu1 %v16843_v6, %s19884_s27 }
 0x65c   : > { %5358 = vrot.lane.b32.xlu0 %v16847_v56, %s14278_s24 }
 0x65f   : > { %5232 = vrot.lane.b32.xlu1 %v16645_v61, %s19768_s30  ;;  %v16885_v61 = vld [vmem:[#allocation2 + $0xf1] sm:$0xff] }
 0x660   : > { %13939 = vrot.lane.b32.xlu0 %v13938_v49, %s19768_s30  ;;  %v13953_v39 = vpack.i.bf16 %v16885_v61, %v16863_v36 }
 0x663   : > { %5296 = vrot.lane.b32.xlu1 %v16856_v45, %s19884_s27 }
 0x664   : > { %13944 = vrot.lane.b32.xlu0 %v13943_v50, %s19884_s27 }
 0x667   : > { %5360 = vrot.lane.b32.xlu1 %v16863_v36, %s14278_s24 }
 0x668   : > { %13949 = vrot.lane.b32.xlu0 %v13948_v30, %s14278_s24 }
 0x66b   : > { %5234 = vrot.lane.b32.xlu1 %v16692_v48, %s19768_s30  ;;  %v16916_v48 = vld [vmem:[#allocation2 + $0x110] sm:$0xff] }
 0x66c   : > { %5298 = vrot.lane.b32.xlu0 %v16881_v26, %s19884_s27 }
 0x66f   : > { %5362 = vrot.lane.b32.xlu1 %v16885_v61, %s14278_s24 }
 0x670   : > { %5236 = vrot.lane.b32.xlu0 %v16694_v53, %s19768_s30 }
 0x673   : > { %13954 = vrot.lane.b32.xlu1 %v13953_v39, %s19768_s30 }
 0x674   : > { %5300 = vrot.lane.b32.xlu0 %v16896_v0, %s19884_s27 }
 0x677   : > { %13959 = vrot.lane.b32.xlu1 %v13958_v12, %s19884_s27 }
 0x678   : > { %5364 = vrot.lane.b32.xlu0 %v16907_v15, %s14278_s24 }
 0x67a   : > { %v5213_v52 = vpop.permute.xlu0 %5212 }
 0x67b   : > { %13964 = vrot.lane.b32.xlu1 %v13963_v62, %s14278_s24  ;;  %v5437_v32 = vsel %vm892_vm2, %v16553_v40, %v5213_v52  ;;  %v5992_v40 = vld [vmem:[%s19619_s2 + $0x8] sm:$0xff]  ;;  %v13973_v62 = vpack.i.bf16 %v16705_v3, %v16703_v13 }
 0x67c   : > { %5238 = vrot.lane.b32.xlu0 %v16703_v13, %s19768_s30  ;;  %v13652_v51 = vpack.c.bf16 %v5992_v40, %v5991_v23  ;;  %v5994_v13 = vld [vmem:[%s19619_s2 + $0x18] sm:$0xff] }
 0x67d   : > { %v13865_v33 = vpop.permute.xlu1 %13864 }
 0x67e   : > { %v5277_v53 = vpop.permute.xlu0 %5276  ;;  %v13866_v16 = vunpack.i.l.bf16 %v13865_v33  ;;  %v13867_v8 = vunpack.i.h.bf16 %v13865_v33 }
 0x67f   : > { %5302 = vrot.lane.b32.xlu1 %v16916_v48, %s19884_s27  ;;  %v5453_v9 = vsel %vm1458_vm5, %v5437_v32, %v5277_v53  ;;  %v5993_v32 = vld [vmem:[%s19619_s2 + $0x10] sm:$0xff] }
 0x680   : > { %5366 = vrot.lane.b32.xlu0 %v16920_v28, %s14278_s24  ;;  %v5388_v4 = vsel %vm892_vm2, %v4860_v37, %v13866_v16 }
 0x681   : > { %v13870_v27 = vpop.permute.xlu1 %13869 }
 0x682   : > { %v13871_v57 = vunpack.i.l.bf16 %v13870_v27  ;;  %v5341_v2 = vpop.permute.xlu0 %5340  ;;  %v13872_v49 = vunpack.i.h.bf16 %v13870_v27  ;;  %v5389_v27 = vsel %vm892_vm2, %v16610_v20, %v13867_v8  ;;  %v5995_v8 = vld [vmem:[%s19619_s2 + $0x20] sm:$0xff] }
 0x683   : > { %5240 = vrot.lane.b32.xlu1 %v16705_v3, %s19768_s30  ;;  %v16938_v24 = vsel %vm5420_vm7, %v5453_v9, %v5341_v2  ;;  %v6043_v2 = vld [vmem:[%s19620_s3 + $0x110] sm:$0xff] }
 0x684   : > { %19885 = vst [vmem:[#allocation26_spill] sm:$0xff] %v16938_v24  ;;  %6157 = vmatprep.mubr.f32.mxu0 %v16938_v24  ;;  %13969 = vrot.lane.b32.xlu0 %v13968_v47, %s19768_s30  ;;  %v5404_v12 = vsel %vm1458_vm5, %v5388_v4, %v13871_v57  ;;  %v5405_v16 = vsel %vm1458_vm5, %v5389_v27, %v13872_v49  ;;  %v6044_v47 = vld [vmem:[%s19620_s3 + $0x118] sm:$0xff] }
 0x685   : > { %v13875_v31 = vpop.permute.xlu1 %13874  ;;  %v13655_v57 = vpack.c.bf16 %v5994_v13, %v5993_v32 }
 0x686   : > { %v13876_v50 = vunpack.i.l.bf16 %v13875_v31  ;;  %v13877_v30 = vunpack.i.h.bf16 %v13875_v31  ;;  %v5215_v39 = vpop.permute.xlu0 %5214  ;;  %v5996_v31 = vld [vmem:[%s19619_s2 + $0x28] sm:$0xff] }
 0x687   : > { %5304 = vrot.lane.b32.xlu1 %v4970_v11, %s19884_s27  ;;  %v5438_v52 = vsel %vm892_vm2, %v16621_v41, %v5215_v39  ;;  %v16960_v41 = vld [vmem:[#allocation2 + $0x121] sm:$0xff] }
 0x688   : > { %v5421_v33 = vsel %vm5420_vm7, %v5404_v12, %v13876_v50  ;;  %13974 = vrot.lane.b32.xlu0 %v13973_v62, %s19884_s27  ;;  %v5422_v20 = vsel %vm5420_vm7, %v5405_v16, %v13877_v30  ;;  %v13647_v50 = vpack.c.bf16 %v6044_v47, %v6043_v2  ;;  %v13658_v30 = vpack.c.bf16 %v5996_v31, %v5995_v8  ;;  %v5997_v12 = vld [vmem:[%s19619_s2 + $0x30] sm:$0xff]  ;;  %v5998_v62 = vld [vmem:[%s19619_s2 + $0x38] sm:$0xff] }
 0x689   : > { %v5279_v53 = vpop.permute.xlu1 %5278  ;;  %6158 = vmatmul.mubr.f32.vlgmr.msra.gmra.mrb[126].mxu0 %v5421_v33  ;;  %v5485_v4 = vpack.c.bf16 %v5422_v20, %v5421_v33  ;;  %v13661_v33 = vpack.c.bf16 %v5998_v62, %v5997_v12 }
 0x68a   : > { %v5454_v3 = vsel %vm1458_vm5, %v5438_v52, %v5279_v53  ;;  %13653 = vmatpush1.bf16.msra.mxu0 %v13652_v51  ;;  %v5343_v37 = vpop.permute.xlu0 %5342  ;;  %v4987_v51 = vld [vmem:[#allocation2 + $0x131] sm:$0xff] }
 0x68b   : > { %5368 = vrot.lane.b32.xlu1 %v16960_v41, %s14278_s24  ;;  %13654 = vmatprep.subr.bf16.mxu0 %v19862_v55  ;;  %v16968_v9 = vsel %vm5420_vm7, %v5454_v3, %v5343_v37 }
 0x68c   : > { %19886 = vst [vmem:[#allocation25_spill] sm:$0xff] %v16968_v9  ;;  %6162 = vmatprep.mubr.f32.mxu0 %v16968_v9  ;;  %5176 = vrot.lane.b32.xlu0 %v16916_v48, %s14278_s24  ;;  %v5486_v40 = vpack.c.bf16 %v16968_v9, %v16938_v24 }
 0x68d   : > { %v5217_v23 = vpop.permute.xlu1 %5216  ;;  %6163 = vmatmul.mubr.f32.gmra.mrb[144].mxu0 %v5422_v20 }
 0x68e   : > { %v13880_v49 = vpop.permute.xlu0 %13879  ;;  %5716 = vmatprep.mubr.bf16.mxu1 %v5486_v40  ;;  %13656 = vmatpush1.bf16.msra.mxu0 %v13655_v57  ;;  %v5439_v52 = vsel %vm892_vm2, %v16673_v46, %v5217_v23  ;;  %v6000_v46 = vld [vmem:[%s19619_s2 + $0x48] sm:$0xff] }
 0x68f   : > { %5242 = vrot.lane.b32.xlu1 %v16747_v44, %s19768_s30  ;;  %5717 = vmatmul.mubr.bf16.vlgmr.msra.gmra.mrb[140].mxu1 %v5485_v4  ;;  %v13882_v3 = vunpack.i.h.bf16 %v13880_v49  ;;  %v6001_v4 = vld [vmem:[%s19619_s2 + $0x50] sm:$0xff] }
 0x690   : > { %5178 = vrot.lane.b32.xlu0 %v4970_v11, %s14278_s24  ;;  %13657 = vmatprep.subr.bf16.mxu0 %v19862_v55  ;;  %v13881_v11 = vunpack.i.l.bf16 %v13880_v49 }
 0x691   : > { %v5281_v39 = vpop.permute.xlu1 %5280  ;;  %13646 = vmatpush3.bf16.msra.mxu1 %v16875_v25  ;;  %v5999_v25 = vld [vmem:[%s19619_s2 + $0x40] sm:$0xff] }
 0x692   : > { %v13885_v44 = vpop.permute.xlu0 %13884  ;;  %13648 = vmatprep.subr.bf16.mxu1 %v13647_v50  ;;  %13659 = vmatpush1.bf16.msra.mxu0 %v13658_v30  ;;  %v5455_v53 = vsel %vm1458_vm5, %v5439_v52, %v5281_v39  ;;  %v5390_v57 = vsel %vm892_vm2, %v16588_v29, %v13881_v11  ;;  %v13664_v2 = vpack.c.bf16 %v6000_v46, %v5999_v25  ;;  %v6002_v29 = vld [vmem:[%s19619_s2 + $0x58] sm:$0xff]  ;;  %v6005_v25 = vld [vmem:[%s19619_s2 + $0x70] sm:$0xff] }
 0x693   : > { %5370 = vrot.lane.b32.xlu1 %v4987_v51, %s14278_s24  ;;  %v13886_v27 = vunpack.i.l.bf16 %v13885_v44  ;;  %13660 = vmatprep.subr.bf16.mxu0 %v19862_v55  ;;  %v13887_v37 = vunpack.i.h.bf16 %v13885_v44  ;;  %v13667_v12 = vpack.c.bf16 %v6002_v29, %v6001_v4  ;;  %v6003_v44 = vld [vmem:[%s19619_s2 + $0x60] sm:$0xff]  ;;  %v6006_v46 = vld [vmem:[%s19619_s2 + $0x78] sm:$0xff] }
 0x694   : > { %7293 = vrot.lane.b32.xlu0 %v16968_v9, %s19768_s30 }
 0x695   : > { %v5345_v32 = vpop.permute.xlu1 %5344  ;;  %13650 = vmatpush3.bf16.msra.mxu1 %v13647_v50  ;;  %v5406_v40 = vsel %vm1458_vm5, %v5390_v57, %v13886_v27  ;;  %v5391_v50 = vsel %vm892_vm2, %v16658_v21, %v13882_v3  ;;  %v6004_v21 = vld [vmem:[%s19619_s2 + $0x68] sm:$0xff] }
 0x696   : > { %v17012_v13 = vsel %vm5420_vm7, %v5455_v53, %v5345_v32  ;;  %v13890_v16 = vpop.permute.xlu0 %13889  ;;  %13662 = vmatpush1.bf16.msra.mxu0 %v13661_v33  ;;  %13678 = vmatprep.subr.bf16.mxu1 %v19862_v55  ;;  %v5407_v51 = vsel %vm1458_vm5, %v5391_v50, %v13887_v37  ;;  %v13670_v27 = vpack.c.bf16 %v6004_v21, %v6003_v44 }
 0x697   : > { %19887 = vst [vmem:[#allocation10_spill] sm:$0xff] %v17012_v13  ;;  %6167 = vmatprep.mubr.f32.mxu0 %v17012_v13  ;;  %7291 = vrot.lane.b32.xlu1 %v16938_v24, %s19768_s30  ;;  %v13891_v20 = vunpack.i.l.bf16 %v13890_v16  ;;  %v13892_v47 = vunpack.i.h.bf16 %v13890_v16 }
 0x698   : > { %13663 = vmatprep.subr.bf16.mxu0 %v19862_v55 }
 0x699   : > { %v5219_v23 = vpop.permute.xlu1 %5218  ;;  %v5423_v31 = vsel %vm5420_vm7, %v5406_v40, %v13891_v20  ;;  %v5424_v39 = vsel %vm5420_vm7, %v5407_v51, %v13892_v47  ;;  %v13673_v20 = vpack.c.bf16 %v6006_v46, %v6005_v25  ;;  %v6008_v40 = vld [vmem:[%s19619_s2 + $0x88] sm:$0xff] }
 0x69a   : > { %v5440_v8 = vsel %vm892_vm2, %v16745_v1, %v5219_v23  ;;  %v5283_v49 = vpop.permute.xlu0 %5282  ;;  %6168 = vmatmul.mubr.f32.gmra.mrb[146].mxu0 %v5423_v31  ;;  %v5488_v33 = vpack.c.bf16 %v5424_v39, %v5423_v31  ;;  %v6007_v23 = vld [vmem:[%s19619_s2 + $0x80] sm:$0xff] }
 0x69b   : > { %7295 = vrot.lane.b32.xlu1 %v17012_v13, %s19768_s30  ;;  %v5456_v1 = vsel %vm1458_vm5, %v5440_v8, %v5283_v49  ;;  %13665 = vmatpush1.bf16.msra.mxu0 %v13664_v2  ;;  %v13676_v50 = vpack.c.bf16 %v6008_v40, %v6007_v23 }
 0x69c   : > { %13666 = vmatprep.subr.bf16.mxu0 %v19862_v55 }
 0x69d   : > { %v5347_v30 = vpop.permute.xlu1 %5346 }
 0x69e   : > { %v17040_v62 = vsel %vm5420_vm7, %v5456_v1, %v5347_v30  ;;  %v5221_v52 = vpop.permute.xlu0 %5220 }
 0x69f   : > { %19888 = vst [vmem:[#allocation9_spill] sm:$0xff] %v17040_v62  ;;  %6172 = vmatprep.mubr.f32.mxu0 %v17040_v62  ;;  %7297 = vrot.lane.b32.xlu0 %v17040_v62, %s19768_s30  ;;  %v5489_v11 = vpack.c.bf16 %v17040_v62, %v17012_v13  ;;  %v5441_v16 = vsel %vm892_vm2, %v16771_v38, %v5221_v52 }
 0x6a0   : > { %6173 = vmatmul.mubr.f32.gmra.mrb[148].mxu0 %v5424_v39 }
 0x6a1   : > { %v13895_v53 = vpop.permute.xlu1 %13894  ;;  %5724 = vmatprep.mubr.bf16.mxu1 %v5489_v11  ;;  %13668 = vmatpush1.bf16.msra.mxu0 %v13667_v12 }
 0x6a2   : > { %5725 = vmatmul.mubr.bf16.gmra.mrb[144].mxu1 %v5488_v33  ;;  %13669 = vmatprep.subr.bf16.mxu0 %v19862_v55  ;;  %v5285_v32 = vpop.permute.xlu0 %5284  ;;  %v13896_v37 = vunpack.i.l.bf16 %v13895_v53  ;;  %v13897_v38 = vunpack.i.h.bf16 %v13895_v53 }
 0x6a3   : > { %v5457_v57 = vsel %vm1458_vm5, %v5441_v16, %v5285_v32 }
 0x6a4   : > { %v5392_v49 = vsel %vm892_vm2, %v16721_v59, %v13896_v37  ;;  %v5393_v21 = vsel %vm892_vm2, %v16767_v42, %v13897_v38 }
 0x6a5   : > { %v13900_v3 = vpop.permute.xlu1 %13899  ;;  %13671 = vmatpush1.bf16.msra.mxu0 %v13670_v27 }
 0x6a6   : > { %13672 = vmatprep.subr.bf16.mxu0 %v19862_v55  ;;  %v13901_v2 = vunpack.i.l.bf16 %v13900_v3  ;;  %v5349_v47 = vpop.permute.xlu0 %5348  ;;  %v13902_v4 = vunpack.i.h.bf16 %v13900_v3 }
 0x6a7   : > { %v17071_v8 = vsel %vm5420_vm7, %v5457_v57, %v5349_v47 }
 0x6a8   : > { %19889 = vst [vmem:[#allocation12_spill] sm:$0xff] %v17071_v8  ;;  %6177 = vmatprep.mubr.f32.mxu0 %v17071_v8  ;;  %7299 = vrot.lane.b32.xlu1 %v17071_v8, %s19768_s30  ;;  %v5408_v30 = vsel %vm1458_vm5, %v5392_v49, %v13901_v2  ;;  %v5409_v52 = vsel %vm1458_vm5, %v5393_v21, %v13902_v4 }
 0x6a9   : > { %v13905_v31 = vpop.permute.xlu1 %13904  ;;  %13674 = vmatpush1.bf16.msra.mxu0 %v13673_v20 }
 0x6aa   : > { %v13906_v29 = vunpack.i.l.bf16 %v13905_v31  ;;  %v13907_v1 = vunpack.i.h.bf16 %v13905_v31  ;;  %v5223_v51 = vpop.permute.xlu0 %5222  ;;  %13675 = vmatprep.subr.bf16.mxu0 %v19862_v55 }
 0x6ab   : > { %v5442_v39 = vsel %vm892_vm2, %v16788_v35, %v5223_v51 }
 0x6ac   : > { %v5425_v12 = vsel %vm5420_vm7, %v5408_v30, %v13906_v29  ;;  %v5426_v33 = vsel %vm5420_vm7, %v5409_v52, %v13907_v1 }
 0x6ad   : > { %v5287_v44 = vpop.permute.xlu1 %5286  ;;  %6178 = vmatmul.mubr.f32.gmra.mrb[150].mxu0 %v5425_v12  ;;  %v5491_v35 = vpack.c.bf16 %v5426_v33, %v5425_v12 }
 0x6ae   : > { %v5458_v59 = vsel %vm1458_vm5, %v5442_v39, %v5287_v44  ;;  %13677 = vmatpush1.bf16.msra.mxu0 %v13676_v50  ;;  %v5351_v11 = vpop.permute.xlu0 %5350 }
 0x6af   : > { %v17089_v53 = vsel %vm5420_vm7, %v5458_v59, %v5351_v11 }
 0x6b0   : > { %19890 = vst [vmem:[#allocation11_spill] sm:$0xff] %v17089_v53  ;;  %6182 = vmatprep.mubr.f32.mxu0 %v17089_v53  ;;  %7301 = vrot.lane.b32.xlu0 %v17089_v53, %s19768_s30  ;;  %v5492_v42 = vpack.c.bf16 %v17089_v53, %v17071_v8 }
 0x6b1   : > { %v5225_v27 = vpop.permute.xlu1 %5224  ;;  %6183 = vmatmul.mubr.f32.gmra.mrb[152].mxu0 %v5426_v33 }
 0x6b2   : > { %v13910_v32 = vpop.permute.xlu0 %13909  ;;  %5732 = vmatprep.mubr.bf16.mxu1 %v5492_v42  ;;  %v5443_v3 = vsel %vm892_vm2, %v16801_v5, %v5225_v27  ;;  %v4868_v27 = vld [vmem:[#allocation2 + $0xa0] sm:$0xff] }
 0x6b3   : > { %5733 = vmatmul.mubr.bf16.gmra.mrb[148].mxu1 %v5491_v35  ;;  %v13911_v16 = vunpack.i.l.bf16 %v13910_v32  ;;  %v13912_v37 = vunpack.i.h.bf16 %v13910_v32 }
 0x6b5   : > { %v5289_v25 = vpop.permute.xlu1 %5288  ;;  %v5394_v5 = vsel %vm892_vm2, %v16781_v60, %v13911_v16  ;;  %v5395_v49 = vsel %vm892_vm2, %v16797_v58, %v13912_v37 }
 0x6b6   : > { %v13915_v46 = vpop.permute.xlu0 %13914  ;;  %v5459_v20 = vsel %vm1458_vm5, %v5443_v3, %v5289_v25 }
 0x6b7   : > { %v13916_v57 = vunpack.i.l.bf16 %v13915_v46  ;;  %v13917_v47 = vunpack.i.h.bf16 %v13915_v46 }
 0x6b9   : > { %v5353_v2 = vpop.permute.xlu1 %5352  ;;  %v5410_v29 = vsel %vm1458_vm5, %v5394_v5, %v13916_v57  ;;  %v5411_v51 = vsel %vm1458_vm5, %v5395_v49, %v13917_v47 }
 0x6ba   : > { %v17100_v23 = vsel %vm5420_vm7, %v5459_v20, %v5353_v2  ;;  %v13920_v40 = vpop.permute.xlu0 %13919 }
 0x6bb   : > { %19891 = vst [vmem:[#allocation14_spill] sm:$0xff] %v17100_v23  ;;  %6187 = vmatprep.mubr.f32.mxu0 %v17100_v23  ;;  %7303 = vrot.lane.b32.xlu1 %v17100_v23, %s19768_s30  ;;  %v13922_v38 = vunpack.i.h.bf16 %v13920_v40  ;;  %v13921_v31 = vunpack.i.l.bf16 %v13920_v40 }
 0x6bd   : > { %v5227_v4 = vpop.permute.xlu1 %5226  ;;  %v5427_v1 = vsel %vm5420_vm7, %v5410_v29, %v13921_v31  ;;  %v5428_v60 = vsel %vm5420_vm7, %v5411_v51, %v13922_v38 }
 0x6be   : > { %v5444_v50 = vsel %vm892_vm2, %v16814_v17, %v5227_v4  ;;  %6188 = vmatmul.mubr.f32.gmra.mrb[154].mxu0 %v5427_v1  ;;  %v5229_v39 = vpop.permute.xlu0 %5228  ;;  %v5494_v44 = vpack.c.bf16 %v5428_v60, %v5427_v1 }
 0x6bf   : > { %v5460_v30 = vsel %vm1458_vm5, %v5444_v50, %v16889_v34  ;;  %v5445_v59 = vsel %vm892_vm2, %v16820_v63, %v5229_v39 }
 0x6c0   : > { %v17119_v12 = vsel %vm5420_vm7, %v5460_v30, %v16905_v19 }
 0x6c1   : > { %19892 = vst [vmem:[#allocation13_spill] sm:$0xff] %v17119_v12  ;;  %6192 = vmatprep.mubr.f32.mxu0 %v17119_v12  ;;  %v13925_v58 = vpop.permute.xlu1 %13924  ;;  %v5495_v17 = vpack.c.bf16 %v17119_v12, %v17100_v23 }
 0x6c2   : > { %6193 = vmatmul.mubr.f32.gmra.mrb[156].mxu0 %v5428_v60  ;;  %v5293_v21 = vpop.permute.xlu0 %5292  ;;  %v13926_v52 = vunpack.i.l.bf16 %v13925_v58  ;;  %v13927_v35 = vunpack.i.h.bf16 %v13925_v58 }
 0x6c3   : > { %5740 = vmatprep.mubr.bf16.mxu1 %v5495_v17  ;;  %v5461_v11 = vsel %vm1458_vm5, %v5445_v59, %v5293_v21 }
 0x6c4   : > { %5741 = vmatmul.mubr.bf16.gmra.mrb[152].mxu1 %v5494_v44  ;;  %v5396_v63 = vsel %vm892_vm2, %v4868_v27, %v13926_v52  ;;  %v5397_v47 = vsel %vm892_vm2, %v16831_v10, %v13927_v35 }
 0x6c5   : > { %v13930_v34 = vpop.permute.xlu1 %13929 }
 0x6c6   : > { %v13931_v19 = vunpack.i.l.bf16 %v13930_v34  ;;  %v5357_v33 = vpop.permute.xlu0 %5356  ;;  %v13932_v25 = vunpack.i.h.bf16 %v13930_v34 }
 0x6c7   : > { %v17128_v42 = vsel %vm5420_vm7, %v5461_v11, %v5357_v33 }
 0x6c8   : > { %19893 = vst [vmem:[#allocation16_spill] sm:$0xff] %v17128_v42  ;;  %7307 = vrot.lane.b32.xlu0 %v17128_v42, %s19768_s30  ;;  %6197 = vmatprep.mubr.f32.mxu0 %v17128_v42  ;;  %v5412_v37 = vsel %vm1458_vm5, %v5396_v63, %v13931_v19  ;;  %v5413_v38 = vsel %vm1458_vm5, %v5397_v47, %v13932_v25 }
 0x6c9   : > { %v13935_v32 = vpop.permute.xlu1 %13934 }
 0x6ca   : > { %v13936_v46 = vunpack.i.l.bf16 %v13935_v32  ;;  %v13937_v3 = vunpack.i.h.bf16 %v13935_v32  ;;  %v5231_v16 = vpop.permute.xlu0 %5230 }
 0x6cb   : > { %v5446_v20 = vsel %vm892_vm2, %v16834_v18, %v5231_v16 }
 0x6cc   : > { %v5429_v57 = vsel %vm5420_vm7, %v5412_v37, %v13936_v46  ;;  %v5430_v5 = vsel %vm5420_vm7, %v5413_v38, %v13937_v3 }
 0x6cd   : > { %v5295_v2 = vpop.permute.xlu1 %5294  ;;  %6198 = vmatmul.mubr.f32.gmra.mrb[158].mxu0 %v5429_v57  ;;  %v5497_v10 = vpack.c.bf16 %v5430_v5, %v5429_v57 }
 0x6ce   : > { %v5462_v40 = vsel %vm1458_vm5, %v5446_v20, %v5295_v2  ;;  %v5359_v31 = vpop.permute.xlu0 %5358 }
 0x6cf   : > { %v17144_v4 = vsel %vm5420_vm7, %v5462_v40, %v5359_v31 }
 0x6d0   : > { %19894 = vst [vmem:[#allocation15_spill] sm:$0xff] %v17144_v4  ;;  %7309 = vrot.lane.b32.xlu1 %v17144_v4, %s19768_s30  ;;  %6202 = vmatprep.mubr.f32.mxu0 %v17144_v4  ;;  %v5498_v29 = vpack.c.bf16 %v17144_v4, %v17128_v42 }
 0x6d1   : > { %v5233_v18 = vpop.permute.xlu1 %5232  ;;  %6203 = vmatmul.mubr.f32.gmra.mrb[160].mxu0 %v5430_v5 }
 0x6d2   : > { %v13940_v49 = vpop.permute.xlu0 %13939  ;;  %5748 = vmatprep.mubr.bf16.mxu1 %v5498_v29  ;;  %v5447_v51 = vsel %vm892_vm2, %v16847_v56, %v5233_v18 }
 0x6d3   : > { %5749 = vmatmul.mubr.bf16.gmra.mrb[156].mxu1 %v5497_v10  ;;  %v13941_v30 = vunpack.i.l.bf16 %v13940_v49  ;;  %v13942_v44 = vunpack.i.h.bf16 %v13940_v49 }
 0x6d5   : > { %v5297_v50 = vpop.permute.xlu1 %5296  ;;  %v5398_v56 = vsel %vm892_vm2, %v16827_v14, %v13941_v30  ;;  %v5399_v32 = vsel %vm892_vm2, %v16843_v6, %v13942_v44 }
 0x6d6   : > { %v13945_v1 = vpop.permute.xlu0 %13944  ;;  %v5463_v39 = vsel %vm1458_vm5, %v5447_v51, %v5297_v50 }
 0x6d7   : > { %v13946_v60 = vunpack.i.l.bf16 %v13945_v1  ;;  %v13947_v34 = vunpack.i.h.bf16 %v13945_v1 }
 0x6d9   : > { %v5361_v58 = vpop.permute.xlu1 %5360  ;;  %v5414_v19 = vsel %vm1458_vm5, %v5398_v56, %v13946_v60  ;;  %v5415_v46 = vsel %vm1458_vm5, %v5399_v32, %v13947_v34 }
 0x6da   : > { %v17155_v17 = vsel %vm5420_vm7, %v5463_v39, %v5361_v58  ;;  %v13950_v21 = vpop.permute.xlu0 %13949 }
 0x6db   : > { %19895 = vst [vmem:[#allocation23_spill] sm:$0xff] %v17155_v17  ;;  %7311 = vrot.lane.b32.xlu0 %v17155_v17, %s19768_s30  ;;  %6207 = vmatprep.mubr.f32.mxu0 %v17155_v17  ;;  %v13951_v59 = vunpack.i.l.bf16 %v13950_v21  ;;  %v13952_v52 = vunpack.i.h.bf16 %v13950_v21 }
 0x6dd   : > { %v5235_v11 = vpop.permute.xlu1 %5234  ;;  %v5431_v27 = vsel %vm5420_vm7, %v5414_v19, %v13951_v59  ;;  %v5432_v14 = vsel %vm5420_vm7, %v5415_v46, %v13952_v52 }
 0x6de   : > { %v5448_v33 = vsel %vm892_vm2, %v16863_v36, %v5235_v11  ;;  %v5299_v35 = vpop.permute.xlu0 %5298  ;;  %6208 = vmatmul.mubr.f32.gmra.mrb[162].mxu0 %v5431_v27  ;;  %v5500_v57 = vpack.c.bf16 %v5432_v14, %v5431_v27 }
 0x6df   : > { %v5464_v25 = vsel %vm1458_vm5, %v5448_v33, %v5299_v35 }
 0x6e1   : > { %v5363_v63 = vpop.permute.xlu1 %5362  ;;  %v17171_v3 = vpop.f32.mrb[128].mxu0 }
 0x6e2   : > { %v17174_v16 = vsel %vm5420_vm7, %v5464_v25, %v5363_v63  ;;  %v17176_v36 = vpop.f32.mrb[129].mxu0  ;;  %v5237_v37 = vpop.permute.xlu0 %5236 }
 0x6e3   : > { %19896 = vst [vmem:[#allocation17_spill] sm:$0xff] %v17174_v16  ;;  %7313 = vrot.lane.b32.xlu1 %v17174_v16, %s19768_s30  ;;  %6212 = vmatprep.mubr.f32.mxu0 %v17174_v16  ;;  %v5501_v6 = vpack.c.bf16 %v17174_v16, %v17155_v17  ;;  %v17183_v20 = vpop.f32.mrb[130].mxu0  ;;  %v5449_v31 = vsel %vm892_vm2, %v16885_v61, %v5237_v37 }
 0x6e4   : > { %6213 = vmatmul.mubr.f32.gmra.mrb[164].mxu0 %v5432_v14  ;;  %v17185_v2 = vpop.f32.mrb[131].mxu0 }
 0x6e5   : > { %v13955_v47 = vpop.permute.xlu1 %13954  ;;  %5756 = vmatprep.mubr.bf16.mxu1 %v5501_v6 }
 0x6e6   : > { %5757 = vmatmul.mubr.bf16.gmra.mrb[160].mxu1 %v5500_v57  ;;  %v5301_v40 = vpop.permute.xlu0 %5300  ;;  %v13956_v5 = vunpack.i.l.bf16 %v13955_v47  ;;  %v13957_v30 = vunpack.i.h.bf16 %v13955_v47 }
 0x6e7   : > { %v5465_v29 = vsel %vm1458_vm5, %v5449_v31, %v5301_v40 }
 0x6e8   : > { %v5400_v44 = vsel %vm892_vm2, %v16856_v45, %v13956_v5  ;;  %v5401_v19 = vsel %vm892_vm2, %v16881_v26, %v13957_v30 }
 0x6e9   : > { %v13960_v38 = vpop.permute.xlu1 %13959  ;;  %v17189_v18 = vpop.f32.mrb[132].mxu0 }
 0x6ea   : > { %v17192_v10 = vpop.f32.mrb[133].mxu0  ;;  %v13961_v49 = vunpack.i.l.bf16 %v13960_v38  ;;  %v5365_v50 = vpop.permute.xlu0 %5364  ;;  %v13962_v60 = vunpack.i.h.bf16 %v13960_v38 }
 0x6eb   : > { %v17194_v1 = vpop.f32.mrb[134].mxu0  ;;  %v17197_v51 = vsel %vm5420_vm7, %v5465_v29, %v5365_v50 }
 0x6ec   : > { %19897 = vst [vmem:[#allocation18_spill] sm:$0xff] %v17197_v51  ;;  %v17199_v39 = vpop.f32.mrb[135].mxu0  ;;  %7315 = vrot.lane.b32.xlu0 %v17197_v51, %s19768_s30  ;;  %6217 = vmatprep.mubr.f32.mxu0 %v17197_v51  ;;  %v5416_v59 = vsel %vm1458_vm5, %v5400_v44, %v13961_v49  ;;  %v5417_v45 = vsel %vm1458_vm5, %v5401_v19, %v13962_v60 }
 0x6ed   : > { %v13965_v61 = vpop.permute.xlu1 %13964 }
 0x6ee   : > { %v13966_v58 = vunpack.i.l.bf16 %v13965_v61  ;;  %v13967_v21 = vunpack.i.h.bf16 %v13965_v61  ;;  %v5239_v34 = vpop.permute.xlu0 %5238 }
 0x6ef   : > { %v5450_v56 = vsel %vm892_vm2, %v16907_v15, %v5239_v34 }
 0x6f0   : > { %v5433_v52 = vsel %vm5420_vm7, %v5416_v59, %v13966_v58  ;;  %v5434_v25 = vsel %vm5420_vm7, %v5417_v45, %v13967_v21 }
 0x6f1   : > { %v5303_v11 = vpop.permute.xlu1 %5302  ;;  %6218 = vmatmul.mubr.f32.gmra.mrb[166].mxu0 %v5433_v52  ;;  %v17212_v33 = vpop.f32.mrb[136].mxu0  ;;  %v5503_v37 = vpack.c.bf16 %v5434_v25, %v5433_v52  ;;  %v17255_v52 = vld [vmem:[%s14386_s29 + $0x80] sm:$0xff] }
 0x6f2   : > { %v5466_v27 = vsel %vm1458_vm5, %v5450_v56, %v5303_v11  ;;  %v17216_v35 = vpop.f32.mrb[137].mxu0  ;;  %v5367_v32 = vpop.permute.xlu0 %5366 }
 0x6f3   : > { %v17219_v46 = vpop.f32.mrb[138].mxu0  ;;  %v17222_v15 = vsel %vm5420_vm7, %v5466_v27, %v5367_v32 }
 0x6f4   : > { %19898 = vst [vmem:[#allocation19_spill] sm:$0xff] %v17222_v15  ;;  %v17224_v63 = vpop.f32.mrb[139].mxu0  ;;  %7317 = vrot.lane.b32.xlu1 %v17222_v15, %s19768_s30  ;;  %6222 = vmatprep.mubr.f32.mxu0 %v17222_v15  ;;  %v5504_v14 = vpack.c.bf16 %v17222_v15, %v17197_v51 }
 0x6f5   : > { %v5241_v26 = vpop.permute.xlu1 %5240  ;;  %6223 = vmatmul.mubr.f32.gmra.mrb[168].mxu0 %v5434_v25 }
 0x6f6   : > { %v13970_v6 = vpop.permute.xlu0 %13969  ;;  %5764 = vmatprep.mubr.bf16.mxu1 %v5504_v14  ;;  %v5451_v5 = vsel %vm892_vm2, %v16920_v28, %v5241_v26  ;;  %v19740_v26 = vunpack.c.h.bf16 %v17255_v52 }
 0x6f7   : > { %5765 = vmatmul.mubr.bf16.gmra.mrb[164].mxu1 %v5503_v37  ;;  %v13971_v57 = vunpack.i.l.bf16 %v13970_v6  ;;  %v13972_v21 = vunpack.i.h.bf16 %v13970_v6 }
 0x6f9   : > { %v5305_v47 = vpop.permute.xlu1 %5304  ;;  %v17231_v40 = vpop.f32.mrb[140].mxu0  ;;  %v5402_v60 = vsel %vm892_vm2, %v16896_v0, %v13971_v57  ;;  %v5403_v19 = vsel %vm892_vm2, %v16916_v48, %v13972_v21  ;;  %v17279_v57 = vld [vmem:[%s14386_s29 + $0x90] sm:$0xff]  ;;  %v14234_v21 = vld [vmem:[#allocation2 + $0x42] sm:$0xff] }
 0x6fa   : > { %v17233_v38 = vpop.f32.mrb[141].mxu0  ;;  %v13975_v31 = vpop.permute.xlu0 %13974  ;;  %v5467_v50 = vsel %vm1458_vm5, %v5451_v5, %v5305_v47  ;;  %v14232_v47 = vld [vmem:[#allocation2 + $0x22] sm:$0xff]  ;;  %v19733_v5 = vunpack.c.h.bf16 %v17279_v57 }
 0x6fb   : > { %v17237_v29 = vpop.f32.mrb[142].mxu0  ;;  %v13976_v49 = vunpack.i.l.bf16 %v13975_v31  ;;  %v13977_v28 = vunpack.i.h.bf16 %v13975_v31 }
 0x6fc   : > { %v17240_v30 = vpop.f32.mrb[143].mxu0 }
 0x6fd   : > { %v5369_v61 = vpop.permute.xlu1 %5368  ;;  %v5418_v44 = vsel %vm1458_vm5, %v5402_v60, %v13976_v49  ;;  %v5419_v27 = vsel %vm1458_vm5, %v5403_v19, %v13977_v28  ;;  %v17290_v49 = vld [vmem:[%s14386_s29 + $0x98] sm:$0xff] }
 0x6fe   : > { %v17245_v58 = vsel %vm5420_vm7, %v5467_v50, %v5369_v61  ;;  %v5177_v34 = vpop.permute.xlu0 %5176  ;;  %v19732_v50 = vunpack.c.l.bf16 %v17279_v57  ;;  %v19731_v61 = vunpack.c.h.bf16 %v17290_v49  ;;  %v14233_v60 = vld [vmem:[#allocation2 + $0x32] sm:$0xff] }
 0x6ff   : > { %19899 = vst [vmem:[#allocation20_spill] sm:$0xff] %v17245_v58  ;;  %7319 = vrot.lane.b32.xlu0 %v17245_v58, %s19768_s30  ;;  %6227 = vmatprep.mubr.f32.mxu0 %v17245_v58  ;;  %v5435_v59 = vsel %vm5420_vm7, %v5418_v44, %v5177_v34  ;;  %v17301_v44 = vld [vmem:[%s14386_s29 + $0xa0] sm:$0xff]  ;;  %v19726_v34 = vunpack.c.l.bf16 %v17290_v49 }
 0x700   : > { %6228 = vmatmul.mubr.f32.gmra.mrb[170].mxu0 %v5435_v59  ;;  %v19723_v28 = vunpack.c.h.bf16 %v17301_v44 }
 0x701   : > { %v5243_v56 = vpop.permute.xlu1 %5242 }
 0x702   : > { %v5452_v0 = vsel %vm892_vm2, %v16960_v41, %v5243_v56  ;;  %v5179_v11 = vpop.permute.xlu0 %5178  ;;  %v17268_v41 = vld [vmem:[%s14386_s29 + $0x88] sm:$0xff] }
 0x703   : > { %v5468_v45 = vsel %vm1458_vm5, %v5452_v0, %v16900_v7  ;;  %v5436_v25 = vsel %vm5420_vm7, %v5419_v27, %v5179_v11  ;;  %v19738_v7 = vunpack.c.l.bf16 %v17255_v52  ;;  %v19736_v6 = vunpack.c.h.bf16 %v17268_v41  ;;  %v17313_v56 = vld [vmem:[%s14386_s29 + $0xa8] sm:$0xff]  ;;  %v14237_v27 = vld [vmem:[#allocation2 + $0x72] sm:$0xff] }
 0x704   : > { %v5506_v37 = vpack.c.bf16 %v5436_v25, %v5435_v59  ;;  %v19735_v31 = vunpack.c.l.bf16 %v17268_v41  ;;  %v14235_v59 = vld [vmem:[#allocation2 + $0x52] sm:$0xff]  ;;  %v14236_v0 = vld [vmem:[#allocation2 + $0x62] sm:$0xff]  ;;  %v19720_v11 = vunpack.c.l.bf16 %v17301_v44  ;;  %v19714_v19 = vunpack.c.h.bf16 %v17313_v56 }
 0x705   : > { %v5371_v32 = vpop.permute.xlu1 %5370 }
 0x706   : > { %v17265_v14 = vsel %vm5420_vm7, %v5468_v45, %v5371_v32  ;;  %v17325_v45 = vld [vmem:[%s14386_s29 + $0xb0] sm:$0xff]  ;;  %v14238_v32 = vld [vmem:[#allocation2 + $0x82] sm:$0xff] }
 0x707   : > { %19900 = vst [vmem:[#allocation22_spill] sm:$0xff] %v17265_v14  ;;  %6232 = vmatprep.mubr.f32.mxu0 %v17265_v14  ;;  %v5507_v48 = vpack.c.bf16 %v17265_v14, %v17245_v58 }
 0x708   : > { %6233 = vmatmul.mubr.f32.gmra.mrb[172].mxu0 %v5436_v25  ;;  %v19711_v25 = vunpack.c.l.bf16 %v17313_v56 }
 0x709   : > { %5772 = vmatprep.mubr.bf16.mxu1 %v5507_v48  ;;  %11564 = vmatprep.mubr.msk.f32.mxu0 %vm1231_vm3, %v19740_v26  ;;  %v19710_v48 = vunpack.c.h.bf16 %v17325_v45 }
 0x70a   : > { %5773 = vmatmul.mubr.bf16.gmra.mrb[168].mxu1 %v5506_v37  ;;  %v14239_v37 = vld [vmem:[#allocation2 + $0x92] sm:$0xff] }
 0x70b   : > { %13017 = vmatprep.mubr.msk.f32.mxu1 %vm892_vm2, %v14232_v47  ;;  %v17337_v47 = vld [vmem:[%s14386_s29 + $0xb8] sm:$0xff] }
 0x70c   : > { %6496 = vmatmul.mubr.f32.vlgmr.msra.gmra.mrb[174].mxu0 %v19738_v7 }
 0x70d   : > { %11565 = vmatprep.mubr.msk.f32.mxu0 %vm1231_vm3, %v19736_v6 }
 0x710   : > { %6501 = vmatmul.mubr.f32.gmra.mrb[176].mxu0 %v19735_v31 }
 0x711   : > { %11566 = vmatprep.mubr.msk.f32.mxu0 %vm1231_vm3, %v19733_v5 }
 0x712   : > { %13018 = vmatmul.mubr.msk.f32.vlgmr.msra.gmra.mrb[138].mxu1 %vm892_vm2, %v14233_v60  ;;  %v14240_v60 = vld [vmem:[#allocation2 + $0xc2] sm:$0xff] }
 0x713   : > { %13020 = vmatprep.mubr.msk.f32.mxu1 %vm892_vm2, %v14234_v21  ;;  %v19713_v21 = vunpack.c.l.bf16 %v17325_v45 }
 0x714   : > { %6506 = vmatmul.mubr.f32.gmra.mrb[178].mxu0 %v19732_v50 }
 0x715   : > { %11567 = vmatprep.mubr.msk.f32.mxu0 %vm1231_vm3, %v19731_v61 }
 0x716   : > { %13021 = vmatmul.mubr.msk.f32.gmra.mrb[172].mxu1 %vm892_vm2, %v14235_v59  ;;  %v19712_v59 = vunpack.c.h.bf16 %v17337_v47 }
 0x717   : > { %13023 = vmatprep.mubr.msk.f32.mxu1 %vm892_vm2, %v14236_v0  ;;  %v14241_v0 = vld [vmem:[#allocation2 + $0xd2] sm:$0xff] }
 0x718   : > { %6511 = vmatmul.mubr.f32.gmra.mrb[180].mxu0 %v19726_v34  ;;  %v17427_v34 = vld [vmem:[%s14386_s29 + $0xf8] sm:$0xff] }
 0x719   : > { %11568 = vmatprep.mubr.msk.f32.mxu0 %vm1231_vm3, %v19723_v28  ;;  %v17417_v28 = vld [vmem:[%s14386_s29 + $0xf0] sm:$0xff]  ;;  %19903 = vst [vmem:[#allocation27_spill] sm:$0xff] %v17427_v34 }
 0x71a   : > { %13024 = vmatmul.mubr.msk.f32.gmra.mrb[174].mxu1 %vm892_vm2, %v14237_v27  ;;  %v17349_v27 = vld [vmem:[%s14386_s29 + $0xc0] sm:$0xff]  ;;  %19902 = vst [vmem:[#allocation24_spill] sm:$0xff] %v17417_v28 }
 0x71b   : > { %13026 = vmatprep.mubr.msk.f32.mxu1 %vm892_vm2, %v14238_v32  ;;  %v14242_v32 = vld [vmem:[#allocation2 + $0xe2] sm:$0xff] }
 0x71c   : > { %6516 = vmatmul.mubr.f32.gmra.mrb[182].mxu0 %v19720_v11  ;;  %v17407_v11 = vld [vmem:[%s14386_s29 + $0xe8] sm:$0xff] }
 0x71d   : > { %11569 = vmatprep.mubr.msk.f32.mxu0 %vm1231_vm3, %v19714_v19  ;;  %v14246_v19 = vld [vmem:[#allocation2 + $0x122] sm:$0xff]  ;;  %19901 = vst [vmem:[#allocation21_spill] sm:$0xff] %v17407_v11 }
 0x71e   : > { %13027 = vmatmul.mubr.msk.f32.gmra.mrb[176].mxu1 %vm892_vm2, %v14239_v37  ;;  %v19716_v37 = vunpack.c.l.bf16 %v17337_v47 }
 0x71f   : > { %13029 = vmatprep.mubr.msk.f32.mxu1 %vm892_vm2, %v14240_v60  ;;  %v19715_v60 = vunpack.c.h.bf16 %v17349_v27 }
 0x720   : > { %6521 = vmatmul.mubr.f32.gmra.mrb[184].mxu0 %v19711_v25  ;;  %v14244_v25 = vld [vmem:[#allocation2 + $0x102] sm:$0xff] }
 0x721   : > { %11570 = vmatprep.mubr.msk.f32.mxu0 %vm1231_vm3, %v19710_v48  ;;  %v14243_v48 = vld [vmem:[#allocation2 + $0xf2] sm:$0xff] }
 0x722   : > { %13030 = vmatmul.mubr.msk.f32.gmra.mrb[178].mxu1 %vm892_vm2, %v14241_v0  ;;  %v17361_v0 = vld [vmem:[%s14386_s29 + $0xc8] sm:$0xff] }
 0x723   : > { %13032 = vmatprep.mubr.msk.f32.mxu1 %vm892_vm2, %v14242_v32  ;;  %v19718_v32 = vunpack.c.l.bf16 %v17349_v27 }
 0x724   : > { %6526 = vmatmul.mubr.f32.gmra.mrb[186].mxu0 %v19713_v21  ;;  %v14245_v21 = vld [vmem:[#allocation2 + $0x112] sm:$0xff] }
 0x725   : > { %11571 = vmatprep.mubr.msk.f32.mxu0 %vm1231_vm3, %v19712_v59  ;;  %v19717_v59 = vunpack.c.h.bf16 %v17361_v0 }
 0x726   : > { %13033 = vmatmul.mubr.msk.f32.gmra.mrb[180].mxu1 %vm892_vm2, %v14243_v48  ;;  %v17373_v48 = vld [vmem:[%s14386_s29 + $0xd0] sm:$0xff] }
 0x727   : > { %13035 = vmatprep.mubr.msk.f32.mxu1 %vm892_vm2, %v14244_v25  ;;  %v19719_v25 = vunpack.c.l.bf16 %v17361_v0 }
 0x728   : > { %6531 = vmatmul.mubr.f32.gmra.mrb[188].mxu0 %v19716_v37  ;;  %v14247_v37 = vld [vmem:[#allocation2 + $0x132] sm:$0xff] }
 0x729   : > { %11572 = vmatprep.mubr.msk.f32.mxu0 %vm1231_vm3, %v19715_v60  ;;  %v19721_v60 = vunpack.c.h.bf16 %v17373_v48 }
 0x72a   : > { %13036 = vmatmul.mubr.msk.f32.gmra.mrb[182].mxu1 %vm892_vm2, %v14245_v21  ;;  %v17385_v21 = vld [vmem:[%s14386_s29 + $0xd8] sm:$0xff] }
 0x72b   : > { %13038 = vmatprep.mubr.msk.f32.mxu1 %vm892_vm2, %v14246_v19  ;;  %v19722_v19 = vunpack.c.l.bf16 %v17373_v48 }
 0x72c   : > { %6536 = vmatmul.mubr.f32.gmra.mrb[190].mxu0 %v19718_v32  ;;  %v17397_v32 = vld [vmem:[%s14386_s29 + $0xe0] sm:$0xff] }
 0x72d   : > { %11573 = vmatprep.mubr.msk.f32.mxu0 %vm1231_vm3, %v19717_v59  ;;  %v19724_v59 = vunpack.c.h.bf16 %v17385_v21 }
 0x72e   : > { %13039 = vmatmul.mubr.msk.f32.gmra.mrb[184].mxu1 %vm892_vm2, %v14247_v37  ;;  %v19725_v37 = vunpack.c.l.bf16 %v17385_v21 }
 0x72f   : > { %13057 = vmatprep.mubr.msk.f32.mxu1 %vm14274_vm4, %v19863_v22 }
 0x730   : > { %6541 = vmatmul.mubr.f32.gmra.mrb[192].mxu0 %v19719_v25  ;;  %v19727_v25 = vunpack.c.h.bf16 %v17397_v32 }
 0x731   : > { %11574 = vmatprep.mubr.msk.f32.mxu0 %vm1231_vm3, %v19721_v60  ;;  %v19728_v60 = vunpack.c.l.bf16 %v17397_v32 }
 0x734   : > { %6546 = vmatmul.mubr.f32.gmra.mrb[194].mxu0 %v19722_v19  ;;  %v19729_v19 = vunpack.c.h.bf16 %v17407_v11 }
 0x735   : > { %11575 = vmatprep.mubr.msk.f32.mxu0 %vm1231_vm3, %v19724_v59  ;;  %v19730_v59 = vunpack.c.l.bf16 %v17407_v11 }
 0x738   : > { %6551 = vmatmul.mubr.f32.gmra.mrb[196].mxu0 %v19725_v37  ;;  %v19734_v37 = vunpack.c.h.bf16 %v17417_v28 }
 0x739   : > { %11576 = vmatprep.mubr.msk.f32.mxu0 %vm1231_vm3, %v19727_v25  ;;  %v19737_v25 = vunpack.c.l.bf16 %v17417_v28 }
 0x73c   : > { %6556 = vmatmul.mubr.f32.gmra.mrb[198].mxu0 %v19728_v60  ;;  %v19739_v60 = vunpack.c.h.bf16 %v17427_v34 }
 0x73d   : > { %11577 = vmatprep.mubr.msk.f32.mxu0 %vm1231_vm3, %v19729_v19  ;;  %v19741_v19 = vunpack.c.l.bf16 %v17427_v34 }
 0x740   : > { %6561 = vmatmul.mubr.f32.gmra.mrb[200].mxu0 %v19730_v59 }
 0x741   : > { %11578 = vmatprep.mubr.msk.f32.mxu0 %vm1231_vm3, %v19734_v37 }
 0x744   : > { %6566 = vmatmul.mubr.f32.gmra.mrb[202].mxu0 %v19737_v25  ;;  %v17451_v25 = vld [vmem:[%s19632_s15] ss:$0 sm:$0xff] }
 0x745   : > { %11579 = vmatprep.mubr.msk.f32.mxu0 %vm1231_vm3, %v19739_v60 }
 0x748   : > { %6571 = vmatmul.mubr.f32.gmra.mrb[204].mxu0 %v19741_v19 }
 0x75c   : > { %v12259_v59 = vpop.f32.mrb[126].mxu0 }
 0x75d   : > { %v12260_v61 = vpop.f32.mrb[127].mxu0 }
 0x75e   : > { %v17444_v50 = vadd.f32 %v12260_v61, %v12259_v59 }
 0x760   : > { %v12262_v5 = vpop.f32.mrb[144].mxu0 }
 0x761   : > { %v12263_v37 = vpop.f32.mrb[145].mxu0 }
 0x762   : > { %v17446_v31 = vadd.f32 %v12263_v37, %v12262_v5  ;;  %v12169_v6 = vpop.f32.mrb[140].mxu1 }
 0x763   : > { %v12170_v7 = vpop.f32.mrb[141].mxu1 }
 0x764   : > { %v12171_v60 = vadd.f32 %v12170_v7, %v12169_v6  ;;  %v12172_v26 = vpop.f32.mrb[142].mxu1 }
 0x765   : > { %v12173_v19 = vpop.f32.mrb[143].mxu1 }
 0x766   : > { %v5719_v58 = vadd.f32 %v12171_v60, %v17451_v25  ;;  %v12174_v61 = vadd.f32 %v12173_v19, %v12172_v26 }
 0x768   : > { %v5816_v59 = vadd.f32 %v17176_v36, %v5719_v58  ;;  %v5722_v5 = vadd.f32 %v12174_v61, %v17451_v25 }
 0x76a   : > { %vm5878_vm8 = vcmp.ge.f32.partialorder %v5816_v59, 0.0  ;;  %v5894_v37 = vmul.f32 0.2, %v5816_v59  ;;  %v5819_v15 = vadd.f32 %v17185_v2, %v5722_v5 }
 0x76c   : > { %v5910_v51 = vsel %vm5878_vm8, %v5816_v59, %v5894_v37  ;;  %vm5879_vm9 = vcmp.ge.f32.partialorder %v5819_v15, 0.0  ;;  %v5895_v16 = vmul.f32 0.2, %v5819_v15 }
 0x76d   : > { %5926 = vst.msk [vmem:[%s14391_s17] sm:$0xff] %vm1458_vm5, %v5910_v51  ;;  %v12265_v7 = vpop.f32.mrb[146].mxu0 }
 0x76e   : > { %v5911_v6 = vsel %vm5879_vm9, %v5819_v15, %v5895_v16  ;;  %v12266_v17 = vpop.f32.mrb[147].mxu0 }
 0x76f   : > { %5927 = vst.msk [vmem:[%s14391_s17 + $0x8] sm:$0xff] %vm1458_vm5, %v5911_v6  ;;  %v17461_v60 = vadd.f32 %v12266_v17, %v12265_v7 }
 0x773   : > { %v12268_v26 = vpop.f32.mrb[148].mxu0 }
 0x774   : > { %v12269_v36 = vpop.f32.mrb[149].mxu0 }
 0x775   : > { %v17463_v58 = vadd.f32 %v12269_v36, %v12268_v26  ;;  %v12175_v19 = vpop.f32.mrb[144].mxu1 }
 0x776   : > { %v12176_v61 = vpop.f32.mrb[145].mxu1 }
 0x777   : > { %v12177_v2 = vadd.f32 %v12176_v61, %v12175_v19  ;;  %v12178_v59 = vpop.f32.mrb[146].mxu1 }
 0x778   : > { %v12179_v5 = vpop.f32.mrb[147].mxu1 }
 0x779   : > { %v5727_v51 = vadd.f32 %v12177_v2, %v17451_v25  ;;  %v12180_v37 = vadd.f32 %v12179_v5, %v12178_v59 }
 0x77b   : > { %v5824_v16 = vadd.f32 %v17171_v3, %v5727_v51  ;;  %v5730_v15 = vadd.f32 %v12180_v37, %v17451_v25 }
 0x77d   : > { %vm5880_vm10 = vcmp.ge.f32.partialorder %v5824_v16, 0.0  ;;  %v5896_v17 = vmul.f32 0.2, %v5824_v16  ;;  %v5827_v7 = vadd.f32 %v17183_v20, %v5730_v15 }
 0x77f   : > { %v5912_v6 = vsel %vm5880_vm10, %v5824_v16, %v5896_v17  ;;  %vm5881_vm11 = vcmp.ge.f32.partialorder %v5827_v7, 0.0  ;;  %v5897_v26 = vmul.f32 0.2, %v5827_v7 }
 0x780   : > { %5928 = vst.msk [vmem:[%s14391_s17 + $0x10] sm:$0xff] %vm1458_vm5, %v5912_v6  ;;  %v12271_v36 = vpop.f32.mrb[150].mxu0 }
 0x781   : > { %v5913_v19 = vsel %vm5881_vm11, %v5827_v7, %v5897_v26  ;;  %v12272_v61 = vpop.f32.mrb[151].mxu0 }
 0x782   : > { %5929 = vst.msk [vmem:[%s14391_s17 + $0x18] sm:$0xff] %vm1458_vm5, %v5913_v19  ;;  %v17473_v2 = vadd.f32 %v12272_v61, %v12271_v36 }
 0x784   : > { %v12274_v59 = vpop.f32.mrb[152].mxu0 }
 0x785   : > { %v12275_v3 = vpop.f32.mrb[153].mxu0 }
 0x786   : > { %v17475_v5 = vadd.f32 %v12275_v3, %v12274_v59  ;;  %v12181_v51 = vpop.f32.mrb[148].mxu1 }
 0x787   : > { %v12182_v37 = vpop.f32.mrb[149].mxu1 }
 0x788   : > { %v12183_v20 = vadd.f32 %v12182_v37, %v12181_v51  ;;  %v12184_v16 = vpop.f32.mrb[150].mxu1 }
 0x789   : > { %v12185_v15 = vpop.f32.mrb[151].mxu1 }
 0x78a   : > { %v5735_v17 = vadd.f32 %v12183_v20, %v17451_v25  ;;  %v12186_v6 = vadd.f32 %v12185_v15, %v12184_v16 }
 0x78c   : > { %v5832_v7 = vadd.f32 %v17192_v10, %v5735_v17  ;;  %v5738_v26 = vadd.f32 %v12186_v6, %v17451_v25 }
 0x78e   : > { %vm5882_vm12 = vcmp.ge.f32.partialorder %v5832_v7, 0.0  ;;  %v5898_v36 = vmul.f32 0.2, %v5832_v7  ;;  %v5835_v19 = vadd.f32 %v17199_v39, %v5738_v26 }
 0x790   : > { %v5914_v61 = vsel %vm5882_vm12, %v5832_v7, %v5898_v36  ;;  %vm5883_vm13 = vcmp.ge.f32.partialorder %v5835_v19, 0.0  ;;  %v5899_v59 = vmul.f32 0.2, %v5835_v19 }
 0x791   : > { %5930 = vst.msk [vmem:[%s14391_s17 + $0x20] sm:$0xff] %vm1458_vm5, %v5914_v61  ;;  %v12277_v3 = vpop.f32.mrb[154].mxu0  ;;  %v6600_v61 = vld [vmem:[%s19624_s7 + $0x8] sm:$0xff] }
 0x792   : > { %v5915_v51 = vsel %vm5883_vm13, %v5835_v19, %v5899_v59  ;;  %v12278_v37 = vpop.f32.mrb[155].mxu0  ;;  %v6599_v19 = vld [vmem:[%s19624_s7] sm:$0xff] }
 0x793   : > { %5931 = vst.msk [vmem:[%s14391_s17 + $0x28] sm:$0xff] %vm1458_vm5, %v5915_v51  ;;  %v17485_v20 = vadd.f32 %v12278_v37, %v12277_v3  ;;  %v17496_v59 = vpack.c.bf16 %v6600_v61, %v6599_v19 }
 0x795   : > { %v12280_v16 = vpop.f32.mrb[156].mxu0  ;;  %13680 = vmatpush3.bf16.msra.mxu1 %v17496_v59 }
 0x796   : > { %v12281_v15 = vpop.f32.mrb[157].mxu0  ;;  %13681 = vmatprep.subr.bf16.mxu1 %v19862_v55 }
 0x797   : > { %v12187_v10 = vpop.f32.mrb[152].mxu1  ;;  %v17487_v17 = vadd.f32 %v12281_v15, %v12280_v16 }
 0x798   : > { %v12188_v6 = vpop.f32.mrb[153].mxu1 }
 0x799   : > { %v12189_v4 = vadd.f32 %v12188_v6, %v12187_v10  ;;  %v12190_v39 = vpop.f32.mrb[154].mxu1 }
 0x79a   : > { %v12191_v7 = vpop.f32.mrb[155].mxu1 }
 0x79b   : > { %v5743_v26 = vadd.f32 %v12189_v4, %v17451_v25  ;;  %v12192_v36 = vadd.f32 %v12191_v7, %v12190_v39 }
 0x79d   : > { %v5840_v3 = vadd.f32 %v17189_v18, %v5743_v26  ;;  %v5746_v51 = vadd.f32 %v12192_v36, %v17451_v25 }
 0x79f   : > { %vm5884_vm14 = vcmp.ge.f32.partialorder %v5840_v3, 0.0  ;;  %v5900_v4 = vmul.f32 0.2, %v5840_v3  ;;  %v5843_v37 = vadd.f32 %v17194_v1, %v5746_v51 }
 0x7a0   : > { %v12283_v16 = vpop.f32.mrb[158].mxu0 }
 0x7a1   : > { %v5916_v10 = vsel %vm5884_vm14, %v5840_v3, %v5900_v4  ;;  %vm5885_vm15 = vcmp.ge.f32.partialorder %v5843_v37, 0.0  ;;  %v5901_v15 = vmul.f32 0.2, %v5843_v37  ;;  %v12284_v6 = vpop.f32.mrb[159].mxu0 }
 0x7a2   : > { %5932 = vst.msk [vmem:[%s14391_s17 + $0x30] sm:$0xff] %vm1458_vm5, %v5916_v10  ;;  %v17505_v39 = vadd.f32 %v12284_v6, %v12283_v16  ;;  %v6601_v16 = vld [vmem:[%s19624_s7 + $0x10] sm:$0xff]  ;;  %v6603_v10 = vld [vmem:[%s19624_s7 + $0x20] sm:$0xff]  ;;  %v6604_v6 = vld [vmem:[%s19624_s7 + $0x28] sm:$0xff] }
 0x7a3   : > { %v5917_v18 = vsel %vm5885_vm15, %v5843_v37, %v5901_v15  ;;  %v6602_v37 = vld [vmem:[%s19624_s7 + $0x18] sm:$0xff] }
 0x7a4   : > { %5933 = vst.msk [vmem:[%s14391_s17 + $0x38] sm:$0xff] %vm1458_vm5, %v5917_v18  ;;  %v12286_v7 = vpop.f32.mrb[160].mxu0  ;;  %v17521_v15 = vpack.c.bf16 %v6602_v37, %v6601_v16 }
 0x7a5   : > { %v12287_v26 = vpop.f32.mrb[161].mxu0 }
 0x7a6   : > { %v17509_v36 = vadd.f32 %v12287_v26, %v12286_v7  ;;  %v12193_v19 = vpop.f32.mrb[156].mxu1  ;;  %13683 = vmatpush3.bf16.msra.mxu1 %v17521_v15  ;;  %v17529_v7 = vpack.c.bf16 %v6604_v6, %v6603_v10 }
 0x7a7   : > { %v12194_v1 = vpop.f32.mrb[157].mxu1  ;;  %13684 = vmatprep.subr.bf16.mxu1 %v19862_v55 }
 0x7a8   : > { %v12195_v61 = vadd.f32 %v12194_v1, %v12193_v19  ;;  %v12196_v51 = vpop.f32.mrb[158].mxu1  ;;  %v6605_v1 = vld [vmem:[%s19624_s7 + $0x30] sm:$0xff] }
 0x7a9   : > { %v12197_v42 = vpop.f32.mrb[159].mxu1 }
 0x7aa   : > { %v5751_v3 = vadd.f32 %v12195_v61, %v17451_v25  ;;  %v12198_v4 = vadd.f32 %v12197_v42, %v12196_v51  ;;  %13686 = vmatpush3.bf16.msra.mxu1 %v17529_v7 }
 0x7ab   : > { %13687 = vmatprep.subr.bf16.mxu1 %v19862_v55 }
 0x7ac   : > { %v5848_v42 = vadd.f32 %v17216_v35, %v5751_v3  ;;  %v5754_v18 = vadd.f32 %v12198_v4, %v17451_v25  ;;  %v6606_v35 = vld [vmem:[%s19624_s7 + $0x38] sm:$0xff] }
 0x7ad   : > { %v17542_v4 = vpack.c.bf16 %v6606_v35, %v6605_v1 }
 0x7ae   : > { %vm5886_vm0 = vcmp.ge.f32.partialorder %v5848_v42, 0.0  ;;  %v5902_v26 = vmul.f32 0.2, %v5848_v42  ;;  %v5851_v19 = vadd.f32 %v17224_v63, %v5754_v18 }
 0x7af   : > { %13689 = vmatpush3.bf16.msra.mxu1 %v17542_v4 }
 0x7b0   : > { %v5918_v61 = vsel %vm5886_vm0, %v5848_v42, %v5902_v26  ;;  %vm5887_vm1 = vcmp.ge.f32.partialorder %v5851_v19, 0.0  ;;  %v5903_v51 = vmul.f32 0.2, %v5851_v19  ;;  %13690 = vmatprep.subr.bf16.mxu1 %v19862_v55 }
 0x7b1   : > { %5934 = vst.msk [vmem:[%s14391_s17 + $0x40] sm:$0xff] %vm1458_vm5, %v5918_v61  ;;  %v12289_v3 = vpop.f32.mrb[162].mxu0 }
 0x7b2   : > { %v5919_v63 = vsel %vm5887_vm1, %v5851_v19, %v5903_v51  ;;  %v12290_v16 = vpop.f32.mrb[163].mxu0 }
 0x7b3   : > { %5935 = vst.msk [vmem:[%s14391_s17 + $0x48] sm:$0xff] %vm1458_vm5, %v5919_v63  ;;  %v17547_v37 = vadd.f32 %v12290_v16, %v12289_v3 }
 0x7b7   : > { %v12292_v10 = vpop.f32.mrb[164].mxu0 }
 0x7b8   : > { %v12293_v6 = vpop.f32.mrb[165].mxu0 }
 0x7b9   : > { %v17551_v42 = vadd.f32 %v12293_v6, %v12292_v10  ;;  %v12199_v18 = vpop.f32.mrb[160].mxu1 }
 0x7ba   : > { %v12200_v26 = vpop.f32.mrb[161].mxu1 }
 0x7bb   : > { %v12201_v1 = vadd.f32 %v12200_v26, %v12199_v18  ;;  %v12202_v19 = vpop.f32.mrb[162].mxu1 }
 0x7bc   : > { %v12203_v35 = vpop.f32.mrb[163].mxu1 }
 0x7bd   : > { %v5759_v61 = vadd.f32 %v12201_v1, %v17451_v25  ;;  %v12204_v51 = vadd.f32 %v12203_v35, %v12202_v19 }
 0x7bf   : > { %v5856_v3 = vadd.f32 %v17212_v33, %v5759_v61  ;;  %v5762_v63 = vadd.f32 %v12204_v51, %v17451_v25 }
 0x7c1   : > { %vm5888_vm8 = vcmp.ge.f32.partialorder %v5856_v3, 0.0  ;;  %v5904_v16 = vmul.f32 0.2, %v5856_v3  ;;  %v5859_v23 = vadd.f32 %v17219_v46, %v5762_v63 }
 0x7c3   : > { %v5920_v10 = vsel %vm5888_vm8, %v5856_v3, %v5904_v16  ;;  %vm5889_vm9 = vcmp.ge.f32.partialorder %v5859_v23, 0.0  ;;  %v5905_v6 = vmul.f32 0.2, %v5859_v23 }
 0x7c4   : > { %5936 = vst.msk [vmem:[%s14391_s17 + $0x50] sm:$0xff] %vm1458_vm5, %v5920_v10  ;;  %v12295_v18 = vpop.f32.mrb[166].mxu0 }
 0x7c5   : > { %v5921_v26 = vsel %vm5889_vm9, %v5859_v23, %v5905_v6  ;;  %v12296_v53 = vpop.f32.mrb[167].mxu0 }
 0x7c6   : > { %5937 = vst.msk [vmem:[%s14391_s17 + $0x58] sm:$0xff] %vm1458_vm5, %v5921_v26  ;;  %v17561_v1 = vadd.f32 %v12296_v53, %v12295_v18 }
 0x7c8   : > { %v12298_v19 = vpop.f32.mrb[168].mxu0 }
 0x7c9   : > { %v12299_v33 = vpop.f32.mrb[169].mxu0 }
 0x7ca   : > { %v17563_v35 = vadd.f32 %v12299_v33, %v12298_v19  ;;  %v12205_v61 = vpop.f32.mrb[164].mxu1 }
 0x7cb   : > { %v12206_v51 = vpop.f32.mrb[165].mxu1 }
 0x7cc   : > { %v12207_v46 = vadd.f32 %v12206_v51, %v12205_v61  ;;  %v12208_v3 = vpop.f32.mrb[166].mxu1 }
 0x7cd   : > { %v12209_v63 = vpop.f32.mrb[167].mxu1 }
 0x7ce   : > { %v5767_v16 = vadd.f32 %v12207_v46, %v17451_v25  ;;  %v12210_v10 = vadd.f32 %v12209_v63, %v12208_v3 }
 0x7d0   : > { %v5864_v23 = vadd.f32 %v17233_v38, %v5767_v16  ;;  %v5770_v6 = vadd.f32 %v12210_v10, %v17451_v25 }
 0x7d2   : > { %vm5890_vm10 = vcmp.ge.f32.partialorder %v5864_v23, 0.0  ;;  %v5906_v53 = vmul.f32 0.2, %v5864_v23  ;;  %v5867_v18 = vadd.f32 %v17240_v30, %v5770_v6 }
 0x7d3   : > { %v12301_v26 = vpop.f32.mrb[170].mxu0 }
 0x7d4   : > { %v5922_v19 = vsel %vm5890_vm10, %v5864_v23, %v5906_v53  ;;  %vm5891_vm11 = vcmp.ge.f32.partialorder %v5867_v18, 0.0  ;;  %v5907_v33 = vmul.f32 0.2, %v5867_v18  ;;  %v12302_v8 = vpop.f32.mrb[171].mxu0 }
 0x7d5   : > { %5938 = vst.msk [vmem:[%s14391_s17 + $0x60] sm:$0xff] %vm1458_vm5, %v5922_v19  ;;  %v17571_v61 = vadd.f32 %v12302_v8, %v12301_v26 }
 0x7d6   : > { %v5923_v51 = vsel %vm5891_vm11, %v5867_v18, %v5907_v33 }
 0x7d7   : > { %5939 = vst.msk [vmem:[%s14391_s17 + $0x68] sm:$0xff] %vm1458_vm5, %v5923_v51 }
 0x7db   : > { %v12304_v46 = vpop.f32.mrb[172].mxu0 }
 0x7dc   : > { %v12305_v38 = vpop.f32.mrb[173].mxu0 }
 0x7dd   : > { %v17575_v3 = vadd.f32 %v12305_v38, %v12304_v46  ;;  %v12211_v63 = vpop.f32.mrb[168].mxu1 }
 0x7de   : > { %v12212_v16 = vpop.f32.mrb[169].mxu1 }
 0x7df   : > { %v12213_v10 = vadd.f32 %v12212_v16, %v12211_v63  ;;  %v12214_v30 = vpop.f32.mrb[170].mxu1  ;;  %v6497_v6 = vpop.f32.mrb[174].mxu0 }
 0x7e0   : > { %v12215_v23 = vpop.f32.mrb[171].mxu1  ;;  %v6499_v53 = vpop.f32.mrb[175].mxu0 }
 0x7e1   : > { %v5775_v13 = vadd.f32 %v12213_v10, %v17451_v25  ;;  %v12216_v62 = vadd.f32 %v12215_v23, %v12214_v30 }
 0x7e3   : > { %v5872_v8 = vadd.f32 %v17231_v40, %v5775_v13  ;;  %v5778_v18 = vadd.f32 %v12216_v62, %v17451_v25  ;;  %v6502_v26 = vpop.f32.mrb[176].mxu0 }
 0x7e4   : > { %v6504_v19 = vpop.f32.mrb[177].mxu0 }
 0x7e5   : > { %vm5892_vm12 = vcmp.ge.f32.partialorder %v5872_v8, 0.0  ;;  %v5908_v33 = vmul.f32 0.2, %v5872_v8  ;;  %v5875_v51 = vadd.f32 %v17237_v29, %v5778_v18  ;;  %v13019_v46 = vpop.f32.mrb[138].mxu1 }
 0x7e6   : > { %v6310_v38 = vadd.f32 %v13019_v46, %v17446_v31  ;;  %v6304_v63 = vpop.f32.mrb[139].mxu1 }
 0x7e7   : > { %v5924_v16 = vsel %vm5892_vm12, %v5872_v8, %v5908_v33  ;;  %vm5893_vm13 = vcmp.ge.f32.partialorder %v5875_v51, 0.0  ;;  %v5909_v10 = vmul.f32 0.2, %v5875_v51  ;;  %v6305_v30 = vadd.f32 %v17444_v50, %v6304_v63  ;;  %v6507_v23 = vpop.f32.mrb[178].mxu0 }
 0x7e8   : > { %5940 = vst.msk [vmem:[%s14391_s17 + $0x70] sm:$0xff] %vm1458_vm5, %v5924_v16  ;;  %v6503_v13 = vadd.f32 %v6502_v26, %v6310_v38  ;;  %v6509_v62 = vpop.f32.mrb[179].mxu0 }
 0x7e9   : > { %v5925_v40 = vsel %vm5893_vm13, %v5875_v51, %v5909_v10  ;;  %v6498_v25 = vadd.f32 %v6497_v6, %v6305_v30  ;;  %v13022_v53 = vpop.f32.mrb[172].mxu1 }
 0x7ea   : > { %5941 = vst.msk [vmem:[%s14391_s17 + $0x78] sm:$0xff] %vm1458_vm5, %v5925_v40  ;;  %v6320_v29 = vadd.f32 %v13022_v53, %v17463_v58  ;;  %v6314_v18 = vpop.f32.mrb[173].mxu1 }
 0x7eb   : > { %v6315_v31 = vadd.f32 %v17461_v60, %v6314_v18  ;;  %v6512_v8 = vpop.f32.mrb[180].mxu0 }
 0x7ec   : > { %v6513_v19 = vadd.f32 %v6512_v8, %v6320_v29  ;;  %v6514_v33 = vpop.f32.mrb[181].mxu0 }
 0x7ed   : > { %v6508_v46 = vadd.f32 %v6507_v23, %v6315_v31  ;;  %v13025_v50 = vpop.f32.mrb[174].mxu1 }
 0x7ee   : > { %v6330_v63 = vadd.f32 %v13025_v50, %v17475_v5  ;;  %v6324_v16 = vpop.f32.mrb[175].mxu1 }
 0x7ef   : > { %v6325_v26 = vadd.f32 %v17473_v2, %v6324_v16  ;;  %v6517_v51 = vpop.f32.mrb[182].mxu0  ;;  %v17597_v2 = vld [vmem:[%s19621_s4] ss:$0 sm:$0xff] }
 0x7f0   : > { %v6519_v6 = vpop.f32.mrb[183].mxu0  ;;  %v17604_v50 = vadd.f32 %v17597_v2, %v6498_v25 }
 0x7f1   : > { %v6518_v38 = vadd.f32 %v6517_v51, %v6325_v26  ;;  %v13028_v10 = vpop.f32.mrb[176].mxu1  ;;  %v17609_v51 = vadd.f32 %v17597_v2, %v6508_v46 }
 0x7f2   : > { %v6340_v30 = vadd.f32 %v13028_v10, %v17487_v17  ;;  %v6334_v58 = vpop.f32.mrb[177].mxu1 }
 0x7f3   : > { %v6335_v62 = vadd.f32 %v17485_v20, %v6334_v58  ;;  %v6522_v60 = vpop.f32.mrb[184].mxu0  ;;  %v17601_v20 = vadd.f32 %v17597_v2, %v6503_v13  ;;  %v6609_v13 = vsel %vm1458_vm5, %v17604_v50, 0.0  ;;  %v6612_v46 = vsel %vm1458_vm5, %v17609_v51, 0.0 }
 0x7f4   : > { %v6523_v40 = vadd.f32 %v6522_v60, %v6330_v63  ;;  %v6524_v53 = vpop.f32.mrb[185].mxu0 }
 0x7f5   : > { %v13031_v29 = vpop.f32.mrb[178].mxu1  ;;  %v6610_v58 = vsel %vm1458_vm5, %v17601_v20, 0.0 }
 0x7f6   : > { %v6350_v23 = vadd.f32 %v13031_v29, %v17509_v36  ;;  %v6344_v18 = vpop.f32.mrb[179].mxu1  ;;  %v6611_v53 = vadd.f32 %v6610_v58, %v6609_v13 }
 0x7f7   : > { %v6345_v5 = vadd.f32 %v17505_v39, %v6344_v18  ;;  %v6527_v31 = vpop.f32.mrb[186].mxu0  ;;  %v17622_v18 = vadd.f32 %v17597_v2, %v6513_v19  ;;  %v6653_v19 = vmul.f32 %v17604_v50, %v17604_v50 }
 0x7f8   : > { %v6528_v8 = vadd.f32 %v6527_v31, %v6335_v62  ;;  %v6529_v17 = vpop.f32.mrb[187].mxu0 }
 0x7f9   : > { %v13034_v33 = vpop.f32.mrb[180].mxu1 }
 0x7fa   : > { %v6360_v36 = vadd.f32 %v13034_v33, %v17551_v42  ;;  %v6354_v63 = vpop.f32.mrb[181].mxu1 }
 0x7fb   : > { %v6355_v16 = vadd.f32 %v17547_v37, %v6354_v63  ;;  %v6532_v26 = vpop.f32.mrb[188].mxu0  ;;  %v17631_v63 = vadd.f32 %v17597_v2, %v6518_v38 }
 0x7fc   : > { %v6533_v39 = vadd.f32 %v6532_v26, %v6340_v30  ;;  %v6534_v6 = vpop.f32.mrb[189].mxu0 }
 0x7fd   : > { %v13037_v10 = vpop.f32.mrb[182].mxu1  ;;  %v6654_v6 = vmul.f32 %v17601_v20, %v17601_v20  ;;  %v6616_v38 = vsel %vm1458_vm5, %v17631_v63, 0.0 }
 0x7fe   : > { %v17616_v25 = vadd.f32 %v13037_v10, %v17563_v35  ;;  %v6364_v42 = vpop.f32.mrb[183].mxu1  ;;  %v6613_v35 = vadd.f32 %v6612_v46, %v6611_v53  ;;  %v6655_v10 = vmul.f32 %v17609_v51, %v17609_v51  ;;  %v6669_v46 = vsel %vm1458_vm5, %v6653_v19, 0.0 }
 0x7ff   : > { %v6365_v62 = vadd.f32 %v17561_v1, %v6364_v42  ;;  %v6537_v37 = vpop.f32.mrb[190].mxu0 }
 0x800   : > { %v6538_v60 = vadd.f32 %v6537_v37, %v6345_v5  ;;  %v6539_v30 = vpop.f32.mrb[191].mxu0  ;;  %v6670_v37 = vsel %vm1458_vm5, %v6654_v6, 0.0  ;;  %v6672_v53 = vsel %vm1458_vm5, %v6655_v10, 0.0 }
 0x801   : > { %v13040_v29 = vpop.f32.mrb[184].mxu1  ;;  %v17649_v30 = vadd.f32 %v17597_v2, %v6528_v8  ;;  %v6671_v6 = vadd.f32 %v6670_v37, %v6669_v46  ;;  %v6656_v8 = vmul.f32 %v17622_v18, %v17622_v18  ;;  %v6657_v37 = vmul.f32 %v17631_v63, %v17631_v63 }
 0x802   : > { %v17625_v31 = vadd.f32 %v13040_v29, %v17575_v3  ;;  %v6374_v17 = vpop.f32.mrb[185].mxu1  ;;  %v6614_v3 = vsel %vm1458_vm5, %v17622_v18, 0.0  ;;  %v17661_v19 = vadd.f32 %v17597_v2, %v6538_v60 }
 0x803   : > { %v17628_v33 = vadd.f32 %v17571_v61, %v6374_v17  ;;  %v6542_v1 = vpop.f32.mrb[192].mxu0  ;;  %v6615_v61 = vadd.f32 %v6614_v3, %v6613_v35  ;;  %v6620_v3 = vsel %vm1458_vm5, %v17649_v30, 0.0 }
 0x804   : > { %v6543_v26 = vadd.f32 %v6542_v1, %v6350_v23  ;;  %v6544_v5 = vpop.f32.mrb[193].mxu0  ;;  %v17644_v23 = vadd.f32 %v17597_v2, %v6523_v40  ;;  %v17655_v1 = vadd.f32 %v17597_v2, %v6533_v39  ;;  %v6673_v39 = vadd.f32 %v6672_v53, %v6671_v6 }
 0x805   : > { %v6617_v29 = vadd.f32 %v6616_v38, %v6615_v61  ;;  %v6674_v53 = vsel %vm1458_vm5, %v6656_v8, 0.0 }
 0x806   : > { %v6618_v35 = vsel %vm1458_vm5, %v17644_v23, 0.0  ;;  %19904 = vst [vmem:[#allocation28_spill] sm:$0xff] %v17655_v1  ;;  %v17658_v40 = vadd.f32 %v17597_v2, %v6543_v26 }
 0x807   : > { %v6547_v58 = vpop.f32.mrb[194].mxu0  ;;  %v6619_v61 = vadd.f32 %v6618_v35, %v6617_v29 }
 0x808   : > { %v6548_v13 = vadd.f32 %v6547_v58, %v6355_v16  ;;  %v6549_v42 = vpop.f32.mrb[195].mxu0  ;;  %v6662_v26 = vmul.f32 %v17658_v40, %v17658_v40  ;;  %v6631_v29 = vsel %vm1458_vm5, %v17658_v40, 0.0 }
 0x809   : > { %v6621_v46 = vadd.f32 %v6620_v3, %v6619_v61 }
 0x80a   : > { %v17668_v10 = vadd.f32 %v17597_v2, %v6548_v13  ;;  %v6661_v13 = vmul.f32 %v17661_v19, %v17661_v19  ;;  %v6691_v3 = vsel %vm1458_vm5, %v6662_v26, 0.0 }
 0x80b   : > { %v6552_v17 = vpop.f32.mrb[196].mxu0 }
 0x80c   : > { %v6553_v16 = vadd.f32 %v6552_v17, %v6360_v36  ;;  %v6554_v5 = vpop.f32.mrb[197].mxu0  ;;  %v6622_v36 = vsel %vm1458_vm5, %v17655_v1, 0.0  ;;  %v6663_v17 = vmul.f32 %v17668_v10, %v17668_v10  ;;  %v6633_v8 = vsel %vm1458_vm5, %v17668_v10, 0.0 }
 0x80d   : > { %v6630_v5 = vsel %vm1458_vm5, %v17661_v19, 0.0 }
 0x80e   : > { %v17675_v60 = vadd.f32 %v17597_v2, %v6553_v16  ;;  %v6623_v16 = vadd.f32 %v6622_v36, %v6621_v46  ;;  %v6690_v36 = vsel %vm1458_vm5, %v6661_v13, 0.0  ;;  %v6632_v46 = vadd.f32 %v6631_v29, %v6630_v5 }
 0x80f   : > { %v6557_v58 = vpop.f32.mrb[198].mxu0 }
 0x810   : > { %v6558_v38 = vadd.f32 %v6557_v58, %v6365_v62  ;;  %v6559_v42 = vpop.f32.mrb[199].mxu0  ;;  %v6675_v62 = vadd.f32 %v6674_v53, %v6673_v39  ;;  %v6664_v61 = vmul.f32 %v17675_v60, %v17675_v60  ;;  %v6658_v39 = vmul.f32 %v17644_v23, %v17644_v23 }
 0x811   : > { %v6693_v53 = vsel %vm1458_vm5, %v6663_v17, 0.0  ;;  %v6635_v26 = vsel %vm1458_vm5, %v17675_v60, 0.0 }
 0x812   : > { %v17687_v35 = vadd.f32 %v17597_v2, %v6558_v38  ;;  %v6676_v38 = vsel %vm1458_vm5, %v6657_v37, 0.0  ;;  %v6634_v37 = vadd.f32 %v6633_v8, %v6632_v46  ;;  %v6695_v14 = vsel %vm1458_vm5, %v6664_v61, 0.0 }
 0x813   : > { %v6562_v6 = vpop.f32.mrb[200].mxu0  ;;  %v6677_v12 = vadd.f32 %v6676_v38, %v6675_v62  ;;  %v6678_v34 = vsel %vm1458_vm5, %v6658_v39, 0.0 }
 0x814   : > { %v6563_v58 = vadd.f32 %v6562_v6, %v17616_v25  ;;  %v6564_v42 = vpop.f32.mrb[201].mxu0  ;;  %v6665_v24 = vmul.f32 %v17687_v35, %v17687_v35  ;;  %v6624_v25 = vrot.slane %v6623_v16, 4  ;;  %v6692_v6 = vadd.f32 %v6691_v3, %v6690_v36 }
 0x815   : > { %v6637_v13 = vsel %vm1458_vm5, %v17687_v35, 0.0  ;;  %v6636_v28 = vadd.f32 %v6635_v26, %v6634_v37  ;;  %v6659_v3 = vmul.f32 %v17649_v30, %v17649_v30 }
 0x816   : > { %v17707_v9 = vadd.f32 %v17597_v2, %v6563_v58  ;;  %v6694_v58 = vadd.f32 %v6693_v53, %v6692_v6  ;;  %v6697_v8 = vsel %vm1458_vm5, %v6665_v24, 0.0  ;;  %v6625_v46 = vadd.f32 %v6624_v25, %v6623_v16 }
 0x817   : > { %v6567_v42 = vpop.f32.mrb[202].mxu0  ;;  %v6638_v38 = vadd.f32 %v6637_v13, %v6636_v28  ;;  %v6680_v16 = vsel %vm1458_vm5, %v6659_v3, 0.0  ;;  %v6679_v28 = vadd.f32 %v6678_v34, %v6677_v12 }
 0x818   : > { %v6666_v29 = vmul.f32 %v17707_v9, %v17707_v9  ;;  %v6568_v17 = vadd.f32 %v6567_v42, %v17628_v33  ;;  %v6569_v5 = vpop.f32.mrb[203].mxu0  ;;  %v6639_v61 = vsel %vm1458_vm5, %v17707_v9, 0.0  ;;  %v6660_v33 = vmul.f32 %v17655_v1, %v17655_v1 }
 0x819   : > { %v6696_v62 = vadd.f32 %v6695_v14, %v6694_v58  ;;  %v6626_v13 = vrot.slane %v6625_v46, 2 }
 0x81a   : > { %v17722_v36 = vadd.f32 %v17597_v2, %v6568_v17  ;;  %v6699_v53 = vsel %vm1458_vm5, %v6666_v29, 0.0  ;;  %v6640_v17 = vadd.f32 %v6639_v61, %v6638_v38  ;;  %v6682_v58 = vsel %vm1458_vm5, %v6660_v33, 0.0 }
 0x81b   : > { %v6572_v39 = vpop.f32.mrb[204].mxu0  ;;  %v6698_v42 = vadd.f32 %v6697_v8, %v6696_v62  ;;  %v6681_v8 = vadd.f32 %v6680_v16, %v6679_v28  ;;  %v6627_v38 = vadd.f32 %v6626_v13, %v6625_v46 }
 0x81c   : > { %v6641_v26 = vsel %vm1458_vm5, %v17722_v36, 0.0  ;;  %v6667_v24 = vmul.f32 %v17722_v36, %v17722_v36  ;;  %v6573_v6 = vadd.f32 %v6572_v39, %v17625_v31  ;;  %v6574_v37 = vpop.f32.mrb[205].mxu0 }
 0x81d   : > { %v6700_v29 = vadd.f32 %v6699_v53, %v6698_v42  ;;  %v6642_v5 = vadd.f32 %v6641_v26, %v6640_v17  ;;  %v6628_v26 = vrot.slane %v6627_v38, 1 }
 0x81e   : > { %v6701_v25 = vsel %vm1458_vm5, %v6667_v24, 0.0  ;;  %v17735_v14 = vadd.f32 %v17597_v2, %v6573_v6  ;;  %v6683_v2 = vadd.f32 %v6682_v58, %v6681_v8 }
 0x81f   : > { %v6702_v61 = vadd.f32 %v6701_v25, %v6700_v29  ;;  %v6629_v1 = vadd.f32 %v6628_v26, %v6627_v38 }
 0x820   : > { %19905 = vst [vmem:[#allocation29_spill] sm:$0xff] %v17735_v14  ;;  %v6643_v11 = vsel %vm1458_vm5, %v17735_v14, 0.0  ;;  %v6668_v31 = vmul.f32 %v17735_v14, %v17735_v14  ;;  %v6684_v24 = vrot.slane %v6683_v2, 4 }
 0x821   : > { %v6644_v3 = vadd.f32 %v6643_v11, %v6642_v5  ;;  %v6651_v11 = vmul.f32 0.015625, %v6629_v1 }
 0x822   : > { %v6703_v62 = vsel %vm1458_vm5, %v6668_v31, 0.0  ;;  %v6685_v42 = vadd.f32 %v6684_v24, %v6683_v2  ;;  %v7109_v2 = vld [vmem:[%s19625_s8 + $0x20] sm:$0xff] }
 0x823   : > { %v6645_v39 = vrot.slane %v6644_v3, 4  ;;  %v6704_v12 = vadd.f32 %v6703_v62, %v6702_v61  ;;  %v7106_v61 = vld [vmem:[%s19625_s8 + $0x8] sm:$0xff]  ;;  %v7108_v62 = vld [vmem:[%s19625_s8 + $0x18] sm:$0xff]  ;;  %v7113_v24 = vld [vmem:[%s19625_s8 + $0x40] sm:$0xff] }
 0x824   : > { %v6686_v25 = vrot.slane %v6685_v42, 2 }
 0x825   : > { %v6646_v34 = vadd.f32 %v6645_v39, %v6644_v3  ;;  %v6705_v53 = vrot.slane %v6704_v12, 4  ;;  %v7107_v3 = vld [vmem:[%s19625_s8 + $0x10] sm:$0xff]  ;;  %v7110_v39 = vld [vmem:[%s19625_s8 + $0x28] sm:$0xff] }
 0x826   : > { %v6687_v29 = vadd.f32 %v6686_v25, %v6685_v42  ;;  %v13706_v38 = vpack.c.bf16 %v7108_v62, %v7107_v3  ;;  %v7116_v25 = vld [vmem:[%s19625_s8 + $0x58] sm:$0xff]  ;;  %v19911_v3 = vunpack.c.l.bf16 %v17279_v57  ;;  %v19912_v62 = vunpack.c.h.bf16 %v17290_v49 }
 0x827   : > { %v6647_v33 = vrot.slane %v6646_v34, 2  ;;  %v6706_v37 = vadd.f32 %v6705_v53, %v6704_v12  ;;  %v7111_v12 = vld [vmem:[%s19625_s8 + $0x30] sm:$0xff]  ;;  %v7112_v53 = vld [vmem:[%s19625_s8 + $0x38] sm:$0xff] }
 0x828   : > { %v6688_v58 = vrot.slane %v6687_v29, 1  ;;  %v13712_v26 = vpack.c.bf16 %v7112_v53, %v7111_v12  ;;  %v19915_v53 = vunpack.c.l.bf16 %v17301_v44 }
 0x829   : > { %v6648_v6 = vadd.f32 %v6647_v33, %v6646_v34  ;;  %v6707_v14 = vrot.slane %v6706_v37, 2  ;;  %v13709_v34 = vpack.c.bf16 %v7110_v39, %v7109_v2  ;;  %v7114_v33 = vld [vmem:[%s19625_s8 + $0x48] sm:$0xff]  ;;  %v19914_v39 = vunpack.c.h.bf16 %v17301_v44 }
 0x82a   : > { %v19919_v44 = vunpack.c.l.bf16 %v17325_v45 }
 0x82b   : > { %v6649_v17 = vrot.slane %v6648_v6, 1  ;;  %v6708_v13 = vadd.f32 %v6707_v14, %v6706_v37  ;;  %v6689_v14 = vadd.f32 %v6688_v58, %v6687_v29  ;;  %v7452_v37 = vld [vmem:[%s19626_s9 + $0x8] sm:$0xff]  ;;  %v7119_v29 = vld [vmem:[%s19625_s8 + $0x70] sm:$0xff] }
 0x82d   : > { %v6650_v16 = vadd.f32 %v6649_v17, %v6648_v6  ;;  %v6709_v5 = vrot.slane %v6708_v13, 1  ;;  %v7451_v6 = vld [vmem:[%s19626_s9] sm:$0xff]  ;;  %v13715_v17 = vpack.c.bf16 %v7114_v33, %v7113_v24  ;;  %v19918_v33 = vunpack.c.h.bf16 %v17325_v45 }
 0x82e   : > { %v13729_v42 = vpack.c.bf16 %v7452_v37, %v7451_v6  ;;  %v19922_v45 = vunpack.c.h.bf16 %v17349_v27 }
 0x82f   : > { %v6652_v28 = vmul.f32 0.015625, %v6650_v16  ;;  %v6710_v1 = vadd.f32 %v6709_v5, %v6708_v13  ;;  %v7115_v16 = vld [vmem:[%s19625_s8 + $0x50] sm:$0xff]  ;;  %v7120_v5 = vld [vmem:[%s19625_s8 + $0x78] sm:$0xff] }
 0x830   : > { %13730 = vmatprep.subr.bf16.mxu0 %v13729_v42  ;;  %v13724_v58 = vpack.c.bf16 %v7120_v5, %v7119_v29 }
 0x831   : > { %v6715_v46 = vsel %vm1566_vm6, %v6652_v28, %v6651_v11  ;;  %v6712_v31 = vmul.f32 0.015625, %v6710_v1  ;;  %13732 = vmatpush3.bf16.msra.mxu0 %v13729_v42  ;;  %v13718_v11 = vpack.c.bf16 %v7116_v25, %v7115_v16  ;;  %v7117_v28 = vld [vmem:[%s19625_s8 + $0x60] sm:$0xff]  ;;  %v19920_v42 = vunpack.c.h.bf16 %v17337_v47 }
 0x832   : > { %13058 = vmatmul.mubr.msk.f32.vlgmr.msra.gmra.mrb[186].mxu1 %vm1458_vm5, %v6715_v46  ;;  %v7118_v46 = vld [vmem:[%s19625_s8 + $0x68] sm:$0xff]  ;;  %v7121_v1 = vld [vmem:[%s19625_s8 + $0x80] sm:$0xff]  ;;  %v19921_v16 = vunpack.c.l.bf16 %v17337_v47 }
 0x833   : > { %13692 = vmatpush3.bf16.msra.mxu1 %v17496_v59  ;;  %13076 = vmatprep.mubr.msk.f32.mxu1 %vm14274_vm4, %v19863_v22  ;;  %v6711_v59 = vmul.f32 0.015625, %v6689_v14  ;;  %v13721_v13 = vpack.c.bf16 %v7118_v46, %v7117_v28  ;;  %v7122_v14 = vld [vmem:[%s19625_s8 + $0x88] sm:$0xff] }
 0x834   : > { %13693 = vmatprep.subr.bf16.mxu1 %v19862_v55 }
 0x835   : > { %v6790_v8 = vsel %vm1566_vm6, %v6712_v31, %v6711_v59  ;;  %v13727_v31 = vpack.c.bf16 %v7122_v14, %v7121_v1 }
 0x837   : > { %13695 = vmatpush3.bf16.msra.mxu1 %v17521_v15  ;;  %v19906_v15 = vunpack.c.h.bf16 %v17255_v52 }
 0x838   : > { %13696 = vmatprep.subr.bf16.mxu1 %v19862_v55 }
 0x83b   : > { %13698 = vmatpush3.bf16.msra.mxu1 %v17529_v7  ;;  %v7105_v7 = vld [vmem:[%s19625_s8] sm:$0xff] }
 0x83c   : > { %13699 = vmatprep.subr.bf16.mxu1 %v19862_v55 }
 0x83f   : > { %13701 = vmatpush3.bf16.msra.mxu1 %v17542_v4  ;;  %v13703_v4 = vpack.c.bf16 %v7106_v61, %v7105_v7  ;;  %v19908_v7 = vunpack.c.h.bf16 %v17268_v41  ;;  %v19909_v61 = vunpack.c.l.bf16 %v17268_v41 }
 0x840   : > { %13702 = vmatprep.subr.bf16.mxu1 %v19862_v55 }
 0x842   : > { %13077 = vmatmul.mubr.msk.f32.vlgmr.msra.gmra.mrb[188].mxu1 %vm1458_vm5, %v6790_v8 }
 0x843   : > { %11602 = vmatprep.mubr.msk.f32.mxu1 %vm1231_vm3, %v19906_v15  ;;  %13704 = vmatpush1.bf16.msra.mxu1 %v13703_v4  ;;  %v19907_v15 = vunpack.c.l.bf16 %v17255_v52  ;;  %v19910_v4 = vunpack.c.h.bf16 %v17279_v57 }
 0x844   : > { %13705 = vmatprep.subr.bf16.mxu1 %v19862_v55 }
 0x847   : > { %13707 = vmatpush1.bf16.msra.mxu1 %v13706_v38  ;;  %v19913_v38 = vunpack.c.l.bf16 %v17290_v49  ;;  %v19917_v49 = vunpack.c.l.bf16 %v17313_v56 }
 0x848   : > { %13708 = vmatprep.subr.bf16.mxu1 %v19862_v55 }
 0x84b   : > { %13710 = vmatpush1.bf16.msra.mxu1 %v13709_v34 }
 0x84c   : > { %13711 = vmatprep.subr.bf16.mxu1 %v19862_v55 }
 0x84f   : > { %13713 = vmatpush1.bf16.msra.mxu1 %v13712_v26  ;;  %v19916_v26 = vunpack.c.h.bf16 %v17313_v56 }
 0x850   : > { %13714 = vmatprep.subr.bf16.mxu1 %v19862_v55 }
 0x853   : > { %13716 = vmatpush1.bf16.msra.mxu1 %v13715_v17 }
 0x854   : > { %13717 = vmatprep.subr.bf16.mxu1 %v19862_v55 }
 0x857   : > { %13719 = vmatpush1.bf16.msra.mxu1 %v13718_v11 }
 0x858   : > { %13720 = vmatprep.subr.bf16.mxu1 %v19862_v55 }
 0x85b   : > { %13722 = vmatpush1.bf16.msra.mxu1 %v13721_v13 }
 0x85c   : > { %13723 = vmatprep.subr.bf16.mxu1 %v19862_v55 }
 0x85f   : > { %13725 = vmatpush1.bf16.msra.mxu1 %v13724_v58 }
 0x860   : > { %13726 = vmatprep.subr.bf16.mxu1 %v19862_v55 }
 0x863   : > { %13728 = vmatpush1.bf16.msra.mxu1 %v13727_v31 }
 0x866   : > { %7195 = vmatmul.mubr.f32.vlgmr.msra.gmra.mrb[190].mxu1 %v19907_v15 }
 0x867   : > { %11603 = vmatprep.mubr.msk.f32.mxu1 %vm1231_vm3, %v19908_v7 }
 0x86a   : > { %7200 = vmatmul.mubr.f32.gmra.mrb[192].mxu1 %v19909_v61 }
 0x86b   : > { %11604 = vmatprep.mubr.msk.f32.mxu1 %vm1231_vm3, %v19910_v4  ;;  %v19925_v4 = vunpack.c.l.bf16 %v17361_v0 }
 0x86e   : > { %7205 = vmatmul.mubr.f32.gmra.mrb[194].mxu1 %v19911_v3 }
 0x86f   : > { %11605 = vmatprep.mubr.msk.f32.mxu1 %vm1231_vm3, %v19912_v62 }
 0x872   : > { %7210 = vmatmul.mubr.f32.gmra.mrb[196].mxu1 %v19913_v38 }
 0x873   : > { %11606 = vmatprep.mubr.msk.f32.mxu1 %vm1231_vm3, %v19914_v39 }
 0x876   : > { %7215 = vmatmul.mubr.f32.gmra.mrb[198].mxu1 %v19915_v53 }
 0x877   : > { %11607 = vmatprep.mubr.msk.f32.mxu1 %vm1231_vm3, %v19916_v26 }
 0x87a   : > { %7220 = vmatmul.mubr.f32.gmra.mrb[200].mxu1 %v19917_v49 }
 0x87b   : > { %11608 = vmatprep.mubr.msk.f32.mxu1 %vm1231_vm3, %v19918_v33 }
 0x87e   : > { %7225 = vmatmul.mubr.f32.gmra.mrb[202].mxu1 %v19919_v44  ;;  %v19927_v44 = vunpack.c.l.bf16 %v17373_v48 }
 0x87f   : > { %11609 = vmatprep.mubr.msk.f32.mxu1 %vm1231_vm3, %v19920_v42 }
 0x882   : > { %7230 = vmatmul.mubr.f32.gmra.mrb[204].mxu1 %v19921_v16 }
 0x883   : > { %11610 = vmatprep.mubr.msk.f32.mxu1 %vm1231_vm3, %v19922_v45 }
 0x905   : > { %v6784_v59 = vpop.f32.mrb[186].mxu1 }
 0x906   : > { %v13059_v8 = vpop.f32.mrb[187].mxu1  ;;  %v6863_v52 = vmul.f32 %v6784_v59, %v6784_v59  ;;  %v6874_v57 = vrot.slane %v6784_v59, %v19866_v54 }
 0x908   : > { %v6875_v24 = vcombine.high %v6874_v57, %v6874_v57  ;;  %v6882_v6 = vrot.slane %v6874_v57, %v19866_v54 }
 0x90a   : > { %v6889_v37 = vrot.slane %v6875_v24, %v19866_v54  ;;  %v17867_v17 = vrot.slane %v6882_v6, %v19867_v43 }
 0x90c   : > { %v17872_v25 = vrot.slane %v6889_v37, %v19867_v43  ;;  %v6900_v28 = vsub.f32 %v17604_v50, %v17867_v17  ;;  %v6901_v46 = vsub.f32 %v17601_v20, %v17867_v17  ;;  %v6902_v47 = vsub.f32 %v17609_v51, %v17867_v17 }
 0x90d   : > { %v6903_v5 = vsub.f32 %v17622_v18, %v17867_v17  ;;  %v6904_v58 = vsub.f32 %v17631_v63, %v17867_v17  ;;  %v6905_v1 = vsub.f32 %v17644_v23, %v17867_v17  ;;  %v19923_v50 = vunpack.c.l.bf16 %v17349_v27 }
 0x90e   : > { %v6906_v20 = vsub.f32 %v17649_v30, %v17867_v17  ;;  %v6908_v14 = vsub.f32 %v17661_v19, %v17872_v25  ;;  %v19924_v18 = vunpack.c.h.bf16 %v17361_v0  ;;  %v6909_v63 = vsub.f32 %v17658_v40, %v17872_v25  ;;  %v17915_v19 = vld [vmem:[%s19622_s5] ss:$0 sm:$0xff] }
 0x90f   : > { %7235 = vmatmul.mubr.f32.gmra.mrb[206].mxu1 %v19923_v50  ;;  %v6910_v27 = vsub.f32 %v17668_v10, %v17872_v25  ;;  %v6911_v23 = vsub.f32 %v17675_v60, %v17872_v25  ;;  %v6912_v30 = vsub.f32 %v17687_v35, %v17872_v25  ;;  %v17926_v60 = vld [vmem:[%s19623_s6] ss:$0 sm:$0xff]  ;;  %v6913_v49 = vsub.f32 %v17707_v9, %v17872_v25 }
 0x910   : > { %11611 = vmatprep.mubr.msk.f32.mxu1 %vm1231_vm3, %v19924_v18  ;;  %v6914_v37 = vsub.f32 %v17722_v36, %v17872_v25 }
 0x913   : > { %7240 = vmatmul.mubr.f32.gmra.mrb[208].mxu1 %v19925_v4  ;;  %v19935_v4 = vld [vmem:[#allocation29_spill] sm:$0xff] }
 0x915   : > { %v6859_v2 = vpop.f32.mrb[188].mxu1 }
 0x916   : > { %v6864_v41 = vsub.f32 %v6859_v2, %v6863_v52  ;;  %v13078_v12 = vpop.f32.mrb[189].mxu1  ;;  %v19926_v2 = vunpack.c.h.bf16 %v17373_v48 }
 0x918   : > { %v6865_v34 = vadd.f32 1e-05, %v6864_v41  ;;  %11612 = vmatprep.mubr.msk.f32.mxu1 %vm1231_vm3, %v19926_v2 }
 0x919   : > { %7245 = vmatmul.mubr.f32.gmra.mrb[210].mxu1 %v19927_v44 }
 0x91a   : > { %14114 = vrsqrt.f32 %v6865_v34 }
 0x924   : > { %v14115_v56 = vpop.eup %14114 }
 0x925   : > { %v6923_v11 = vrot.slane %v14115_v56, %v19866_v54 }
 0x927   : > { %v6924_v13 = vcombine.high %v6923_v11, %v6923_v11  ;;  %v6931_v29 = vrot.slane %v6923_v11, %v19866_v54  ;;  %v19928_v11 = vunpack.c.h.bf16 %v17385_v21 }
 0x929   : > { %v6938_v51 = vrot.slane %v6924_v13, %v19866_v54  ;;  %v17899_v31 = vrot.slane %v6931_v29, %v19867_v43  ;;  %11613 = vmatprep.mubr.msk.f32.mxu1 %vm1231_vm3, %v19928_v11  ;;  %v11654_v11 = vld [vmem:[%s19626_s9 + $0x40] sm:$0xff] }
 0x92b   : > { %v17918_v59 = vrot.slane %v6938_v51, %v19867_v43  ;;  %v6950_v8 = vmul.f32 %v17899_v31, %v6901_v46  ;;  %v6949_v40 = vmul.f32 %v17899_v31, %v6900_v28  ;;  %v6952_v10 = vmul.f32 %v17899_v31, %v6903_v5 }
 0x92c   : > { %v6951_v35 = vmul.f32 %v17899_v31, %v6902_v47  ;;  %v6954_v15 = vmul.f32 %v17899_v31, %v6905_v1  ;;  %v6953_v7 = vmul.f32 %v17899_v31, %v6904_v58  ;;  %v6955_v61 = vmul.f32 %v17899_v31, %v6906_v20 }
 0x92d   : > { %v6972_v3 = vmul.f32 %v17915_v19, %v6950_v8  ;;  %v6971_v62 = vmul.f32 %v17915_v19, %v6949_v40  ;;  %v6974_v52 = vmul.f32 %v17915_v19, %v6952_v10  ;;  %v6958_v38 = vmul.f32 %v17918_v59, %v6909_v63 }
 0x92e   : > { %v6973_v39 = vmul.f32 %v17915_v19, %v6951_v35  ;;  %v6976_v41 = vmul.f32 %v17915_v19, %v6954_v15  ;;  %v6975_v12 = vmul.f32 %v17915_v19, %v6953_v7  ;;  %v6977_v0 = vmul.f32 %v17915_v19, %v6955_v61  ;;  %v19933_v7 = vld [vmem:[#allocation21_spill] sm:$0xff] }
 0x92f   : > { %v6994_v34 = vadd.f32 %v17926_v60, %v6972_v3  ;;  %v6993_v53 = vadd.f32 %v17926_v60, %v6971_v62  ;;  %v6996_v57 = vadd.f32 %v17926_v60, %v6974_v52  ;;  %v6980_v26 = vmul.f32 %v17915_v19, %v6958_v38 }
 0x930   : > { %v6995_v24 = vadd.f32 %v17926_v60, %v6973_v39  ;;  %v6998_v33 = vadd.f32 %v17926_v60, %v6976_v41  ;;  %v6997_v6 = vadd.f32 %v17926_v60, %v6975_v12  ;;  %v6999_v45 = vadd.f32 %v17926_v60, %v6977_v0 }
 0x931   : > { %v11586_v42 = vmul.f32 -1.442695, %v6994_v34  ;;  %v11585_v56 = vmul.f32 -1.442695, %v6993_v53  ;;  %v11588_v16 = vmul.f32 -1.442695, %v6996_v57  ;;  %v7002_v28 = vadd.f32 %v17926_v60, %v6980_v26 }
 0x932   : > { %v11587_v9 = vmul.f32 -1.442695, %v6995_v24  ;;  %v6957_v46 = vmul.f32 %v17918_v59, %v6908_v14  ;;  %v11590_v48 = vmul.f32 -1.442695, %v6998_v33  ;;  %v11589_v13 = vmul.f32 -1.442695, %v6997_v6 }
 0x933   : > { %14116 = vpow2.f32 %v11586_v42  ;;  %v6960_v29 = vmul.f32 %v17918_v59, %v6911_v23  ;;  %v6959_v47 = vmul.f32 %v17918_v59, %v6910_v27  ;;  %v6962_v5 = vmul.f32 %v17918_v59, %v6913_v49  ;;  %v19931_v27 = vld [vmem:[#allocation28_spill] sm:$0xff] }
 0x934   : > { %14118 = vpow2.f32 %v11585_v56  ;;  %v6979_v36 = vmul.f32 %v17915_v19, %v6957_v46  ;;  %v19929_v58 = vunpack.c.l.bf16 %v17385_v21  ;;  %v6961_v50 = vmul.f32 %v17918_v59, %v6912_v30 }
 0x935   : > { %14120 = vpow2.f32 %v11588_v16  ;;  %v6982_v1 = vmul.f32 %v17915_v19, %v6960_v29  ;;  %v6963_v20 = vmul.f32 %v17918_v59, %v6914_v37  ;;  %v19930_v14 = vunpack.c.h.bf16 %v17397_v32 }
 0x936   : > { %7250 = vmatmul.mubr.f32.gmra.mrb[212].mxu1 %v19929_v58  ;;  %14122 = vpow2.f32 %v11587_v9  ;;  %v11591_v51 = vmul.f32 -1.442695, %v6999_v45  ;;  %v7001_v18 = vadd.f32 %v17926_v60, %v6979_v36  ;;  %v6981_v63 = vmul.f32 %v17915_v19, %v6959_v47  ;;  %v11655_v9 = vld [vmem:[%s19626_s9 + $0x48] sm:$0xff]  ;;  %v19940_v45 = vld [vmem:[#allocation27_spill] sm:$0xff]  ;;  %v7454_v58 = vld [vmem:[%s19626_s9 + $0x18] sm:$0xff] }
 0x937   : > { %11614 = vmatprep.mubr.msk.f32.mxu1 %vm1231_vm3, %v19930_v14  ;;  %14124 = vpow2.f32 %v11590_v48  ;;  %v7004_v21 = vadd.f32 %v17926_v60, %v6982_v1  ;;  %v6907_v23 = vsub.f32 %v19931_v27, %v17867_v17  ;;  %v11594_v30 = vmul.f32 -1.442695, %v7002_v28  ;;  %v11656_v1 = vld [vmem:[%s19626_s9 + $0x50] sm:$0xff]  ;;  %v7435_v14 = vld [vmem:[#allocation2] sm:$0xff] }
 0x938   : > { %14126 = vpow2.f32 %v11589_v13  ;;  %v7003_v8 = vadd.f32 %v17926_v60, %v6981_v63  ;;  %v6984_v40 = vmul.f32 %v17915_v19, %v6962_v5  ;;  %v19932_v10 = vunpack.c.l.bf16 %v17397_v32  ;;  %v7453_v5 = vld [vmem:[%s19626_s9 + $0x10] sm:$0xff]  ;;  %13087 = vmatprep.mubr.msk.f32.mxu0 %vm892_vm2, %v7435_v14 }
 0x939   : > { %v11593_v35 = vmul.f32 -1.442695, %v7001_v18  ;;  %v6983_v15 = vmul.f32 %v17915_v19, %v6961_v50  ;;  %v19934_v61 = vunpack.c.h.bf16 %v19933_v7  ;;  %v6915_v3 = vsub.f32 %v19935_v4, %v17872_v25  ;;  %v19937_v25 = vld [vmem:[#allocation24_spill] sm:$0xff] }
 0x93a   : > { %7255 = vmatmul.mubr.f32.gmra.mrb[214].mxu1 %v19932_v10  ;;  %14128 = vpow2.f32 %v11591_v51  ;;  %v11596_v17 = vmul.f32 -1.442695, %v7004_v21  ;;  %v6956_v62 = vmul.f32 %v17899_v31, %v6907_v23  ;;  %v11595_v52 = vmul.f32 -1.442695, %v7003_v8  ;;  %v7893_v51 = vld [vmem:[#allocation2 + $0x2] sm:$0xff]  ;;  %v7292_v23 = vpop.permute.xlu1 %7291  ;;  %v7294_v10 = vpop.permute.xlu0 %7293 }
 0x93b   : > { %11615 = vmatprep.mubr.msk.f32.mxu1 %vm1231_vm3, %v19934_v61  ;;  %v6964_v38 = vmul.f32 %v17918_v59, %v6915_v3  ;;  %14130 = vpow2.f32 %v11594_v30  ;;  %v7006_v32 = vadd.f32 %v17926_v60, %v6984_v40  ;;  %v19936_v2 = vunpack.c.l.bf16 %v19933_v7 }
 0x93c   : > { %v6978_v39 = vmul.f32 %v17915_v19, %v6956_v62  ;;  %14132 = vpow2.f32 %v11593_v35  ;;  %v7005_v12 = vadd.f32 %v17926_v60, %v6983_v15  ;;  %v19938_v0 = vunpack.c.h.bf16 %v19937_v25 }
 0x93d   : > { %v14117_v41 = vpop.eup %14116  ;;  %v6986_v31 = vmul.f32 %v17915_v19, %v6964_v38  ;;  %14134 = vpow2.f32 %v11596_v17  ;;  %v11598_v6 = vmul.f32 -1.442695, %v7006_v32  ;;  %v19939_v44 = vunpack.c.l.bf16 %v19937_v25 }
 0x93e   : > { %7260 = vmatmul.mubr.f32.gmra.mrb[216].mxu1 %v19936_v2  ;;  %v14119_v34 = vpop.eup %14118  ;;  %v7058_v59 = vadd.f32 1.0, %v14117_v41  ;;  %v18003_v53 = vadd.f32 %v17926_v60, %v6978_v39  ;;  %14136 = vpow2.f32 %v11595_v52  ;;  %v11597_v56 = vmul.f32 -1.442695, %v7005_v12  ;;  %v7296_v52 = vpop.permute.xlu1 %7295 }
 0x93f   : > { %11616 = vmatprep.mubr.msk.f32.mxu1 %vm1231_vm3, %v19938_v0  ;;  %v14121_v57 = vpop.eup %14120  ;;  %v7057_v26 = vadd.f32 1.0, %v14119_v34  ;;  %v18006_v49 = vadd.f32 %v17926_v60, %v6986_v31  ;;  %v6985_v16 = vmul.f32 %v17915_v19, %v6963_v20  ;;  %v19941_v28 = vunpack.c.h.bf16 %v19940_v45  ;;  %v7298_v38 = vpop.permute.xlu0 %7297 }
 0x940   : > { %v14123_v24 = vpop.eup %14122  ;;  %14138 = vrcp.f32 %v7058_v59  ;;  %v7060_v33 = vadd.f32 1.0, %v14121_v57  ;;  %v13745_v13 = vpack.c.bf16 %v11655_v9, %v11654_v11  ;;  %v19942_v19 = vunpack.c.l.bf16 %v19940_v45  ;;  %v19953_v11 = vld [vmem:[#allocation13_spill] sm:$0xff] }
 0x941   : > { %v14125_v37 = vpop.eup %14124  ;;  %14140 = vrcp.f32 %v7057_v26  ;;  %v7059_v42 = vadd.f32 1.0, %v14123_v24  ;;  %v7007_v47 = vadd.f32 %v17926_v60, %v6985_v16  ;;  %v13733_v20 = vpack.c.bf16 %v7454_v58, %v7453_v5  ;;  %v11657_v60 = vld [vmem:[%s19626_s9 + $0x58] sm:$0xff] }
 0x942   : > { %7265 = vmatmul.mubr.f32.gmra.mrb[218].mxu1 %v19939_v44  ;;  %v14127_v46 = vpop.eup %14126  ;;  %14142 = vrcp.f32 %v7060_v33  ;;  %v7062_v48 = vadd.f32 1.0, %v14125_v37  ;;  %13746 = vmatprep.subr.bf16.mxu1 %v13745_v13  ;;  %v13749_v21 = vpack.c.bf16 %v11657_v60, %v11656_v1  ;;  %v7300_v31 = vpop.permute.xlu1 %7299  ;;  %v11634_v1 = vld [vmem:[%s19626_s9 + $0x20] sm:$0xff] }
 0x943   : > { %11617 = vmatprep.mubr.msk.f32.mxu1 %vm1231_vm3, %v19941_v28  ;;  %14144 = vrcp.f32 %v7059_v42  ;;  %v7061_v29 = vadd.f32 1.0, %v14127_v46  ;;  %13748 = vmatpush3.bf16.msra.mxu1 %v13745_v13  ;;  %v11599_v8 = vmul.f32 -1.442695, %v7007_v47  ;;  %v7302_v34 = vpop.permute.xlu0 %7301 }
 0x944   : > { %v14129_v36 = vpop.eup %14128  ;;  %14146 = vpow2.f32 %v11598_v6  ;;  %13734 = vmatprep.subr.bf16.mxu0 %v13733_v20  ;;  %13750 = vmatprep.subr.bf16.mxu1 %v13749_v21 }
 0x945   : > { %14148 = vpow2.f32 %v11597_v56  ;;  %v14131_v50 = vpop.eup %14130  ;;  %v7063_v63 = vadd.f32 1.0, %v14129_v36  ;;  %13736 = vmatpush3.bf16.msra.mxu0 %v13733_v20  ;;  %v11694_v20 = vld [vmem:[%s19626_s9 + $0x80] sm:$0xff] }
 0x946   : > { %7270 = vmatmul.mubr.f32.gmra.mrb[220].mxu1 %v19942_v19  ;;  %14150 = vrcp.f32 %v7062_v48  ;;  %v14133_v18 = vpop.eup %14132  ;;  %v7066_v35 = vadd.f32 1.0, %v14131_v50  ;;  %v7304_v6 = vpop.permute.xlu1 %7303  ;;  %v11635_v50 = vld [vmem:[%s19626_s9 + $0x28] sm:$0xff] }
 0x947   : > { %14152 = vrcp.f32 %v7061_v29  ;;  %13151 = vmatprep.mubr.msk.f32.mxu1 %vm892_vm2, %v7893_v51  ;;  %v14135_v27 = vpop.eup %14134  ;;  %13752 = vmatpush3.bf16.msra.mxu1 %v13749_v21  ;;  %v7065_v61 = vadd.f32 1.0, %v14133_v18  ;;  %v7308_v45 = vpop.permute.xlu0 %7307  ;;  %v13737_v14 = vpack.c.bf16 %v11635_v50, %v11634_v1  ;;  %v11695_v51 = vld [vmem:[%s19626_s9 + $0x88] sm:$0xff] }
 0x948   : > { %v14137_v30 = vpop.eup %14136  ;;  %14154 = vrcp.f32 %v7063_v63  ;;  %v7068_v32 = vadd.f32 1.0, %v14135_v27  ;;  %v13761_v21 = vpack.c.bf16 %v11695_v51, %v11694_v20  ;;  %v11735_v50 = vld [vmem:[%s19626_s9 + $0xc8] sm:$0xff] }
 0x949   : > { %14156 = vpow2.f32 %v11599_v8  ;;  %v7067_v41 = vadd.f32 1.0, %v14137_v30  ;;  %13738 = vmatprep.subr.bf16.mxu0 %v13737_v14 }
 0x94a   : > { %v18037_v40 = vpop.eup %14138  ;;  %14158 = vrcp.f32 %v7066_v35  ;;  %v7310_v9 = vpop.permute.xlu1 %7309  ;;  %13762 = vmatprep.subr.bf16.mxu1 %v13761_v21  ;;  %v11592_v35 = vmul.f32 -1.442695, %v18003_v53  ;;  %v11636_v53 = vld [vmem:[%s19626_s9 + $0x30] sm:$0xff] }
 0x94b   : > { %19943 = vst [vmem:[#allocation28_spill] sm:$0xff] %v18037_v40  ;;  %v18039_v15 = vpop.eup %14140  ;;  %v7340_v7 = vmul.f32 %v18037_v40, %v7294_v10  ;;  %14160 = vrcp.f32 %v7065_v61  ;;  %v7312_v36 = vpop.permute.xlu0 %7311  ;;  %v19959_v10 = vld [vmem:[#allocation22_spill] sm:$0xff]  ;;  %v11600_v61 = vmul.f32 -1.442695, %v18006_v49  ;;  %v11637_v49 = vld [vmem:[%s19626_s9 + $0x38] sm:$0xff] }
 0x94c   : > { %19944 = vst [vmem:[#allocation21_spill] sm:$0xff] %v18039_v15  ;;  %v18042_v4 = vpop.eup %14142  ;;  %v7339_v3 = vmul.f32 %v18039_v15, %v7292_v23  ;;  %14162 = vrcp.f32 %v7068_v32 }
 0x94d   : > { %19945 = vst [vmem:[#allocation29_spill] sm:$0xff] %v18042_v4  ;;  %v18045_v17 = vpop.eup %14144  ;;  %7373 = vrot.lane.b32.xlu0 %v7340_v7, %s14278_s24  ;;  %v7342_v39 = vmul.f32 %v18042_v4, %v7298_v38  ;;  %14164 = vrcp.f32 %v7067_v41 }
 0x94e   : > { %19946 = vst [vmem:[#allocation24_spill] sm:$0xff] %v18045_v17  ;;  %v14147_v62 = vpop.eup %14146  ;;  %7371 = vrot.lane.b32.xlu1 %v7339_v3, %s14278_s24  ;;  %v7341_v25 = vmul.f32 %v18045_v17, %v7296_v52  ;;  %v7314_v29 = vpop.permute.xlu1 %7313 }
 0x94f   : > { %v14149_v2 = vpop.eup %14148  ;;  %v7070_v59 = vadd.f32 1.0, %v14147_v62  ;;  %v7316_v18 = vpop.permute.xlu0 %7315 }
 0x950   : > { %v18050_v12 = vpop.eup %14150  ;;  %v7069_v26 = vadd.f32 1.0, %v14149_v2  ;;  %v11696_v2 = vld [vmem:[%s19626_s9 + $0x90] sm:$0xff] }
 0x951   : > { %19947 = vst [vmem:[#allocation27_spill] sm:$0xff] %v18050_v12  ;;  %v18053_v0 = vpop.eup %14152  ;;  %7377 = vrot.lane.b32.xlu0 %v7342_v39, %s14278_s24  ;;  %v7344_v57 = vmul.f32 %v18050_v12, %v7302_v34  ;;  %14166 = vrcp.f32 %v7070_v59  ;;  %v11697_v39 = vld [vmem:[%s19626_s9 + $0x98] sm:$0xff] }
 0x952   : > { %19948 = vst [vmem:[#allocation30_spill] sm:$0xff] %v18053_v0  ;;  %7375 = vrot.lane.b32.xlu1 %v7341_v25, %s14278_s24  ;;  %v7343_v24 = vmul.f32 %v18053_v0, %v7300_v31  ;;  %v18059_v33 = vpop.eup %14154  ;;  %14168 = vrcp.f32 %v7069_v26  ;;  %v7318_v60 = vpop.permute.xlu1 %7317  ;;  %v13741_v26 = vpack.c.bf16 %v11637_v49, %v11636_v53  ;;  %v11754_v0 = vld [vmem:[%s19626_s9 + $0xe0] sm:$0xff] }
 0x953   : > { %19949 = vst [vmem:[#allocation31_spill] sm:$0xff] %v18059_v33  ;;  %v14157_v44 = vpop.eup %14156  ;;  %v7345_v42 = vmul.f32 %v18059_v33, %v7304_v6  ;;  %v7320_v30 = vpop.permute.xlu0 %7319  ;;  %v11674_v6 = vld [vmem:[%s19626_s9 + $0x60] sm:$0xff] }
 0x954   : > { %v18063_v37 = vpop.eup %14158  ;;  %v7071_v56 = vadd.f32 1.0, %v14157_v44  ;;  %v11675_v44 = vld [vmem:[%s19626_s9 + $0x68] sm:$0xff] }
 0x955   : > { %7381 = vrot.lane.b32.xlu0 %v7344_v57, %s14278_s24  ;;  %19950 = vst [vmem:[#allocation32_spill] sm:$0xff] %v18063_v37  ;;  %v18066_v16 = vpop.eup %14160  ;;  %v7348_v28 = vmul.f32 %v18063_v37, %v7310_v9  ;;  %v18165_v1 = vpack.c.bf16 %v11675_v44, %v11674_v6 }
 0x956   : > { %7379 = vrot.lane.b32.xlu1 %v7343_v24, %s14278_s24  ;;  %19951 = vst [vmem:[#allocation33_spill] sm:$0xff] %v18066_v16  ;;  %14170 = vrcp.f32 %v7071_v56  ;;  %v18072_v46 = vpop.eup %14162  ;;  %v7347_v48 = vmul.f32 %v18066_v16, %v7308_v45  ;;  %v13765_v24 = vpack.c.bf16 %v11697_v39, %v11696_v2 }
 0x957   : > { %19954 = vst [vmem:[#allocation34_spill] sm:$0xff] %v18072_v46  ;;  %v18075_v13 = vpop.eup %14164  ;;  %v7350_v19 = vmul.f32 %v18072_v46, %v7314_v29  ;;  %14172 = vpow2.f32 %v11592_v35  ;;  %v7901_v35 = vld [vmem:[#allocation2 + $0xa2] sm:$0xff] }
 0x958   : > { %19955 = vst [vmem:[#allocation35_spill] sm:$0xff] %v18075_v13  ;;  %v7349_v5 = vmul.f32 %v18075_v13, %v7312_v36  ;;  %14174 = vpow2.f32 %v11600_v61 }
 0x959   : > { %7305 = vrot.lane.b32.xlu0 %v19953_v11, %s19952_s19 }
 0x95a   : > { %7383 = vrot.lane.b32.xlu1 %v7345_v42, %s14278_s24 }
 0x95b   : > { %v18080_v47 = vpop.eup %14166 }
 0x95c   : > { %19956 = vst [vmem:[#allocation36_spill] sm:$0xff] %v18080_v47  ;;  %v18083_v58 = vpop.eup %14168  ;;  %v7352_v63 = vmul.f32 %v18080_v47, %v7318_v60 }
 0x95d   : > { %7389 = vrot.lane.b32.xlu0 %v7348_v28, %s14278_s24  ;;  %19957 = vst [vmem:[#allocation37_spill] sm:$0xff] %v18083_v58  ;;  %v7351_v27 = vmul.f32 %v18083_v58, %v7316_v18 }
 0x95e   : > { %7387 = vrot.lane.b32.xlu1 %v7347_v48, %s14278_s24  ;;  %v11734_v48 = vld [vmem:[%s19626_s9 + $0xc0] sm:$0xff] }
 0x95f   : > { %v18184_v18 = vpack.c.bf16 %v11735_v50, %v11734_v48  ;;  %v11676_v50 = vld [vmem:[%s19626_s9 + $0x70] sm:$0xff] }
 0x960   : > { %v18101_v23 = vpop.eup %14170 }
 0x961   : > { %7393 = vrot.lane.b32.xlu0 %v7350_v19, %s14278_s24  ;;  %19958 = vst [vmem:[#allocation38_spill] sm:$0xff] %v18101_v23  ;;  %v7353_v8 = vmul.f32 %v18101_v23, %v7320_v30  ;;  %v14173_v7 = vpop.eup %14172 }
 0x962   : > { %7391 = vrot.lane.b32.xlu1 %v7349_v5, %s14278_s24  ;;  %v7064_v3 = vadd.f32 1.0, %v14173_v7  ;;  %v14175_v42 = vpop.eup %14174 }
 0x963   : > { %v7072_v20 = vadd.f32 1.0, %v14175_v42 }
 0x964   : > { %14176 = vrcp.f32 %v7064_v3 }
 0x965   : > { %7397 = vrot.lane.b32.xlu0 %v7352_v63, %s14278_s24  ;;  %14178 = vrcp.f32 %v7072_v20 }
 0x966   : > { %7395 = vrot.lane.b32.xlu1 %v7351_v27, %s14278_s24 }
 0x969   : > { %7321 = vrot.lane.b32.xlu0 %v19959_v10, %s19952_s19 }
 0x96a   : > { %7399 = vrot.lane.b32.xlu1 %v7353_v8, %s14278_s24  ;;  %v7443_v8 = vld [vmem:[#allocation2 + $0xa0] sm:$0xff] }
 0x96e   : > { %v18151_v56 = vpop.eup %14176 }
 0x96f   : > { %19960 = vst [vmem:[#allocation39_spill] sm:$0xff] %v18151_v56  ;;  %v18232_v2 = vpop.eup %14178 }
 0x970   : > { %19961 = vst [vmem:[#allocation40_spill] sm:$0xff] %v18232_v2 }
 0x9bf   : > { %v7374_v62 = vpop.permute.xlu0 %7373 }
 0x9c0   : > { %7420 = vst.msk [vmem:[#allocation2 + $0x21] sm:$0xff] %vm892_vm2, %v7374_v62  ;;  %v7372_v52 = vpop.permute.xlu1 %7371 }
 0x9c1   : > { %7419 = vst.msk [vmem:[#allocation2 + $0x11] sm:$0xff] %vm892_vm2, %v7372_v52 }
 0x9c3   : > { %v7378_v38 = vpop.permute.xlu0 %7377 }
 0x9c4   : > { %7422 = vst.msk [vmem:[#allocation2 + $0x41] sm:$0xff] %vm892_vm2, %v7378_v38  ;;  %v7376_v32 = vpop.permute.xlu1 %7375 }
 0x9c5   : > { %7421 = vst.msk [vmem:[#allocation2 + $0x31] sm:$0xff] %vm892_vm2, %v7376_v32 }
 0x9c7   : > { %v7382_v41 = vpop.permute.xlu0 %7381  ;;  %v18127_v25 = vld [vmem:[#allocation2 + $0x20] sm:$0xff] }
 0x9c8   : > { %v18129_v31 = vld [vmem:[#allocation2 + $0x22] sm:$0xff]  ;;  %7424 = vst.msk [vmem:[#allocation2 + $0x61] sm:$0xff] %vm892_vm2, %v7382_v41  ;;  %v7380_v34 = vpop.permute.xlu1 %7379  ;;  %v18132_v59 = vld [vmem:[#allocation2 + $0x10] sm:$0xff] }
 0x9c9   : > { %v18134_v57 = vld [vmem:[#allocation2 + $0x12] sm:$0xff]  ;;  %7423 = vst.msk [vmem:[#allocation2 + $0x51] sm:$0xff] %vm892_vm2, %v7380_v34  ;;  %13088 = vmatmul.mubr.msk.f32.vlgmr.msra.gmra.mrb[206].mxu0 %vm892_vm2, %v18132_v59 }
 0x9ca   : > { %13152 = vmatmul.mubr.msk.f32.vlgmr.msra.gmra.mrb[222].mxu1 %vm892_vm2, %v18134_v57  ;;  %13090 = vmatprep.mubr.msk.f32.mxu0 %vm892_vm2, %v18127_v25 }
 0x9cb   : > { %13154 = vmatprep.mubr.msk.f32.mxu1 %vm892_vm2, %v18129_v31  ;;  %v7306_v9 = vpop.permute.xlu0 %7305  ;;  %v18153_v45 = vld [vmem:[#allocation2 + $0x40] sm:$0xff]  ;;  %13740 = vmatpush3.bf16.msra.mxu0 %v13737_v14 }
 0x9cc   : > { %v18155_v28 = vld [vmem:[#allocation2 + $0x42] sm:$0xff]  ;;  %13764 = vmatpush3.bf16.msra.mxu1 %v13761_v21  ;;  %v7346_v29 = vmul.f32 %v18151_v56, %v7306_v9  ;;  %v7384_v36 = vpop.permute.xlu1 %7383  ;;  %v18161_v19 = vld [vmem:[#allocation2 + $0x30] sm:$0xff]  ;;  %13742 = vmatprep.subr.bf16.mxu0 %v13741_v26 }
 0x9cd   : > { %v18163_v5 = vld [vmem:[#allocation2 + $0x32] sm:$0xff]  ;;  %13766 = vmatprep.subr.bf16.mxu1 %v13765_v24  ;;  %7425 = vst.msk [vmem:[#allocation2 + $0x71] sm:$0xff] %vm892_vm2, %v7384_v36  ;;  %13091 = vmatmul.mubr.msk.f32.gmra.mrb[208].mxu0 %vm892_vm2, %v18161_v19  ;;  %v7664_v36 = vld [vmem:[#allocation2 + $0x1] sm:$0xff] }
 0x9ce   : > { %13155 = vmatmul.mubr.msk.f32.gmra.mrb[224].mxu1 %vm892_vm2, %v18163_v5  ;;  %13093 = vmatprep.mubr.msk.f32.mxu0 %vm892_vm2, %v18153_v45 }
 0x9cf   : > { %13157 = vmatprep.mubr.msk.f32.mxu1 %vm892_vm2, %v18155_v28  ;;  %7385 = vrot.lane.b32.xlu1 %v7346_v29, %s14278_s24  ;;  %v7390_v60 = vpop.permute.xlu0 %7389  ;;  %v18180_v14 = vld [vmem:[#allocation2 + $0x60] sm:$0xff] }
 0x9d0   : > { %v18182_v51 = vld [vmem:[#allocation2 + $0x62] sm:$0xff]  ;;  %13744 = vmatpush3.bf16.msra.mxu0 %v13741_v26  ;;  %7428 = vst.msk [vmem:[#allocation2 + $0xc1] sm:$0xff] %vm892_vm2, %v7390_v60  ;;  %v7388_v63 = vpop.permute.xlu1 %7387  ;;  %v18187_v21 = vld [vmem:[#allocation2 + $0x50] sm:$0xff]  ;;  %13768 = vmatpush3.bf16.msra.mxu1 %v13765_v24 }
 0x9d1   : > { %v18189_v27 = vld [vmem:[#allocation2 + $0x52] sm:$0xff]  ;;  %13754 = vmatprep.subr.bf16.mxu0 %v18165_v1  ;;  %7427 = vst.msk [vmem:[#allocation2 + $0xb1] sm:$0xff] %vm892_vm2, %v7388_v63  ;;  %13094 = vmatmul.mubr.msk.f32.gmra.mrb[210].mxu0 %vm892_vm2, %v18187_v21 }
 0x9d2   : > { %13158 = vmatmul.mubr.msk.f32.gmra.mrb[226].mxu1 %vm892_vm2, %v18189_v27  ;;  %13096 = vmatprep.mubr.msk.f32.mxu0 %vm892_vm2, %v18180_v14  ;;  %v11677_v63 = vld [vmem:[%s19626_s9 + $0x78] sm:$0xff] }
 0x9d3   : > { %13160 = vmatprep.mubr.msk.f32.mxu1 %vm892_vm2, %v18182_v51  ;;  %v7394_v30 = vpop.permute.xlu0 %7393  ;;  %13778 = vmatprep.subr.bf16.mxu1 %v18184_v18 }
 0x9d4   : > { %7430 = vst.msk [vmem:[#allocation2 + $0xe1] sm:$0xff] %vm892_vm2, %v7394_v30  ;;  %v7392_v7 = vpop.permute.xlu1 %7391  ;;  %v18203_v61 = vld [vmem:[#allocation2 + $0x70] sm:$0xff] }
 0x9d5   : > { %v18205_v3 = vld [vmem:[#allocation2 + $0x72] sm:$0xff]  ;;  %7429 = vst.msk [vmem:[#allocation2 + $0xd1] sm:$0xff] %vm892_vm2, %v7392_v7  ;;  %13097 = vmatmul.mubr.msk.f32.gmra.mrb[212].mxu0 %vm892_vm2, %v18203_v61  ;;  %v18291_v7 = vld [vmem:[#allocation2 + $0x21] sm:$0xff] }
 0x9d6   : > { %13161 = vmatmul.mubr.msk.f32.gmra.mrb[228].mxu1 %vm892_vm2, %v18205_v3  ;;  %13099 = vmatprep.mubr.msk.f32.mxu0 %vm892_vm2, %v7443_v8  ;;  %v8351_v30 = vld [vmem:[#allocation2 + $0x11] sm:$0xff] }
 0x9d7   : > { %13163 = vmatprep.mubr.msk.f32.mxu1 %vm892_vm2, %v7901_v35  ;;  %v7398_v62 = vpop.permute.xlu0 %7397  ;;  %v18214_v52 = vld [vmem:[#allocation2 + $0xc0] sm:$0xff]  ;;  %v11736_v8 = vld [vmem:[%s19626_s9 + $0xd0] sm:$0xff]  ;;  %v11737_v35 = vld [vmem:[%s19626_s9 + $0xd8] sm:$0xff] }
 0x9d8   : > { %v18216_v38 = vld [vmem:[#allocation2 + $0xc2] sm:$0xff]  ;;  %7432 = vst.msk [vmem:[#allocation2 + $0x101] sm:$0xff] %vm892_vm2, %v7398_v62  ;;  %v7396_v32 = vpop.permute.xlu1 %7395  ;;  %v18219_v53 = vld [vmem:[#allocation2 + $0xb0] sm:$0xff]  ;;  %v13757_v62 = vpack.c.bf16 %v11677_v63, %v11676_v50 }
 0x9d9   : > { %v18221_v49 = vld [vmem:[#allocation2 + $0xb2] sm:$0xff]  ;;  %7431 = vst.msk [vmem:[#allocation2 + $0xf1] sm:$0xff] %vm892_vm2, %v7396_v32  ;;  %13100 = vmatmul.mubr.msk.f32.gmra.mrb[214].mxu0 %vm892_vm2, %v18219_v53  ;;  %v11714_v32 = vld [vmem:[%s19626_s9 + $0xa0] sm:$0xff]  ;;  %v11775_v50 = vld [vmem:[%s19626_s9 + $0x108] sm:$0xff] }
 0x9da   : > { %13164 = vmatmul.mubr.msk.f32.gmra.mrb[230].mxu1 %vm892_vm2, %v18221_v49  ;;  %13102 = vmatprep.mubr.msk.f32.mxu0 %vm892_vm2, %v18214_v52  ;;  %v18316_v63 = vld [vmem:[#allocation2 + $0x41] sm:$0xff] }
 0x9db   : > { %13166 = vmatprep.mubr.msk.f32.mxu1 %vm892_vm2, %v18216_v38  ;;  %v7322_v39 = vpop.permute.xlu0 %7321  ;;  %v18234_v41 = vld [vmem:[#allocation2 + $0xe0] sm:$0xff] }
 0x9dc   : > { %v18236_v34 = vld [vmem:[#allocation2 + $0xe2] sm:$0xff]  ;;  %v7354_v26 = vmul.f32 %v18232_v2, %v7322_v39  ;;  %v7400_v24 = vpop.permute.xlu1 %7399  ;;  %v18239_v6 = vld [vmem:[#allocation2 + $0xd0] sm:$0xff] }
 0x9dd   : > { %v18241_v44 = vld [vmem:[#allocation2 + $0xd2] sm:$0xff]  ;;  %7433 = vst.msk [vmem:[#allocation2 + $0x111] sm:$0xff] %vm892_vm2, %v7400_v24  ;;  %13103 = vmatmul.mubr.msk.f32.gmra.mrb[216].mxu0 %vm892_vm2, %v18239_v6  ;;  %v11715_v39 = vld [vmem:[%s19626_s9 + $0xa8] sm:$0xff] }
 0x9de   : > { %13167 = vmatmul.mubr.msk.f32.gmra.mrb[232].mxu1 %vm892_vm2, %v18241_v44  ;;  %13105 = vmatprep.mubr.msk.f32.mxu0 %vm892_vm2, %v18234_v41  ;;  %v18302_v24 = vld [vmem:[#allocation2 + $0x31] sm:$0xff]  ;;  %v18360_v10 = vld [vmem:[#allocation2 + $0xe1] sm:$0xff] }
 0x9df   : > { %13169 = vmatprep.mubr.msk.f32.mxu1 %vm892_vm2, %v18236_v34  ;;  %7401 = vrot.lane.b32.xlu0 %v7354_v26, %s14278_s24  ;;  %v18253_v42 = vld [vmem:[#allocation2 + $0x100] sm:$0xff]  ;;  %v13781_v26 = vpack.c.bf16 %v11737_v35, %v11736_v8  ;;  %v18324_v35 = vld [vmem:[#allocation2 + $0x51] sm:$0xff] }
 0x9e0   : > { %v18255_v9 = vld [vmem:[#allocation2 + $0x102] sm:$0xff]  ;;  %v18257_v48 = vld [vmem:[#allocation2 + $0xf0] sm:$0xff] }
 0x9e1   : > { %v18259_v29 = vld [vmem:[#allocation2 + $0xf2] sm:$0xff]  ;;  %13106 = vmatmul.mubr.msk.f32.gmra.mrb[218].mxu0 %vm892_vm2, %v18257_v48 }
 0x9e2   : > { %13170 = vmatmul.mubr.msk.f32.gmra.mrb[234].mxu1 %vm892_vm2, %v18259_v29  ;;  %13108 = vmatprep.mubr.msk.f32.mxu0 %vm892_vm2, %v18253_v42  ;;  %v18368_v47 = vld [vmem:[#allocation2 + $0xf1] sm:$0xff] }
 0x9e3   : > { %13172 = vmatprep.mubr.msk.f32.mxu1 %vm892_vm2, %v18255_v9 }
 0x9e4   : > { %v18272_v20 = vld [vmem:[#allocation2 + $0x110] sm:$0xff] }
 0x9e5   : > { %v18274_v60 = vld [vmem:[#allocation2 + $0x112] sm:$0xff]  ;;  %13109 = vmatmul.mubr.msk.f32.gmra.mrb[220].mxu0 %vm892_vm2, %v18272_v20 }
 0x9e6   : > { %13173 = vmatmul.mubr.msk.f32.gmra.mrb[236].mxu1 %vm892_vm2, %v18274_v60  ;;  %13119 = vmatprep.mubr.msk.f32.mxu0 %vm892_vm2, %v7664_v36  ;;  %v11774_v36 = vld [vmem:[%s19626_s9 + $0x100] sm:$0xff]  ;;  %v18380_v37 = vld [vmem:[#allocation2 + $0x111] sm:$0xff] }
 0x9e7   : > { %13215 = vmatprep.mubr.msk.f32.mxu1 %vm892_vm2, %v8351_v30  ;;  %v18318_v8 = vpack.c.bf16 %v11775_v50, %v11774_v36  ;;  %v18356_v36 = vld [vmem:[#allocation2 + $0xd1] sm:$0xff] }
 0x9e9   : > { %13120 = vmatmul.mubr.msk.f32.vlgmr.msra.gmra.mrb[222].mxu0 %vm892_vm2, %v8351_v30  ;;  %v13769_v30 = vpack.c.bf16 %v11715_v39, %v11714_v32  ;;  %v18346_v32 = vld [vmem:[#allocation2 + $0xb1] sm:$0xff]  ;;  %v18350_v39 = vld [vmem:[#allocation2 + $0xc1] sm:$0xff] }
 0x9ea   : > { %13216 = vmatmul.mubr.msk.f32.vlgmr.msra.gmra.mrb[238].mxu1 %vm892_vm2, %v18291_v7  ;;  %13122 = vmatprep.mubr.msk.f32.mxu0 %vm892_vm2, %v18291_v7 }
 0x9eb   : > { %13218 = vmatprep.mubr.msk.f32.mxu1 %vm892_vm2, %v18302_v24  ;;  %13756 = vmatpush3.bf16.msra.mxu0 %v18165_v1  ;;  %v18330_v1 = vld [vmem:[#allocation2 + $0x61] sm:$0xff] }
 0x9ec   : > { %13780 = vmatpush3.bf16.msra.mxu1 %v18184_v18  ;;  %13758 = vmatprep.subr.bf16.mxu0 %v13757_v62  ;;  %v18337_v18 = vld [vmem:[#allocation2 + $0x71] sm:$0xff] }
 0x9ed   : > { %13782 = vmatprep.subr.bf16.mxu1 %v13781_v26  ;;  %13123 = vmatmul.mubr.msk.f32.gmra.mrb[224].mxu0 %vm892_vm2, %v18302_v24 }
 0x9ee   : > { %13219 = vmatmul.mubr.msk.f32.gmra.mrb[240].mxu1 %vm892_vm2, %v18316_v63  ;;  %13125 = vmatprep.mubr.msk.f32.mxu0 %vm892_vm2, %v18316_v63 }
 0x9ef   : > { %13221 = vmatprep.mubr.msk.f32.mxu1 %vm892_vm2, %v18324_v35  ;;  %13760 = vmatpush3.bf16.msra.mxu0 %v13757_v62  ;;  %v7672_v62 = vld [vmem:[#allocation2 + $0xa1] sm:$0xff] }
 0x9f0   : > { %13784 = vmatpush3.bf16.msra.mxu1 %v13781_v26  ;;  %13770 = vmatprep.subr.bf16.mxu0 %v13769_v30  ;;  %v18354_v26 = vpop.f32.mrb[190].mxu1 }
 0x9f1   : > { %13794 = vmatprep.subr.bf16.mxu1 %v18318_v8  ;;  %13126 = vmatmul.mubr.msk.f32.gmra.mrb[226].mxu0 %vm892_vm2, %v18324_v35  ;;  %v7198_v50 = vpop.f32.mrb[191].mxu1 }
 0x9f2   : > { %13222 = vmatmul.mubr.msk.f32.gmra.mrb[242].mxu1 %vm892_vm2, %v18330_v1  ;;  %13128 = vmatprep.mubr.msk.f32.mxu0 %vm892_vm2, %v18330_v1  ;;  %v18372_v50 = vld [vmem:[#allocation2 + $0x101] sm:$0xff] }
 0x9f3   : > { %13224 = vmatprep.mubr.msk.f32.mxu1 %vm892_vm2, %v18337_v18 }
 0x9f5   : > { %13129 = vmatmul.mubr.msk.f32.gmra.mrb[228].mxu0 %vm892_vm2, %v18337_v18 }
 0x9f6   : > { %13131 = vmatprep.mubr.msk.f32.mxu0 %vm892_vm2, %v7672_v62  ;;  %v18362_v62 = vpop.f32.mrb[192].mxu1 }
 0x9f7   : > { %v7203_v2 = vpop.f32.mrb[193].mxu1 }
 0x9f8   : > { %v18366_v23 = vpop.f32.mrb[194].mxu1  ;;  %v11716_v2 = vld [vmem:[%s19626_s9 + $0xb0] sm:$0xff] }
 0x9f9   : > { %13132 = vmatmul.mubr.msk.f32.gmra.mrb[230].mxu0 %vm892_vm2, %v18346_v32  ;;  %v7208_v58 = vpop.f32.mrb[195].mxu1 }
 0x9fa   : > { %13134 = vmatprep.mubr.msk.f32.mxu0 %vm892_vm2, %v18350_v39  ;;  %v18374_v11 = vpop.f32.mrb[196].mxu1  ;;  %v11717_v58 = vld [vmem:[%s19626_s9 + $0xb8] sm:$0xff] }
 0x9fb   : > { %v7213_v46 = vpop.f32.mrb[197].mxu1  ;;  %v13773_v33 = vpack.c.bf16 %v11717_v58, %v11716_v2 }
 0x9fc   : > { %v18378_v13 = vpop.f32.mrb[198].mxu1 }
 0x9fd   : > { %13135 = vmatmul.mubr.msk.f32.gmra.mrb[232].mxu0 %vm892_vm2, %v18356_v36  ;;  %v7218_v16 = vpop.f32.mrb[199].mxu1 }
 0x9fe   : > { %13137 = vmatprep.mubr.msk.f32.mxu0 %vm892_vm2, %v18360_v10  ;;  %v18390_v56 = vpop.f32.mrb[200].mxu1  ;;  %v11755_v16 = vld [vmem:[%s19626_s9 + $0xe8] sm:$0xff] }
 0x9ff   : > { %v7223_v46 = vpop.f32.mrb[201].mxu1  ;;  %v13785_v2 = vpack.c.bf16 %v11755_v16, %v11754_v0 }
 0xa00   : > { %v18394_v12 = vpop.f32.mrb[202].mxu1 }
 0xa01   : > { %13138 = vmatmul.mubr.msk.f32.gmra.mrb[234].mxu0 %vm892_vm2, %v18368_v47  ;;  %v7228_v17 = vpop.f32.mrb[203].mxu1 }
 0xa02   : > { %13140 = vmatprep.mubr.msk.f32.mxu0 %vm892_vm2, %v18372_v50  ;;  %v18404_v4 = vpop.f32.mrb[204].mxu1 }
 0xa05   : > { %13141 = vmatmul.mubr.msk.f32.gmra.mrb[236].mxu0 %vm892_vm2, %v18380_v37 }
 0xa06   : > { %13183 = vmatprep.mubr.msk.f32.mxu0 %vm892_vm2, %v18132_v59  ;;  %v7233_v59 = vpop.f32.mrb[205].mxu1 }
 0xa07   : > { %v18408_v58 = vpop.f32.mrb[206].mxu1 }
 0xa08   : > { %19962 = vst [vmem:[#allocation41_spill] sm:$0xff] %v18408_v58  ;;  %v7238_v46 = vpop.f32.mrb[207].mxu1 }
 0xa09   : > { %13184 = vmatmul.mubr.msk.f32.vlgmr.msra.gmra.mrb[238].mxu0 %vm892_vm2, %v18127_v25  ;;  %v18412_v15 = vpop.f32.mrb[208].mxu1 }
 0xa0a   : > { %13186 = vmatprep.mubr.msk.f32.mxu0 %vm892_vm2, %v18161_v19  ;;  %13772 = vmatpush3.bf16.msra.mxu0 %v13769_v30  ;;  %19963 = vst [vmem:[#allocation42_spill] sm:$0xff] %v18412_v15  ;;  %v7243_v17 = vpop.f32.mrb[209].mxu1 }
 0xa0b   : > { %13774 = vmatprep.subr.bf16.mxu0 %v13773_v33  ;;  %v18416_v40 = vpop.f32.mrb[210].mxu1 }
 0xa0c   : > { %19964 = vst [vmem:[#allocation43_spill] sm:$0xff] %v18416_v40  ;;  %v7248_v30 = vpop.f32.mrb[211].mxu1 }
 0xa0d   : > { %13187 = vmatmul.mubr.msk.f32.gmra.mrb[240].mxu0 %vm892_vm2, %v18153_v45  ;;  %v18420_v0 = vpop.f32.mrb[212].mxu1 }
 0xa0e   : > { %13189 = vmatprep.mubr.msk.f32.mxu0 %vm892_vm2, %v18187_v21  ;;  %13776 = vmatpush3.bf16.msra.mxu0 %v13773_v33  ;;  %19965 = vst [vmem:[#allocation44_spill] sm:$0xff] %v18420_v0  ;;  %v7253_v16 = vpop.f32.mrb[213].mxu1 }
 0xa0f   : > { %13786 = vmatprep.subr.bf16.mxu0 %v13785_v2  ;;  %v18424_v59 = vpop.f32.mrb[214].mxu1  ;;  %v11757_v16 = vld [vmem:[%s19626_s9 + $0xf8] sm:$0xff] }
 0xa10   : > { %v7258_v46 = vpop.f32.mrb[215].mxu1 }
 0xa11   : > { %13190 = vmatmul.mubr.msk.f32.gmra.mrb[242].mxu0 %vm892_vm2, %v18180_v14  ;;  %v18426_v43 = vpop.f32.mrb[216].mxu1  ;;  %v11776_v46 = vld [vmem:[%s19626_s9 + $0x110] sm:$0xff] }
 0xa12   : > { %13192 = vmatprep.mubr.msk.f32.mxu0 %vm892_vm2, %v18203_v61  ;;  %v7263_v33 = vpop.f32.mrb[217].mxu1 }
 0xa13   : > { %v11777_v33 = vld [vmem:[%s19626_s9 + $0x118] sm:$0xff] }
 0xa15   : > { %v18428_v17 = vpop.f32.mrb[218].mxu1 }
 0xa16   : > { %v7268_v54 = vpop.f32.mrb[219].mxu1 }
 0xa19   : > { %v18430_v40 = vpop.f32.mrb[220].mxu1 }
 0xa1a   : > { %v7273_v30 = vpop.f32.mrb[221].mxu1 }
 0xa41   : > { %v7386_v58 = vpop.permute.xlu1 %7385 }
 0xa42   : > { %7426 = vst.msk [vmem:[#allocation2 + $0x81] sm:$0xff] %vm892_vm2, %v7386_v58  ;;  %v11756_v58 = vld [vmem:[%s19626_s9 + $0xf0] sm:$0xff] }
 0xa43   : > { %v13789_v30 = vpack.c.bf16 %v11757_v16, %v11756_v58  ;;  %v19969_v58 = vld [vmem:[#allocation43_spill] sm:$0xff] }
 0xa49   : > { %v8129_v0 = vld [vmem:[#allocation2 + $0x80] sm:$0xff] }
 0xa4a   : > { %v18433_v15 = vld [vmem:[#allocation2 + $0x81] sm:$0xff]  ;;  %13193 = vmatmul.mubr.msk.f32.gmra.mrb[244].mxu0 %vm892_vm2, %v8129_v0 }
 0xa4b   : > { %13225 = vmatmul.mubr.msk.f32.gmra.mrb[244].mxu1 %vm892_vm2, %v18433_v15  ;;  %13195 = vmatprep.mubr.msk.f32.mxu0 %vm892_vm2, %v18219_v53 }
 0xa4c   : > { %13227 = vmatprep.mubr.msk.f32.mxu1 %vm892_vm2, %v18346_v32 }
 0xa4e   : > { %13196 = vmatmul.mubr.msk.f32.gmra.mrb[246].mxu0 %vm892_vm2, %v18214_v52 }
 0xa4f   : > { %13228 = vmatmul.mubr.msk.f32.gmra.mrb[246].mxu1 %vm892_vm2, %v18350_v39  ;;  %13198 = vmatprep.mubr.msk.f32.mxu0 %vm892_vm2, %v18239_v6 }
 0xa50   : > { %13230 = vmatprep.mubr.msk.f32.mxu1 %vm892_vm2, %v18356_v36 }
 0xa51   : > { %v7402_v54 = vpop.permute.xlu0 %7401 }
 0xa52   : > { %7434 = vst.msk [vmem:[#allocation2 + $0x121] sm:$0xff] %vm892_vm2, %v7402_v54  ;;  %13199 = vmatmul.mubr.msk.f32.gmra.mrb[248].mxu0 %vm892_vm2, %v18234_v41  ;;  %v13797_v54 = vpack.c.bf16 %v11777_v33, %v11776_v46 }
 0xa53   : > { %13231 = vmatmul.mubr.msk.f32.gmra.mrb[248].mxu1 %vm892_vm2, %v18360_v10  ;;  %13201 = vmatprep.mubr.msk.f32.mxu0 %vm892_vm2, %v18257_v48 }
 0xa54   : > { %13233 = vmatprep.mubr.msk.f32.mxu1 %vm892_vm2, %v18368_v47 }
 0xa56   : > { %13202 = vmatmul.mubr.msk.f32.gmra.mrb[250].mxu0 %vm892_vm2, %v18253_v42 }
 0xa57   : > { %13234 = vmatmul.mubr.msk.f32.gmra.mrb[250].mxu1 %vm892_vm2, %v18372_v50  ;;  %13204 = vmatprep.mubr.msk.f32.mxu0 %vm892_vm2, %v18272_v20 }
 0xa58   : > { %13236 = vmatprep.mubr.msk.f32.mxu1 %vm892_vm2, %v18380_v37 }
 0xa59   : > { %v8137_v53 = vld [vmem:[#allocation2 + $0x120] sm:$0xff] }
 0xa5a   : > { %v18467_v32 = vld [vmem:[#allocation2 + $0x121] sm:$0xff]  ;;  %13205 = vmatmul.mubr.msk.f32.gmra.mrb[252].mxu0 %vm892_vm2, %v8137_v53 }
 0xa5b   : > { %13237 = vmatmul.mubr.msk.f32.gmra.mrb[252].mxu1 %vm892_vm2, %v18467_v32  ;;  %13247 = vmatprep.mubr.msk.f32.mxu0 %vm892_vm2, %v18134_v57  ;;  %v8587_v57 = vld [vmem:[#allocation2 + $0x82] sm:$0xff] }
 0xa5c   : > { %13279 = vmatprep.mubr.msk.f32.mxu1 %vm892_vm2, %v18127_v25  ;;  %v8816_v25 = vld [vmem:[#allocation2 + $0x90] sm:$0xff] }
 0xa5e   : > { %13248 = vmatmul.mubr.msk.f32.vlgmr.msra.gmra.mrb[254].mxu0 %vm892_vm2, %v18129_v31 }
 0xa5f   : > { %13280 = vmatmul.mubr.msk.f32.vlgmr.msra.gmra.mrb[254].mxu1 %vm892_vm2, %v18161_v19  ;;  %13250 = vmatprep.mubr.msk.f32.mxu0 %vm892_vm2, %v18163_v5  ;;  %v8595_v19 = vld [vmem:[#allocation2 + $0x122] sm:$0xff] }
 0xa60   : > { %13282 = vmatprep.mubr.msk.f32.mxu1 %vm892_vm2, %v18153_v45  ;;  %13788 = vmatpush3.bf16.msra.mxu0 %v13785_v2  ;;  %v8824_v45 = vld [vmem:[#allocation2 + $0x130] sm:$0xff]  ;;  %v19968_v2 = vld [vmem:[#allocation44_spill] sm:$0xff] }
 0xa61   : > { %13796 = vmatpush3.bf16.msra.mxu1 %v18318_v8  ;;  %13790 = vmatprep.subr.bf16.mxu0 %v13789_v30 }
 0xa62   : > { %13798 = vmatprep.subr.bf16.mxu1 %v13797_v54  ;;  %13251 = vmatmul.mubr.msk.f32.gmra.mrb[0].mxu0 %vm892_vm2, %v18155_v28 }
 0xa63   : > { %13283 = vmatmul.mubr.msk.f32.gmra.mrb[0].mxu1 %vm892_vm2, %v18187_v21  ;;  %13253 = vmatprep.mubr.msk.f32.mxu0 %vm892_vm2, %v18189_v27 }
 0xa64   : > { %13285 = vmatprep.mubr.msk.f32.mxu1 %vm892_vm2, %v18180_v14  ;;  %13792 = vmatpush3.bf16.msra.mxu0 %v13789_v30 }
 0xa65   : > { %13800 = vmatpush3.bf16.msra.mxu1 %v13797_v54  ;;  %13801 = vmatprep.subr.bf16.mxu0 %v19862_v55 }
 0xa66   : > { %13254 = vmatmul.mubr.msk.f32.gmra.mrb[2].mxu0 %vm892_vm2, %v18182_v51 }
 0xa67   : > { %13286 = vmatmul.mubr.msk.f32.gmra.mrb[2].mxu1 %vm892_vm2, %v18203_v61  ;;  %13256 = vmatprep.mubr.msk.f32.mxu0 %vm892_vm2, %v18205_v3 }
 0xa68   : > { %13288 = vmatprep.mubr.msk.f32.mxu1 %vm892_vm2, %v8129_v0 }
 0xa6a   : > { %13257 = vmatmul.mubr.msk.f32.gmra.mrb[4].mxu0 %vm892_vm2, %v8587_v57 }
 0xa6b   : > { %13289 = vmatmul.mubr.msk.f32.gmra.mrb[4].mxu1 %vm892_vm2, %v8816_v25  ;;  %13259 = vmatprep.mubr.msk.f32.mxu0 %vm892_vm2, %v18221_v49 }
 0xa6c   : > { %13291 = vmatprep.mubr.msk.f32.mxu1 %vm892_vm2, %v18214_v52 }
 0xa6e   : > { %13260 = vmatmul.mubr.msk.f32.gmra.mrb[6].mxu0 %vm892_vm2, %v18216_v38 }
 0xa6f   : > { %13292 = vmatmul.mubr.msk.f32.gmra.mrb[6].mxu1 %vm892_vm2, %v18239_v6  ;;  %13262 = vmatprep.mubr.msk.f32.mxu0 %vm892_vm2, %v18241_v44 }
 0xa70   : > { %13294 = vmatprep.mubr.msk.f32.mxu1 %vm892_vm2, %v18234_v41 }
 0xa72   : > { %13263 = vmatmul.mubr.msk.f32.gmra.mrb[8].mxu0 %vm892_vm2, %v18236_v34 }
 0xa73   : > { %13295 = vmatmul.mubr.msk.f32.gmra.mrb[8].mxu1 %vm892_vm2, %v18257_v48  ;;  %13265 = vmatprep.mubr.msk.f32.mxu0 %vm892_vm2, %v18259_v29 }
 0xa74   : > { %13297 = vmatprep.mubr.msk.f32.mxu1 %vm892_vm2, %v18253_v42 }
 0xa76   : > { %13266 = vmatmul.mubr.msk.f32.gmra.mrb[10].mxu0 %vm892_vm2, %v18255_v9 }
 0xa77   : > { %13298 = vmatmul.mubr.msk.f32.gmra.mrb[10].mxu1 %vm892_vm2, %v18272_v20  ;;  %13268 = vmatprep.mubr.msk.f32.mxu0 %vm892_vm2, %v18274_v60 }
 0xa78   : > { %13300 = vmatprep.mubr.msk.f32.mxu1 %vm892_vm2, %v8137_v53 }
 0xa7a   : > { %13269 = vmatmul.mubr.msk.f32.gmra.mrb[12].mxu0 %vm892_vm2, %v8595_v19 }
 0xa7b   : > { %13301 = vmatmul.mubr.msk.f32.gmra.mrb[12].mxu1 %vm892_vm2, %v8824_v45  ;;  %13311 = vmatprep.mubr.msk.f32.mxu0 %vm892_vm2, %v18291_v7 }
 0xa7c   : > { %13343 = vmatprep.mubr.msk.f32.mxu1 %vm892_vm2, %v18129_v31  ;;  %v9045_v31 = vld [vmem:[#allocation2 + $0x91] sm:$0xff] }
 0xa7e   : > { %13312 = vmatmul.mubr.msk.f32.vlgmr.msra.gmra.mrb[14].mxu0 %vm892_vm2, %v18302_v24 }
 0xa7f   : > { %13344 = vmatmul.mubr.msk.f32.vlgmr.msra.gmra.mrb[14].mxu1 %vm892_vm2, %v18163_v5  ;;  %13314 = vmatprep.mubr.msk.f32.mxu0 %vm892_vm2, %v18316_v63 }
 0xa80   : > { %13346 = vmatprep.mubr.msk.f32.mxu1 %vm892_vm2, %v18155_v28  ;;  %v9274_v28 = vld [vmem:[#allocation2 + $0x92] sm:$0xff] }
 0xa82   : > { %13315 = vmatmul.mubr.msk.f32.gmra.mrb[16].mxu0 %vm892_vm2, %v18324_v35  ;;  %v19966_v35 = vld [vmem:[#allocation42_spill] sm:$0xff] }
 0xa83   : > { %13347 = vmatmul.mubr.msk.f32.gmra.mrb[16].mxu1 %vm892_vm2, %v18189_v27  ;;  %13317 = vmatprep.mubr.msk.f32.mxu0 %vm892_vm2, %v18330_v1 }
 0xa84   : > { %13349 = vmatprep.mubr.msk.f32.mxu1 %vm892_vm2, %v18182_v51 }
 0xa86   : > { %13318 = vmatmul.mubr.msk.f32.gmra.mrb[18].mxu0 %vm892_vm2, %v18337_v18 }
 0xa87   : > { %13350 = vmatmul.mubr.msk.f32.gmra.mrb[18].mxu1 %vm892_vm2, %v18205_v3  ;;  %13320 = vmatprep.mubr.msk.f32.mxu0 %vm892_vm2, %v18433_v15  ;;  %v18596_v15 = vld [vmem:[%s19627_s10] ss:$0 sm:$0xff] }
 0xa88   : > { %13352 = vmatprep.mubr.msk.f32.mxu1 %vm892_vm2, %v8587_v57  ;;  %v7202_v5 = vadd.f32 %v18596_v15, %v18362_v62  ;;  %v7197_v14 = vadd.f32 %v18596_v15, %v18354_v26  ;;  %v7212_v21 = vadd.f32 %v18596_v15, %v18374_v11  ;;  %v7207_v52 = vadd.f32 %v18596_v15, %v18366_v23  ;;  %v19967_v26 = vld [vmem:[#allocation41_spill] sm:$0xff] }
 0xa89   : > { %v7217_v11 = vadd.f32 %v18596_v15, %v18378_v13  ;;  %v7232_v23 = vadd.f32 %v18596_v15, %v18404_v4  ;;  %v7242_v13 = vadd.f32 %v18596_v15, %v19966_v35  ;;  %v7237_v4 = vadd.f32 %v18596_v15, %v19967_v26 }
 0xa8a   : > { %13321 = vmatmul.mubr.msk.f32.gmra.mrb[20].mxu0 %vm892_vm2, %v9045_v31  ;;  %v7247_v16 = vadd.f32 %v18596_v15, %v19969_v58  ;;  %v7262_v54 = vadd.f32 %v18596_v15, %v18426_v43 }
 0xa8b   : > { %13353 = vmatmul.mubr.msk.f32.gmra.mrb[20].mxu1 %vm892_vm2, %v9274_v28  ;;  %13323 = vmatprep.mubr.msk.f32.mxu0 %vm892_vm2, %v18350_v39 }
 0xa8c   : > { %13355 = vmatprep.mubr.msk.f32.mxu1 %vm892_vm2, %v18216_v38 }
 0xa8e   : > { %13324 = vmatmul.mubr.msk.f32.gmra.mrb[22].mxu0 %vm892_vm2, %v18356_v36 }
 0xa8f   : > { %13356 = vmatmul.mubr.msk.f32.gmra.mrb[22].mxu1 %vm892_vm2, %v18241_v44  ;;  %13326 = vmatprep.mubr.msk.f32.mxu0 %vm892_vm2, %v18360_v10  ;;  %v9282_v10 = vld [vmem:[#allocation2 + $0x132] sm:$0xff] }
 0xa90   : > { %13358 = vmatprep.mubr.msk.f32.mxu1 %vm892_vm2, %v18236_v34  ;;  %v7222_v34 = vadd.f32 %v18596_v15, %v18390_v56  ;;  %v7227_v56 = vadd.f32 %v18596_v15, %v18394_v12  ;;  %v7252_v12 = vadd.f32 %v18596_v15, %v19968_v2 }
 0xa92   : > { %13327 = vmatmul.mubr.msk.f32.gmra.mrb[24].mxu0 %vm892_vm2, %v18368_v47  ;;  %v9053_v47 = vld [vmem:[#allocation2 + $0x131] sm:$0xff] }
 0xa93   : > { %13359 = vmatmul.mubr.msk.f32.gmra.mrb[24].mxu1 %vm892_vm2, %v18259_v29  ;;  %13329 = vmatprep.mubr.msk.f32.mxu0 %vm892_vm2, %v18372_v50 }
 0xa94   : > { %13361 = vmatprep.mubr.msk.f32.mxu1 %vm892_vm2, %v18255_v9 }
 0xa96   : > { %13330 = vmatmul.mubr.msk.f32.gmra.mrb[26].mxu0 %vm892_vm2, %v18380_v37 }
 0xa97   : > { %13362 = vmatmul.mubr.msk.f32.gmra.mrb[26].mxu1 %vm892_vm2, %v18274_v60  ;;  %13332 = vmatprep.mubr.msk.f32.mxu0 %vm892_vm2, %v18467_v32 }
 0xa98   : > { %13364 = vmatprep.mubr.msk.f32.mxu1 %vm892_vm2, %v8595_v19  ;;  %v7257_v19 = vadd.f32 %v18596_v15, %v18424_v59 }
 0xa9a   : > { %13333 = vmatmul.mubr.msk.f32.gmra.mrb[28].mxu0 %vm892_vm2, %v9053_v47 }
 0xa9b   : > { %13365 = vmatmul.mubr.msk.f32.gmra.mrb[28].mxu1 %vm892_vm2, %v9282_v10  ;;  %13375 = vmatprep.mubr.msk.f32.mxu0 %vm14274_vm4, %v19863_v22  ;;  %v7272_v10 = vadd.f32 %v18596_v15, %v18430_v40 }
 0xa9c   : > { %v13089_v37 = vpop.f32.mrb[206].mxu0 }
 0xa9d   : > { %v18613_v51 = vpop.f32.mrb[222].mxu1  ;;  %v7649_v27 = vadd.f32 %v13089_v37, %v7202_v5  ;;  %v7569_v61 = vpop.f32.mrb[207].mxu0 }
 0xa9e   : > { %v18617_v3 = vpop.f32.mrb[223].mxu1  ;;  %v7648_v38 = vadd.f32 %v7569_v61, %v7197_v14 }
 0xaa0   : > { %v13092_v49 = vpop.f32.mrb[208].mxu0 }
 0xaa1   : > { %v18621_v41 = vpop.f32.mrb[224].mxu1  ;;  %v7651_v6 = vadd.f32 %v13092_v49, %v7212_v21  ;;  %v7579_v44 = vpop.f32.mrb[209].mxu0  ;;  %v7267_v21 = vadd.f32 %v18596_v15, %v18428_v17 }
 0xaa2   : > { %v18625_v42 = vpop.f32.mrb[225].mxu1  ;;  %v7650_v9 = vadd.f32 %v7579_v44, %v7207_v52 }
 0xaa4   : > { %v13095_v48 = vpop.f32.mrb[210].mxu0 }
 0xaa5   : > { %v18629_v29 = vpop.f32.mrb[226].mxu1  ;;  %v7653_v20 = vadd.f32 %v13095_v48, %v7222_v34  ;;  %v7589_v60 = vpop.f32.mrb[211].mxu0 }
 0xaa6   : > { %v18633_v7 = vpop.f32.mrb[227].mxu1  ;;  %v7652_v24 = vadd.f32 %v7589_v60, %v7217_v11 }
 0xaa8   : > { %v13098_v63 = vpop.f32.mrb[212].mxu0 }
 0xaa9   : > { %v18637_v8 = vpop.f32.mrb[228].mxu1  ;;  %v7655_v1 = vadd.f32 %v13098_v63, %v7232_v23  ;;  %v7599_v18 = vpop.f32.mrb[213].mxu0 }
 0xaaa   : > { %v18641_v39 = vpop.f32.mrb[229].mxu1  ;;  %v7654_v36 = vadd.f32 %v7599_v18, %v7227_v56 }
 0xaac   : > { %v13101_v62 = vpop.f32.mrb[214].mxu0 }
 0xaad   : > { %v18645_v50 = vpop.f32.mrb[230].mxu1  ;;  %v7657_v0 = vadd.f32 %v13101_v62, %v7242_v13  ;;  %v7609_v53 = vpop.f32.mrb[215].mxu0 }
 0xaae   : > { %v8067_v32 = vpop.f32.mrb[231].mxu1  ;;  %v7656_v46 = vadd.f32 %v7609_v53, %v7237_v4 }
 0xab0   : > { %v13104_v33 = vpop.f32.mrb[216].mxu0 }
 0xab1   : > { %v13168_v30 = vpop.f32.mrb[232].mxu1  ;;  %v7659_v25 = vadd.f32 %v13104_v33, %v7252_v12  ;;  %v7619_v57 = vpop.f32.mrb[217].mxu0 }
 0xab2   : > { %v8077_v45 = vpop.f32.mrb[233].mxu1  ;;  %v7658_v31 = vadd.f32 %v7619_v57, %v7247_v16 }
 0xab4   : > { %v13107_v28 = vpop.f32.mrb[218].mxu0 }
 0xab5   : > { %v13171_v47 = vpop.f32.mrb[234].mxu1  ;;  %v7661_v5 = vadd.f32 %v13107_v28, %v7262_v54  ;;  %v7629_v14 = vpop.f32.mrb[219].mxu0 }
 0xab6   : > { %v8087_v37 = vpop.f32.mrb[235].mxu1  ;;  %v7660_v61 = vadd.f32 %v7629_v14, %v7257_v19 }
 0xab8   : > { %v13110_v43 = vpop.f32.mrb[220].mxu0 }
 0xab9   : > { %v13174_v52 = vpop.f32.mrb[236].mxu1  ;;  %v7663_v49 = vadd.f32 %v13110_v43, %v7272_v10  ;;  %v7639_v34 = vpop.f32.mrb[221].mxu0 }
 0xaba   : > { %v8097_v44 = vpop.f32.mrb[237].mxu1  ;;  %v7662_v11 = vadd.f32 %v7639_v34, %v7267_v21 }
 0xabc   : > { %v13121_v59 = vpop.f32.mrb[222].mxu0 }
 0xabd   : > { %v13217_v48 = vpop.f32.mrb[238].mxu1  ;;  %v7878_v23 = vadd.f32 %v13121_v59, %v7649_v27  ;;  %v7798_v60 = vpop.f32.mrb[223].mxu0 }
 0xabe   : > { %v8485_v56 = vpop.f32.mrb[239].mxu1  ;;  %v7877_v63 = vadd.f32 %v7798_v60, %v7648_v38 }
 0xabf   : > { %v8107_v40 = vadd.f32 %v18613_v51, %v7878_v23 }
 0xac0   : > { %v13124_v35 = vpop.f32.mrb[224].mxu0  ;;  %v8106_v18 = vadd.f32 %v18617_v3, %v7877_v63 }
 0xac1   : > { %v13220_v13 = vpop.f32.mrb[240].mxu1  ;;  %v7880_v17 = vadd.f32 %v13124_v35, %v7651_v6  ;;  %v7808_v15 = vpop.f32.mrb[225].mxu0 }
 0xac2   : > { %v8495_v26 = vpop.f32.mrb[241].mxu1  ;;  %v7879_v4 = vadd.f32 %v7808_v15, %v7650_v9 }
 0xac3   : > { %v8109_v62 = vadd.f32 %v18621_v41, %v7880_v17 }
 0xac4   : > { %v13127_v2 = vpop.f32.mrb[226].mxu0  ;;  %v8108_v53 = vadd.f32 %v18625_v42, %v7879_v4 }
 0xac5   : > { %v13223_v12 = vpop.f32.mrb[242].mxu1  ;;  %v7882_v27 = vadd.f32 %v13127_v2, %v7653_v20  ;;  %v7818_v58 = vpop.f32.mrb[227].mxu0 }
 0xac6   : > { %v8505_v16 = vpop.f32.mrb[243].mxu1  ;;  %v7881_v38 = vadd.f32 %v7818_v58, %v7652_v24 }
 0xac7   : > { %v8111_v51 = vadd.f32 %v18629_v29, %v7882_v27 }
 0xac8   : > { %v13130_v33 = vpop.f32.mrb[228].mxu0  ;;  %v8110_v54 = vadd.f32 %v18633_v7, %v7881_v38 }
 0xac9   : > { %v7884_v3 = vadd.f32 %v13130_v33, %v7655_v1  ;;  %v7828_v6 = vpop.f32.mrb[229].mxu0 }
 0xaca   : > { %v7883_v57 = vadd.f32 %v7828_v6, %v7654_v36 }
 0xacb   : > { %v8113_v9 = vadd.f32 %v18637_v8, %v7884_v3 }
 0xacc   : > { %v13133_v19 = vpop.f32.mrb[230].mxu0  ;;  %v8112_v41 = vadd.f32 %v18641_v39, %v7883_v57 }
 0xacd   : > { %v7886_v28 = vadd.f32 %v13133_v19, %v7657_v0  ;;  %v7838_v10 = vpop.f32.mrb[231].mxu0 }
 0xace   : > { %v7885_v42 = vadd.f32 %v7838_v10, %v7656_v46 }
 0xacf   : > { %v8115_v20 = vadd.f32 %v18645_v50, %v7886_v28 }
 0xad0   : > { %v13136_v14 = vpop.f32.mrb[232].mxu0  ;;  %v8114_v24 = vadd.f32 %v8067_v32, %v7885_v42 }
 0xad1   : > { %v7888_v21 = vadd.f32 %v13136_v14, %v7659_v25  ;;  %v7848_v29 = vpop.f32.mrb[233].mxu0 }
 0xad2   : > { %v7887_v43 = vadd.f32 %v7848_v29, %v7658_v31 }
 0xad3   : > { %v8117_v34 = vadd.f32 %v13168_v30, %v7888_v21 }
 0xad4   : > { %v13139_v7 = vpop.f32.mrb[234].mxu0  ;;  %v8116_v1 = vadd.f32 %v8077_v45, %v7887_v43 }
 0xad5   : > { %v7890_v59 = vadd.f32 %v13139_v7, %v7661_v5  ;;  %v7858_v36 = vpop.f32.mrb[235].mxu0 }
 0xad6   : > { %v7889_v23 = vadd.f32 %v7858_v36, %v7660_v61 }
 0xad7   : > { %v8119_v8 = vadd.f32 %v13171_v47, %v7890_v59 }
 0xad8   : > { %v13142_v60 = vpop.f32.mrb[236].mxu0  ;;  %v18668_v63 = vadd.f32 %v8087_v37, %v7889_v23 }
 0xad9   : > { %v7892_v39 = vadd.f32 %v13142_v60, %v7663_v49  ;;  %v7868_v0 = vpop.f32.mrb[237].mxu0 }
 0xada   : > { %v7891_v46 = vadd.f32 %v7868_v0, %v7662_v11 }
 0xadb   : > { %v18670_v35 = vadd.f32 %v13174_v52, %v7892_v39 }
 0xadc   : > { %v13185_v50 = vpop.f32.mrb[238].mxu0  ;;  %v18672_v32 = vadd.f32 %v8097_v44, %v7891_v46 }
 0xadd   : > { %v8336_v25 = vadd.f32 %v13185_v50, %v8107_v40  ;;  %v8256_v31 = vpop.f32.mrb[239].mxu0 }
 0xade   : > { %v8335_v30 = vadd.f32 %v8256_v31, %v8106_v18  ;;  %v9498_v18 = vld [vmem:[%s19630_s13 + $0x10] sm:$0xff] }
 0xadf   : > { %v18674_v17 = vadd.f32 %v13217_v48, %v8336_v25  ;;  %v9496_v48 = vld [vmem:[%s19630_s13] sm:$0xff] }
 0xae0   : > { %v13188_v45 = vpop.f32.mrb[240].mxu0  ;;  %v18676_v5 = vadd.f32 %v8485_v56, %v8335_v30  ;;  %v9497_v56 = vld [vmem:[%s19630_s13 + $0x8] sm:$0xff] }
 0xae1   : > { %v8338_v47 = vadd.f32 %v13188_v45, %v8109_v62  ;;  %v8266_v61 = vpop.f32.mrb[241].mxu0 }
 0xae2   : > { %v8337_v37 = vadd.f32 %v8266_v61, %v8108_v53 }
 0xae3   : > { %v18678_v15 = vadd.f32 %v13220_v13, %v8338_v47  ;;  %v18692_v13 = vpack.c.bf16 %v9497_v56, %v9496_v48 }
 0xae4   : > { %v13191_v49 = vpop.f32.mrb[242].mxu0  ;;  %v18680_v11 = vadd.f32 %v8495_v26, %v8337_v37  ;;  %v9499_v26 = vld [vmem:[%s19630_s13 + $0x18] sm:$0xff] }
 0xae5   : > { %v8340_v52 = vadd.f32 %v13191_v49, %v8111_v51  ;;  %v8276_v4 = vpop.f32.mrb[243].mxu0  ;;  %13803 = vmatpush3.bf16.msra.mxu0 %v18692_v13  ;;  %v18702_v62 = vpack.c.bf16 %v9499_v26, %v9498_v18 }
 0xae6   : > { %v8339_v44 = vadd.f32 %v8276_v4, %v8110_v54  ;;  %13804 = vmatprep.subr.bf16.mxu0 %v19862_v55 }
 0xae7   : > { %v18682_v2 = vadd.f32 %v13223_v12, %v8340_v52 }
 0xae8   : > { %v18684_v40 = vadd.f32 %v8505_v16, %v8339_v44 }
 0xae9   : > { %13806 = vmatpush3.bf16.msra.mxu0 %v18702_v62 }
 0xaea   : > { %13807 = vmatprep.subr.bf16.mxu0 %v19862_v55 }
 0xb1d   : > { %v13194_v12 = vpop.f32.mrb[244].mxu0 }
 0xb1e   : > { %v13226_v53 = vpop.f32.mrb[244].mxu1  ;;  %v8342_v27 = vadd.f32 %v13194_v12, %v8113_v9  ;;  %v8286_v58 = vpop.f32.mrb[245].mxu0 }
 0xb1f   : > { %v8515_v16 = vpop.f32.mrb[245].mxu1  ;;  %v8341_v38 = vadd.f32 %v8286_v58, %v8112_v41 }
 0xb20   : > { %v8571_v51 = vadd.f32 %v13226_v53, %v8342_v27 }
 0xb21   : > { %v8570_v33 = vadd.f32 %v8515_v16, %v8341_v38  ;;  %v13197_v54 = vpop.f32.mrb[246].mxu0 }
 0xb22   : > { %v13229_v3 = vpop.f32.mrb[246].mxu1  ;;  %v8344_v6 = vadd.f32 %v13197_v54, %v8115_v20  ;;  %v8296_v57 = vpop.f32.mrb[247].mxu0 }
 0xb23   : > { %v8525_v19 = vpop.f32.mrb[247].mxu1  ;;  %v8343_v28 = vadd.f32 %v8296_v57, %v8114_v24 }
 0xb24   : > { %v8573_v10 = vadd.f32 %v13229_v3, %v8344_v6 }
 0xb25   : > { %v8572_v42 = vadd.f32 %v8525_v19, %v8343_v28  ;;  %v13200_v14 = vpop.f32.mrb[248].mxu0 }
 0xb26   : > { %v13232_v21 = vpop.f32.mrb[248].mxu1  ;;  %v8346_v29 = vadd.f32 %v13200_v14, %v8117_v34  ;;  %v8306_v43 = vpop.f32.mrb[249].mxu0 }
 0xb27   : > { %v8535_v7 = vpop.f32.mrb[249].mxu1  ;;  %v8345_v59 = vadd.f32 %v8306_v43, %v8116_v1 }
 0xb28   : > { %v8575_v9 = vadd.f32 %v13232_v21, %v8346_v29 }
 0xb29   : > { %v8574_v36 = vadd.f32 %v8535_v7, %v8345_v59  ;;  %v13203_v23 = vpop.f32.mrb[250].mxu0 }
 0xb2a   : > { %v13235_v41 = vpop.f32.mrb[250].mxu1  ;;  %v8348_v60 = vadd.f32 %v13203_v23, %v8119_v8  ;;  %v8316_v39 = vpop.f32.mrb[251].mxu0 }
 0xb2b   : > { %v8545_v0 = vpop.f32.mrb[251].mxu1  ;;  %v8347_v20 = vadd.f32 %v8316_v39, %v18668_v63 }
 0xb2c   : > { %v8577_v46 = vadd.f32 %v13235_v41, %v8348_v60 }
 0xb2d   : > { %v8576_v50 = vadd.f32 %v8545_v0, %v8347_v20  ;;  %v13206_v24 = vpop.f32.mrb[252].mxu0 }
 0xb2e   : > { %v13238_v25 = vpop.f32.mrb[252].mxu1  ;;  %v8350_v31 = vadd.f32 %v13206_v24, %v18670_v35  ;;  %v8326_v30 = vpop.f32.mrb[253].mxu0 }
 0xb2f   : > { %v8555_v34 = vpop.f32.mrb[253].mxu1  ;;  %v8349_v45 = vadd.f32 %v8326_v30, %v18672_v32 }
 0xb30   : > { %v8579_v1 = vadd.f32 %v13238_v25, %v8350_v31 }
 0xb31   : > { %v8578_v47 = vadd.f32 %v8555_v34, %v8349_v45  ;;  %v13249_v61 = vpop.f32.mrb[254].mxu0 }
 0xb32   : > { %v13281_v37 = vpop.f32.mrb[254].mxu1  ;;  %v8794_v8 = vadd.f32 %v13249_v61, %v18674_v17  ;;  %v8714_v49 = vpop.f32.mrb[255].mxu0 }
 0xb33   : > { %v8943_v52 = vpop.f32.mrb[255].mxu1  ;;  %v8793_v63 = vadd.f32 %v8714_v49, %v18676_v5 }
 0xb34   : > { %v9023_v4 = vadd.f32 %v13281_v37, %v8794_v8 }
 0xb35   : > { %v9022_v44 = vadd.f32 %v8943_v52, %v8793_v63  ;;  %v13252_v48 = vpop.f32.mrb[0].mxu0 }
 0xb36   : > { %v13284_v56 = vpop.f32.mrb[0].mxu1  ;;  %v8796_v35 = vadd.f32 %v13252_v48, %v18678_v15  ;;  %v8724_v18 = vpop.f32.mrb[1].mxu0 }
 0xb37   : > { %v8953_v26 = vpop.f32.mrb[1].mxu1  ;;  %v8795_v32 = vadd.f32 %v8724_v18, %v18680_v11 }
 0xb38   : > { %v9025_v12 = vadd.f32 %v13284_v56, %v8796_v35 }
 0xb39   : > { %v18713_v53 = vadd.f32 %v8953_v26, %v8795_v32  ;;  %v13255_v27 = vpop.f32.mrb[2].mxu0 }
 0xb3a   : > { %v13287_v58 = vpop.f32.mrb[2].mxu1  ;;  %v8798_v17 = vadd.f32 %v13255_v27, %v18682_v2  ;;  %v8734_v16 = vpop.f32.mrb[3].mxu0 }
 0xb3b   : > { %v8963_v38 = vpop.f32.mrb[3].mxu1  ;;  %v8797_v5 = vadd.f32 %v8734_v16, %v18684_v40 }
 0xb3c   : > { %v18717_v54 = vadd.f32 %v13287_v58, %v8798_v17 }
 0xb3d   : > { %v18719_v3 = vadd.f32 %v8963_v38, %v8797_v5  ;;  %v13258_v15 = vpop.f32.mrb[4].mxu0 }
 0xb3e   : > { %v13290_v6 = vpop.f32.mrb[4].mxu1  ;;  %v8800_v57 = vadd.f32 %v13258_v15, %v8571_v51  ;;  %v8744_v19 = vpop.f32.mrb[5].mxu0 }
 0xb3f   : > { %v8973_v11 = vpop.f32.mrb[5].mxu1  ;;  %v8799_v28 = vadd.f32 %v8744_v19, %v8570_v33 }
 0xb40   : > { %v18721_v14 = vadd.f32 %v13290_v6, %v8800_v57 }
 0xb41   : > { %v18723_v21 = vadd.f32 %v8973_v11, %v8799_v28  ;;  %v13261_v29 = vpop.f32.mrb[6].mxu0 }
 0xb42   : > { %v13293_v2 = vpop.f32.mrb[6].mxu1  ;;  %v8802_v43 = vadd.f32 %v13261_v29, %v8573_v10  ;;  %v8754_v7 = vpop.f32.mrb[7].mxu0 }
 0xb43   : > { %v8983_v59 = vpop.f32.mrb[7].mxu1  ;;  %v8801_v40 = vadd.f32 %v8754_v7, %v8572_v42 }
 0xb44   : > { %v18725_v23 = vadd.f32 %v13293_v2, %v8802_v43 }
 0xb45   : > { %v18727_v41 = vadd.f32 %v8983_v59, %v8801_v40  ;;  %v13264_v60 = vpop.f32.mrb[8].mxu0 }
 0xb46   : > { %v13296_v39 = vpop.f32.mrb[8].mxu1  ;;  %v8804_v51 = vadd.f32 %v13264_v60, %v8575_v9  ;;  %v8764_v0 = vpop.f32.mrb[9].mxu0 }
 0xb47   : > { %v8993_v20 = vpop.f32.mrb[9].mxu1  ;;  %v8803_v33 = vadd.f32 %v8764_v0, %v8574_v36 }
 0xb48   : > { %v18729_v24 = vadd.f32 %v13296_v39, %v8804_v51 }
 0xb49   : > { %v18731_v25 = vadd.f32 %v8993_v20, %v8803_v33  ;;  %v13267_v31 = vpop.f32.mrb[10].mxu0 }
 0xb4a   : > { %v13299_v30 = vpop.f32.mrb[10].mxu1  ;;  %v8806_v10 = vadd.f32 %v13267_v31, %v8577_v46  ;;  %v8774_v34 = vpop.f32.mrb[11].mxu0 }
 0xb4b   : > { %v9003_v45 = vpop.f32.mrb[11].mxu1  ;;  %v8805_v42 = vadd.f32 %v8774_v34, %v8576_v50 }
 0xb4c   : > { %v18733_v61 = vadd.f32 %v13299_v30, %v8806_v10 }
 0xb4d   : > { %v18735_v37 = vadd.f32 %v9003_v45, %v8805_v42  ;;  %v13270_v8 = vpop.f32.mrb[12].mxu0 }
 0xb4e   : > { %v13302_v49 = vpop.f32.mrb[12].mxu1  ;;  %v8808_v9 = vadd.f32 %v13270_v8, %v8579_v1  ;;  %v8784_v52 = vpop.f32.mrb[13].mxu0 }
 0xb4f   : > { %v9013_v63 = vpop.f32.mrb[13].mxu1  ;;  %v8807_v36 = vadd.f32 %v8784_v52, %v8578_v47 }
 0xb50   : > { %v18737_v48 = vadd.f32 %v13302_v49, %v8808_v9 }
 0xb51   : > { %v18739_v56 = vadd.f32 %v9013_v63, %v8807_v36  ;;  %v13313_v35 = vpop.f32.mrb[14].mxu0 }
 0xb52   : > { %v13345_v18 = vpop.f32.mrb[14].mxu1  ;;  %v9252_v46 = vadd.f32 %v13313_v35, %v9023_v4  ;;  %v9172_v26 = vpop.f32.mrb[15].mxu0 }
 0xb53   : > { %v9401_v32 = vpop.f32.mrb[15].mxu1  ;;  %v9251_v50 = vadd.f32 %v9172_v26, %v9022_v44 }
 0xb54   : > { %v18741_v27 = vadd.f32 %v13345_v18, %v9252_v46 }
 0xb55   : > { %v18743_v58 = vadd.f32 %v9401_v32, %v9251_v50  ;;  %v13316_v17 = vpop.f32.mrb[16].mxu0 }
 0xb56   : > { %v13348_v16 = vpop.f32.mrb[16].mxu1  ;;  %v9547_v1 = vmul.f32 %v18741_v27, %v18741_v27  ;;  %v9254_v47 = vadd.f32 %v13316_v17, %v9025_v12  ;;  %v9182_v38 = vpop.f32.mrb[17].mxu0  ;;  %v9503_v15 = vsel %vm892_vm2, %v18741_v27, 0.0 }
 0xb57   : > { %v9411_v5 = vpop.f32.mrb[17].mxu1  ;;  %v9502_v4 = vsel %vm892_vm2, %v18743_v58, 0.0  ;;  %v9546_v44 = vmul.f32 %v18743_v58, %v18743_v58  ;;  %v9253_v6 = vadd.f32 %v9182_v38, %v18713_v53 }
 0xb58   : > { %v18754_v57 = vadd.f32 %v13348_v16, %v9254_v47  ;;  %v9563_v19 = vsel %vm892_vm2, %v9547_v1, 0.0  ;;  %v9504_v2 = vadd.f32 %v9503_v15, %v9502_v4 }
 0xb59   : > { %v9562_v11 = vsel %vm892_vm2, %v9546_v44, 0.0  ;;  %v18758_v12 = vadd.f32 %v9411_v5, %v9253_v6  ;;  %v13319_v28 = vpop.f32.mrb[18].mxu0 }
 0xb5a   : > { %v13351_v29 = vpop.f32.mrb[18].mxu1  ;;  %v9549_v43 = vmul.f32 %v18754_v57, %v18754_v57  ;;  %v9256_v7 = vadd.f32 %v13319_v28, %v18717_v54  ;;  %v9192_v59 = vpop.f32.mrb[19].mxu0  ;;  %v9564_v51 = vadd.f32 %v9563_v19, %v9562_v11  ;;  %v9507_v33 = vsel %vm892_vm2, %v18754_v57, 0.0 }
 0xb5b   : > { %v9421_v40 = vpop.f32.mrb[19].mxu1  ;;  %v9505_v53 = vsel %vm892_vm2, %v18758_v12, 0.0  ;;  %v9548_v60 = vmul.f32 %v18758_v12, %v18758_v12  ;;  %v9255_v39 = vadd.f32 %v9192_v59, %v18719_v3 }
 0xb5c   : > { %v9506_v0 = vadd.f32 %v9505_v53, %v9504_v2  ;;  %v18768_v20 = vadd.f32 %v13351_v29, %v9256_v7  ;;  %v9567_v34 = vsel %vm892_vm2, %v9549_v43, 0.0 }
 0xb5d   : > { %v9565_v31 = vsel %vm892_vm2, %v9548_v60, 0.0  ;;  %v18773_v54 = vadd.f32 %v9421_v40, %v9255_v39  ;;  %v13322_v30 = vpop.f32.mrb[20].mxu0 }
 0xb5e   : > { %v13354_v10 = vpop.f32.mrb[20].mxu1  ;;  %v9566_v45 = vadd.f32 %v9565_v31, %v9564_v51  ;;  %v9508_v42 = vadd.f32 %v9507_v33, %v9506_v0  ;;  %v9202_v8 = vpop.f32.mrb[21].mxu0  ;;  %v9258_v52 = vadd.f32 %v13322_v30, %v18721_v14  ;;  %v9511_v18 = vsel %vm892_vm2, %v18768_v20, 0.0 }
 0xb5f   : > { %v9431_v49 = vpop.f32.mrb[21].mxu1  ;;  %v9509_v3 = vsel %vm892_vm2, %v18773_v54, 0.0  ;;  %v9550_v9 = vmul.f32 %v18773_v54, %v18773_v54  ;;  %v9257_v63 = vadd.f32 %v9202_v8, %v18723_v21  ;;  %v9551_v16 = vmul.f32 %v18768_v20, %v18768_v20 }
 0xb60   : > { %v9510_v36 = vadd.f32 %v9509_v3, %v9508_v42  ;;  %v9568_v35 = vadd.f32 %v9567_v34, %v9566_v45  ;;  %v18785_v26 = vadd.f32 %v13354_v10, %v9258_v52 }
 0xb61   : > { %v9569_v46 = vsel %vm892_vm2, %v9550_v9, 0.0  ;;  %v18787_v32 = vadd.f32 %v9431_v49, %v9257_v63  ;;  %v13325_v50 = vpop.f32.mrb[22].mxu0  ;;  %v9571_v11 = vsel %vm892_vm2, %v9551_v16, 0.0 }
 0xb62   : > { %v13357_v17 = vpop.f32.mrb[22].mxu1  ;;  %v9512_v1 = vadd.f32 %v9511_v18, %v9510_v36  ;;  %v9260_v14 = vadd.f32 %v13325_v50, %v18725_v23  ;;  %v9212_v21 = vpop.f32.mrb[23].mxu0  ;;  %v9570_v5 = vadd.f32 %v9569_v46, %v9568_v35  ;;  %v9553_v3 = vmul.f32 %v18785_v26, %v18785_v26 }
 0xb63   : > { %v9441_v47 = vpop.f32.mrb[23].mxu1  ;;  %v9513_v38 = vsel %vm892_vm2, %v18787_v32, 0.0  ;;  %v9552_v15 = vmul.f32 %v18787_v32, %v18787_v32  ;;  %v9259_v44 = vadd.f32 %v9212_v21, %v18727_v41  ;;  %v9515_v41 = vsel %vm892_vm2, %v18785_v26, 0.0 }
 0xb64   : > { %v18796_v4 = vadd.f32 %v13357_v17, %v9260_v14  ;;  %v9514_v28 = vadd.f32 %v9513_v38, %v9512_v1  ;;  %v9572_v53 = vadd.f32 %v9571_v11, %v9570_v5 }
 0xb65   : > { %v13328_v6 = vpop.f32.mrb[24].mxu0  ;;  %v18804_v7 = vadd.f32 %v9441_v47, %v9259_v44  ;;  %v9573_v60 = vsel %vm892_vm2, %v9552_v15, 0.0  ;;  %v9575_v15 = vsel %vm892_vm2, %v9553_v3, 0.0 }
 0xb66   : > { %v13360_v19 = vpop.f32.mrb[24].mxu1  ;;  %v9524_v23 = vsel %vm892_vm2, %v18796_v4, 0.0  ;;  %v9222_v29 = vpop.f32.mrb[25].mxu0  ;;  %v9555_v43 = vmul.f32 %v18796_v4, %v18796_v4  ;;  %v9262_v59 = vadd.f32 %v13328_v6, %v18729_v24  ;;  %v9516_v30 = vadd.f32 %v9515_v41, %v9514_v28 }
 0xb67   : > { %v9451_v2 = vpop.f32.mrb[25].mxu1  ;;  %v9261_v40 = vadd.f32 %v9222_v29, %v18731_v25  ;;  %v9523_v39 = vsel %vm892_vm2, %v18804_v7, 0.0  ;;  %v9554_v51 = vmul.f32 %v18804_v7, %v18804_v7  ;;  %v9574_v9 = vadd.f32 %v9573_v60, %v9572_v53 }
 0xb68   : > { %v18815_v0 = vadd.f32 %v13360_v19, %v9262_v59  ;;  %v9525_v25 = vadd.f32 %v9524_v23, %v9523_v39  ;;  %v9584_v42 = vsel %vm892_vm2, %v9555_v43, 0.0  ;;  %v9517_v17 = vrot.slane %v9516_v30, 4 }
 0xb69   : > { %v18817_v33 = vadd.f32 %v9451_v2, %v9261_v40  ;;  %v13331_v31 = vpop.f32.mrb[26].mxu0  ;;  %v9583_v8 = vsel %vm892_vm2, %v9554_v51, 0.0  ;;  %v9576_v29 = vadd.f32 %v9575_v15, %v9574_v9 }
 0xb6a   : > { %v13363_v24 = vpop.f32.mrb[26].mxu1  ;;  %v9264_v10 = vadd.f32 %v13331_v31, %v18733_v61  ;;  %v9232_v34 = vpop.f32.mrb[27].mxu0  ;;  %v9557_v52 = vmul.f32 %v18815_v0, %v18815_v0  ;;  %v9528_v61 = vsel %vm892_vm2, %v18815_v0, 0.0  ;;  %v9585_v16 = vadd.f32 %v9584_v42, %v9583_v8 }
 0xb6b   : > { %v9461_v45 = vpop.f32.mrb[27].mxu1  ;;  %v9526_v49 = vsel %vm892_vm2, %v18817_v33, 0.0  ;;  %v9556_v36 = vmul.f32 %v18817_v33, %v18817_v33  ;;  %v9263_v18 = vadd.f32 %v9232_v34, %v18735_v37  ;;  %v9518_v23 = vadd.f32 %v9517_v17, %v9516_v30 }
 0xb6c   : > { %v9527_v63 = vadd.f32 %v9526_v49, %v9525_v25  ;;  %v18832_v35 = vadd.f32 %v13363_v24, %v9264_v10  ;;  %v9588_v44 = vsel %vm892_vm2, %v9557_v52, 0.0  ;;  %v9577_v30 = vrot.slane %v9576_v29, 4 }
 0xb6d   : > { %v13334_v46 = vpop.f32.mrb[28].mxu0  ;;  %v9586_v38 = vsel %vm892_vm2, %v9556_v36, 0.0  ;;  %v18837_v5 = vadd.f32 %v9461_v45, %v9263_v18  ;;  %v9519_v24 = vrot.slane %v9518_v23, 2 }
 0xb6e   : > { %v13366_v50 = vpop.f32.mrb[28].mxu1  ;;  %v9529_v1 = vadd.f32 %v9528_v61, %v9527_v63  ;;  %v9266_v14 = vadd.f32 %v13334_v46, %v18737_v48  ;;  %v9242_v21 = vpop.f32.mrb[29].mxu0  ;;  %v9587_v6 = vadd.f32 %v9586_v38, %v9585_v16  ;;  %v9559_v19 = vmul.f32 %v18832_v35, %v18832_v35 }
 0xb6f   : > { %v9471_v47 = vpop.f32.mrb[29].mxu1  ;;  %v9265_v37 = vadd.f32 %v9242_v21, %v18739_v56  ;;  %v9530_v11 = vsel %vm892_vm2, %v18837_v5, 0.0  ;;  %v9558_v48 = vmul.f32 %v18837_v5, %v18837_v5  ;;  %v9532_v59 = vsel %vm892_vm2, %v18832_v35, 0.0 }
 0xb70   : > { %v18848_v28 = vadd.f32 %v13366_v50, %v9266_v14  ;;  %v9531_v2 = vadd.f32 %v9530_v11, %v9529_v1  ;;  %v9589_v43 = vadd.f32 %v9588_v44, %v9587_v6  ;;  %v9592_v60 = vsel %vm892_vm2, %v9559_v19, 0.0 }
 0xb71   : > { %v9590_v56 = vsel %vm892_vm2, %v9558_v48, 0.0  ;;  %v18853_v40 = vadd.f32 %v9471_v47, %v9265_v37  ;;  %v9520_v3 = vadd.f32 %v9519_v24, %v9518_v23  ;;  %v9578_v9 = vadd.f32 %v9577_v30, %v9576_v29 }
 0xb72   : > { %v9591_v41 = vadd.f32 %v9590_v56, %v9589_v43  ;;  %v9533_v53 = vadd.f32 %v9532_v59, %v9531_v2  ;;  %v9561_v39 = vmul.f32 %v18848_v28, %v18848_v28  ;;  %v9536_v34 = vsel %vm892_vm2, %v18848_v28, 0.0  ;;  %v10014_v59 = vld [vmem:[#allocation2 + $0x1] sm:$0xff]  ;;  %v10101_v56 = vld [vmem:[#allocation2 + $0x90] sm:$0xff] }
 0xb73   : > { %v9534_v51 = vsel %vm892_vm2, %v18853_v40, 0.0  ;;  %v9560_v31 = vmul.f32 %v18853_v40, %v18853_v40  ;;  %v9521_v18 = vrot.slane %v9520_v3, 1  ;;  %v9579_v46 = vrot.slane %v9578_v9, 2  ;;  %10158 = vrot.lane.b32.xlu1 %v10014_v59, %s19952_s19  ;;  %10428 = vrot.lane.b32.xlu0 %v10101_v56, %s19884_s27 }
 0xb74   : > { %v9535_v25 = vadd.f32 %v9534_v51, %v9533_v53  ;;  %v9593_v10 = vadd.f32 %v9592_v60, %v9591_v41  ;;  %v9596_v49 = vsel %vm892_vm2, %v9561_v39, 0.0  ;;  %v10038_v41 = vld [vmem:[#allocation2 + $0xa2] sm:$0xff]  ;;  %v10125_v60 = vld [vmem:[#allocation2 + $0x131] sm:$0xff] }
 0xb75   : > { %v9594_v45 = vsel %vm892_vm2, %v9560_v31, 0.0  ;;  %v9522_v14 = vadd.f32 %v9521_v18, %v9520_v3  ;;  %v9580_v21 = vadd.f32 %v9579_v46, %v9578_v9  ;;  %v13996_v53 = vld [vmem:[%s19631_s14 + $0x80] sm:$0xff]   ;;  %v13997_v39 = vld [vmem:[%s19631_s14 + $0x88] sm:$0xff]   ;;  %v19971_v9 = vld [vmem:[#allocation8_spill] sm:$0xff] }
 0xb76   : > { %v9537_v42 = vadd.f32 %v9536_v34, %v9535_v25  ;;  %v9595_v8 = vadd.f32 %v9594_v45, %v9593_v10  ;;  %v19970_v34 = vld [vmem:[#allocation7_spill] sm:$0xff] }
 0xb77   : > { %v9544_v6 = vmul.f32 0.015625, %v9522_v14  ;;  %v9581_v37 = vrot.slane %v9580_v21, 1 }
 0xb78   : > { %v9538_v52 = vrot.slane %v9537_v42, 4  ;;  %v9597_v63 = vadd.f32 %v9596_v49, %v9595_v8 }
 0xb79   : > { %v9582_v23 = vadd.f32 %v9581_v37, %v9580_v21 }
 0xb7a   : > { %v9539_v61 = vadd.f32 %v9538_v52, %v9537_v42  ;;  %v9598_v36 = vrot.slane %v9597_v63, 4 }
 0xb7b   : > { %v9604_v2 = vmul.f32 0.015625, %v9582_v23 }
 0xb7c   : > { %v9540_v50 = vrot.slane %v9539_v61, 2  ;;  %v9599_v17 = vadd.f32 %v9598_v36, %v9597_v63 }
 0xb7e   : > { %v9541_v16 = vadd.f32 %v9540_v50, %v9539_v61  ;;  %v9600_v1 = vrot.slane %v9599_v17, 2 }
 0xb80   : > { %v9542_v47 = vrot.slane %v9541_v16, 1  ;;  %v9601_v38 = vadd.f32 %v9600_v1, %v9599_v17 }
 0xb82   : > { %v9543_v15 = vadd.f32 %v9542_v47, %v9541_v16  ;;  %v9602_v44 = vrot.slane %v9601_v38, 1 }
 0xb84   : > { %v9545_v19 = vmul.f32 0.015625, %v9543_v15  ;;  %v9603_v11 = vadd.f32 %v9602_v44, %v9601_v38 }
 0xb86   : > { %v9608_v48 = vsel %vm1566_vm6, %v9545_v19, %v9544_v6  ;;  %v9605_v29 = vmul.f32 0.015625, %v9603_v11 }
 0xb87   : > { %13376 = vmatmul.mubr.msk.f32.vlgmr.msra.gmra.mrb[30].mxu0 %vm892_vm2, %v9608_v48 }
 0xb88   : > { %13809 = vmatpush3.bf16.msra.mxu0 %v18692_v13  ;;  %13386 = vmatprep.mubr.msk.f32.mxu0 %vm14274_vm4, %v19863_v22  ;;  %v9683_v43 = vsel %vm1566_vm6, %v9605_v29, %v9604_v2  ;;  %v10030_v13 = vld [vmem:[#allocation2 + $0x2] sm:$0xff]  ;;  %v10117_v22 = vld [vmem:[#allocation2 + $0x91] sm:$0xff] }
 0xb89   : > { %13810 = vmatprep.subr.bf16.mxu0 %v19862_v55  ;;  %10222 = vrot.lane.b32.xlu1 %v10030_v13, %s19884_s27  ;;  %v10022_v55 = vld [vmem:[#allocation2 + $0xa1] sm:$0xff]  ;;  %v18921_v13 = vld [vmem:[%s19629_s12] ss:$0 sm:$0xff] }
 0xb8a   : > { %10492 = vrot.lane.b32.xlu0 %v10117_v22, %s14278_s24 }
 0xb8c   : > { %13812 = vmatpush3.bf16.msra.mxu0 %v18702_v62  ;;  %v10109_v62 = vld [vmem:[#allocation2 + $0x130] sm:$0xff] }
 0xb8d   : > { %10174 = vrot.lane.b32.xlu1 %v10022_v55, %s19952_s19  ;;  %13389 = vmatprep.subr.bf16.mxu0 %v13996_v53 }
 0xb8e   : > { %10444 = vrot.lane.b32.xlu0 %v10109_v62, %s19884_s27 }
 0xb8f   : > { %13387 = vmatmul.mubr.msk.f32.vlgmr.msra.gmra.mrb[32].mxu0 %vm892_vm2, %v9683_v43 }
 0xb90   : > { %13390 = vmatpush3.bf16.msra.mxu0 %v13996_v53 }
 0xb91   : > { %10238 = vrot.lane.b32.xlu1 %v10038_v41, %s19884_s27  ;;  %13391 = vmatprep.subr.bf16.mxu0 %v13997_v39 }
 0xb92   : > { %10508 = vrot.lane.b32.xlu0 %v10125_v60, %s14278_s24 }
 0xb94   : > { %13392 = vmatpush3.bf16.msra.mxu0 %v13997_v39 }
 0xc5a   : > { %v9677_v51 = vpop.f32.mrb[30].mxu0 }
 0xc5b   : > { %v13377_v31 = vpop.f32.mrb[31].mxu0  ;;  %v9756_v30 = vmul.f32 %v9677_v51, %v9677_v51  ;;  %v9767_v45 = vrot.slane %v9677_v51, %v19970_v34 }
 0xc5d   : > { %v9768_v8 = vcombine.high %v9767_v45, %v9767_v45  ;;  %v9775_v49 = vrot.slane %v9767_v45, %v19970_v34  ;;  %v13999_v45 = vld [vmem:[%s19631_s14] sm:$0xff]  }
 0xc5f   : > { %v9782_v3 = vrot.slane %v9768_v8, %v19970_v34  ;;  %v9786_v52 = vrot.slane %v9775_v49, %v19971_v9 }
 0xc61   : > { %v9790_v61 = vrot.slane %v9782_v3, %v19971_v9  ;;  %v9793_v18 = vsub.f32 %v18743_v58, %v9786_v52  ;;  %v9794_v46 = vsub.f32 %v18741_v27, %v9786_v52  ;;  %v9795_v50 = vsub.f32 %v18758_v12, %v9786_v52 }
 0xc62   : > { %v9752_v24 = vpop.f32.mrb[32].mxu0  ;;  %v9796_v17 = vsub.f32 %v18754_v57, %v9786_v52  ;;  %v9797_v16 = vsub.f32 %v18773_v54, %v9786_v52  ;;  %v9798_v1 = vsub.f32 %v18768_v20, %v9786_v52  ;;  %v9799_v47 = vsub.f32 %v18787_v32, %v9786_v52 }
 0xc63   : > { %v13388_v25 = vpop.f32.mrb[33].mxu0  ;;  %v9757_v10 = vsub.f32 %v9752_v24, %v9756_v30  ;;  %v9800_v38 = vsub.f32 %v18785_v26, %v9786_v52  ;;  %v9801_v15 = vsub.f32 %v18804_v7, %v9790_v61  ;;  %v9802_v58 = vsub.f32 %v18796_v4, %v9790_v61 }
 0xc64   : > { %v9803_v27 = vsub.f32 %v18817_v33, %v9790_v61  ;;  %v9804_v12 = vsub.f32 %v18815_v0, %v9790_v61  ;;  %v9805_v20 = vsub.f32 %v18837_v5, %v9790_v61  ;;  %v9806_v44 = vsub.f32 %v18832_v35, %v9790_v61  ;;  %v11796_v0 = vld [vmem:[%s19628_s11] ss:$0 sm:$0xff] }
 0xc65   : > { %v9758_v42 = vadd.f32 1e-05, %v9757_v10  ;;  %v9807_v32 = vsub.f32 %v18853_v40, %v9790_v61  ;;  %v9808_v26 = vsub.f32 %v18848_v28, %v9790_v61 }
 0xc67   : > { %14180 = vrsqrt.f32 %v9758_v42 }
 0xc71   : > { %v14181_v63 = vpop.eup %14180 }
 0xc72   : > { %v9816_v36 = vrot.slane %v14181_v63, %v19970_v34  ;;  %v19972_v63 = vld [vmem:[#allocation28_spill] sm:$0xff] }
 0xc73   : > { %v9919_v61 = vsub.f32 1.0, %v19972_v63 }
 0xc74   : > { %v9817_v14 = vcombine.high %v9816_v36, %v9816_v36  ;;  %v9824_v21 = vrot.slane %v9816_v36, %v19970_v34 }
 0xc76   : > { %v9831_v57 = vrot.slane %v9817_v14, %v19970_v34  ;;  %v9835_v54 = vrot.slane %v9824_v21, %v19971_v9  ;;  %v13998_v34 = vld [vmem:[%s19631_s14 + $0x40] sm:$0xff]  }
 0xc77   : > { %12535 = vmatprep.subr.bf16.mxu1 %v13998_v34  ;;  %v19974_v21 = vld [vmem:[#allocation29_spill] sm:$0xff] }
 0xc78   : > { %v9839_v7 = vrot.slane %v9831_v57, %v19971_v9  ;;  %v9842_v6 = vmul.f32 %v9835_v54, %v9793_v18  ;;  %v9843_v4 = vmul.f32 %v9835_v54, %v9794_v46  ;;  %v9844_v37 = vmul.f32 %v9835_v54, %v9795_v50  ;;  %12536 = vmatpush3.bf16.msra.mxu1 %v13999_v45  ;;  %v14000_v46 = vld [vmem:[%s19631_s14 + $0x48] sm:$0xff]  }
 0xc79   : > { %v9845_v33 = vmul.f32 %v9835_v54, %v9796_v17  ;;  %v9846_v19 = vmul.f32 %v9835_v54, %v9797_v16  ;;  %v9847_v11 = vmul.f32 %v9835_v54, %v9798_v1  ;;  %v9848_v48 = vmul.f32 %v9835_v54, %v9799_v47  ;;  %v14001_v50 = vld [vmem:[%s19631_s14 + $0x8] sm:$0xff]   ;;  %v19973_v17 = vld [vmem:[#allocation21_spill] sm:$0xff]  ;;  %12537 = vmatprep.subr.bf16.mxu1 %v14000_v46 }
 0xc7a   : > { %v9849_v5 = vmul.f32 %v9835_v54, %v9800_v38  ;;  %v9850_v23 = vmul.f32 %v9839_v7, %v9801_v15  ;;  %v9851_v35 = vmul.f32 %v9839_v7, %v9802_v58  ;;  %v9852_v29 = vmul.f32 %v9839_v7, %v9803_v27 }
 0xc7b   : > { %v9853_v40 = vmul.f32 %v9839_v7, %v9804_v12  ;;  %v9854_v2 = vmul.f32 %v9839_v7, %v9805_v20  ;;  %v9855_v28 = vmul.f32 %v9839_v7, %v9806_v44  ;;  %v9856_v43 = vmul.f32 %v9839_v7, %v9807_v32  ;;  %v19975_v12 = vld [vmem:[#allocation24_spill] sm:$0xff]  ;;  %v14002_v20 = vld [vmem:[%s19631_s14 + $0x50] sm:$0xff]   ;;  %v19976_v44 = vld [vmem:[#allocation25_spill] sm:$0xff] }
 0xc7c   : > { %v9857_v59 = vmul.f32 %v9839_v7, %v9808_v26  ;;  %v9864_v56 = vmul.f32 %v11796_v0, %v9842_v6  ;;  %v9865_v22 = vmul.f32 %v11796_v0, %v9843_v4  ;;  %v9866_v55 = vmul.f32 %v11796_v0, %v9844_v37  ;;  %12538 = vmatpush3.bf16.msra.mxu1 %v14001_v50  ;;  %v19977_v26 = vld [vmem:[#allocation30_spill] sm:$0xff] }
 0xc7d   : > { %v9867_v62 = vmul.f32 %v11796_v0, %v9845_v33  ;;  %v9868_v41 = vmul.f32 %v11796_v0, %v9846_v19  ;;  %v9869_v60 = vmul.f32 %v11796_v0, %v9847_v11  ;;  %v9870_v51 = vmul.f32 %v11796_v0, %v9848_v48  ;;  %v19978_v37 = vld [vmem:[#allocation26_spill] sm:$0xff]  ;;  %v19979_v33 = vld [vmem:[#allocation9_spill] sm:$0xff]  ;;  %12539 = vmatprep.subr.bf16.mxu1 %v14002_v20  ;;  %v19992_v20 = vld [vmem:[#allocation16_spill] sm:$0xff] }
 0xc7e   : > { %v9886_v53 = vadd.f32 %v18921_v13, %v9864_v56  ;;  %v9887_v39 = vadd.f32 %v18921_v13, %v9865_v22  ;;  %v9888_v31 = vadd.f32 %v18921_v13, %v9866_v55  ;;  %v9871_v24 = vmul.f32 %v11796_v0, %v9849_v5  ;;  %v19980_v5 = vld [vmem:[#allocation27_spill] sm:$0xff]  ;;  %v14004_v55 = vld [vmem:[%s19631_s14 + $0x58] sm:$0xff]   ;;  %v19988_v50 = vld [vmem:[#allocation14_spill] sm:$0xff] }
 0xc7f   : > { %v9889_v30 = vadd.f32 %v18921_v13, %v9867_v62  ;;  %v9872_v25 = vmul.f32 %v11796_v0, %v9850_v23  ;;  %v9890_v10 = vadd.f32 %v18921_v13, %v9868_v41  ;;  %v9873_v42 = vmul.f32 %v11796_v0, %v9851_v35  ;;  %v19983_v62 = vld [vmem:[#allocation12_spill] sm:$0xff] }
 0xc80   : > { %14182 = vtanh.f32 %v9886_v53  ;;  %v9891_v8 = vadd.f32 %v18921_v13, %v9869_v60  ;;  %v9874_v49 = vmul.f32 %v11796_v0, %v9852_v29  ;;  %v9892_v3 = vadd.f32 %v18921_v13, %v9870_v51  ;;  %v19984_v51 = vld [vmem:[#allocation39_spill] sm:$0xff] }
 0xc81   : > { %14184 = vtanh.f32 %v9887_v39  ;;  %v9875_v9 = vmul.f32 %v11796_v0, %v9853_v40  ;;  %v9893_v52 = vadd.f32 %v18921_v13, %v9871_v24  ;;  %v9876_v36 = vmul.f32 %v11796_v0, %v9854_v2  ;;  %v14003_v40 = vld [vmem:[%s19631_s14 + $0x10] sm:$0xff]  }
 0xc82   : > { %14186 = vtanh.f32 %v9888_v31  ;;  %v9894_v18 = vadd.f32 %v18921_v13, %v9872_v25  ;;  %v9918_v16 = vsub.f32 1.0, %v19973_v17  ;;  %v9877_v1 = vmul.f32 %v11796_v0, %v9855_v28  ;;  %v19981_v28 = vld [vmem:[#allocation10_spill] sm:$0xff]  ;;  %12540 = vmatpush3.bf16.msra.mxu1 %v14003_v40 }
 0xc83   : > { %14188 = vtanh.f32 %v9889_v30  ;;  %v9895_v14 = vadd.f32 %v18921_v13, %v9873_v42  ;;  %v9921_v47 = vsub.f32 1.0, %v19974_v21  ;;  %v9878_v38 = vmul.f32 %v11796_v0, %v9856_v43  ;;  %12541 = vmatprep.subr.bf16.mxu1 %v14004_v55 }
 0xc84   : > { %14190 = vtanh.f32 %v9890_v10  ;;  %v9896_v15 = vadd.f32 %v18921_v13, %v9874_v49  ;;  %v9879_v58 = vmul.f32 %v11796_v0, %v9857_v59  ;;  %v9897_v27 = vadd.f32 %v18921_v13, %v9875_v9  ;;  %v19982_v59 = vld [vmem:[#allocation31_spill] sm:$0xff]  ;;  %v19985_v10 = vld [vmem:[#allocation33_spill] sm:$0xff] }
 0xc85   : > { %14192 = vtanh.f32 %v9891_v8  ;;  %v9920_v57 = vsub.f32 1.0, %v19975_v12  ;;  %v9898_v54 = vadd.f32 %v18921_v13, %v9876_v36  ;;  %v9935_v32 = vmul.f32 %v9919_v61, %v19976_v44  ;;  %v14005_v8 = vld [vmem:[%s19631_s14 + $0x18] sm:$0xff]  }
 0xc86   : > { %14194 = vtanh.f32 %v9892_v3  ;;  %v9922_v7 = vsub.f32 1.0, %v19977_v26  ;;  %v9899_v6 = vadd.f32 %v18921_v13, %v9877_v1  ;;  %v9934_v0 = vmul.f32 %v9918_v16, %v19978_v37  ;;  %v19986_v3 = vld [vmem:[#allocation11_spill] sm:$0xff]  ;;  %12542 = vmatpush3.bf16.msra.mxu1 %v14005_v8 }
 0xc87   : > { %14196 = vtanh.f32 %v9893_v52  ;;  %v9937_v19 = vmul.f32 %v9921_v47, %v19979_v33  ;;  %v9900_v11 = vadd.f32 %v18921_v13, %v9878_v38  ;;  %v9923_v23 = vsub.f32 1.0, %v19980_v5  ;;  %v19987_v52 = vld [vmem:[#allocation32_spill] sm:$0xff]  ;;  %v19989_v16 = vld [vmem:[#allocation35_spill] sm:$0xff]  ;;  %v19990_v38 = vld [vmem:[#allocation34_spill] sm:$0xff] }
 0xc88   : > { %14198 = vtanh.f32 %v9894_v18  ;;  %v9901_v35 = vadd.f32 %v18921_v13, %v9879_v58  ;;  %v9936_v43 = vmul.f32 %v9920_v57, %v19981_v28  ;;  %v9924_v56 = vsub.f32 1.0, %v19982_v59  ;;  %v14006_v18 = vld [vmem:[%s19631_s14 + $0x60] sm:$0xff]  }
 0xc89   : > { %14200 = vtanh.f32 %v9895_v14  ;;  %v9938_v41 = vmul.f32 %v9922_v7, %v19983_v62  ;;  %v9925_v31 = vsub.f32 1.0, %v19984_v51  ;;  %v9926_v34 = vsub.f32 1.0, %v19985_v10  ;;  %v19991_v58 = vld [vmem:[#allocation13_spill] sm:$0xff]  ;;  %12543 = vmatprep.subr.bf16.mxu1 %v14006_v18 }
 0xc8a   : > { %v14183_v4 = vpop.eup %14182  ;;  %14202 = vtanh.f32 %v9896_v15  ;;  %v9939_v9 = vmul.f32 %v9923_v23, %v19986_v3  ;;  %v9928_v1 = vsub.f32 1.0, %v19989_v16  ;;  %v9929_v15 = vsub.f32 1.0, %v19990_v38  ;;  %v14008_v23 = vld [vmem:[%s19631_s14 + $0x68] sm:$0xff]  }
 0xc8b   : > { %v14185_v48 = vpop.eup %14184  ;;  %14204 = vtanh.f32 %v9897_v27  ;;  %v9950_v29 = vmul.f32 %v14183_v4, %v19973_v17  ;;  %v9940_v17 = vmul.f32 %v9924_v56, %v19988_v50  ;;  %v9941_v27 = vmul.f32 %v9925_v31, %v19991_v58  ;;  %v14007_v4 = vld [vmem:[%s19631_s14 + $0x20] sm:$0xff]  }
 0xc8c   : > { %v14187_v2 = vpop.eup %14186  ;;  %14206 = vtanh.f32 %v9898_v54  ;;  %v9951_v22 = vmul.f32 %v14185_v48, %v19972_v63  ;;  %v9927_v63 = vsub.f32 1.0, %v19987_v52  ;;  %v9942_v44 = vmul.f32 %v9926_v34, %v19992_v20  ;;  %12544 = vmatpush3.bf16.msra.mxu1 %v14007_v4  ;;  %v20001_v34 = vld [vmem:[#allocation19_spill] sm:$0xff]  ;;  %v14009_v4 = vld [vmem:[%s19631_s14 + $0x28] sm:$0xff]  }
 0xc8d   : > { %v14189_v13 = vpop.eup %14188  ;;  %14208 = vtanh.f32 %v9899_v6  ;;  %v9952_v53 = vmul.f32 %v14187_v2, %v19975_v12  ;;  %v9966_v60 = vadd.f32 %v9950_v29, %v9934_v0  ;;  %v19994_v0 = vld [vmem:[#allocation15_spill] sm:$0xff]  ;;  %v19997_v2 = vld [vmem:[#allocation38_spill] sm:$0xff]  ;;  %12545 = vmatprep.subr.bf16.mxu1 %v14008_v23 }
 0xc8e   : > { %v14191_v39 = vpop.eup %14190  ;;  %14210 = vtanh.f32 %v9900_v11  ;;  %v9953_v24 = vmul.f32 %v14189_v13, %v19974_v21  ;;  %v9967_v30 = vadd.f32 %v9951_v22, %v9935_v32  ;;  %v19993_v32 = vld [vmem:[#allocation37_spill] sm:$0xff]  ;;  %v9943_v33 = vmul.f32 %v9927_v63, %v19994_v0  ;;  %v19996_v29 = vld [vmem:[#allocation23_spill] sm:$0xff]  ;;  %v19999_v13 = vld [vmem:[#allocation40_spill] sm:$0xff] }
 0xc8f   : > { %v14193_v25 = vpop.eup %14192  ;;  %14212 = vtanh.f32 %v9901_v35  ;;  %v9954_v45 = vmul.f32 %v14191_v39, %v19977_v26  ;;  %v9968_v42 = vadd.f32 %v9952_v53, %v9936_v43  ;;  %9982 = vst.msk [vmem:[#allocation2 + $0x11] sm:$0xff] %vm892_vm2, %v9966_v60  ;;  %v9930_v26 = vsub.f32 1.0, %v19993_v32  ;;  %v19998_v22 = vld [vmem:[#allocation17_spill] sm:$0xff] }
 0xc90   : > { %v14195_v49 = vpop.eup %14194  ;;  %v9955_v61 = vmul.f32 %v14193_v25, %v19980_v5  ;;  %v9969_v36 = vadd.f32 %v9953_v24, %v9937_v19  ;;  %9983 = vst.msk [vmem:[#allocation2 + $0x21] sm:$0xff] %vm892_vm2, %v9967_v30  ;;  %v19995_v19 = vld [vmem:[#allocation36_spill] sm:$0xff]  ;;  %v9944_v40 = vmul.f32 %v9928_v1, %v19996_v29  ;;  %v9932_v28 = vsub.f32 1.0, %v19997_v2  ;;  %12546 = vmatpush3.bf16.msra.mxu1 %v14009_v4 }
 0xc91   : > { %v14197_v46 = vpop.eup %14196  ;;  %v9956_v14 = vmul.f32 %v14195_v49, %v19982_v59  ;;  %v9970_v21 = vadd.f32 %v9954_v45, %v9938_v41  ;;  %9984 = vst.msk [vmem:[#allocation2 + $0x31] sm:$0xff] %vm892_vm2, %v9968_v42  ;;  %v9931_v11 = vsub.f32 1.0, %v19995_v19  ;;  %v9945_v55 = vmul.f32 %v9929_v15, %v19998_v22 }
 0xc92   : > { %v14199_v47 = vpop.eup %14198  ;;  %v9957_v12 = vmul.f32 %v14197_v46, %v19984_v51  ;;  %v9971_v57 = vadd.f32 %v9955_v61, %v9939_v9  ;;  %9985 = vst.msk [vmem:[#allocation2 + $0x41] sm:$0xff] %vm892_vm2, %v9969_v36  ;;  %v9933_v62 = vsub.f32 1.0, %v19999_v13  ;;  %v20000_v51 = vld [vmem:[#allocation18_spill] sm:$0xff]  ;;  %v20002_v9 = vld [vmem:[#allocation20_spill] sm:$0xff] }
 0xc93   : > { %v14201_v54 = vpop.eup %14200  ;;  %v9958_v7 = vmul.f32 %v14199_v47, %v19985_v10  ;;  %v9972_v6 = vadd.f32 %v9956_v14, %v9940_v17  ;;  %9986 = vst.msk [vmem:[#allocation2 + $0x51] sm:$0xff] %vm892_vm2, %v9970_v21  ;;  %v9946_v31 = vmul.f32 %v9930_v26, %v20000_v51  ;;  %v9947_v45 = vmul.f32 %v9931_v11, %v20001_v34  ;;  %v20003_v46 = vld [vmem:[#allocation22_spill] sm:$0xff] }
 0xc94   : > { %v14203_v37 = vpop.eup %14202  ;;  %v9959_v48 = vmul.f32 %v14201_v54, %v19987_v52  ;;  %v9973_v5 = vadd.f32 %v9957_v12, %v9941_v27  ;;  %9987 = vst.msk [vmem:[#allocation2 + $0x61] sm:$0xff] %vm892_vm2, %v9971_v57  ;;  %v9948_v52 = vmul.f32 %v9932_v28, %v20002_v9  ;;  %v9949_v50 = vmul.f32 %v9933_v62, %v20003_v46 }
 0xc95   : > { %v14205_v35 = vpop.eup %14204  ;;  %v9960_v43 = vmul.f32 %v14203_v37, %v19989_v16  ;;  %v9974_v59 = vadd.f32 %v9958_v7, %v9942_v44  ;;  %9988 = vst.msk [vmem:[#allocation2 + $0x71] sm:$0xff] %vm892_vm2, %v9972_v6  ;;  %v20004_v37 = vld [vmem:[#allocation5_spill] sm:$0xff] }
 0xc96   : > { %v14207_v56 = vpop.eup %14206  ;;  %v9961_v41 = vmul.f32 %v14205_v35, %v19990_v38  ;;  %v9975_v53 = vadd.f32 %v9959_v48, %v9943_v33  ;;  %9989 = vst.msk [vmem:[#allocation2 + $0x81] sm:$0xff] %vm892_vm2, %v9973_v5  ;;  %v19020_v60 = vld [vmem:[#allocation2 + $0x12] sm:$0xff] }
 0xc97   : > { %v14209_v39 = vpop.eup %14208  ;;  %v9962_v24 = vmul.f32 %v14207_v56, %v19993_v32  ;;  %v9976_v30 = vadd.f32 %v9960_v43, %v9944_v40  ;;  %9990 = vst.msk [vmem:[#allocation2 + $0xb1] sm:$0xff] %vm892_vm2, %v9974_v59  ;;  %v19025_v25 = vld [vmem:[#allocation2 + $0x22] sm:$0xff]  ;;  %10350 = vrot.lane.b32.xlu1 %v19020_v60, %s19952_s19  ;;  %v19066_v15 = vld [vmem:[#allocation2 + $0x11] sm:$0xff] }
 0xc98   : > { %v14211_v10 = vpop.eup %14210  ;;  %v9963_v42 = vmul.f32 %v14209_v39, %v19995_v19  ;;  %v9977_v8 = vadd.f32 %v9961_v41, %v9945_v55  ;;  %9991 = vst.msk [vmem:[#allocation2 + $0xc1] sm:$0xff] %vm892_vm2, %v9975_v53  ;;  %10352 = vrot.lane.b32.xlu0 %v19025_v25, %s19952_s19  ;;  %v19034_v49 = vld [vmem:[#allocation2 + $0x32] sm:$0xff]  ;;  %11082 = vst.msk [vmem:[#allocation3 + $0x10] sm:$0xff] %vm892_vm2, %v19025_v25  ;;  %v19054_v14 = vld [vmem:[#allocation2 + $0x20] sm:$0xff] }
 0xc99   : > { %v14213_v3 = vpop.eup %14212  ;;  %v9964_v63 = vmul.f32 %v14211_v10, %v19997_v2  ;;  %v9978_v61 = vadd.f32 %v9962_v24, %v9946_v31  ;;  %9992 = vst.msk [vmem:[#allocation2 + $0xd1] sm:$0xff] %vm892_vm2, %v9976_v30  ;;  %v10624_v36 = vpack.c.bf16 %v19034_v49, %v19025_v25  ;;  %11085 = vst.msk [vmem:[#allocation3 + $0x28] sm:$0xff] %vm892_vm2, %v19034_v49  ;;  %v19045_v18 = vld [vmem:[#allocation2 + $0x42] sm:$0xff]  ;;  %v19091_v20 = vld [vmem:[#allocation2 + $0x30] sm:$0xff]  ;;  %v19254_v30 = vpop.permute.xlu0 %10428 }
 0xc9a   : > { %v9965_v17 = vmul.f32 %v14213_v3, %v19999_v13  ;;  %v9979_v16 = vadd.f32 %v9963_v42, %v9947_v45  ;;  %9993 = vst.msk [vmem:[#allocation2 + $0xe1] sm:$0xff] %vm892_vm2, %v9977_v8  ;;  %v19050_v1 = vld [vmem:[#allocation2 + $0x52] sm:$0xff]  ;;  %11088 = vst.msk [vmem:[#allocation3 + $0x40] sm:$0xff] %vm892_vm2, %v19045_v18  ;;  %v19084_v54 = vld [vmem:[#allocation2 + $0x21] sm:$0xff]  ;;  %v10159_v10 = vpop.permute.xlu1 %10158 }
 0xc9b   : > { %v9980_v21 = vadd.f32 %v9964_v63, %v9948_v52  ;;  %9994 = vst.msk [vmem:[#allocation2 + $0xf1] sm:$0xff] %vm892_vm2, %v9978_v61  ;;  %13393 = vmatprep.mubr.msk.bf16.mxu0 %vm892_vm2, %v10624_v36  ;;  %v10627_v47 = vpack.c.bf16 %v19050_v1, %v19045_v18  ;;  %11091 = vst.msk [vmem:[#allocation3 + $0x58] sm:$0xff] %vm892_vm2, %v19050_v1  ;;  %v19062_v38 = vld [vmem:[#allocation2 + $0x62] sm:$0xff]  ;;  %10414 = vrot.lane.b32.xlu1 %v19054_v14, %s19884_s27  ;;  %v19105_v7 = vld [vmem:[#allocation2 + $0x10] sm:$0xff] }
 0xc9c   : > { %v9981_v58 = vadd.f32 %v9965_v17, %v9949_v50  ;;  %9995 = vst.msk [vmem:[#allocation2 + $0x101] sm:$0xff] %vm892_vm2, %v9979_v16  ;;  %v19069_v27 = vld [vmem:[#allocation2 + $0x72] sm:$0xff]  ;;  %11094 = vst.msk [vmem:[#allocation3 + $0x70] sm:$0xff] %vm892_vm2, %v19062_v38  ;;  %10160 = vrot.lane.b32.xlu0 %v19066_v15, %s19952_s19  ;;  %v19166_v43 = vld [vmem:[#allocation2 + $0x40] sm:$0xff] }
 0xc9d   : > { %9996 = vst.msk [vmem:[#allocation2 + $0x111] sm:$0xff] %vm892_vm2, %v9980_v21  ;;  %13394 = vmatmul.mubr.msk.bf16.vlgmr.msra.gmra.mrb[36].mxu0 %vm892_vm2, %v10627_v47  ;;  %v10630_v12 = vpack.c.bf16 %v19069_v27, %v19062_v38  ;;  %11097 = vst.msk [vmem:[#allocation3 + $0x88] sm:$0xff] %vm892_vm2, %v19069_v27  ;;  %v19081_v57 = vld [vmem:[#allocation2 + $0x82] sm:$0xff]  ;;  %v14010_v19 = vld [vmem:[%s19631_s14 + $0x70] sm:$0xff]   ;;  %v19270_v42 = vpop.permute.xlu0 %10492 }
 0xc9e   : > { %9997 = vst.msk [vmem:[#allocation2 + $0x121] sm:$0xff] %vm892_vm2, %v9981_v58  ;;  %11100 = vst.msk [vmem:[#allocation3 + $0xa0] sm:$0xff] %vm892_vm2, %v19081_v57  ;;  %v10633_v0 = vpack.c.bf16 %v20004_v37, %v19081_v57  ;;  %v14011_v5 = vld [vmem:[%s19631_s14 + $0x30] sm:$0xff]   ;;  %12547 = vmatprep.subr.bf16.mxu1 %v14010_v19  ;;  %v14012_v35 = vld [vmem:[%s19631_s14 + $0x78] sm:$0xff]   ;;  %v10223_v8 = vpop.permute.xlu1 %10222 }
 0xc9f   : > { %13397 = vmatprep.mubr.msk.bf16.mxu0 %vm892_vm2, %v10630_v12  ;;  %10478 = vrot.lane.b32.xlu1 %v19084_v54, %s14278_s24  ;;  %v19093_v44 = vld [vmem:[#allocation2 + $0xc2] sm:$0xff]  ;;  %v19149_v29 = vld [vmem:[#allocation2 + $0x31] sm:$0xff] }
 0xca0   : > { %10416 = vrot.lane.b32.xlu0 %v19091_v20, %s19884_s27  ;;  %v19097_v32 = vld [vmem:[#allocation2 + $0xd2] sm:$0xff]  ;;  %11106 = vst.msk [vmem:[#allocation3 + $0xd0] sm:$0xff] %vm892_vm2, %v19093_v44  ;;  %12548 = vmatpush3.bf16.msra.mxu1 %v14011_v5  ;;  %v20005_v59 = vld [vmem:[#allocation6_spill] sm:$0xff]  ;;  %v19201_v62 = vld [vmem:[#allocation2 + $0x60] sm:$0xff] }
 0xca1   : > { %11109 = vst.msk [vmem:[#allocation3 + $0xe8] sm:$0xff] %vm892_vm2, %v19097_v32  ;;  %v19103_v26 = vld [vmem:[#allocation2 + $0xe2] sm:$0xff]  ;;  %v10636_v11 = vpack.c.bf16 %v19097_v32, %v19093_v44  ;;  %v14013_v40 = vld [vmem:[%s19631_s14 + $0x38] sm:$0xff]   ;;  %12549 = vmatprep.subr.bf16.mxu1 %v14012_v35  ;;  %v19183_v55 = vld [vmem:[#allocation2 + $0x50] sm:$0xff]  ;;  %v19277_v3 = vpop.permute.xlu0 %10444 }
 0xca2   : > { %v19107_v6 = vld [vmem:[#allocation2 + $0xf2] sm:$0xff]  ;;  %11112 = vst.msk [vmem:[#allocation3 + $0x100] sm:$0xff] %vm892_vm2, %v19103_v26  ;;  %v19179_v22 = vld [vmem:[#allocation2 + $0x41] sm:$0xff]  ;;  %v19279_v9 = vpop.permute.xlu1 %10174 }
 0xca3   : > { %10286 = vrot.lane.b32.xlu1 %v19105_v7, %s14278_s24  ;;  %11115 = vst.msk [vmem:[#allocation3 + $0x118] sm:$0xff] %vm892_vm2, %v19107_v6  ;;  %v19120_v33 = vld [vmem:[#allocation2 + $0x102] sm:$0xff]  ;;  %v10639_v2 = vpack.c.bf16 %v19107_v6, %v19103_v26  ;;  %v19193_v13 = vld [vmem:[#allocation2 + $0x51] sm:$0xff] }
 0xca4   : > { %10224 = vrot.lane.b32.xlu0 %v19020_v60, %s19884_s27  ;;  %v19129_v48 = vld [vmem:[#allocation2 + $0x112] sm:$0xff]  ;;  %11118 = vst.msk [vmem:[#allocation3 + $0x130] sm:$0xff] %vm892_vm2, %v19120_v33  ;;  %12550 = vmatpush3.bf16.msra.mxu1 %v14013_v40  ;;  %v19211_v41 = vld [vmem:[#allocation2 + $0x61] sm:$0xff] }
 0xca5   : > { %13398 = vmatmul.mubr.msk.bf16.gmra.mrb[40].mxu0 %vm892_vm2, %v10633_v0  ;;  %11121 = vst.msk [vmem:[#allocation3 + $0x148] sm:$0xff] %vm892_vm2, %v19129_v48  ;;  %v19139_v23 = vld [vmem:[#allocation2 + $0x122] sm:$0xff]  ;;  %v10642_v28 = vpack.c.bf16 %v19129_v48, %v19120_v33  ;;  %v19215_v53 = vld [vmem:[#allocation2 + $0x70] sm:$0xff]  ;;  %v19291_v63 = vpop.permute.xlu0 %10508 }
 0xca6   : > { %13401 = vmatprep.mubr.msk.bf16.mxu0 %vm892_vm2, %v10636_v11  ;;  %11124 = vst.msk [vmem:[#allocation3 + $0x160] sm:$0xff] %vm892_vm2, %v19139_v23  ;;  %v10645_v56 = vpack.c.bf16 %v20005_v59, %v19139_v23  ;;  %v19225_v60 = vld [vmem:[#allocation2 + $0x71] sm:$0xff]  ;;  %v10100_v39 = vld [vmem:[#allocation2 + $0x80] sm:$0xff]  ;;  %v19293_v61 = vpop.permute.xlu1 %10238 }
 0xca7   : > { %10354 = vrot.lane.b32.xlu1 %v19034_v49, %s19952_s19  ;;  %v19240_v51 = vld [vmem:[#allocation2 + $0x81] sm:$0xff]  ;;  %v10086_v31 = vld [vmem:[#allocation2 + $0xb2] sm:$0xff] }
 0xca8   : > { %10480 = vrot.lane.b32.xlu0 %v19149_v29, %s14278_s24  ;;  %v19252_v24 = vld [vmem:[#allocation2 + $0xc0] sm:$0xff]  ;;  %v19266_v45 = vld [vmem:[#allocation2 + $0xd0] sm:$0xff] }
 0xca9   : > { %v19262_v34 = vld [vmem:[#allocation2 + $0xc1] sm:$0xff]  ;;  %v19283_v52 = vld [vmem:[#allocation2 + $0xd1] sm:$0xff] }
 0xcaa   : > { %v19295_v36 = vld [vmem:[#allocation2 + $0xe0] sm:$0xff]  ;;  %v19309_v21 = vld [vmem:[#allocation2 + $0xf0] sm:$0xff] }
 0xcab   : > { %10162 = vrot.lane.b32.xlu1 %v19084_v54, %s19952_s19  ;;  %v19305_v16 = vld [vmem:[#allocation2 + $0xe1] sm:$0xff]  ;;  %v19326_v0 = vld [vmem:[#allocation2 + $0xf1] sm:$0xff] }
 0xcac   : > { %10288 = vrot.lane.b32.xlu0 %v19054_v14, %s14278_s24 }
 0xcad   : > { %13402 = vmatmul.mubr.msk.bf16.gmra.mrb[44].mxu0 %vm892_vm2, %v10639_v2 }
 0xcae   : > { %13405 = vmatprep.mubr.msk.bf16.mxu0 %vm892_vm2, %v10642_v28 }
 0xcaf   : > { %10418 = vrot.lane.b32.xlu1 %v19166_v43, %s19884_s27 }
 0xcb0   : > { %10356 = vrot.lane.b32.xlu0 %v19045_v18, %s19952_s19 }
 0xcb3   : > { %10226 = vrot.lane.b32.xlu1 %v19025_v25, %s19884_s27  ;;  %v19258_v25 = vld [vmem:[#allocation2 + $0xb1] sm:$0xff] }
 0xcb4   : > { %10164 = vrot.lane.b32.xlu0 %v19149_v29, %s19952_s19 }
 0xcb5   : > { %13406 = vmatmul.mubr.msk.bf16.gmra.mrb[48].mxu0 %vm892_vm2, %v10645_v56  ;;  %v19341_v56 = vld [vmem:[#allocation2 + $0x100] sm:$0xff] }
 0xcb7   : > { %10482 = vrot.lane.b32.xlu1 %v19179_v22, %s14278_s24 }
 0xcb8   : > { %10420 = vrot.lane.b32.xlu0 %v19183_v55, %s19884_s27 }
 0xcbb   : > { %10290 = vrot.lane.b32.xlu1 %v19091_v20, %s14278_s24 }
 0xcbc   : > { %10228 = vrot.lane.b32.xlu0 %v19034_v49, %s19884_s27  ;;  %v19272_v49 = vld [vmem:[#allocation2 + $0xb0] sm:$0xff] }
 0xcbf   : > { %10358 = vrot.lane.b32.xlu1 %v19050_v1, %s19952_s19 }
 0xcc0   : > { %10484 = vrot.lane.b32.xlu0 %v19193_v13, %s14278_s24 }
 0xcc3   : > { %10166 = vrot.lane.b32.xlu1 %v19179_v22, %s19952_s19 }
 0xcc4   : > { %10292 = vrot.lane.b32.xlu0 %v19166_v43, %s14278_s24 }
 0xcc7   : > { %10422 = vrot.lane.b32.xlu1 %v19201_v62, %s19884_s27 }
 0xcc8   : > { %10360 = vrot.lane.b32.xlu0 %v19062_v38, %s19952_s19 }
 0xccb   : > { %10230 = vrot.lane.b32.xlu1 %v19045_v18, %s19884_s27 }
 0xccc   : > { %10168 = vrot.lane.b32.xlu0 %v19193_v13, %s19952_s19 }
 0xccf   : > { %10486 = vrot.lane.b32.xlu1 %v19211_v41, %s14278_s24 }
 0xcd0   : > { %10424 = vrot.lane.b32.xlu0 %v19215_v53, %s19884_s27 }
 0xcd3   : > { %10294 = vrot.lane.b32.xlu1 %v19183_v55, %s14278_s24 }
 0xcd4   : > { %10232 = vrot.lane.b32.xlu0 %v19050_v1, %s19884_s27  ;;  %v9998_v1 = vld [vmem:[#allocation2] sm:$0xff] }
 0xcd7   : > { %10362 = vrot.lane.b32.xlu1 %v19069_v27, %s19952_s19 }
 0xcd8   : > { %10488 = vrot.lane.b32.xlu0 %v19225_v60, %s14278_s24 }
 0xcdb   : > { %10170 = vrot.lane.b32.xlu1 %v19211_v41, %s19952_s19 }
 0xcdc   : > { %10296 = vrot.lane.b32.xlu0 %v19201_v62, %s14278_s24 }
 0xcdf   : > { %10426 = vrot.lane.b32.xlu1 %v10100_v39, %s19884_s27 }
 0xce0   : > { %10364 = vrot.lane.b32.xlu0 %v19081_v57, %s19952_s19 }
 0xce3   : > { %10234 = vrot.lane.b32.xlu1 %v19062_v38, %s19884_s27 }
 0xce4   : > { %10172 = vrot.lane.b32.xlu0 %v19225_v60, %s19952_s19 }
 0xce7   : > { %10490 = vrot.lane.b32.xlu1 %v19240_v51, %s14278_s24 }
 0xce8   : > { %10236 = vrot.lane.b32.xlu0 %v19069_v27, %s19884_s27  ;;  %v10526_v27 = vsel %vm892_vm2, %v9998_v1, %v10159_v10 }
 0xceb   : > { %10298 = vrot.lane.b32.xlu1 %v19215_v53, %s14278_s24 }
 0xcec   : > { %10300 = vrot.lane.b32.xlu0 %v10100_v39, %s14278_s24 }
 0xcef   : > { %10366 = vrot.lane.b32.xlu1 %v10086_v31, %s19952_s19 }
 0xcf0   : > { %10368 = vrot.lane.b32.xlu0 %v19093_v44, %s19952_s19 }
 0xcf3   : > { %10430 = vrot.lane.b32.xlu1 %v19252_v24, %s19884_s27 }
 0xcf4   : > { %10176 = vrot.lane.b32.xlu0 %v19258_v25, %s19952_s19 }
 0xcf7   : > { %10494 = vrot.lane.b32.xlu1 %v19262_v34, %s14278_s24 }
 0xcf8   : > { %10432 = vrot.lane.b32.xlu0 %v19266_v45, %s19884_s27 }
 0xcfb   : > { %10302 = vrot.lane.b32.xlu1 %v19272_v49, %s14278_s24 }
 0xcfc   : > { %10240 = vrot.lane.b32.xlu0 %v10086_v31, %s19884_s27 }
 0xcff   : > { %10370 = vrot.lane.b32.xlu1 %v19097_v32, %s19952_s19 }
 0xd00   : > { %10496 = vrot.lane.b32.xlu0 %v19283_v52, %s14278_s24 }
 0xd03   : > { %10178 = vrot.lane.b32.xlu1 %v19262_v34, %s19952_s19 }
 0xd04   : > { %10304 = vrot.lane.b32.xlu0 %v19252_v24, %s14278_s24 }
 0xd07   : > { %10434 = vrot.lane.b32.xlu1 %v19295_v36, %s19884_s27 }
 0xd08   : > { %10372 = vrot.lane.b32.xlu0 %v19103_v26, %s19952_s19 }
 0xd09   : > { %v10351_v18 = vpop.permute.xlu1 %10350 }
 0xd0a   : > { %v10353_v46 = vpop.permute.xlu0 %10352  ;;  %v10574_v47 = vsel %vm892_vm2, %v19066_v15, %v10351_v18  ;;  %v10542_v15 = vsel %vm1458_vm5, %v10526_v27, %v10223_v8 }
 0xd0b   : > { %10242 = vrot.lane.b32.xlu1 %v19093_v44, %s19884_s27  ;;  %v10575_v19 = vsel %vm892_vm2, %v19084_v54, %v10353_v46  ;;  %v19352_v46 = vld [vmem:[#allocation2 + $0x101] sm:$0xff] }
 0xd0c   : > { %10180 = vrot.lane.b32.xlu0 %v19283_v52, %s19952_s19 }
 0xd0d   : > { %v10415_v50 = vpop.permute.xlu1 %10414 }
 0xd0e   : > { %v10161_v17 = vpop.permute.xlu0 %10160  ;;  %v10590_v38 = vsel %vm1458_vm5, %v10574_v47, %v10415_v50  ;;  %v19356_v50 = vld [vmem:[#allocation2 + $0x110] sm:$0xff] }
 0xd0f   : > { %10498 = vrot.lane.b32.xlu1 %v19305_v16, %s14278_s24  ;;  %v10527_v2 = vsel %vm892_vm2, %v19105_v7, %v10161_v17 }
 0xd10   : > { %10436 = vrot.lane.b32.xlu0 %v19309_v21, %s19884_s27 }
 0xd11   : > { %v10479_v58 = vpop.permute.xlu1 %10478 }
 0xd12   : > { %v10606_v12 = vsel %vm5420_vm7, %v10590_v38, %v10479_v58  ;;  %v10417_v57 = vpop.permute.xlu0 %10416 }
 0xd13   : > { %11081 = vst [vmem:[#allocation3 + $0x8] sm:$0xff] %v10606_v12  ;;  %10306 = vrot.lane.b32.xlu1 %v19266_v45, %s14278_s24 }
 0xd14   : > { %10244 = vrot.lane.b32.xlu0 %v19097_v32, %s19884_s27  ;;  %v10591_v32 = vsel %vm1458_vm5, %v10575_v19, %v10417_v57 }
 0xd15   : > { %v10287_v44 = vpop.permute.xlu1 %10286 }
 0xd16   : > { %v10558_v4 = vsel %vm5420_vm7, %v10542_v15, %v10287_v44  ;;  %v10225_v37 = vpop.permute.xlu0 %10224  ;;  %v19374_v15 = vld [vmem:[#allocation2 + $0x111] sm:$0xff] }
 0xd17   : > { %11080 = vst [vmem:[#allocation3] sm:$0xff] %v10558_v4  ;;  %10374 = vrot.lane.b32.xlu1 %v19107_v6, %s19952_s19  ;;  %v10543_v54 = vsel %vm1458_vm5, %v10527_v2, %v10225_v37 }
 0xd18   : > { %10500 = vrot.lane.b32.xlu0 %v19326_v0, %s14278_s24 }
 0xd19   : > { %v10355_v11 = vpop.permute.xlu1 %10354 }
 0xd1a   : > { %v10481_v5 = vpop.permute.xlu0 %10480  ;;  %v10576_v17 = vsel %vm892_vm2, %v19149_v29, %v10355_v11 }
 0xd1b   : > { %v10607_v35 = vsel %vm5420_vm7, %v10591_v32, %v10481_v5  ;;  %10182 = vrot.lane.b32.xlu1 %v19305_v16, %s19952_s19 }
 0xd1c   : > { %v10623_v40 = vpack.c.bf16 %v10607_v35, %v10606_v12  ;;  %11084 = vst [vmem:[#allocation3 + $0x20] sm:$0xff] %v10607_v35  ;;  %10308 = vrot.lane.b32.xlu0 %v19295_v36, %s14278_s24  ;;  %v10108_v35 = vld [vmem:[#allocation2 + $0x120] sm:$0xff] }
 0xd1d   : > { %v10163_v28 = vpop.permute.xlu1 %10162 }
 0xd1e   : > { %10853 = vmatprep.mubr.bf16.mxu1 %v10623_v40  ;;  %v10289_v59 = vpop.permute.xlu0 %10288  ;;  %v10528_v58 = vsel %vm892_vm2, %v19054_v14, %v10163_v28 }
 0xd1f   : > { %v10559_v39 = vsel %vm5420_vm7, %v10543_v54, %v10289_v59  ;;  %10438 = vrot.lane.b32.xlu1 %v19341_v56, %s19884_s27 }
 0xd20   : > { %v10622_v31 = vpack.c.bf16 %v10559_v39, %v10558_v4  ;;  %11083 = vst [vmem:[#allocation3 + $0x18] sm:$0xff] %v10559_v39  ;;  %10376 = vrot.lane.b32.xlu0 %v19120_v33, %s19952_s19  ;;  %v19397_v39 = vld [vmem:[#allocation2 + $0x121] sm:$0xff] }
 0xd21   : > { %v10419_v10 = vpop.permute.xlu1 %10418 }
 0xd22   : > { %v10357_v8 = vpop.permute.xlu0 %10356  ;;  %10854 = vmatmul.mubr.bf16.vlgmr.msra.gmra.mrb[32].mxu1 %v10622_v31 }
 0xd23   : > { %10246 = vrot.lane.b32.xlu1 %v19103_v26, %s19884_s27  ;;  %v10592_v26 = vsel %vm1458_vm5, %v10576_v17, %v10419_v10  ;;  %v10577_v14 = vsel %vm892_vm2, %v19179_v22, %v10357_v8 }
 0xd24   : > { %10184 = vrot.lane.b32.xlu0 %v19326_v0, %s19952_s19 }
 0xd25   : > { %v10227_v7 = vpop.permute.xlu1 %10226 }
 0xd26   : > { %v10165_v18 = vpop.permute.xlu0 %10164  ;;  %v10544_v29 = vsel %vm1458_vm5, %v10528_v58, %v10227_v7 }
 0xd27   : > { %10502 = vrot.lane.b32.xlu1 %v19352_v46, %s14278_s24  ;;  %v10529_v11 = vsel %vm892_vm2, %v19091_v20, %v10165_v18 }
 0xd28   : > { %10440 = vrot.lane.b32.xlu0 %v19356_v50, %s19884_s27 }
 0xd29   : > { %v10483_v1 = vpop.permute.xlu1 %10482 }
 0xd2a   : > { %v10608_v47 = vsel %vm5420_vm7, %v10592_v26, %v10483_v1  ;;  %v10421_v38 = vpop.permute.xlu0 %10420 }
 0xd2b   : > { %11087 = vst [vmem:[#allocation3 + $0x38] sm:$0xff] %v10608_v47  ;;  %10310 = vrot.lane.b32.xlu1 %v19309_v21, %s14278_s24 }
 0xd2c   : > { %10248 = vrot.lane.b32.xlu0 %v19107_v6, %s19884_s27  ;;  %v10593_v6 = vsel %vm1458_vm5, %v10577_v14, %v10421_v38 }
 0xd2d   : > { %v10291_v27 = vpop.permute.xlu1 %10290 }
 0xd2e   : > { %v10560_v12 = vsel %vm5420_vm7, %v10544_v29, %v10291_v27  ;;  %v10229_v57 = vpop.permute.xlu0 %10228 }
 0xd2f   : > { %11086 = vst [vmem:[#allocation3 + $0x30] sm:$0xff] %v10560_v12  ;;  %10378 = vrot.lane.b32.xlu1 %v19129_v48, %s19952_s19  ;;  %v10545_v22 = vsel %vm1458_vm5, %v10529_v11, %v10229_v57 }
 0xd30   : > { %10504 = vrot.lane.b32.xlu0 %v19374_v15, %s14278_s24 }
 0xd31   : > { %v10359_v44 = vpop.permute.xlu1 %10358 }
 0xd32   : > { %v10485_v4 = vpop.permute.xlu0 %10484  ;;  %v10578_v31 = vsel %vm892_vm2, %v19193_v13, %v10359_v44 }
 0xd33   : > { %v10609_v37 = vsel %vm5420_vm7, %v10593_v6, %v10485_v4  ;;  %10186 = vrot.lane.b32.xlu1 %v19352_v46, %s19952_s19 }
 0xd34   : > { %v10626_v19 = vpack.c.bf16 %v10609_v37, %v10608_v47  ;;  %11090 = vst [vmem:[#allocation3 + $0x50] sm:$0xff] %v10609_v37  ;;  %10312 = vrot.lane.b32.xlu0 %v19341_v56, %s14278_s24 }
 0xd35   : > { %v10167_v32 = vpop.permute.xlu1 %10166 }
 0xd36   : > { %v10293_v5 = vpop.permute.xlu0 %10292  ;;  %10861 = vmatprep.mubr.bf16.mxu1 %v10626_v19  ;;  %v10530_v7 = vsel %vm892_vm2, %v19166_v43, %v10167_v32 }
 0xd37   : > { %v10561_v40 = vsel %vm5420_vm7, %v10545_v22, %v10293_v5  ;;  %10442 = vrot.lane.b32.xlu1 %v10108_v35, %s19884_s27 }
 0xd38   : > { %v10625_v2 = vpack.c.bf16 %v10561_v40, %v10560_v12  ;;  %11089 = vst [vmem:[#allocation3 + $0x48] sm:$0xff] %v10561_v40  ;;  %10380 = vrot.lane.b32.xlu0 %v19139_v23, %s19952_s19 }
 0xd39   : > { %v10423_v28 = vpop.permute.xlu1 %10422 }
 0xd3a   : > { %v10361_v54 = vpop.permute.xlu0 %10360  ;;  %10862 = vmatmul.mubr.bf16.gmra.mrb[36].mxu1 %v10625_v2  ;;  %v10594_v23 = vsel %vm1458_vm5, %v10578_v31, %v10423_v28 }
 0xd3b   : > { %10250 = vrot.lane.b32.xlu1 %v19120_v33, %s19884_s27  ;;  %v10579_v26 = vsel %vm892_vm2, %v19211_v41, %v10361_v54 }
 0xd3c   : > { %10188 = vrot.lane.b32.xlu0 %v19374_v15, %s19952_s19 }
 0xd3d   : > { %v10231_v20 = vpop.permute.xlu1 %10230 }
 0xd3e   : > { %v10169_v59 = vpop.permute.xlu0 %10168  ;;  %v10546_v13 = vsel %vm1458_vm5, %v10530_v7, %v10231_v20 }
 0xd3f   : > { %10506 = vrot.lane.b32.xlu1 %v19397_v39, %s14278_s24  ;;  %v10531_v43 = vsel %vm892_vm2, %v19183_v55, %v10169_v59 }
 0xd40   : > { %10252 = vrot.lane.b32.xlu0 %v19129_v48, %s19884_s27 }
 0xd41   : > { %v10487_v10 = vpop.permute.xlu1 %10486 }
 0xd42   : > { %v10610_v33 = vsel %vm5420_vm7, %v10594_v23, %v10487_v10  ;;  %v10425_v8 = vpop.permute.xlu0 %10424 }
 0xd43   : > { %11093 = vst [vmem:[#allocation3 + $0x68] sm:$0xff] %v10610_v33  ;;  %10314 = vrot.lane.b32.xlu1 %v19356_v50, %s14278_s24  ;;  %v10595_v47 = vsel %vm1458_vm5, %v10579_v26, %v10425_v8  ;;  %v10006_v8 = vld [vmem:[#allocation2 + $0xa0] sm:$0xff] }
 0xd44   : > { %10316 = vrot.lane.b32.xlu0 %v10108_v35, %s14278_s24 }
 0xd45   : > { %v10295_v18 = vpop.permute.xlu1 %10294 }
 0xd46   : > { %v10562_v48 = vsel %vm5420_vm7, %v10546_v13, %v10295_v18  ;;  %v10233_v17 = vpop.permute.xlu0 %10232  ;;  %v10534_v18 = vsel %vm892_vm2, %v10006_v8, %v19279_v9 }
 0xd47   : > { %11092 = vst [vmem:[#allocation3 + $0x60] sm:$0xff] %v10562_v48  ;;  %v10547_v12 = vsel %vm1458_vm5, %v10531_v43, %v10233_v17  ;;  %v10550_v26 = vsel %vm1458_vm5, %v10534_v18, %v19293_v61 }
 0xd49   : > { %v10363_v1 = vpop.permute.xlu1 %10362 }
 0xd4a   : > { %v10489_v38 = vpop.permute.xlu0 %10488  ;;  %v10580_v32 = vsel %vm892_vm2, %v19225_v60, %v10363_v1 }
 0xd4b   : > { %v10611_v58 = vsel %vm5420_vm7, %v10595_v47, %v10489_v38 }
 0xd4c   : > { %v10629_v29 = vpack.c.bf16 %v10611_v58, %v10610_v33  ;;  %11096 = vst [vmem:[#allocation3 + $0x80] sm:$0xff] %v10611_v58 }
 0xd4d   : > { %v10171_v27 = vpop.permute.xlu1 %10170 }
 0xd4e   : > { %v10297_v57 = vpop.permute.xlu0 %10296  ;;  %10869 = vmatprep.mubr.bf16.mxu1 %v10629_v29 }
 0xd4f   : > { %v10563_v14 = vsel %vm5420_vm7, %v10547_v12, %v10297_v57 }
 0xd50   : > { %v10628_v44 = vpack.c.bf16 %v10563_v14, %v10562_v48  ;;  %11095 = vst [vmem:[#allocation3 + $0x78] sm:$0xff] %v10563_v14 }
 0xd51   : > { %v10427_v41 = vpop.permute.xlu1 %10426 }
 0xd52   : > { %v10365_v6 = vpop.permute.xlu0 %10364  ;;  %10870 = vmatmul.mubr.bf16.gmra.mrb[40].mxu1 %v10628_v44  ;;  %v10596_v22 = vsel %vm1458_vm5, %v10580_v32, %v10427_v41 }
 0xd53   : > { %v10581_v4 = vsel %vm892_vm2, %v19240_v51, %v10365_v6  ;;  %v10532_v51 = vsel %vm892_vm2, %v19201_v62, %v10171_v27 }
 0xd54   : > { %v10597_v37 = vsel %vm1458_vm5, %v10581_v4, %v19254_v30 }
 0xd55   : > { %v10235_v19 = vpop.permute.xlu1 %10234  ;;  %v10613_v55 = vsel %vm5420_vm7, %v10597_v37, %v19270_v42 }
 0xd56   : > { %v10173_v11 = vpop.permute.xlu0 %10172  ;;  %11102 = vst [vmem:[#allocation3 + $0xb0] sm:$0xff] %v10613_v55  ;;  %v10548_v30 = vsel %vm1458_vm5, %v10532_v51, %v10235_v19 }
 0xd57   : > { %v10533_v42 = vsel %vm892_vm2, %v19215_v53, %v10173_v11 }
 0xd59   : > { %v10491_v5 = vpop.permute.xlu1 %10490 }
 0xd5a   : > { %v10612_v35 = vsel %vm5420_vm7, %v10596_v22, %v10491_v5  ;;  %v10237_v40 = vpop.permute.xlu0 %10236 }
 0xd5b   : > { %v10632_v2 = vpack.c.bf16 %v10613_v55, %v10612_v35  ;;  %11099 = vst [vmem:[#allocation3 + $0x98] sm:$0xff] %v10612_v35  ;;  %v10549_v60 = vsel %vm1458_vm5, %v10533_v42, %v10237_v40 }
 0xd5d   : > { %v10299_v28 = vpop.permute.xlu1 %10298  ;;  %10877 = vmatprep.mubr.bf16.mxu1 %v10632_v2 }
 0xd5e   : > { %v10564_v54 = vsel %vm5420_vm7, %v10548_v30, %v10299_v28  ;;  %v10301_v20 = vpop.permute.xlu0 %10300 }
 0xd5f   : > { %11098 = vst [vmem:[#allocation3 + $0x90] sm:$0xff] %v10564_v54  ;;  %v10565_v59 = vsel %vm5420_vm7, %v10549_v60, %v10301_v20 }
 0xd60   : > { %v10631_v31 = vpack.c.bf16 %v10565_v59, %v10564_v54  ;;  %11101 = vst [vmem:[#allocation3 + $0xa8] sm:$0xff] %v10565_v59 }
 0xd61   : > { %v10367_v23 = vpop.permute.xlu1 %10366 }
 0xd62   : > { %10878 = vmatmul.mubr.bf16.gmra.mrb[44].mxu1 %v10631_v31  ;;  %v10369_v62 = vpop.permute.xlu0 %10368  ;;  %v10582_v53 = vsel %vm892_vm2, %v19258_v25, %v10367_v23 }
 0xd63   : > { %v10583_v25 = vsel %vm892_vm2, %v19262_v34, %v10369_v62 }
 0xd65   : > { %v10431_v10 = vpop.permute.xlu1 %10430 }
 0xd66   : > { %v10177_v33 = vpop.permute.xlu0 %10176  ;;  %v10598_v7 = vsel %vm1458_vm5, %v10582_v53, %v10431_v10 }
 0xd67   : > { %v10535_v44 = vsel %vm892_vm2, %v19272_v49, %v10177_v33 }
 0xd69   : > { %v10495_v13 = vpop.permute.xlu1 %10494 }
 0xd6a   : > { %v10614_v48 = vsel %vm5420_vm7, %v10598_v7, %v10495_v13  ;;  %v10433_v17 = vpop.permute.xlu0 %10432 }
 0xd6b   : > { %11105 = vst [vmem:[#allocation3 + $0xc8] sm:$0xff] %v10614_v48  ;;  %v10599_v43 = vsel %vm1458_vm5, %v10583_v25, %v10433_v17 }
 0xd6d   : > { %v10303_v1 = vpop.permute.xlu1 %10302 }
 0xd6e   : > { %v10566_v47 = vsel %vm5420_vm7, %v10550_v26, %v10303_v1  ;;  %v10241_v38 = vpop.permute.xlu0 %10240 }
 0xd6f   : > { %11104 = vst [vmem:[#allocation3 + $0xc0] sm:$0xff] %v10566_v47  ;;  %v10551_v34 = vsel %vm1458_vm5, %v10535_v44, %v10241_v38 }
 0xd70   : > { %v19449_v58 = vpop.f32.mrb[36].mxu0 }
 0xd71   : > { %v19453_v29 = vpop.f32.mrb[37].mxu0  ;;  %v10371_v9 = vpop.permute.xlu1 %10370 }
 0xd72   : > { %v19456_v27 = vpop.f32.mrb[38].mxu0  ;;  %v10497_v12 = vpop.permute.xlu0 %10496  ;;  %v10584_v40 = vsel %vm892_vm2, %v19283_v52, %v10371_v9 }
 0xd73   : > { %v19458_v57 = vpop.f32.mrb[39].mxu0  ;;  %v10615_v61 = vsel %vm5420_vm7, %v10599_v43, %v10497_v12 }
 0xd74   : > { %v10635_v14 = vpack.c.bf16 %v10615_v61, %v10614_v48  ;;  %11108 = vst [vmem:[#allocation3 + $0xe0] sm:$0xff] %v10615_v61 }
 0xd75   : > { %v10179_v41 = vpop.permute.xlu1 %10178 }
 0xd76   : > { %10885 = vmatprep.mubr.bf16.mxu1 %v10635_v14  ;;  %v10305_v6 = vpop.permute.xlu0 %10304  ;;  %v10536_v59 = vsel %vm892_vm2, %v19252_v24, %v10179_v41 }
 0xd77   : > { %v10567_v4 = vsel %vm5420_vm7, %v10551_v34, %v10305_v6 }
 0xd78   : > { %v10634_v37 = vpack.c.bf16 %v10567_v4, %v10566_v47  ;;  %11107 = vst [vmem:[#allocation3 + $0xd8] sm:$0xff] %v10567_v4  ;;  %v19465_v19 = vpop.f32.mrb[40].mxu0 }
 0xd79   : > { %v19467_v55 = vpop.f32.mrb[41].mxu0  ;;  %v10435_v11 = vpop.permute.xlu1 %10434 }
 0xd7a   : > { %v19469_v32 = vpop.f32.mrb[42].mxu0  ;;  %v10373_v22 = vpop.permute.xlu0 %10372  ;;  %10886 = vmatmul.mubr.bf16.gmra.mrb[48].mxu1 %v10634_v37  ;;  %v10600_v51 = vsel %vm1458_vm5, %v10584_v40, %v10435_v11 }
 0xd7b   : > { %v19471_v5 = vpop.f32.mrb[43].mxu0  ;;  %v10585_v33 = vsel %vm892_vm2, %v19305_v16, %v10373_v22 }
 0xd7d   : > { %v10243_v49 = vpop.permute.xlu1 %10242 }
 0xd7e   : > { %v10181_v35 = vpop.permute.xlu0 %10180  ;;  %v10552_v52 = vsel %vm1458_vm5, %v10536_v59, %v10243_v49 }
 0xd7f   : > { %v10537_v26 = vsel %vm892_vm2, %v19266_v45, %v10181_v35 }
 0xd80   : > { %v19475_v2 = vpop.f32.mrb[44].mxu0 }
 0xd81   : > { %v19478_v30 = vpop.f32.mrb[45].mxu0  ;;  %v10499_v42 = vpop.permute.xlu1 %10498 }
 0xd82   : > { %v19480_v28 = vpop.f32.mrb[46].mxu0  ;;  %v10616_v60 = vsel %vm5420_vm7, %v10600_v51, %v10499_v42  ;;  %v10437_v54 = vpop.permute.xlu0 %10436 }
 0xd83   : > { %v19483_v20 = vpop.f32.mrb[47].mxu0  ;;  %11111 = vst [vmem:[#allocation3 + $0xf8] sm:$0xff] %v10616_v60  ;;  %v10601_v7 = vsel %vm1458_vm5, %v10585_v33, %v10437_v54 }
 0xd85   : > { %v10307_v31 = vpop.permute.xlu1 %10306 }
 0xd86   : > { %v10568_v23 = vsel %vm5420_vm7, %v10552_v52, %v10307_v31  ;;  %v10245_v62 = vpop.permute.xlu0 %10244 }
 0xd87   : > { %11110 = vst [vmem:[#allocation3 + $0xf0] sm:$0xff] %v10568_v23  ;;  %v10553_v16 = vsel %vm1458_vm5, %v10537_v26, %v10245_v62 }
 0xd88   : > { %v19489_v10 = vpop.f32.mrb[48].mxu0 }
 0xd89   : > { %v19493_v8 = vpop.f32.mrb[49].mxu0  ;;  %v10375_v53 = vpop.permute.xlu1 %10374 }
 0xd8a   : > { %v19496_v13 = vpop.f32.mrb[50].mxu0  ;;  %v10501_v24 = vpop.permute.xlu0 %10500  ;;  %v10586_v14 = vsel %vm892_vm2, %v19326_v0, %v10375_v53 }
 0xd8b   : > { %v19498_v18 = vpop.f32.mrb[51].mxu0  ;;  %v10617_v48 = vsel %vm5420_vm7, %v10601_v7, %v10501_v24 }
 0xd8c   : > { %v10638_v17 = vpack.c.bf16 %v10617_v48, %v10616_v60  ;;  %11114 = vst [vmem:[#allocation3 + $0x110] sm:$0xff] %v10617_v48 }
 0xd8d   : > { %v10183_v1 = vpop.permute.xlu1 %10182 }
 0xd8e   : > { %v10309_v47 = vpop.permute.xlu0 %10308  ;;  %10893 = vmatprep.mubr.bf16.mxu1 %v10638_v17  ;;  %v10538_v6 = vsel %vm892_vm2, %v19295_v36, %v10183_v1 }
 0xd8f   : > { %v10569_v38 = vsel %vm5420_vm7, %v10553_v16, %v10309_v47 }
 0xd90   : > { %v10637_v25 = vpack.c.bf16 %v10569_v38, %v10568_v23  ;;  %11113 = vst [vmem:[#allocation3 + $0x108] sm:$0xff] %v10569_v38 }
 0xd91   : > { %v10439_v9 = vpop.permute.xlu1 %10438 }
 0xd92   : > { %v10377_v43 = vpop.permute.xlu0 %10376  ;;  %10894 = vmatmul.mubr.bf16.gmra.mrb[52].mxu1 %v10637_v25  ;;  %v10602_v44 = vsel %vm1458_vm5, %v10586_v14, %v10439_v9 }
 0xd93   : > { %v10587_v0 = vsel %vm892_vm2, %v19352_v46, %v10377_v43 }
 0xd95   : > { %v10247_v12 = vpop.permute.xlu1 %10246 }
 0xd96   : > { %v10185_v61 = vpop.permute.xlu0 %10184  ;;  %v10554_v4 = vsel %vm1458_vm5, %v10538_v6, %v10247_v12 }
 0xd97   : > { %v10539_v36 = vsel %vm892_vm2, %v19309_v21, %v10185_v61 }
 0xd99   : > { %v10503_v45 = vpop.permute.xlu1 %10502 }
 0xd9a   : > { %v10618_v41 = vsel %vm5420_vm7, %v10602_v44, %v10503_v45  ;;  %v10441_v34 = vpop.permute.xlu0 %10440 }
 0xd9b   : > { %11117 = vst [vmem:[#allocation3 + $0x128] sm:$0xff] %v10618_v41  ;;  %v10603_v35 = vsel %vm1458_vm5, %v10587_v0, %v10441_v34 }
 0xd9d   : > { %v10311_v37 = vpop.permute.xlu1 %10310 }
 0xd9e   : > { %v10570_v11 = vsel %vm5420_vm7, %v10554_v4, %v10311_v37  ;;  %v10249_v22 = vpop.permute.xlu0 %10248 }
 0xd9f   : > { %11116 = vst [vmem:[#allocation3 + $0x120] sm:$0xff] %v10570_v11  ;;  %v10555_v54 = vsel %vm1458_vm5, %v10539_v36, %v10249_v22 }
 0xda1   : > { %v10379_v49 = vpop.permute.xlu1 %10378 }
 0xda2   : > { %v10505_v40 = vpop.permute.xlu0 %10504  ;;  %v10588_v24 = vsel %vm892_vm2, %v19374_v15, %v10379_v49 }
 0xda3   : > { %v10619_v51 = vsel %vm5420_vm7, %v10603_v35, %v10505_v40 }
 0xda4   : > { %v10641_v42 = vpack.c.bf16 %v10619_v51, %v10618_v41  ;;  %11120 = vst [vmem:[#allocation3 + $0x140] sm:$0xff] %v10619_v51 }
 0xda5   : > { %v10187_v60 = vpop.permute.xlu1 %10186 }
 0xda6   : > { %v10313_v59 = vpop.permute.xlu0 %10312  ;;  %10901 = vmatprep.mubr.bf16.mxu1 %v10641_v42 }
 0xda7   : > { %v10571_v52 = vsel %vm5420_vm7, %v10555_v54, %v10313_v59 }
 0xda8   : > { %v10640_v31 = vpack.c.bf16 %v10571_v52, %v10570_v11  ;;  %11119 = vst [vmem:[#allocation3 + $0x138] sm:$0xff] %v10571_v52 }
 0xda9   : > { %v10443_v46 = vpop.permute.xlu1 %10442 }
 0xdaa   : > { %v10381_v23 = vpop.permute.xlu0 %10380  ;;  %10902 = vmatmul.mubr.bf16.gmra.mrb[56].mxu1 %v10640_v31  ;;  %v10604_v48 = vsel %vm1458_vm5, %v10588_v24, %v10443_v46 }
 0xdab   : > { %v10589_v62 = vsel %vm892_vm2, %v19397_v39, %v10381_v23 }
 0xdac   : > { %v10605_v33 = vsel %vm1458_vm5, %v10589_v62, %v19277_v3  ;;  %v10540_v3 = vsel %vm892_vm2, %v19341_v56, %v10187_v60  ;;  %v19542_v56 = vld [vmem:[%s19632_s15] ss:$0 sm:$0xff] }
 0xdad   : > { %v10251_v53 = vpop.permute.xlu1 %10250  ;;  %v10621_v21 = vsel %vm5420_vm7, %v10605_v33, %v19291_v63 }
 0xdae   : > { %v10189_v7 = vpop.permute.xlu0 %10188  ;;  %11126 = vst [vmem:[#allocation3 + $0x170] sm:$0xff] %v10621_v21  ;;  %v10556_v39 = vsel %vm1458_vm5, %v10540_v3, %v10251_v53 }
 0xdaf   : > { %v10541_v63 = vsel %vm892_vm2, %v19356_v50, %v10189_v7 }
 0xdb1   : > { %v10507_v17 = vpop.permute.xlu1 %10506 }
 0xdb2   : > { %v10620_v26 = vsel %vm5420_vm7, %v10604_v48, %v10507_v17  ;;  %v10253_v1 = vpop.permute.xlu0 %10252 }
 0xdb3   : > { %v10644_v16 = vpack.c.bf16 %v10621_v21, %v10620_v26  ;;  %11123 = vst [vmem:[#allocation3 + $0x158] sm:$0xff] %v10620_v26  ;;  %v10557_v15 = vsel %vm1458_vm5, %v10541_v63, %v10253_v1 }
 0xdb5   : > { %v10315_v47 = vpop.permute.xlu1 %10314  ;;  %10909 = vmatprep.mubr.bf16.mxu1 %v10644_v16 }
 0xdb6   : > { %v10572_v38 = vsel %vm5420_vm7, %v10556_v39, %v10315_v47  ;;  %v10317_v25 = vpop.permute.xlu0 %10316 }
 0xdb7   : > { %11122 = vst [vmem:[#allocation3 + $0x150] sm:$0xff] %v10572_v38  ;;  %v10573_v9 = vsel %vm5420_vm7, %v10557_v15, %v10317_v25 }
 0xdb8   : > { %v10643_v43 = vpack.c.bf16 %v10573_v9, %v10572_v38  ;;  %11125 = vst [vmem:[#allocation3 + $0x168] sm:$0xff] %v10573_v9 }
 0xdba   : > { %10910 = vmatmul.mubr.bf16.gmra.mrb[60].mxu1 %v10643_v43 }
 0xdf5   : > { %v12551_v12 = vpop.f32.mrb[32].mxu1 }
 0xdf6   : > { %v12552_v50 = vpop.f32.mrb[33].mxu1 }
 0xdf7   : > { %v12553_v61 = vadd.f32 %v12552_v50, %v12551_v12  ;;  %v12554_v14 = vpop.f32.mrb[34].mxu1 }
 0xdf8   : > { %v12555_v44 = vpop.f32.mrb[35].mxu1 }
 0xdf9   : > { %v10856_v45 = vadd.f32 %v12553_v61, %v19542_v56  ;;  %v12556_v41 = vadd.f32 %v12555_v44, %v12554_v14 }
 0xdfb   : > { %v10953_v34 = vadd.f32 %v19453_v29, %v10856_v45  ;;  %v10859_v6 = vadd.f32 %v12556_v41, %v19542_v56 }
 0xdfd   : > { %vm11015_vm2 = vcmp.ge.f32.partialorder %v10953_v34, 0.0  ;;  %v11031_v4 = vmul.f32 0.2, %v10953_v34  ;;  %v10956_v37 = vadd.f32 %v19458_v57, %v10859_v6 }
 0xdff   : > { %v11047_v11 = vsel %vm11015_vm2, %v10953_v34, %v11031_v4  ;;  %vm11016_vm3 = vcmp.ge.f32.partialorder %v10956_v37, 0.0  ;;  %v11032_v22 = vmul.f32 0.2, %v10956_v37 }
 0xe00   : > { %11825 = vst.msk [vmem:[%s14391_s17 + $0x80] sm:$0xff] %vm1458_vm5, %v11047_v11 }
 0xe01   : > { %v11048_v0 = vsel %vm11016_vm3, %v10956_v37, %v11032_v22 }
 0xe02   : > { %11826 = vst.msk [vmem:[%s14391_s17 + $0x88] sm:$0xff] %vm1458_vm5, %v11048_v0 }
 0xe0d   : > { %v12557_v49 = vpop.f32.mrb[36].mxu1 }
 0xe0e   : > { %v12558_v35 = vpop.f32.mrb[37].mxu1 }
 0xe0f   : > { %v12559_v40 = vadd.f32 %v12558_v35, %v12557_v49  ;;  %v12560_v29 = vpop.f32.mrb[38].mxu1 }
 0xe10   : > { %v12561_v51 = vpop.f32.mrb[39].mxu1 }
 0xe11   : > { %v10864_v42 = vadd.f32 %v12559_v40, %v19542_v56  ;;  %v12562_v36 = vadd.f32 %v12561_v51, %v12560_v29 }
 0xe13   : > { %v10961_v57 = vadd.f32 %v19449_v58, %v10864_v42  ;;  %v10867_v60 = vadd.f32 %v12562_v36, %v19542_v56 }
 0xe15   : > { %vm11017_vm4 = vcmp.ge.f32.partialorder %v10961_v57, 0.0  ;;  %v11033_v54 = vmul.f32 0.2, %v10961_v57  ;;  %v10964_v59 = vadd.f32 %v19456_v27, %v10867_v60 }
 0xe17   : > { %v11049_v52 = vsel %vm11017_vm4, %v10961_v57, %v11033_v54  ;;  %vm11018_vm6 = vcmp.ge.f32.partialorder %v10964_v59, 0.0  ;;  %v11034_v31 = vmul.f32 0.2, %v10964_v59 }
 0xe18   : > { %11827 = vst.msk [vmem:[%s14391_s17 + $0x90] sm:$0xff] %vm1458_vm5, %v11049_v52 }
 0xe19   : > { %v11050_v46 = vsel %vm11018_vm6, %v10964_v59, %v11034_v31 }
 0xe1a   : > { %11828 = vst.msk [vmem:[%s14391_s17 + $0x98] sm:$0xff] %vm1458_vm5, %v11050_v46 }
 0xe25   : > { %v12563_v23 = vpop.f32.mrb[40].mxu1 }
 0xe26   : > { %v12564_v62 = vpop.f32.mrb[41].mxu1 }
 0xe27   : > { %v12565_v33 = vadd.f32 %v12564_v62, %v12563_v23  ;;  %v12566_v58 = vpop.f32.mrb[42].mxu1 }
 0xe28   : > { %v12567_v53 = vpop.f32.mrb[43].mxu1 }
 0xe29   : > { %v10872_v21 = vadd.f32 %v12565_v33, %v19542_v56  ;;  %v12568_v7 = vadd.f32 %v12567_v53, %v12566_v58 }
 0xe2b   : > { %v10969_v27 = vadd.f32 %v19467_v55, %v10872_v21  ;;  %v10875_v24 = vadd.f32 %v12568_v7, %v19542_v56 }
 0xe2d   : > { %vm11019_vm7 = vcmp.ge.f32.partialorder %v10969_v27, 0.0  ;;  %v11035_v48 = vmul.f32 0.2, %v10969_v27  ;;  %v10972_v17 = vadd.f32 %v19471_v5, %v10875_v24 }
 0xe2f   : > { %v11051_v26 = vsel %vm11019_vm7, %v10969_v27, %v11035_v48  ;;  %vm11020_vm14 = vcmp.ge.f32.partialorder %v10972_v17, 0.0  ;;  %v11036_v1 = vmul.f32 0.2, %v10972_v17 }
 0xe30   : > { %11829 = vst.msk [vmem:[%s14391_s17 + $0xa0] sm:$0xff] %vm1458_vm5, %v11051_v26 }
 0xe31   : > { %v11052_v16 = vsel %vm11020_vm14, %v10972_v17, %v11036_v1 }
 0xe32   : > { %11830 = vst.msk [vmem:[%s14391_s17 + $0xa8] sm:$0xff] %vm1458_vm5, %v11052_v16 }
 0xe35   : > { %v12569_v3 = vpop.f32.mrb[44].mxu1 }
 0xe36   : > { %v12570_v39 = vpop.f32.mrb[45].mxu1 }
 0xe37   : > { %v12571_v63 = vadd.f32 %v12570_v39, %v12569_v3  ;;  %v12572_v55 = vpop.f32.mrb[46].mxu1 }
 0xe38   : > { %v12573_v47 = vpop.f32.mrb[47].mxu1 }
 0xe39   : > { %v10880_v15 = vadd.f32 %v12571_v63, %v19542_v56  ;;  %v12574_v38 = vadd.f32 %v12573_v47, %v12572_v55 }
 0xe3b   : > { %v10977_v5 = vadd.f32 %v19465_v19, %v10880_v15  ;;  %v10883_v25 = vadd.f32 %v12574_v38, %v19542_v56 }
 0xe3d   : > { %vm11021_vm15 = vcmp.ge.f32.partialorder %v10977_v5, 0.0  ;;  %v11037_v9 = vmul.f32 0.2, %v10977_v5  ;;  %v10980_v43 = vadd.f32 %v19469_v32, %v10883_v25 }
 0xe3f   : > { %v11053_v12 = vsel %vm11021_vm15, %v10977_v5, %v11037_v9  ;;  %vm11022_vm0 = vcmp.ge.f32.partialorder %v10980_v43, 0.0  ;;  %v11038_v50 = vmul.f32 0.2, %v10980_v43 }
 0xe40   : > { %11831 = vst.msk [vmem:[%s14391_s17 + $0xb0] sm:$0xff] %vm1458_vm5, %v11053_v12 }
 0xe41   : > { %v11054_v61 = vsel %vm11022_vm0, %v10980_v43, %v11038_v50 }
 0xe42   : > { %11832 = vst.msk [vmem:[%s14391_s17 + $0xb8] sm:$0xff] %vm1458_vm5, %v11054_v61 }
 0xe4d   : > { %v12575_v14 = vpop.f32.mrb[48].mxu1 }
 0xe4e   : > { %v12576_v44 = vpop.f32.mrb[49].mxu1 }
 0xe4f   : > { %v12577_v45 = vadd.f32 %v12576_v44, %v12575_v14  ;;  %v12578_v19 = vpop.f32.mrb[50].mxu1 }
 0xe50   : > { %v12579_v41 = vpop.f32.mrb[51].mxu1 }
 0xe51   : > { %v10888_v34 = vadd.f32 %v12577_v45, %v19542_v56  ;;  %v12580_v6 = vadd.f32 %v12579_v41, %v12578_v19 }
 0xe53   : > { %v10985_v32 = vadd.f32 %v19478_v30, %v10888_v34  ;;  %v10891_v4 = vadd.f32 %v12580_v6, %v19542_v56 }
 0xe55   : > { %vm11023_vm1 = vcmp.ge.f32.partialorder %v10985_v32, 0.0  ;;  %v11039_v37 = vmul.f32 0.2, %v10985_v32  ;;  %v10988_v11 = vadd.f32 %v19483_v20, %v10891_v4 }
 0xe57   : > { %v11055_v22 = vsel %vm11023_vm1, %v10985_v32, %v11039_v37  ;;  %vm11024_vm8 = vcmp.ge.f32.partialorder %v10988_v11, 0.0  ;;  %v11040_v0 = vmul.f32 0.2, %v10988_v11 }
 0xe58   : > { %11833 = vst.msk [vmem:[%s14391_s17 + $0xc0] sm:$0xff] %vm1458_vm5, %v11055_v22 }
 0xe59   : > { %v11056_v49 = vsel %vm11024_vm8, %v10988_v11, %v11040_v0 }
 0xe5a   : > { %11834 = vst.msk [vmem:[%s14391_s17 + $0xc8] sm:$0xff] %vm1458_vm5, %v11056_v49 }
 0xe65   : > { %v12581_v35 = vpop.f32.mrb[52].mxu1 }
 0xe66   : > { %v12582_v40 = vpop.f32.mrb[53].mxu1 }
 0xe67   : > { %v12583_v29 = vadd.f32 %v12582_v40, %v12581_v35  ;;  %v12584_v30 = vpop.f32.mrb[54].mxu1 }
 0xe68   : > { %v12585_v51 = vpop.f32.mrb[55].mxu1 }
 0xe69   : > { %v10896_v42 = vadd.f32 %v12583_v29, %v19542_v56  ;;  %v12586_v36 = vadd.f32 %v12585_v51, %v12584_v30 }
 0xe6b   : > { %v10993_v20 = vadd.f32 %v19475_v2, %v10896_v42  ;;  %v10899_v57 = vadd.f32 %v12586_v36, %v19542_v56 }
 0xe6d   : > { %vm11025_vm9 = vcmp.ge.f32.partialorder %v10993_v20, 0.0  ;;  %v11041_v60 = vmul.f32 0.2, %v10993_v20  ;;  %v10996_v54 = vadd.f32 %v19480_v28, %v10899_v57 }
 0xe6f   : > { %v11057_v59 = vsel %vm11025_vm9, %v10993_v20, %v11041_v60  ;;  %vm11026_vm10 = vcmp.ge.f32.partialorder %v10996_v54, 0.0  ;;  %v11042_v52 = vmul.f32 0.2, %v10996_v54 }
 0xe70   : > { %11835 = vst.msk [vmem:[%s14391_s17 + $0xd0] sm:$0xff] %vm1458_vm5, %v11057_v59 }
 0xe71   : > { %v11058_v31 = vsel %vm11026_vm10, %v10996_v54, %v11042_v52 }
 0xe72   : > { %11836 = vst.msk [vmem:[%s14391_s17 + $0xd8] sm:$0xff] %vm1458_vm5, %v11058_v31 }
 0xe7d   : > { %v12587_v46 = vpop.f32.mrb[56].mxu1 }
 0xe7e   : > { %v12588_v23 = vpop.f32.mrb[57].mxu1 }
 0xe7f   : > { %v12589_v62 = vadd.f32 %v12588_v23, %v12587_v46  ;;  %v12590_v2 = vpop.f32.mrb[58].mxu1 }
 0xe80   : > { %v12591_v33 = vpop.f32.mrb[59].mxu1 }
 0xe81   : > { %v10904_v58 = vadd.f32 %v12589_v62, %v19542_v56  ;;  %v12592_v53 = vadd.f32 %v12591_v33, %v12590_v2 }
 0xe83   : > { %v11001_v28 = vadd.f32 %v19493_v8, %v10904_v58  ;;  %v10907_v21 = vadd.f32 %v12592_v53, %v19542_v56 }
 0xe85   : > { %vm11027_vm11 = vcmp.ge.f32.partialorder %v11001_v28, 0.0  ;;  %v11043_v7 = vmul.f32 0.2, %v11001_v28  ;;  %v11004_v27 = vadd.f32 %v19498_v18, %v10907_v21 }
 0xe87   : > { %v11059_v24 = vsel %vm11027_vm11, %v11001_v28, %v11043_v7  ;;  %vm11028_vm12 = vcmp.ge.f32.partialorder %v11004_v27, 0.0  ;;  %v11044_v48 = vmul.f32 0.2, %v11004_v27 }
 0xe88   : > { %11837 = vst.msk [vmem:[%s14391_s17 + $0xe0] sm:$0xff] %vm1458_vm5, %v11059_v24 }
 0xe89   : > { %v11060_v17 = vsel %vm11028_vm12, %v11004_v27, %v11044_v48 }
 0xe8a   : > { %11838 = vst.msk [vmem:[%s14391_s17 + $0xe8] sm:$0xff] %vm1458_vm5, %v11060_v17 }
 0xe8d   : > { %v12593_v26 = vpop.f32.mrb[60].mxu1 }
 0xe8e   : > { %v12594_v1 = vpop.f32.mrb[61].mxu1 }
 0xe8f   : > { %v12595_v16 = vadd.f32 %v12594_v1, %v12593_v26  ;;  %v12596_v8 = vpop.f32.mrb[62].mxu1 }
 0xe90   : > { %v12597_v3 = vpop.f32.mrb[63].mxu1 }
 0xe91   : > { %v10912_v39 = vadd.f32 %v12595_v16, %v19542_v56  ;;  %v12598_v63 = vadd.f32 %v12597_v3, %v12596_v8 }
 0xe93   : > { %v11009_v18 = vadd.f32 %v19489_v10, %v10912_v39  ;;  %v10915_v55 = vadd.f32 %v12598_v63, %v19542_v56 }
 0xe95   : > { %vm11029_vm13 = vcmp.ge.f32.partialorder %v11009_v18, 0.0  ;;  %v11045_v47 = vmul.f32 0.2, %v11009_v18  ;;  %v11012_v15 = vadd.f32 %v19496_v13, %v10915_v55 }
 0xe97   : > { %v11061_v38 = vsel %vm11029_vm13, %v11009_v18, %v11045_v47  ;;  %vm11030_vm2 = vcmp.ge.f32.partialorder %v11012_v15, 0.0  ;;  %v11046_v5 = vmul.f32 0.2, %v11012_v15 }
 0xe98   : > { %11839 = vst.msk [vmem:[%s14391_s17 + $0xf0] sm:$0xff] %vm1458_vm5, %v11061_v38 }
 0xe99   : > { %v11062_v25 = vsel %vm11030_vm2, %v11012_v15, %v11046_v5 }
 0xe9a   : > { %11840 = vst.msk [vmem:[%s14391_s17 + $0xf8] sm:$0xff] %vm1458_vm5, %v11062_v25 }
 0xe9b PF: > { %s26_s23 = sadd.s32 1, %s14270_s23   ;;  %s20006_s19 = sld [smem:[#allocation4_spill]] }
 0xe9c   : > { %p23_p6 = scmp.ge.s32.totalorder %s26_s23, 4   ;;  %s20007_s21 = smov %s14266_s22 }
 0xe9e   :  { %25 = sbr.rel (!%p23_p6) target bundleno = 3 (0x3), region = 133 }
 0xea1   : > { %s20008_s22 = smov %s20006_s19 }

</bundles_post_ra>
